<compile_context>
chip_gen: v6e
topology: v6e:2x2x1
jax: 0.10.0
libtpu: 0.0.40
codegen_flags: <defaults>
</compile_context>

<pallas_src>
import jax
import jax.numpy as jnp
from jax import lax
from jax.experimental import pallas as pl
from jax.experimental.pallas import tpu as pltpu


def _align(n, m):
    return ((n + m - 1) // m) * m


def _in_offsets(a_dim, o_dim, l_dim):
    """Lane offsets of (action | obs | eps_prior | eps_post) in the packed slab."""
    off_a = 0
    off_o = _align(a_dim, 32)
    off_ep = off_o + _align(o_dim, 32)
    off_eq = off_ep + _align(l_dim, 32)
    width = _align(off_eq + l_dim, 128)
    return off_a, off_o, off_ep, off_eq, width


def _out_layout(l_dim, h_dim):
    """Output slab: [prior(2L)|p_samp(L)|pad] ++ [post(2L)|q_samp(L)|belief(H)|pad]."""
    half0 = _align(3 * l_dim, 128)
    half1 = _align(3 * l_dim + h_dim, 128)
    return half0, half0 + half1


def _layernorm(x, gamma, beta, eps=1e-3):
    mu = jnp.mean(x, axis=-1, keepdims=True)
    var = jnp.mean((x - mu) ** 2, axis=-1, keepdims=True)
    return (x - mu) * lax.rsqrt(var + eps) * gamma + beta


def _elu(x):
    # F.elu (alpha=1)
    return jnp.where(x > 0, x, jnp.exp(x) - 1.0)


def rssm_rollout_kernel(
    inp_ref,                    # [T, B, IN_W] f32  packed (action|obs|eps_p|eps_q)
    belief0_ref, latent0_ref,   # [B, H], [B, L] f32
    w_sa_l_ref, w_sa_a_ref,     # [L, H], [seg_a, H]   bf16
    w_i_ref, w_h_ref,           # [H, 3H], [H, 3H]     bf16 (gate order r|z|n)
    w_pq1_ref, w_q1o_ref,       # [H, 2M], [seg_o, M]  bf16
    w_p2_ref, w_q2_ref,         # [M, 2L], [M, 2L]     bf16
    vh_ref, vg_ref, vm_ref, vl_ref,   # [3,H], [2,3H], [6,M], [2,2L] f32
    out_ref,                    # [T, B, OUT_W] f32
):
    f32, bf16 = jnp.float32, jnp.bfloat16
    T, B, out_w = out_ref.shape
    H = belief0_ref.shape[1]
    L = latent0_ref.shape[1]
    seg_a = w_sa_a_ref.shape[0]
    seg_o, M = w_q1o_ref.shape
    _, off_o, off_ep, off_eq, _ = _in_offsets(seg_a, seg_o, L)
    half0_w, _ = _out_layout(L, H)

    # ---- loop-invariant bias / LayerNorm-affine rows, broadcast once ----
    def brow(ref, i, width):
        return jnp.broadcast_to(ref[i:i + 1, :], (B, width))

    b_sa, sa_g, sa_b = [brow(vh_ref, i, H) for i in range(3)]
    b_gi, b_gh = [brow(vg_ref, i, 3 * H) for i in range(2)]
    p_b1, p_g1, p_be1, q_b1, q_g1, q_be1 = [brow(vm_ref, i, M) for i in range(6)]
    p_b2, q_b2 = [brow(vl_ref, i, 2 * L) for i in range(2)]

    pad0 = half0_w - 3 * L
    pad1 = out_w - half0_w - (3 * L + H)
    zeros0 = jnp.zeros((B, pad0), f32) if pad0 else None
    zeros1 = jnp.zeros((B, pad1), f32) if pad1 else None

    def mm(x, w_ref):
        # bf16 MXU operands, f32 accumulation; elementwise math stays f32.
        return jnp.dot(x.astype(bf16), w_ref[...], preferred_element_type=f32)

    def step(t, carry):
        belief, latent = carry                         # [B, H], [B, L] f32
        x_t = inp_ref[t]                               # [B, IN_W] f32
        action = x_t[:, 0:off_o]                       # zero-padded action segment
        obs = x_t[:, off_o:off_ep]                     # zero-padded obs segment
        eps_p = x_t[:, off_ep:off_ep + L]
        eps_q = x_t[:, off_eq:off_eq + L]

        # sa_embed = ELU(LayerNorm(Linear(cat([latent, action]))))
        sa = mm(latent, w_sa_l_ref) + mm(action, w_sa_a_ref) + b_sa
        sa = _elu(_layernorm(sa, sa_g, sa_b, eps=1e-3))

        # nn.GRUCell: fused 3-gate matmuls (gate order r|z|n)
        gi = mm(sa, w_i_ref) + b_gi                    # [B, 3H]
        gh = mm(belief, w_h_ref) + b_gh                # [B, 3H]
        r = jax.nn.sigmoid(gi[:, 0:H] + gh[:, 0:H])
        z = jax.nn.sigmoid(gi[:, H:2 * H] + gh[:, H:2 * H])
        n = jnp.tanh(gi[:, 2 * H:3 * H] + r * gh[:, 2 * H:3 * H])
        belief_new = (1.0 - z) * n + z * belief

        # prior / posterior hidden layers: one fused [H, 2M] matmul,
        # LayerNorm applied separately per 64-lane head (correctness!).
        pq = mm(belief_new, w_pq1_ref)                 # [B, 2M]
        ph = _elu(_layernorm(pq[:, 0:M] + p_b1, p_g1, p_be1, eps=1e-3))
        qh = _elu(_layernorm(pq[:, M:2 * M] + mm(obs, w_q1o_ref) + q_b1,
                             q_g1, q_be1, eps=1e-3))

        prior = mm(ph, w_p2_ref) + p_b2                # [B, 2L] = [mean | std-logit]
        post = mm(qh, w_q2_ref) + q_b2
        p_samp = prior[:, 0:L] + (2.0 * jax.nn.sigmoid(prior[:, L:2 * L]) + 0.1) * eps_p
        q_samp = post[:, 0:L] + (2.0 * jax.nn.sigmoid(post[:, L:2 * L]) + 0.1) * eps_q

        # one lane-dense [B, OUT_W] store per step (two 128-aligned halves)
        h0 = [prior, p_samp] + ([zeros0] if pad0 else [])
        h1 = [post, q_samp, belief_new] + ([zeros1] if pad1 else [])
        out_ref[t] = jnp.concatenate(h0 + h1, axis=-1)

        return belief_new, q_samp                      # chain latent (train rollout)

    lax.fori_loop(0, T, step, (belief0_ref[...], latent0_ref[...]), unroll=True)


def rssm_rollout_forward(init_states, actions, obs_embeds, eps_prior, eps_post, params):
    """Run T RSSMCell steps (train mode) in one fused, gridless Pallas call."""
    (w_sa, b_sa, sa_g, sa_b,
     w_ih, w_hh, b_ih, b_hh,
     p_w1, p_b1, p_g1, p_be1, p_w2, p_b2,
     q_w1, q_b1, q_g1, q_be1, q_w2, q_b2) = params

    belief0, latent0 = init_states
    T, B, A = actions.shape
    H = belief0.shape[1]
    L = latent0.shape[1]
    O = obs_embeds.shape[2]
    M = p_w1.shape[1]
    # Reference module only runs when latent_dim == hidden_dim (GRUCell input width).
    assert L == H, "RSSMCell as written requires latent_dim == hidden_dim"
    assert w_sa.shape == (L + A, H)
    assert w_ih.shape == (H, 3 * H) and w_hh.shape == (H, 3 * H)
    assert p_w1.shape == (H, M) and q_w1.shape == (H + O, M)
    assert p_w2.shape == (M, 2 * L) and q_w2.shape == (M, 2 * L)

    f32, bf16 = jnp.float32, jnp.bfloat16
    row = lambda v: v.reshape(1, -1).astype(f32)

    _, off_o, off_ep, off_eq, in_w = _in_offsets(A, O, L)
    half0_w, out_w = _out_layout(L, H)

    def pad_rows(w, rows):
        return jnp.pad(w, ((0, rows - w.shape[0]), (0, 0))) if rows > w.shape[0] else w

    # bf16 matmul operands (f32 accumulation in-kernel); fused / padded layouts.
    w_sa_l = w_sa[:L].astype(bf16)                                   # [L, H]
    w_sa_a = pad_rows(w_sa[L:], off_o).astype(bf16)                  # [seg_a, H]
    w_i = w_ih.astype(bf16)                                          # [H, 3H]
    w_h = w_hh.astype(bf16)                                          # [H, 3H]
    w_pq1 = jnp.concatenate([p_w1, q_w1[:H]], axis=1).astype(bf16)   # [H, 2M]
    w_q1o = pad_rows(q_w1[H:], off_ep - off_o).astype(bf16)          # [seg_o, M]
    w_p2 = p_w2.astype(bf16)                                         # [M, 2L]
    w_q2 = q_w2.astype(bf16)                                         # [M, 2L]

    # packed small vectors (biases / LayerNorm affine), all f32
    vh = jnp.concatenate([row(b_sa), row(sa_g), row(sa_b)], axis=0)        # [3, H]
    vg = jnp.concatenate([row(b_ih), row(b_hh)], axis=0)                   # [2, 3H]
    vm = jnp.concatenate([row(p_b1), row(p_g1), row(p_be1),
                          row(q_b1), row(q_g1), row(q_be1)], axis=0)       # [6, M]
    vl = jnp.concatenate([row(p_b2), row(q_b2)], axis=0)                   # [2, 2L]

    # one lane-dense packed per-step input slab: action | obs | eps_prior | eps_post
    inp = jnp.zeros((T, B, in_w), f32)
    inp = inp.at[:, :, 0:A].set(actions.astype(f32))
    inp = inp.at[:, :, off_o:off_o + O].set(obs_embeds.astype(f32))
    inp = inp.at[:, :, off_ep:off_ep + L].set(eps_prior.astype(f32))
    inp = inp.at[:, :, off_eq:off_eq + L].set(eps_post.astype(f32))

    vmem = pl.BlockSpec(memory_space=pltpu.MemorySpace.VMEM)
    args = (inp, belief0.astype(f32), latent0.astype(f32),
            w_sa_l, w_sa_a, w_i, w_h, w_pq1, w_q1o, w_p2, w_q2,
            vh, vg, vm, vl)

    # TODO(synk): a core_parallel batch grid axis (v7x 2nd TensorCore) only pays
    # off once the caller supplies >=16 batch rows per core; single-core here.
    slab = pl.pallas_call(
        rssm_rollout_kernel,
        out_shape=jax.ShapeDtypeStruct((T, B, out_w), f32),
        in_specs=[vmem] * len(args),
        out_specs=vmem,
    )(*args)

    prior = slab[:, :, 0:2 * L]
    prior_sample = slab[:, :, 2 * L:3 * L]
    posterior = slab[:, :, half0_w:half0_w + 2 * L]
    posterior_sample = slab[:, :, half0_w + 2 * L:half0_w + 3 * L]
    belief = slab[:, :, half0_w + 3 * L:half0_w + 3 * L + H]
    return prior, prior_sample, posterior, posterior_sample, belief


def rssm_rollout_reference(init_states, actions, obs_embeds, eps_prior, eps_post,
                           params, matmul_dtype=jnp.float32):
    """Pure-JAX reference: T chained RSSMCell.forward steps (train mode)."""
    (w_sa, b_sa, sa_g, sa_b,
     w_ih, w_hh, b_ih, b_hh,
     p_w1, p_b1, p_g1, p_be1, p_w2, p_b2,
     q_w1, q_b1, q_g1, q_be1, q_w2, q_b2) = params
    belief, latent = init_states
    H = belief.shape[1]
    L = latent.shape[1]
    T = actions.shape[0]

    def mm(x, w):
        return jnp.dot(x.astype(matmul_dtype), w.astype(matmul_dtype),
                       preferred_element_type=jnp.float32)

    priors, p_samps, posts, q_samps, beliefs = [], [], [], [], []
    for t in range(T):
        x = jnp.concatenate([latent, actions[t]], axis=-1)
        sa = _elu(_layernorm(mm(x, w_sa) + b_sa, sa_g, sa_b, eps=1e-3))
        gi = mm(sa, w_ih) + b_ih
        gh = mm(belief, w_hh) + b_hh
        r = jax.nn.sigmoid(gi[:, :H] + gh[:, :H])
        z = jax.nn.sigmoid(gi[:, H:2 * H] + gh[:, H:2 * H])
        n = jnp.tanh(gi[:, 2 * H:] + r * gh[:, 2 * H:])
        belief = (1.0 - z) * n + z * belief

        ph = _elu(_layernorm(mm(belief, p_w1) + p_b1, p_g1, p_be1, eps=1e-3))
        prior = mm(ph, p_w2) + p_b2
        p_samp = prior[:, :L] + (2.0 * jax.nn.sigmoid(prior[:, L:]) + 0.1) * eps_prior[t]

        qh_in = jnp.concatenate([belief, obs_embeds[t]], axis=-1)
        qh = _elu(_layernorm(mm(qh_in, q_w1) + q_b1, q_g1, q_be1, eps=1e-3))
        post = mm(qh, q_w2) + q_b2
        q_samp = post[:, :L] + (2.0 * jax.nn.sigmoid(post[:, L:]) + 0.1) * eps_post[t]

        latent = q_samp
        priors.append(prior); p_samps.append(p_samp); posts.append(post)
        q_samps.append(q_samp); beliefs.append(belief)

    stack = lambda xs: jnp.stack(xs, axis=0)
    return stack(priors), stack(p_samps), stack(posts), stack(q_samps), stack(beliefs)


if __name__ == "__main__":
    # cfg: action_dim=8, latent_dim=hidden_dim=belief_dim=32, mlp_dim=64, obs_dim=24
    T, B = 8, 2
    A_DIM, L_DIM, H_DIM, M_DIM, O_DIM = 8, 32, 32, 64, 24

    key = jax.random.PRNGKey(0)
    k_in, k_par = jax.random.split(key)
    kin = jax.random.split(k_in, 4)
    kp = jax.random.split(k_par, 14)

    # init_state: zeros (as in RSSMCell.init_state)
    belief0 = jnp.zeros((B, H_DIM), jnp.float32)
    latent0 = jnp.zeros((B, L_DIM), jnp.float32)
    actions = jax.random.normal(kin[0], (T, B, A_DIM), jnp.float32)
    obs_embeds = jax.random.normal(kin[1], (T, B, O_DIM), jnp.float32)
    eps_prior = jax.random.normal(kin[2], (T, B, L_DIM), jnp.float32)
    eps_post = jax.random.normal(kin[3], (T, B, L_DIM), jnp.float32)

    def w(k, shape, scale=0.1):
        return scale * jax.random.normal(k, shape, jnp.float32)

    params = (
        # state_act_proj: Linear(L+A, H) (stored transposed: [in,out]) + sa_norm
        w(kp[0], (L_DIM + A_DIM, H_DIM)), w(kp[1], (H_DIM,)),
        jnp.ones((H_DIM,), jnp.float32), jnp.zeros((H_DIM,), jnp.float32),
        # nn.GRUCell(H -> H), transposed layout, gate order [r | z | n]
        w(kp[2], (H_DIM, 3 * H_DIM)), w(kp[3], (H_DIM, 3 * H_DIM)),
        w(kp[4], (3 * H_DIM,)), w(kp[5], (3 * H_DIM,)),
        # prior_mlp: Linear(H,M) -> LayerNorm(eps=1e-3) -> ELU -> Linear(M,2L)
        w(kp[6], (H_DIM, M_DIM)), w(kp[7], (M_DIM,)),
        jnp.ones((M_DIM,), jnp.float32), jnp.zeros((M_DIM,), jnp.float32),
        w(kp[8], (M_DIM, 2 * L_DIM)), w(kp[9], (2 * L_DIM,)),
        # post_mlp: Linear(H+O,M) -> LayerNorm(eps=1e-3) -> ELU -> Linear(M,2L)
        w(kp[10], (H_DIM + O_DIM, M_DIM)), w(kp[11], (M_DIM,)),
        jnp.ones((M_DIM,), jnp.float32), jnp.zeros((M_DIM,), jnp.float32),
        w(kp[12], (M_DIM, 2 * L_DIM)), w(kp[13], (2 * L_DIM,)),
    )

    out = rssm_rollout_forward((belief0, latent0), actions, obs_embeds,
                               eps_prior, eps_post, params)
    out = jax.block_until_ready(out)

    # Strict check: same math (bf16 matmul operands, f32 accumulation) in pure JAX.
    ref_bf16 = rssm_rollout_reference((belief0, latent0), actions, obs_embeds,
                                      eps_prior, eps_post, params,
                                      matmul_dtype=jnp.bfloat16)
    # Spec check: full-f32 reference; looser tolerance reflects bf16 MXU operands.
    ref_f32 = rssm_rollout_reference((belief0, latent0), actions, obs_embeds,
                                     eps_prior, eps_post, params,
                                     matmul_dtype=jnp.float32)

    names = ("prior", "prior_sample", "posterior", "posterior_sample", "belief")
    for nm, o, rb, rf in zip(names, out, ref_bf16, ref_f32):
        assert o.shape == rf.shape and o.dtype == rf.dtype, nm
        err_b = float(jnp.max(jnp.abs(o - rb)))
        assert err_b < 2e-3, f"{nm}: max abs err {err_b} vs bf16-matmul reference"
        err_f = float(jnp.max(jnp.abs(o - rf)))
        assert err_f < 3e-2, f"{nm}: max abs err {err_f} vs f32 reference"

    # TODO(synk): NormGRUCell (cfg.norm_cell=True) branch and eval/'rollout' mode
    # (posterior=None) are not implemented; standard nn.GRUCell train mode only.
    print("KERNEL_OK")
</pallas_src>

<mosaic_0001>
module attributes {stable_mosaic.version = 11 : i64} {
  func.func @rssm_rollout_kernel(%arg0: memref<8x2x128xf32, #tpu.memory_space<vmem>>, %arg1: memref<2x32xf32, #tpu.memory_space<vmem>>, %arg2: memref<2x32xf32, #tpu.memory_space<vmem>>, %arg3: memref<32x32xbf16, #tpu.memory_space<vmem>>, %arg4: memref<32x32xbf16, #tpu.memory_space<vmem>>, %arg5: memref<32x96xbf16, #tpu.memory_space<vmem>>, %arg6: memref<32x96xbf16, #tpu.memory_space<vmem>>, %arg7: memref<32x128xbf16, #tpu.memory_space<vmem>>, %arg8: memref<32x64xbf16, #tpu.memory_space<vmem>>, %arg9: memref<64x64xbf16, #tpu.memory_space<vmem>>, %arg10: memref<64x64xbf16, #tpu.memory_space<vmem>>, %arg11: memref<3x32xf32, #tpu.memory_space<vmem>>, %arg12: memref<2x96xf32, #tpu.memory_space<vmem>>, %arg13: memref<6x64xf32, #tpu.memory_space<vmem>>, %arg14: memref<2x64xf32, #tpu.memory_space<vmem>>, %arg15: memref<8x2x256xf32, #tpu.memory_space<vmem>>) attributes {dimension_semantics = [], scalar_prefetch = 0 : i64, scratch_operands = 0 : i64, tpu.core_type = #tpu.core_type<tc>} {
    %c0 = arith.constant 0 : index
    %c0_0 = arith.constant 0 : index
    %0 = vector.load %arg11[%c0, %c0_0] : memref<3x32xf32, #tpu.memory_space<vmem>>, vector<1x32xf32>
    %1 = vector.shape_cast %0 : vector<1x32xf32> to vector<1x32xf32>
    %2 = vector.broadcast %1 : vector<1x32xf32> to vector<2x32xf32>
    %c1 = arith.constant 1 : index
    %c0_1 = arith.constant 0 : index
    %3 = vector.load %arg11[%c1, %c0_1] : memref<3x32xf32, #tpu.memory_space<vmem>>, vector<1x32xf32>
    %4 = vector.shape_cast %3 : vector<1x32xf32> to vector<1x32xf32>
    %5 = vector.broadcast %4 : vector<1x32xf32> to vector<2x32xf32>
    %c2 = arith.constant 2 : index
    %c0_2 = arith.constant 0 : index
    %6 = vector.load %arg11[%c2, %c0_2] : memref<3x32xf32, #tpu.memory_space<vmem>>, vector<1x32xf32>
    %7 = vector.shape_cast %6 : vector<1x32xf32> to vector<1x32xf32>
    %8 = vector.broadcast %7 : vector<1x32xf32> to vector<2x32xf32>
    %c0_3 = arith.constant 0 : index
    %c0_4 = arith.constant 0 : index
    %9 = vector.load %arg12[%c0_3, %c0_4] : memref<2x96xf32, #tpu.memory_space<vmem>>, vector<1x96xf32>
    %10 = vector.shape_cast %9 : vector<1x96xf32> to vector<1x96xf32>
    %11 = vector.broadcast %10 : vector<1x96xf32> to vector<2x96xf32>
    %c1_5 = arith.constant 1 : index
    %c0_6 = arith.constant 0 : index
    %12 = vector.load %arg12[%c1_5, %c0_6] : memref<2x96xf32, #tpu.memory_space<vmem>>, vector<1x96xf32>
    %13 = vector.shape_cast %12 : vector<1x96xf32> to vector<1x96xf32>
    %14 = vector.broadcast %13 : vector<1x96xf32> to vector<2x96xf32>
    %c0_7 = arith.constant 0 : index
    %c0_8 = arith.constant 0 : index
    %15 = vector.load %arg13[%c0_7, %c0_8] : memref<6x64xf32, #tpu.memory_space<vmem>>, vector<1x64xf32>
    %16 = vector.shape_cast %15 : vector<1x64xf32> to vector<1x64xf32>
    %17 = vector.broadcast %16 : vector<1x64xf32> to vector<2x64xf32>
    %c1_9 = arith.constant 1 : index
    %c0_10 = arith.constant 0 : index
    %18 = vector.load %arg13[%c1_9, %c0_10] : memref<6x64xf32, #tpu.memory_space<vmem>>, vector<1x64xf32>
    %19 = vector.shape_cast %18 : vector<1x64xf32> to vector<1x64xf32>
    %20 = vector.broadcast %19 : vector<1x64xf32> to vector<2x64xf32>
    %c2_11 = arith.constant 2 : index
    %c0_12 = arith.constant 0 : index
    %21 = vector.load %arg13[%c2_11, %c0_12] : memref<6x64xf32, #tpu.memory_space<vmem>>, vector<1x64xf32>
    %22 = vector.shape_cast %21 : vector<1x64xf32> to vector<1x64xf32>
    %23 = vector.broadcast %22 : vector<1x64xf32> to vector<2x64xf32>
    %c3 = arith.constant 3 : index
    %c0_13 = arith.constant 0 : index
    %24 = vector.load %arg13[%c3, %c0_13] : memref<6x64xf32, #tpu.memory_space<vmem>>, vector<1x64xf32>
    %25 = vector.shape_cast %24 : vector<1x64xf32> to vector<1x64xf32>
    %26 = vector.broadcast %25 : vector<1x64xf32> to vector<2x64xf32>
    %c4 = arith.constant 4 : index
    %c0_14 = arith.constant 0 : index
    %27 = vector.load %arg13[%c4, %c0_14] : memref<6x64xf32, #tpu.memory_space<vmem>>, vector<1x64xf32>
    %28 = vector.shape_cast %27 : vector<1x64xf32> to vector<1x64xf32>
    %29 = vector.broadcast %28 : vector<1x64xf32> to vector<2x64xf32>
    %c5 = arith.constant 5 : index
    %c0_15 = arith.constant 0 : index
    %30 = vector.load %arg13[%c5, %c0_15] : memref<6x64xf32, #tpu.memory_space<vmem>>, vector<1x64xf32>
    %31 = vector.shape_cast %30 : vector<1x64xf32> to vector<1x64xf32>
    %32 = vector.broadcast %31 : vector<1x64xf32> to vector<2x64xf32>
    %c0_16 = arith.constant 0 : index
    %c0_17 = arith.constant 0 : index
    %33 = vector.load %arg14[%c0_16, %c0_17] : memref<2x64xf32, #tpu.memory_space<vmem>>, vector<1x64xf32>
    %34 = vector.shape_cast %33 : vector<1x64xf32> to vector<1x64xf32>
    %35 = vector.broadcast %34 : vector<1x64xf32> to vector<2x64xf32>
    %c1_18 = arith.constant 1 : index
    %c0_19 = arith.constant 0 : index
    %36 = vector.load %arg14[%c1_18, %c0_19] : memref<2x64xf32, #tpu.memory_space<vmem>>, vector<1x64xf32>
    %37 = vector.shape_cast %36 : vector<1x64xf32> to vector<1x64xf32>
    %38 = vector.broadcast %37 : vector<1x64xf32> to vector<2x64xf32>
    %cst = arith.constant 0.000000e+00 : f32
    %39 = vector.broadcast %cst : f32 to vector<2x32xf32>
    %c0_20 = arith.constant 0 : index
    %c0_21 = arith.constant 0 : index
    %40 = vector.load %arg1[%c0_20, %c0_21] : memref<2x32xf32, #tpu.memory_space<vmem>>, vector<2x32xf32>
    %c0_22 = arith.constant 0 : index
    %c0_23 = arith.constant 0 : index
    %41 = vector.load %arg2[%c0_22, %c0_23] : memref<2x32xf32, #tpu.memory_space<vmem>>, vector<2x32xf32>
    %c0_i32 = arith.constant 0 : i32
    %42 = arith.index_cast %c0_i32 : i32 to index
    %c0_24 = arith.constant 0 : index
    %c0_25 = arith.constant 0 : index
    %43 = vector.load %arg0[%42, %c0_24, %c0_25] : memref<8x2x128xf32, #tpu.memory_space<vmem>>, vector<1x2x128xf32>
    %44 = vector.shape_cast %43 : vector<1x2x128xf32> to vector<2x128xf32>
    %45 = vector.extract_strided_slice %44 {offsets = [0, 0], sizes = [2, 32], strides = [1, 1]} : vector<2x128xf32> to vector<2x32xf32>
    %46 = vector.extract_strided_slice %44 {offsets = [0, 32], sizes = [2, 32], strides = [1, 1]} : vector<2x128xf32> to vector<2x32xf32>
    %47 = vector.extract_strided_slice %44 {offsets = [0, 64], sizes = [2, 32], strides = [1, 1]} : vector<2x128xf32> to vector<2x32xf32>
    %48 = vector.extract_strided_slice %44 {offsets = [0, 96], sizes = [2, 32], strides = [1, 1]} : vector<2x128xf32> to vector<2x32xf32>
    %49 = arith.truncf %41 : vector<2x32xf32> to vector<2x32xbf16>
    %c0_26 = arith.constant 0 : index
    %c0_27 = arith.constant 0 : index
    %50 = vector.load %arg3[%c0_26, %c0_27] : memref<32x32xbf16, #tpu.memory_space<vmem>>, vector<32x32xbf16>
    %cst_28 = arith.constant dense<0.000000e+00> : vector<2x32xf32>
    %51 = tpu.matmul %49, %50, %cst_28 {dimension_numbers = #tpu.dot_dimension_numbers<[1], [0], [0], [1], [0, 0, 1, 1], [], []>} : vector<2x32xbf16>, vector<32x32xbf16>, vector<2x32xf32> -> vector<2x32xf32>
    %52 = arith.truncf %45 : vector<2x32xf32> to vector<2x32xbf16>
    %c0_29 = arith.constant 0 : index
    %c0_30 = arith.constant 0 : index
    %53 = vector.load %arg4[%c0_29, %c0_30] : memref<32x32xbf16, #tpu.memory_space<vmem>>, vector<32x32xbf16>
    %cst_31 = arith.constant dense<0.000000e+00> : vector<2x32xf32>
    %54 = tpu.matmul %52, %53, %cst_31 {dimension_numbers = #tpu.dot_dimension_numbers<[1], [0], [0], [1], [0, 0, 1, 1], [], []>} : vector<2x32xbf16>, vector<32x32xbf16>, vector<2x32xf32> -> vector<2x32xf32>
    %55 = arith.addf %51, %54 : vector<2x32xf32>
    %56 = arith.addf %55, %2 : vector<2x32xf32>
    %cst_32 = arith.constant dense<0.000000e+00> : vector<2xf32>
    %57 = vector.multi_reduction <add>, %56, %cst_32 [1] : vector<2x32xf32> to vector<2xf32>
    %58 = vector.shape_cast %57 : vector<2xf32> to vector<2x1xf32>
    %cst_33 = arith.constant 3.200000e+01 : f32
    %59 = vector.broadcast %cst_33 : f32 to vector<2x1xf32>
    %60 = arith.divf %58, %59 : vector<2x1xf32>
    %61 = vector.broadcast %60 : vector<2x1xf32> to vector<2x32xf32>
    %62 = arith.subf %56, %61 : vector<2x32xf32>
    %63 = arith.mulf %62, %62 : vector<2x32xf32>
    %cst_34 = arith.constant dense<0.000000e+00> : vector<2xf32>
    %64 = vector.multi_reduction <add>, %63, %cst_34 [1] : vector<2x32xf32> to vector<2xf32>
    %65 = vector.shape_cast %64 : vector<2xf32> to vector<2x1xf32>
    %cst_35 = arith.constant 3.200000e+01 : f32
    %66 = vector.broadcast %cst_35 : f32 to vector<2x1xf32>
    %67 = arith.divf %65, %66 : vector<2x1xf32>
    %68 = vector.broadcast %60 : vector<2x1xf32> to vector<2x32xf32>
    %69 = arith.subf %56, %68 : vector<2x32xf32>
    %cst_36 = arith.constant 1.000000e-03 : f32
    %70 = vector.broadcast %cst_36 : f32 to vector<2x1xf32>
    %71 = arith.addf %67, %70 : vector<2x1xf32>
    %72 = math.rsqrt %71 : vector<2x1xf32>
    %73 = vector.broadcast %72 : vector<2x1xf32> to vector<2x32xf32>
    %74 = arith.mulf %69, %73 : vector<2x32xf32>
    %75 = arith.mulf %74, %5 : vector<2x32xf32>
    %76 = arith.addf %75, %8 : vector<2x32xf32>
    %cst_37 = arith.constant 0.000000e+00 : f32
    %77 = vector.broadcast %cst_37 : f32 to vector<2x32xf32>
    %78 = arith.cmpf ogt, %76, %77 : vector<2x32xf32>
    %79 = math.exp %76 : vector<2x32xf32>
    %cst_38 = arith.constant 1.000000e+00 : f32
    %80 = vector.broadcast %cst_38 : f32 to vector<2x32xf32>
    %81 = arith.subf %79, %80 : vector<2x32xf32>
    %82 = arith.select %78, %76, %81 : vector<2x32xi1>, vector<2x32xf32>
    %83 = arith.truncf %82 : vector<2x32xf32> to vector<2x32xbf16>
    %c0_39 = arith.constant 0 : index
    %c0_40 = arith.constant 0 : index
    %84 = vector.load %arg5[%c0_39, %c0_40] : memref<32x96xbf16, #tpu.memory_space<vmem>>, vector<32x96xbf16>
    %cst_41 = arith.constant dense<0.000000e+00> : vector<2x96xf32>
    %85 = tpu.matmul %83, %84, %cst_41 {dimension_numbers = #tpu.dot_dimension_numbers<[1], [0], [0], [1], [0, 0, 1, 1], [], []>} : vector<2x32xbf16>, vector<32x96xbf16>, vector<2x96xf32> -> vector<2x96xf32>
    %86 = arith.addf %85, %11 : vector<2x96xf32>
    %87 = arith.truncf %40 : vector<2x32xf32> to vector<2x32xbf16>
    %c0_42 = arith.constant 0 : index
    %c0_43 = arith.constant 0 : index
    %88 = vector.load %arg6[%c0_42, %c0_43] : memref<32x96xbf16, #tpu.memory_space<vmem>>, vector<32x96xbf16>
    %cst_44 = arith.constant dense<0.000000e+00> : vector<2x96xf32>
    %89 = tpu.matmul %87, %88, %cst_44 {dimension_numbers = #tpu.dot_dimension_numbers<[1], [0], [0], [1], [0, 0, 1, 1], [], []>} : vector<2x32xbf16>, vector<32x96xbf16>, vector<2x96xf32> -> vector<2x96xf32>
    %90 = arith.addf %89, %14 : vector<2x96xf32>
    %91 = vector.extract_strided_slice %86 {offsets = [0, 0], sizes = [2, 32], strides = [1, 1]} : vector<2x96xf32> to vector<2x32xf32>
    %92 = vector.extract_strided_slice %90 {offsets = [0, 0], sizes = [2, 32], strides = [1, 1]} : vector<2x96xf32> to vector<2x32xf32>
    %93 = arith.addf %91, %92 : vector<2x32xf32>
    %94 = arith.negf %93 : vector<2x32xf32>
    %95 = math.exp %94 : vector<2x32xf32>
    %cst_45 = arith.constant 1.000000e+00 : f32
    %96 = vector.broadcast %cst_45 : f32 to vector<2x32xf32>
    %97 = arith.addf %96, %95 : vector<2x32xf32>
    %98 = arith.divf %96, %97 : vector<2x32xf32>
    %99 = vector.extract_strided_slice %86 {offsets = [0, 32], sizes = [2, 32], strides = [1, 1]} : vector<2x96xf32> to vector<2x32xf32>
    %100 = vector.extract_strided_slice %90 {offsets = [0, 32], sizes = [2, 32], strides = [1, 1]} : vector<2x96xf32> to vector<2x32xf32>
    %101 = arith.addf %99, %100 : vector<2x32xf32>
    %102 = arith.negf %101 : vector<2x32xf32>
    %103 = math.exp %102 : vector<2x32xf32>
    %cst_46 = arith.constant 1.000000e+00 : f32
    %104 = vector.broadcast %cst_46 : f32 to vector<2x32xf32>
    %105 = arith.addf %104, %103 : vector<2x32xf32>
    %106 = arith.divf %104, %105 : vector<2x32xf32>
    %107 = vector.extract_strided_slice %86 {offsets = [0, 64], sizes = [2, 32], strides = [1, 1]} : vector<2x96xf32> to vector<2x32xf32>
    %108 = vector.extract_strided_slice %90 {offsets = [0, 64], sizes = [2, 32], strides = [1, 1]} : vector<2x96xf32> to vector<2x32xf32>
    %109 = arith.mulf %98, %108 : vector<2x32xf32>
    %110 = arith.addf %107, %109 : vector<2x32xf32>
    %111 = math.tanh %110 : vector<2x32xf32>
    %cst_47 = arith.constant 1.000000e+00 : f32
    %112 = vector.broadcast %cst_47 : f32 to vector<2x32xf32>
    %113 = arith.subf %112, %106 : vector<2x32xf32>
    %114 = arith.mulf %113, %111 : vector<2x32xf32>
    %115 = arith.mulf %106, %40 : vector<2x32xf32>
    %116 = arith.addf %114, %115 : vector<2x32xf32>
    %117 = arith.truncf %116 : vector<2x32xf32> to vector<2x32xbf16>
    %c0_48 = arith.constant 0 : index
    %c0_49 = arith.constant 0 : index
    %118 = vector.load %arg7[%c0_48, %c0_49] : memref<32x128xbf16, #tpu.memory_space<vmem>>, vector<32x128xbf16>
    %cst_50 = arith.constant dense<0.000000e+00> : vector<2x128xf32>
    %119 = tpu.matmul %117, %118, %cst_50 {dimension_numbers = #tpu.dot_dimension_numbers<[1], [0], [0], [1], [0, 0, 1, 1], [], []>} : vector<2x32xbf16>, vector<32x128xbf16>, vector<2x128xf32> -> vector<2x128xf32>
    %120 = vector.extract_strided_slice %119 {offsets = [0, 0], sizes = [2, 64], strides = [1, 1]} : vector<2x128xf32> to vector<2x64xf32>
    %121 = arith.addf %120, %17 : vector<2x64xf32>
    %cst_51 = arith.constant dense<0.000000e+00> : vector<2xf32>
    %122 = vector.multi_reduction <add>, %121, %cst_51 [1] : vector<2x64xf32> to vector<2xf32>
    %123 = vector.shape_cast %122 : vector<2xf32> to vector<2x1xf32>
    %cst_52 = arith.constant 6.400000e+01 : f32
    %124 = vector.broadcast %cst_52 : f32 to vector<2x1xf32>
    %125 = arith.divf %123, %124 : vector<2x1xf32>
    %126 = vector.broadcast %125 : vector<2x1xf32> to vector<2x64xf32>
    %127 = arith.subf %121, %126 : vector<2x64xf32>
    %128 = arith.mulf %127, %127 : vector<2x64xf32>
    %cst_53 = arith.constant dense<0.000000e+00> : vector<2xf32>
    %129 = vector.multi_reduction <add>, %128, %cst_53 [1] : vector<2x64xf32> to vector<2xf32>
    %130 = vector.shape_cast %129 : vector<2xf32> to vector<2x1xf32>
    %cst_54 = arith.constant 6.400000e+01 : f32
    %131 = vector.broadcast %cst_54 : f32 to vector<2x1xf32>
    %132 = arith.divf %130, %131 : vector<2x1xf32>
    %133 = vector.broadcast %125 : vector<2x1xf32> to vector<2x64xf32>
    %134 = arith.subf %121, %133 : vector<2x64xf32>
    %cst_55 = arith.constant 1.000000e-03 : f32
    %135 = vector.broadcast %cst_55 : f32 to vector<2x1xf32>
    %136 = arith.addf %132, %135 : vector<2x1xf32>
    %137 = math.rsqrt %136 : vector<2x1xf32>
    %138 = vector.broadcast %137 : vector<2x1xf32> to vector<2x64xf32>
    %139 = arith.mulf %134, %138 : vector<2x64xf32>
    %140 = arith.mulf %139, %20 : vector<2x64xf32>
    %141 = arith.addf %140, %23 : vector<2x64xf32>
    %cst_56 = arith.constant 0.000000e+00 : f32
    %142 = vector.broadcast %cst_56 : f32 to vector<2x64xf32>
    %143 = arith.cmpf ogt, %141, %142 : vector<2x64xf32>
    %144 = math.exp %141 : vector<2x64xf32>
    %cst_57 = arith.constant 1.000000e+00 : f32
    %145 = vector.broadcast %cst_57 : f32 to vector<2x64xf32>
    %146 = arith.subf %144, %145 : vector<2x64xf32>
    %147 = arith.select %143, %141, %146 : vector<2x64xi1>, vector<2x64xf32>
    %148 = vector.extract_strided_slice %119 {offsets = [0, 64], sizes = [2, 64], strides = [1, 1]} : vector<2x128xf32> to vector<2x64xf32>
    %149 = arith.truncf %46 : vector<2x32xf32> to vector<2x32xbf16>
    %c0_58 = arith.constant 0 : index
    %c0_59 = arith.constant 0 : index
    %150 = vector.load %arg8[%c0_58, %c0_59] : memref<32x64xbf16, #tpu.memory_space<vmem>>, vector<32x64xbf16>
    %cst_60 = arith.constant dense<0.000000e+00> : vector<2x64xf32>
    %151 = tpu.matmul %149, %150, %cst_60 {dimension_numbers = #tpu.dot_dimension_numbers<[1], [0], [0], [1], [0, 0, 1, 1], [], []>} : vector<2x32xbf16>, vector<32x64xbf16>, vector<2x64xf32> -> vector<2x64xf32>
    %152 = arith.addf %148, %151 : vector<2x64xf32>
    %153 = arith.addf %152, %26 : vector<2x64xf32>
    %cst_61 = arith.constant dense<0.000000e+00> : vector<2xf32>
    %154 = vector.multi_reduction <add>, %153, %cst_61 [1] : vector<2x64xf32> to vector<2xf32>
    %155 = vector.shape_cast %154 : vector<2xf32> to vector<2x1xf32>
    %cst_62 = arith.constant 6.400000e+01 : f32
    %156 = vector.broadcast %cst_62 : f32 to vector<2x1xf32>
    %157 = arith.divf %155, %156 : vector<2x1xf32>
    %158 = vector.broadcast %157 : vector<2x1xf32> to vector<2x64xf32>
    %159 = arith.subf %153, %158 : vector<2x64xf32>
    %160 = arith.mulf %159, %159 : vector<2x64xf32>
    %cst_63 = arith.constant dense<0.000000e+00> : vector<2xf32>
    %161 = vector.multi_reduction <add>, %160, %cst_63 [1] : vector<2x64xf32> to vector<2xf32>
    %162 = vector.shape_cast %161 : vector<2xf32> to vector<2x1xf32>
    %cst_64 = arith.constant 6.400000e+01 : f32
    %163 = vector.broadcast %cst_64 : f32 to vector<2x1xf32>
    %164 = arith.divf %162, %163 : vector<2x1xf32>
    %165 = vector.broadcast %157 : vector<2x1xf32> to vector<2x64xf32>
    %166 = arith.subf %153, %165 : vector<2x64xf32>
    %cst_65 = arith.constant 1.000000e-03 : f32
    %167 = vector.broadcast %cst_65 : f32 to vector<2x1xf32>
    %168 = arith.addf %164, %167 : vector<2x1xf32>
    %169 = math.rsqrt %168 : vector<2x1xf32>
    %170 = vector.broadcast %169 : vector<2x1xf32> to vector<2x64xf32>
    %171 = arith.mulf %166, %170 : vector<2x64xf32>
    %172 = arith.mulf %171, %29 : vector<2x64xf32>
    %173 = arith.addf %172, %32 : vector<2x64xf32>
    %cst_66 = arith.constant 0.000000e+00 : f32
    %174 = vector.broadcast %cst_66 : f32 to vector<2x64xf32>
    %175 = arith.cmpf ogt, %173, %174 : vector<2x64xf32>
    %176 = math.exp %173 : vector<2x64xf32>
    %cst_67 = arith.constant 1.000000e+00 : f32
    %177 = vector.broadcast %cst_67 : f32 to vector<2x64xf32>
    %178 = arith.subf %176, %177 : vector<2x64xf32>
    %179 = arith.select %175, %173, %178 : vector<2x64xi1>, vector<2x64xf32>
    %180 = arith.truncf %147 : vector<2x64xf32> to vector<2x64xbf16>
    %c0_68 = arith.constant 0 : index
    %c0_69 = arith.constant 0 : index
    %181 = vector.load %arg9[%c0_68, %c0_69] : memref<64x64xbf16, #tpu.memory_space<vmem>>, vector<64x64xbf16>
    %cst_70 = arith.constant dense<0.000000e+00> : vector<2x64xf32>
    %182 = tpu.matmul %180, %181, %cst_70 {dimension_numbers = #tpu.dot_dimension_numbers<[1], [0], [0], [1], [0, 0, 1, 1], [], []>} : vector<2x64xbf16>, vector<64x64xbf16>, vector<2x64xf32> -> vector<2x64xf32>
    %183 = arith.addf %182, %35 : vector<2x64xf32>
    %184 = arith.truncf %179 : vector<2x64xf32> to vector<2x64xbf16>
    %c0_71 = arith.constant 0 : index
    %c0_72 = arith.constant 0 : index
    %185 = vector.load %arg10[%c0_71, %c0_72] : memref<64x64xbf16, #tpu.memory_space<vmem>>, vector<64x64xbf16>
    %cst_73 = arith.constant dense<0.000000e+00> : vector<2x64xf32>
    %186 = tpu.matmul %184, %185, %cst_73 {dimension_numbers = #tpu.dot_dimension_numbers<[1], [0], [0], [1], [0, 0, 1, 1], [], []>} : vector<2x64xbf16>, vector<64x64xbf16>, vector<2x64xf32> -> vector<2x64xf32>
    %187 = arith.addf %186, %38 : vector<2x64xf32>
    %188 = vector.extract_strided_slice %183 {offsets = [0, 0], sizes = [2, 32], strides = [1, 1]} : vector<2x64xf32> to vector<2x32xf32>
    %189 = vector.extract_strided_slice %183 {offsets = [0, 32], sizes = [2, 32], strides = [1, 1]} : vector<2x64xf32> to vector<2x32xf32>
    %190 = arith.negf %189 : vector<2x32xf32>
    %191 = math.exp %190 : vector<2x32xf32>
    %cst_74 = arith.constant 1.000000e+00 : f32
    %192 = vector.broadcast %cst_74 : f32 to vector<2x32xf32>
    %193 = arith.addf %192, %191 : vector<2x32xf32>
    %194 = arith.divf %192, %193 : vector<2x32xf32>
    %cst_75 = arith.constant 2.000000e+00 : f32
    %195 = vector.broadcast %cst_75 : f32 to vector<2x32xf32>
    %196 = arith.mulf %195, %194 : vector<2x32xf32>
    %cst_76 = arith.constant 1.000000e-01 : f32
    %197 = vector.broadcast %cst_76 : f32 to vector<2x32xf32>
    %198 = arith.addf %196, %197 : vector<2x32xf32>
    %199 = arith.mulf %198, %47 : vector<2x32xf32>
    %200 = arith.addf %188, %199 : vector<2x32xf32>
    %201 = vector.extract_strided_slice %187 {offsets = [0, 0], sizes = [2, 32], strides = [1, 1]} : vector<2x64xf32> to vector<2x32xf32>
    %202 = vector.extract_strided_slice %187 {offsets = [0, 32], sizes = [2, 32], strides = [1, 1]} : vector<2x64xf32> to vector<2x32xf32>
    %203 = arith.negf %202 : vector<2x32xf32>
    %204 = math.exp %203 : vector<2x32xf32>
    %cst_77 = arith.constant 1.000000e+00 : f32
    %205 = vector.broadcast %cst_77 : f32 to vector<2x32xf32>
    %206 = arith.addf %205, %204 : vector<2x32xf32>
    %207 = arith.divf %205, %206 : vector<2x32xf32>
    %cst_78 = arith.constant 2.000000e+00 : f32
    %208 = vector.broadcast %cst_78 : f32 to vector<2x32xf32>
    %209 = arith.mulf %208, %207 : vector<2x32xf32>
    %cst_79 = arith.constant 1.000000e-01 : f32
    %210 = vector.broadcast %cst_79 : f32 to vector<2x32xf32>
    %211 = arith.addf %209, %210 : vector<2x32xf32>
    %212 = arith.mulf %211, %48 : vector<2x32xf32>
    %213 = arith.addf %201, %212 : vector<2x32xf32>
    %214 = tpu.concatenate %183, %200, %39, %187, %213, %116 in 1 : vector<2x64xf32>, vector<2x32xf32>, vector<2x32xf32>, vector<2x64xf32>, vector<2x32xf32>, vector<2x32xf32> -> vector<2x256xf32>
    %215 = arith.index_cast %c0_i32 : i32 to index
    %c0_80 = arith.constant 0 : index
    %c0_81 = arith.constant 0 : index
    %216 = vector.load %arg15[%215, %c0_80, %c0_81] : memref<8x2x256xf32, #tpu.memory_space<vmem>>, vector<1x2x256xf32>
    %217 = vector.shape_cast %216 : vector<1x2x256xf32> to vector<2x256xf32>
    %218 = vector.shape_cast %214 : vector<2x256xf32> to vector<1x2x256xf32>
    tpu.vector_store %arg15[%215, %c0_80, %c0_81], %218 {strides = array<i32>} : memref<8x2x256xf32, #tpu.memory_space<vmem>>, vector<1x2x256xf32>,
    %c1_i32 = arith.constant 1 : i32
    %219 = arith.index_cast %c1_i32 : i32 to index
    %c0_82 = arith.constant 0 : index
    %c0_83 = arith.constant 0 : index
    %220 = vector.load %arg0[%219, %c0_82, %c0_83] : memref<8x2x128xf32, #tpu.memory_space<vmem>>, vector<1x2x128xf32>
    %221 = vector.shape_cast %220 : vector<1x2x128xf32> to vector<2x128xf32>
    %222 = vector.extract_strided_slice %221 {offsets = [0, 0], sizes = [2, 32], strides = [1, 1]} : vector<2x128xf32> to vector<2x32xf32>
    %223 = vector.extract_strided_slice %221 {offsets = [0, 32], sizes = [2, 32], strides = [1, 1]} : vector<2x128xf32> to vector<2x32xf32>
    %224 = vector.extract_strided_slice %221 {offsets = [0, 64], sizes = [2, 32], strides = [1, 1]} : vector<2x128xf32> to vector<2x32xf32>
    %225 = vector.extract_strided_slice %221 {offsets = [0, 96], sizes = [2, 32], strides = [1, 1]} : vector<2x128xf32> to vector<2x32xf32>
    %226 = arith.truncf %213 : vector<2x32xf32> to vector<2x32xbf16>
    %c0_84 = arith.constant 0 : index
    %c0_85 = arith.constant 0 : index
    %227 = vector.load %arg3[%c0_84, %c0_85] : memref<32x32xbf16, #tpu.memory_space<vmem>>, vector<32x32xbf16>
    %cst_86 = arith.constant dense<0.000000e+00> : vector<2x32xf32>
    %228 = tpu.matmul %226, %227, %cst_86 {dimension_numbers = #tpu.dot_dimension_numbers<[1], [0], [0], [1], [0, 0, 1, 1], [], []>} : vector<2x32xbf16>, vector<32x32xbf16>, vector<2x32xf32> -> vector<2x32xf32>
    %229 = arith.truncf %222 : vector<2x32xf32> to vector<2x32xbf16>
    %c0_87 = arith.constant 0 : index
    %c0_88 = arith.constant 0 : index
    %230 = vector.load %arg4[%c0_87, %c0_88] : memref<32x32xbf16, #tpu.memory_space<vmem>>, vector<32x32xbf16>
    %cst_89 = arith.constant dense<0.000000e+00> : vector<2x32xf32>
    %231 = tpu.matmul %229, %230, %cst_89 {dimension_numbers = #tpu.dot_dimension_numbers<[1], [0], [0], [1], [0, 0, 1, 1], [], []>} : vector<2x32xbf16>, vector<32x32xbf16>, vector<2x32xf32> -> vector<2x32xf32>
    %232 = arith.addf %228, %231 : vector<2x32xf32>
    %233 = arith.addf %232, %2 : vector<2x32xf32>
    %cst_90 = arith.constant dense<0.000000e+00> : vector<2xf32>
    %234 = vector.multi_reduction <add>, %233, %cst_90 [1] : vector<2x32xf32> to vector<2xf32>
    %235 = vector.shape_cast %234 : vector<2xf32> to vector<2x1xf32>
    %cst_91 = arith.constant 3.200000e+01 : f32
    %236 = vector.broadcast %cst_91 : f32 to vector<2x1xf32>
    %237 = arith.divf %235, %236 : vector<2x1xf32>
    %238 = vector.broadcast %237 : vector<2x1xf32> to vector<2x32xf32>
    %239 = arith.subf %233, %238 : vector<2x32xf32>
    %240 = arith.mulf %239, %239 : vector<2x32xf32>
    %cst_92 = arith.constant dense<0.000000e+00> : vector<2xf32>
    %241 = vector.multi_reduction <add>, %240, %cst_92 [1] : vector<2x32xf32> to vector<2xf32>
    %242 = vector.shape_cast %241 : vector<2xf32> to vector<2x1xf32>
    %cst_93 = arith.constant 3.200000e+01 : f32
    %243 = vector.broadcast %cst_93 : f32 to vector<2x1xf32>
    %244 = arith.divf %242, %243 : vector<2x1xf32>
    %245 = vector.broadcast %237 : vector<2x1xf32> to vector<2x32xf32>
    %246 = arith.subf %233, %245 : vector<2x32xf32>
    %cst_94 = arith.constant 1.000000e-03 : f32
    %247 = vector.broadcast %cst_94 : f32 to vector<2x1xf32>
    %248 = arith.addf %244, %247 : vector<2x1xf32>
    %249 = math.rsqrt %248 : vector<2x1xf32>
    %250 = vector.broadcast %249 : vector<2x1xf32> to vector<2x32xf32>
    %251 = arith.mulf %246, %250 : vector<2x32xf32>
    %252 = arith.mulf %251, %5 : vector<2x32xf32>
    %253 = arith.addf %252, %8 : vector<2x32xf32>
    %cst_95 = arith.constant 0.000000e+00 : f32
    %254 = vector.broadcast %cst_95 : f32 to vector<2x32xf32>
    %255 = arith.cmpf ogt, %253, %254 : vector<2x32xf32>
    %256 = math.exp %253 : vector<2x32xf32>
    %cst_96 = arith.constant 1.000000e+00 : f32
    %257 = vector.broadcast %cst_96 : f32 to vector<2x32xf32>
    %258 = arith.subf %256, %257 : vector<2x32xf32>
    %259 = arith.select %255, %253, %258 : vector<2x32xi1>, vector<2x32xf32>
    %260 = arith.truncf %259 : vector<2x32xf32> to vector<2x32xbf16>
    %c0_97 = arith.constant 0 : index
    %c0_98 = arith.constant 0 : index
    %261 = vector.load %arg5[%c0_97, %c0_98] : memref<32x96xbf16, #tpu.memory_space<vmem>>, vector<32x96xbf16>
    %cst_99 = arith.constant dense<0.000000e+00> : vector<2x96xf32>
    %262 = tpu.matmul %260, %261, %cst_99 {dimension_numbers = #tpu.dot_dimension_numbers<[1], [0], [0], [1], [0, 0, 1, 1], [], []>} : vector<2x32xbf16>, vector<32x96xbf16>, vector<2x96xf32> -> vector<2x96xf32>
    %263 = arith.addf %262, %11 : vector<2x96xf32>
    %264 = arith.truncf %116 : vector<2x32xf32> to vector<2x32xbf16>
    %c0_100 = arith.constant 0 : index
    %c0_101 = arith.constant 0 : index
    %265 = vector.load %arg6[%c0_100, %c0_101] : memref<32x96xbf16, #tpu.memory_space<vmem>>, vector<32x96xbf16>
    %cst_102 = arith.constant dense<0.000000e+00> : vector<2x96xf32>
    %266 = tpu.matmul %264, %265, %cst_102 {dimension_numbers = #tpu.dot_dimension_numbers<[1], [0], [0], [1], [0, 0, 1, 1], [], []>} : vector<2x32xbf16>, vector<32x96xbf16>, vector<2x96xf32> -> vector<2x96xf32>
    %267 = arith.addf %266, %14 : vector<2x96xf32>
    %268 = vector.extract_strided_slice %263 {offsets = [0, 0], sizes = [2, 32], strides = [1, 1]} : vector<2x96xf32> to vector<2x32xf32>
    %269 = vector.extract_strided_slice %267 {offsets = [0, 0], sizes = [2, 32], strides = [1, 1]} : vector<2x96xf32> to vector<2x32xf32>
    %270 = arith.addf %268, %269 : vector<2x32xf32>
    %271 = arith.negf %270 : vector<2x32xf32>
    %272 = math.exp %271 : vector<2x32xf32>
    %cst_103 = arith.constant 1.000000e+00 : f32
    %273 = vector.broadcast %cst_103 : f32 to vector<2x32xf32>
    %274 = arith.addf %273, %272 : vector<2x32xf32>
    %275 = arith.divf %273, %274 : vector<2x32xf32>
    %276 = vector.extract_strided_slice %263 {offsets = [0, 32], sizes = [2, 32], strides = [1, 1]} : vector<2x96xf32> to vector<2x32xf32>
    %277 = vector.extract_strided_slice %267 {offsets = [0, 32], sizes = [2, 32], strides = [1, 1]} : vector<2x96xf32> to vector<2x32xf32>
    %278 = arith.addf %276, %277 : vector<2x32xf32>
    %279 = arith.negf %278 : vector<2x32xf32>
    %280 = math.exp %279 : vector<2x32xf32>
    %cst_104 = arith.constant 1.000000e+00 : f32
    %281 = vector.broadcast %cst_104 : f32 to vector<2x32xf32>
    %282 = arith.addf %281, %280 : vector<2x32xf32>
    %283 = arith.divf %281, %282 : vector<2x32xf32>
    %284 = vector.extract_strided_slice %263 {offsets = [0, 64], sizes = [2, 32], strides = [1, 1]} : vector<2x96xf32> to vector<2x32xf32>
    %285 = vector.extract_strided_slice %267 {offsets = [0, 64], sizes = [2, 32], strides = [1, 1]} : vector<2x96xf32> to vector<2x32xf32>
    %286 = arith.mulf %275, %285 : vector<2x32xf32>
    %287 = arith.addf %284, %286 : vector<2x32xf32>
    %288 = math.tanh %287 : vector<2x32xf32>
    %cst_105 = arith.constant 1.000000e+00 : f32
    %289 = vector.broadcast %cst_105 : f32 to vector<2x32xf32>
    %290 = arith.subf %289, %283 : vector<2x32xf32>
    %291 = arith.mulf %290, %288 : vector<2x32xf32>
    %292 = arith.mulf %283, %116 : vector<2x32xf32>
    %293 = arith.addf %291, %292 : vector<2x32xf32>
    %294 = arith.truncf %293 : vector<2x32xf32> to vector<2x32xbf16>
    %c0_106 = arith.constant 0 : index
    %c0_107 = arith.constant 0 : index
    %295 = vector.load %arg7[%c0_106, %c0_107] : memref<32x128xbf16, #tpu.memory_space<vmem>>, vector<32x128xbf16>
    %cst_108 = arith.constant dense<0.000000e+00> : vector<2x128xf32>
    %296 = tpu.matmul %294, %295, %cst_108 {dimension_numbers = #tpu.dot_dimension_numbers<[1], [0], [0], [1], [0, 0, 1, 1], [], []>} : vector<2x32xbf16>, vector<32x128xbf16>, vector<2x128xf32> -> vector<2x128xf32>
    %297 = vector.extract_strided_slice %296 {offsets = [0, 0], sizes = [2, 64], strides = [1, 1]} : vector<2x128xf32> to vector<2x64xf32>
    %298 = arith.addf %297, %17 : vector<2x64xf32>
    %cst_109 = arith.constant dense<0.000000e+00> : vector<2xf32>
    %299 = vector.multi_reduction <add>, %298, %cst_109 [1] : vector<2x64xf32> to vector<2xf32>
    %300 = vector.shape_cast %299 : vector<2xf32> to vector<2x1xf32>
    %cst_110 = arith.constant 6.400000e+01 : f32
    %301 = vector.broadcast %cst_110 : f32 to vector<2x1xf32>
    %302 = arith.divf %300, %301 : vector<2x1xf32>
    %303 = vector.broadcast %302 : vector<2x1xf32> to vector<2x64xf32>
    %304 = arith.subf %298, %303 : vector<2x64xf32>
    %305 = arith.mulf %304, %304 : vector<2x64xf32>
    %cst_111 = arith.constant dense<0.000000e+00> : vector<2xf32>
    %306 = vector.multi_reduction <add>, %305, %cst_111 [1] : vector<2x64xf32> to vector<2xf32>
    %307 = vector.shape_cast %306 : vector<2xf32> to vector<2x1xf32>
    %cst_112 = arith.constant 6.400000e+01 : f32
    %308 = vector.broadcast %cst_112 : f32 to vector<2x1xf32>
    %309 = arith.divf %307, %308 : vector<2x1xf32>
    %310 = vector.broadcast %302 : vector<2x1xf32> to vector<2x64xf32>
    %311 = arith.subf %298, %310 : vector<2x64xf32>
    %cst_113 = arith.constant 1.000000e-03 : f32
    %312 = vector.broadcast %cst_113 : f32 to vector<2x1xf32>
    %313 = arith.addf %309, %312 : vector<2x1xf32>
    %314 = math.rsqrt %313 : vector<2x1xf32>
    %315 = vector.broadcast %314 : vector<2x1xf32> to vector<2x64xf32>
    %316 = arith.mulf %311, %315 : vector<2x64xf32>
    %317 = arith.mulf %316, %20 : vector<2x64xf32>
    %318 = arith.addf %317, %23 : vector<2x64xf32>
    %cst_114 = arith.constant 0.000000e+00 : f32
    %319 = vector.broadcast %cst_114 : f32 to vector<2x64xf32>
    %320 = arith.cmpf ogt, %318, %319 : vector<2x64xf32>
    %321 = math.exp %318 : vector<2x64xf32>
    %cst_115 = arith.constant 1.000000e+00 : f32
    %322 = vector.broadcast %cst_115 : f32 to vector<2x64xf32>
    %323 = arith.subf %321, %322 : vector<2x64xf32>
    %324 = arith.select %320, %318, %323 : vector<2x64xi1>, vector<2x64xf32>
    %325 = vector.extract_strided_slice %296 {offsets = [0, 64], sizes = [2, 64], strides = [1, 1]} : vector<2x128xf32> to vector<2x64xf32>
    %326 = arith.truncf %223 : vector<2x32xf32> to vector<2x32xbf16>
    %c0_116 = arith.constant 0 : index
    %c0_117 = arith.constant 0 : index
    %327 = vector.load %arg8[%c0_116, %c0_117] : memref<32x64xbf16, #tpu.memory_space<vmem>>, vector<32x64xbf16>
    %cst_118 = arith.constant dense<0.000000e+00> : vector<2x64xf32>
    %328 = tpu.matmul %326, %327, %cst_118 {dimension_numbers = #tpu.dot_dimension_numbers<[1], [0], [0], [1], [0, 0, 1, 1], [], []>} : vector<2x32xbf16>, vector<32x64xbf16>, vector<2x64xf32> -> vector<2x64xf32>
    %329 = arith.addf %325, %328 : vector<2x64xf32>
    %330 = arith.addf %329, %26 : vector<2x64xf32>
    %cst_119 = arith.constant dense<0.000000e+00> : vector<2xf32>
    %331 = vector.multi_reduction <add>, %330, %cst_119 [1] : vector<2x64xf32> to vector<2xf32>
    %332 = vector.shape_cast %331 : vector<2xf32> to vector<2x1xf32>
    %cst_120 = arith.constant 6.400000e+01 : f32
    %333 = vector.broadcast %cst_120 : f32 to vector<2x1xf32>
    %334 = arith.divf %332, %333 : vector<2x1xf32>
    %335 = vector.broadcast %334 : vector<2x1xf32> to vector<2x64xf32>
    %336 = arith.subf %330, %335 : vector<2x64xf32>
    %337 = arith.mulf %336, %336 : vector<2x64xf32>
    %cst_121 = arith.constant dense<0.000000e+00> : vector<2xf32>
    %338 = vector.multi_reduction <add>, %337, %cst_121 [1] : vector<2x64xf32> to vector<2xf32>
    %339 = vector.shape_cast %338 : vector<2xf32> to vector<2x1xf32>
    %cst_122 = arith.constant 6.400000e+01 : f32
    %340 = vector.broadcast %cst_122 : f32 to vector<2x1xf32>
    %341 = arith.divf %339, %340 : vector<2x1xf32>
    %342 = vector.broadcast %334 : vector<2x1xf32> to vector<2x64xf32>
    %343 = arith.subf %330, %342 : vector<2x64xf32>
    %cst_123 = arith.constant 1.000000e-03 : f32
    %344 = vector.broadcast %cst_123 : f32 to vector<2x1xf32>
    %345 = arith.addf %341, %344 : vector<2x1xf32>
    %346 = math.rsqrt %345 : vector<2x1xf32>
    %347 = vector.broadcast %346 : vector<2x1xf32> to vector<2x64xf32>
    %348 = arith.mulf %343, %347 : vector<2x64xf32>
    %349 = arith.mulf %348, %29 : vector<2x64xf32>
    %350 = arith.addf %349, %32 : vector<2x64xf32>
    %cst_124 = arith.constant 0.000000e+00 : f32
    %351 = vector.broadcast %cst_124 : f32 to vector<2x64xf32>
    %352 = arith.cmpf ogt, %350, %351 : vector<2x64xf32>
    %353 = math.exp %350 : vector<2x64xf32>
    %cst_125 = arith.constant 1.000000e+00 : f32
    %354 = vector.broadcast %cst_125 : f32 to vector<2x64xf32>
    %355 = arith.subf %353, %354 : vector<2x64xf32>
    %356 = arith.select %352, %350, %355 : vector<2x64xi1>, vector<2x64xf32>
    %357 = arith.truncf %324 : vector<2x64xf32> to vector<2x64xbf16>
    %c0_126 = arith.constant 0 : index
    %c0_127 = arith.constant 0 : index
    %358 = vector.load %arg9[%c0_126, %c0_127] : memref<64x64xbf16, #tpu.memory_space<vmem>>, vector<64x64xbf16>
    %cst_128 = arith.constant dense<0.000000e+00> : vector<2x64xf32>
    %359 = tpu.matmul %357, %358, %cst_128 {dimension_numbers = #tpu.dot_dimension_numbers<[1], [0], [0], [1], [0, 0, 1, 1], [], []>} : vector<2x64xbf16>, vector<64x64xbf16>, vector<2x64xf32> -> vector<2x64xf32>
    %360 = arith.addf %359, %35 : vector<2x64xf32>
    %361 = arith.truncf %356 : vector<2x64xf32> to vector<2x64xbf16>
    %c0_129 = arith.constant 0 : index
    %c0_130 = arith.constant 0 : index
    %362 = vector.load %arg10[%c0_129, %c0_130] : memref<64x64xbf16, #tpu.memory_space<vmem>>, vector<64x64xbf16>
    %cst_131 = arith.constant dense<0.000000e+00> : vector<2x64xf32>
    %363 = tpu.matmul %361, %362, %cst_131 {dimension_numbers = #tpu.dot_dimension_numbers<[1], [0], [0], [1], [0, 0, 1, 1], [], []>} : vector<2x64xbf16>, vector<64x64xbf16>, vector<2x64xf32> -> vector<2x64xf32>
    %364 = arith.addf %363, %38 : vector<2x64xf32>
    %365 = vector.extract_strided_slice %360 {offsets = [0, 0], sizes = [2, 32], strides = [1, 1]} : vector<2x64xf32> to vector<2x32xf32>
    %366 = vector.extract_strided_slice %360 {offsets = [0, 32], sizes = [2, 32], strides = [1, 1]} : vector<2x64xf32> to vector<2x32xf32>
    %367 = arith.negf %366 : vector<2x32xf32>
    %368 = math.exp %367 : vector<2x32xf32>
    %cst_132 = arith.constant 1.000000e+00 : f32
    %369 = vector.broadcast %cst_132 : f32 to vector<2x32xf32>
    %370 = arith.addf %369, %368 : vector<2x32xf32>
    %371 = arith.divf %369, %370 : vector<2x32xf32>
    %cst_133 = arith.constant 2.000000e+00 : f32
    %372 = vector.broadcast %cst_133 : f32 to vector<2x32xf32>
    %373 = arith.mulf %372, %371 : vector<2x32xf32>
    %cst_134 = arith.constant 1.000000e-01 : f32
    %374 = vector.broadcast %cst_134 : f32 to vector<2x32xf32>
    %375 = arith.addf %373, %374 : vector<2x32xf32>
    %376 = arith.mulf %375, %224 : vector<2x32xf32>
    %377 = arith.addf %365, %376 : vector<2x32xf32>
    %378 = vector.extract_strided_slice %364 {offsets = [0, 0], sizes = [2, 32], strides = [1, 1]} : vector<2x64xf32> to vector<2x32xf32>
    %379 = vector.extract_strided_slice %364 {offsets = [0, 32], sizes = [2, 32], strides = [1, 1]} : vector<2x64xf32> to vector<2x32xf32>
    %380 = arith.negf %379 : vector<2x32xf32>
    %381 = math.exp %380 : vector<2x32xf32>
    %cst_135 = arith.constant 1.000000e+00 : f32
    %382 = vector.broadcast %cst_135 : f32 to vector<2x32xf32>
    %383 = arith.addf %382, %381 : vector<2x32xf32>
    %384 = arith.divf %382, %383 : vector<2x32xf32>
    %cst_136 = arith.constant 2.000000e+00 : f32
    %385 = vector.broadcast %cst_136 : f32 to vector<2x32xf32>
    %386 = arith.mulf %385, %384 : vector<2x32xf32>
    %cst_137 = arith.constant 1.000000e-01 : f32
    %387 = vector.broadcast %cst_137 : f32 to vector<2x32xf32>
    %388 = arith.addf %386, %387 : vector<2x32xf32>
    %389 = arith.mulf %388, %225 : vector<2x32xf32>
    %390 = arith.addf %378, %389 : vector<2x32xf32>
    %391 = tpu.concatenate %360, %377, %39, %364, %390, %293 in 1 : vector<2x64xf32>, vector<2x32xf32>, vector<2x32xf32>, vector<2x64xf32>, vector<2x32xf32>, vector<2x32xf32> -> vector<2x256xf32>
    %392 = arith.index_cast %c1_i32 : i32 to index
    %c0_138 = arith.constant 0 : index
    %c0_139 = arith.constant 0 : index
    %393 = vector.load %arg15[%392, %c0_138, %c0_139] : memref<8x2x256xf32, #tpu.memory_space<vmem>>, vector<1x2x256xf32>
    %394 = vector.shape_cast %393 : vector<1x2x256xf32> to vector<2x256xf32>
    %395 = vector.shape_cast %391 : vector<2x256xf32> to vector<1x2x256xf32>
    tpu.vector_store %arg15[%392, %c0_138, %c0_139], %395 {strides = array<i32>} : memref<8x2x256xf32, #tpu.memory_space<vmem>>, vector<1x2x256xf32>,
    %c2_i32 = arith.constant 2 : i32
    %396 = arith.index_cast %c2_i32 : i32 to index
    %c0_140 = arith.constant 0 : index
    %c0_141 = arith.constant 0 : index
    %397 = vector.load %arg0[%396, %c0_140, %c0_141] : memref<8x2x128xf32, #tpu.memory_space<vmem>>, vector<1x2x128xf32>
    %398 = vector.shape_cast %397 : vector<1x2x128xf32> to vector<2x128xf32>
    %399 = vector.extract_strided_slice %398 {offsets = [0, 0], sizes = [2, 32], strides = [1, 1]} : vector<2x128xf32> to vector<2x32xf32>
    %400 = vector.extract_strided_slice %398 {offsets = [0, 32], sizes = [2, 32], strides = [1, 1]} : vector<2x128xf32> to vector<2x32xf32>
    %401 = vector.extract_strided_slice %398 {offsets = [0, 64], sizes = [2, 32], strides = [1, 1]} : vector<2x128xf32> to vector<2x32xf32>
    %402 = vector.extract_strided_slice %398 {offsets = [0, 96], sizes = [2, 32], strides = [1, 1]} : vector<2x128xf32> to vector<2x32xf32>
    %403 = arith.truncf %390 : vector<2x32xf32> to vector<2x32xbf16>
    %c0_142 = arith.constant 0 : index
    %c0_143 = arith.constant 0 : index
    %404 = vector.load %arg3[%c0_142, %c0_143] : memref<32x32xbf16, #tpu.memory_space<vmem>>, vector<32x32xbf16>
    %cst_144 = arith.constant dense<0.000000e+00> : vector<2x32xf32>
    %405 = tpu.matmul %403, %404, %cst_144 {dimension_numbers = #tpu.dot_dimension_numbers<[1], [0], [0], [1], [0, 0, 1, 1], [], []>} : vector<2x32xbf16>, vector<32x32xbf16>, vector<2x32xf32> -> vector<2x32xf32>
    %406 = arith.truncf %399 : vector<2x32xf32> to vector<2x32xbf16>
    %c0_145 = arith.constant 0 : index
    %c0_146 = arith.constant 0 : index
    %407 = vector.load %arg4[%c0_145, %c0_146] : memref<32x32xbf16, #tpu.memory_space<vmem>>, vector<32x32xbf16>
    %cst_147 = arith.constant dense<0.000000e+00> : vector<2x32xf32>
    %408 = tpu.matmul %406, %407, %cst_147 {dimension_numbers = #tpu.dot_dimension_numbers<[1], [0], [0], [1], [0, 0, 1, 1], [], []>} : vector<2x32xbf16>, vector<32x32xbf16>, vector<2x32xf32> -> vector<2x32xf32>
    %409 = arith.addf %405, %408 : vector<2x32xf32>
    %410 = arith.addf %409, %2 : vector<2x32xf32>
    %cst_148 = arith.constant dense<0.000000e+00> : vector<2xf32>
    %411 = vector.multi_reduction <add>, %410, %cst_148 [1] : vector<2x32xf32> to vector<2xf32>
    %412 = vector.shape_cast %411 : vector<2xf32> to vector<2x1xf32>
    %cst_149 = arith.constant 3.200000e+01 : f32
    %413 = vector.broadcast %cst_149 : f32 to vector<2x1xf32>
    %414 = arith.divf %412, %413 : vector<2x1xf32>
    %415 = vector.broadcast %414 : vector<2x1xf32> to vector<2x32xf32>
    %416 = arith.subf %410, %415 : vector<2x32xf32>
    %417 = arith.mulf %416, %416 : vector<2x32xf32>
    %cst_150 = arith.constant dense<0.000000e+00> : vector<2xf32>
    %418 = vector.multi_reduction <add>, %417, %cst_150 [1] : vector<2x32xf32> to vector<2xf32>
    %419 = vector.shape_cast %418 : vector<2xf32> to vector<2x1xf32>
    %cst_151 = arith.constant 3.200000e+01 : f32
    %420 = vector.broadcast %cst_151 : f32 to vector<2x1xf32>
    %421 = arith.divf %419, %420 : vector<2x1xf32>
    %422 = vector.broadcast %414 : vector<2x1xf32> to vector<2x32xf32>
    %423 = arith.subf %410, %422 : vector<2x32xf32>
    %cst_152 = arith.constant 1.000000e-03 : f32
    %424 = vector.broadcast %cst_152 : f32 to vector<2x1xf32>
    %425 = arith.addf %421, %424 : vector<2x1xf32>
    %426 = math.rsqrt %425 : vector<2x1xf32>
    %427 = vector.broadcast %426 : vector<2x1xf32> to vector<2x32xf32>
    %428 = arith.mulf %423, %427 : vector<2x32xf32>
    %429 = arith.mulf %428, %5 : vector<2x32xf32>
    %430 = arith.addf %429, %8 : vector<2x32xf32>
    %cst_153 = arith.constant 0.000000e+00 : f32
    %431 = vector.broadcast %cst_153 : f32 to vector<2x32xf32>
    %432 = arith.cmpf ogt, %430, %431 : vector<2x32xf32>
    %433 = math.exp %430 : vector<2x32xf32>
    %cst_154 = arith.constant 1.000000e+00 : f32
    %434 = vector.broadcast %cst_154 : f32 to vector<2x32xf32>
    %435 = arith.subf %433, %434 : vector<2x32xf32>
    %436 = arith.select %432, %430, %435 : vector<2x32xi1>, vector<2x32xf32>
    %437 = arith.truncf %436 : vector<2x32xf32> to vector<2x32xbf16>
    %c0_155 = arith.constant 0 : index
    %c0_156 = arith.constant 0 : index
    %438 = vector.load %arg5[%c0_155, %c0_156] : memref<32x96xbf16, #tpu.memory_space<vmem>>, vector<32x96xbf16>
    %cst_157 = arith.constant dense<0.000000e+00> : vector<2x96xf32>
    %439 = tpu.matmul %437, %438, %cst_157 {dimension_numbers = #tpu.dot_dimension_numbers<[1], [0], [0], [1], [0, 0, 1, 1], [], []>} : vector<2x32xbf16>, vector<32x96xbf16>, vector<2x96xf32> -> vector<2x96xf32>
    %440 = arith.addf %439, %11 : vector<2x96xf32>
    %441 = arith.truncf %293 : vector<2x32xf32> to vector<2x32xbf16>
    %c0_158 = arith.constant 0 : index
    %c0_159 = arith.constant 0 : index
    %442 = vector.load %arg6[%c0_158, %c0_159] : memref<32x96xbf16, #tpu.memory_space<vmem>>, vector<32x96xbf16>
    %cst_160 = arith.constant dense<0.000000e+00> : vector<2x96xf32>
    %443 = tpu.matmul %441, %442, %cst_160 {dimension_numbers = #tpu.dot_dimension_numbers<[1], [0], [0], [1], [0, 0, 1, 1], [], []>} : vector<2x32xbf16>, vector<32x96xbf16>, vector<2x96xf32> -> vector<2x96xf32>
    %444 = arith.addf %443, %14 : vector<2x96xf32>
    %445 = vector.extract_strided_slice %440 {offsets = [0, 0], sizes = [2, 32], strides = [1, 1]} : vector<2x96xf32> to vector<2x32xf32>
    %446 = vector.extract_strided_slice %444 {offsets = [0, 0], sizes = [2, 32], strides = [1, 1]} : vector<2x96xf32> to vector<2x32xf32>
    %447 = arith.addf %445, %446 : vector<2x32xf32>
    %448 = arith.negf %447 : vector<2x32xf32>
    %449 = math.exp %448 : vector<2x32xf32>
    %cst_161 = arith.constant 1.000000e+00 : f32
    %450 = vector.broadcast %cst_161 : f32 to vector<2x32xf32>
    %451 = arith.addf %450, %449 : vector<2x32xf32>
    %452 = arith.divf %450, %451 : vector<2x32xf32>
    %453 = vector.extract_strided_slice %440 {offsets = [0, 32], sizes = [2, 32], strides = [1, 1]} : vector<2x96xf32> to vector<2x32xf32>
    %454 = vector.extract_strided_slice %444 {offsets = [0, 32], sizes = [2, 32], strides = [1, 1]} : vector<2x96xf32> to vector<2x32xf32>
    %455 = arith.addf %453, %454 : vector<2x32xf32>
    %456 = arith.negf %455 : vector<2x32xf32>
    %457 = math.exp %456 : vector<2x32xf32>
    %cst_162 = arith.constant 1.000000e+00 : f32
    %458 = vector.broadcast %cst_162 : f32 to vector<2x32xf32>
    %459 = arith.addf %458, %457 : vector<2x32xf32>
    %460 = arith.divf %458, %459 : vector<2x32xf32>
    %461 = vector.extract_strided_slice %440 {offsets = [0, 64], sizes = [2, 32], strides = [1, 1]} : vector<2x96xf32> to vector<2x32xf32>
    %462 = vector.extract_strided_slice %444 {offsets = [0, 64], sizes = [2, 32], strides = [1, 1]} : vector<2x96xf32> to vector<2x32xf32>
    %463 = arith.mulf %452, %462 : vector<2x32xf32>
    %464 = arith.addf %461, %463 : vector<2x32xf32>
    %465 = math.tanh %464 : vector<2x32xf32>
    %cst_163 = arith.constant 1.000000e+00 : f32
    %466 = vector.broadcast %cst_163 : f32 to vector<2x32xf32>
    %467 = arith.subf %466, %460 : vector<2x32xf32>
    %468 = arith.mulf %467, %465 : vector<2x32xf32>
    %469 = arith.mulf %460, %293 : vector<2x32xf32>
    %470 = arith.addf %468, %469 : vector<2x32xf32>
    %471 = arith.truncf %470 : vector<2x32xf32> to vector<2x32xbf16>
    %c0_164 = arith.constant 0 : index
    %c0_165 = arith.constant 0 : index
    %472 = vector.load %arg7[%c0_164, %c0_165] : memref<32x128xbf16, #tpu.memory_space<vmem>>, vector<32x128xbf16>
    %cst_166 = arith.constant dense<0.000000e+00> : vector<2x128xf32>
    %473 = tpu.matmul %471, %472, %cst_166 {dimension_numbers = #tpu.dot_dimension_numbers<[1], [0], [0], [1], [0, 0, 1, 1], [], []>} : vector<2x32xbf16>, vector<32x128xbf16>, vector<2x128xf32> -> vector<2x128xf32>
    %474 = vector.extract_strided_slice %473 {offsets = [0, 0], sizes = [2, 64], strides = [1, 1]} : vector<2x128xf32> to vector<2x64xf32>
    %475 = arith.addf %474, %17 : vector<2x64xf32>
    %cst_167 = arith.constant dense<0.000000e+00> : vector<2xf32>
    %476 = vector.multi_reduction <add>, %475, %cst_167 [1] : vector<2x64xf32> to vector<2xf32>
    %477 = vector.shape_cast %476 : vector<2xf32> to vector<2x1xf32>
    %cst_168 = arith.constant 6.400000e+01 : f32
    %478 = vector.broadcast %cst_168 : f32 to vector<2x1xf32>
    %479 = arith.divf %477, %478 : vector<2x1xf32>
    %480 = vector.broadcast %479 : vector<2x1xf32> to vector<2x64xf32>
    %481 = arith.subf %475, %480 : vector<2x64xf32>
    %482 = arith.mulf %481, %481 : vector<2x64xf32>
    %cst_169 = arith.constant dense<0.000000e+00> : vector<2xf32>
    %483 = vector.multi_reduction <add>, %482, %cst_169 [1] : vector<2x64xf32> to vector<2xf32>
    %484 = vector.shape_cast %483 : vector<2xf32> to vector<2x1xf32>
    %cst_170 = arith.constant 6.400000e+01 : f32
    %485 = vector.broadcast %cst_170 : f32 to vector<2x1xf32>
    %486 = arith.divf %484, %485 : vector<2x1xf32>
    %487 = vector.broadcast %479 : vector<2x1xf32> to vector<2x64xf32>
    %488 = arith.subf %475, %487 : vector<2x64xf32>
    %cst_171 = arith.constant 1.000000e-03 : f32
    %489 = vector.broadcast %cst_171 : f32 to vector<2x1xf32>
    %490 = arith.addf %486, %489 : vector<2x1xf32>
    %491 = math.rsqrt %490 : vector<2x1xf32>
    %492 = vector.broadcast %491 : vector<2x1xf32> to vector<2x64xf32>
    %493 = arith.mulf %488, %492 : vector<2x64xf32>
    %494 = arith.mulf %493, %20 : vector<2x64xf32>
    %495 = arith.addf %494, %23 : vector<2x64xf32>
    %cst_172 = arith.constant 0.000000e+00 : f32
    %496 = vector.broadcast %cst_172 : f32 to vector<2x64xf32>
    %497 = arith.cmpf ogt, %495, %496 : vector<2x64xf32>
    %498 = math.exp %495 : vector<2x64xf32>
    %cst_173 = arith.constant 1.000000e+00 : f32
    %499 = vector.broadcast %cst_173 : f32 to vector<2x64xf32>
    %500 = arith.subf %498, %499 : vector<2x64xf32>
    %501 = arith.select %497, %495, %500 : vector<2x64xi1>, vector<2x64xf32>
    %502 = vector.extract_strided_slice %473 {offsets = [0, 64], sizes = [2, 64], strides = [1, 1]} : vector<2x128xf32> to vector<2x64xf32>
    %503 = arith.truncf %400 : vector<2x32xf32> to vector<2x32xbf16>
    %c0_174 = arith.constant 0 : index
    %c0_175 = arith.constant 0 : index
    %504 = vector.load %arg8[%c0_174, %c0_175] : memref<32x64xbf16, #tpu.memory_space<vmem>>, vector<32x64xbf16>
    %cst_176 = arith.constant dense<0.000000e+00> : vector<2x64xf32>
    %505 = tpu.matmul %503, %504, %cst_176 {dimension_numbers = #tpu.dot_dimension_numbers<[1], [0], [0], [1], [0, 0, 1, 1], [], []>} : vector<2x32xbf16>, vector<32x64xbf16>, vector<2x64xf32> -> vector<2x64xf32>
    %506 = arith.addf %502, %505 : vector<2x64xf32>
    %507 = arith.addf %506, %26 : vector<2x64xf32>
    %cst_177 = arith.constant dense<0.000000e+00> : vector<2xf32>
    %508 = vector.multi_reduction <add>, %507, %cst_177 [1] : vector<2x64xf32> to vector<2xf32>
    %509 = vector.shape_cast %508 : vector<2xf32> to vector<2x1xf32>
    %cst_178 = arith.constant 6.400000e+01 : f32
    %510 = vector.broadcast %cst_178 : f32 to vector<2x1xf32>
    %511 = arith.divf %509, %510 : vector<2x1xf32>
    %512 = vector.broadcast %511 : vector<2x1xf32> to vector<2x64xf32>
    %513 = arith.subf %507, %512 : vector<2x64xf32>
    %514 = arith.mulf %513, %513 : vector<2x64xf32>
    %cst_179 = arith.constant dense<0.000000e+00> : vector<2xf32>
    %515 = vector.multi_reduction <add>, %514, %cst_179 [1] : vector<2x64xf32> to vector<2xf32>
    %516 = vector.shape_cast %515 : vector<2xf32> to vector<2x1xf32>
    %cst_180 = arith.constant 6.400000e+01 : f32
    %517 = vector.broadcast %cst_180 : f32 to vector<2x1xf32>
    %518 = arith.divf %516, %517 : vector<2x1xf32>
    %519 = vector.broadcast %511 : vector<2x1xf32> to vector<2x64xf32>
    %520 = arith.subf %507, %519 : vector<2x64xf32>
    %cst_181 = arith.constant 1.000000e-03 : f32
    %521 = vector.broadcast %cst_181 : f32 to vector<2x1xf32>
    %522 = arith.addf %518, %521 : vector<2x1xf32>
    %523 = math.rsqrt %522 : vector<2x1xf32>
    %524 = vector.broadcast %523 : vector<2x1xf32> to vector<2x64xf32>
    %525 = arith.mulf %520, %524 : vector<2x64xf32>
    %526 = arith.mulf %525, %29 : vector<2x64xf32>
    %527 = arith.addf %526, %32 : vector<2x64xf32>
    %cst_182 = arith.constant 0.000000e+00 : f32
    %528 = vector.broadcast %cst_182 : f32 to vector<2x64xf32>
    %529 = arith.cmpf ogt, %527, %528 : vector<2x64xf32>
    %530 = math.exp %527 : vector<2x64xf32>
    %cst_183 = arith.constant 1.000000e+00 : f32
    %531 = vector.broadcast %cst_183 : f32 to vector<2x64xf32>
    %532 = arith.subf %530, %531 : vector<2x64xf32>
    %533 = arith.select %529, %527, %532 : vector<2x64xi1>, vector<2x64xf32>
    %534 = arith.truncf %501 : vector<2x64xf32> to vector<2x64xbf16>
    %c0_184 = arith.constant 0 : index
    %c0_185 = arith.constant 0 : index
    %535 = vector.load %arg9[%c0_184, %c0_185] : memref<64x64xbf16, #tpu.memory_space<vmem>>, vector<64x64xbf16>
    %cst_186 = arith.constant dense<0.000000e+00> : vector<2x64xf32>
    %536 = tpu.matmul %534, %535, %cst_186 {dimension_numbers = #tpu.dot_dimension_numbers<[1], [0], [0], [1], [0, 0, 1, 1], [], []>} : vector<2x64xbf16>, vector<64x64xbf16>, vector<2x64xf32> -> vector<2x64xf32>
    %537 = arith.addf %536, %35 : vector<2x64xf32>
    %538 = arith.truncf %533 : vector<2x64xf32> to vector<2x64xbf16>
    %c0_187 = arith.constant 0 : index
    %c0_188 = arith.constant 0 : index
    %539 = vector.load %arg10[%c0_187, %c0_188] : memref<64x64xbf16, #tpu.memory_space<vmem>>, vector<64x64xbf16>
    %cst_189 = arith.constant dense<0.000000e+00> : vector<2x64xf32>
    %540 = tpu.matmul %538, %539, %cst_189 {dimension_numbers = #tpu.dot_dimension_numbers<[1], [0], [0], [1], [0, 0, 1, 1], [], []>} : vector<2x64xbf16>, vector<64x64xbf16>, vector<2x64xf32> -> vector<2x64xf32>
    %541 = arith.addf %540, %38 : vector<2x64xf32>
    %542 = vector.extract_strided_slice %537 {offsets = [0, 0], sizes = [2, 32], strides = [1, 1]} : vector<2x64xf32> to vector<2x32xf32>
    %543 = vector.extract_strided_slice %537 {offsets = [0, 32], sizes = [2, 32], strides = [1, 1]} : vector<2x64xf32> to vector<2x32xf32>
    %544 = arith.negf %543 : vector<2x32xf32>
    %545 = math.exp %544 : vector<2x32xf32>
    %cst_190 = arith.constant 1.000000e+00 : f32
    %546 = vector.broadcast %cst_190 : f32 to vector<2x32xf32>
    %547 = arith.addf %546, %545 : vector<2x32xf32>
    %548 = arith.divf %546, %547 : vector<2x32xf32>
    %cst_191 = arith.constant 2.000000e+00 : f32
    %549 = vector.broadcast %cst_191 : f32 to vector<2x32xf32>
    %550 = arith.mulf %549, %548 : vector<2x32xf32>
    %cst_192 = arith.constant 1.000000e-01 : f32
    %551 = vector.broadcast %cst_192 : f32 to vector<2x32xf32>
    %552 = arith.addf %550, %551 : vector<2x32xf32>
    %553 = arith.mulf %552, %401 : vector<2x32xf32>
    %554 = arith.addf %542, %553 : vector<2x32xf32>
    %555 = vector.extract_strided_slice %541 {offsets = [0, 0], sizes = [2, 32], strides = [1, 1]} : vector<2x64xf32> to vector<2x32xf32>
    %556 = vector.extract_strided_slice %541 {offsets = [0, 32], sizes = [2, 32], strides = [1, 1]} : vector<2x64xf32> to vector<2x32xf32>
    %557 = arith.negf %556 : vector<2x32xf32>
    %558 = math.exp %557 : vector<2x32xf32>
    %cst_193 = arith.constant 1.000000e+00 : f32
    %559 = vector.broadcast %cst_193 : f32 to vector<2x32xf32>
    %560 = arith.addf %559, %558 : vector<2x32xf32>
    %561 = arith.divf %559, %560 : vector<2x32xf32>
    %cst_194 = arith.constant 2.000000e+00 : f32
    %562 = vector.broadcast %cst_194 : f32 to vector<2x32xf32>
    %563 = arith.mulf %562, %561 : vector<2x32xf32>
    %cst_195 = arith.constant 1.000000e-01 : f32
    %564 = vector.broadcast %cst_195 : f32 to vector<2x32xf32>
    %565 = arith.addf %563, %564 : vector<2x32xf32>
    %566 = arith.mulf %565, %402 : vector<2x32xf32>
    %567 = arith.addf %555, %566 : vector<2x32xf32>
    %568 = tpu.concatenate %537, %554, %39, %541, %567, %470 in 1 : vector<2x64xf32>, vector<2x32xf32>, vector<2x32xf32>, vector<2x64xf32>, vector<2x32xf32>, vector<2x32xf32> -> vector<2x256xf32>
    %569 = arith.index_cast %c2_i32 : i32 to index
    %c0_196 = arith.constant 0 : index
    %c0_197 = arith.constant 0 : index
    %570 = vector.load %arg15[%569, %c0_196, %c0_197] : memref<8x2x256xf32, #tpu.memory_space<vmem>>, vector<1x2x256xf32>
    %571 = vector.shape_cast %570 : vector<1x2x256xf32> to vector<2x256xf32>
    %572 = vector.shape_cast %568 : vector<2x256xf32> to vector<1x2x256xf32>
    tpu.vector_store %arg15[%569, %c0_196, %c0_197], %572 {strides = array<i32>} : memref<8x2x256xf32, #tpu.memory_space<vmem>>, vector<1x2x256xf32>,
    %c3_i32 = arith.constant 3 : i32
    %573 = arith.index_cast %c3_i32 : i32 to index
    %c0_198 = arith.constant 0 : index
    %c0_199 = arith.constant 0 : index
    %574 = vector.load %arg0[%573, %c0_198, %c0_199] : memref<8x2x128xf32, #tpu.memory_space<vmem>>, vector<1x2x128xf32>
    %575 = vector.shape_cast %574 : vector<1x2x128xf32> to vector<2x128xf32>
    %576 = vector.extract_strided_slice %575 {offsets = [0, 0], sizes = [2, 32], strides = [1, 1]} : vector<2x128xf32> to vector<2x32xf32>
    %577 = vector.extract_strided_slice %575 {offsets = [0, 32], sizes = [2, 32], strides = [1, 1]} : vector<2x128xf32> to vector<2x32xf32>
    %578 = vector.extract_strided_slice %575 {offsets = [0, 64], sizes = [2, 32], strides = [1, 1]} : vector<2x128xf32> to vector<2x32xf32>
    %579 = vector.extract_strided_slice %575 {offsets = [0, 96], sizes = [2, 32], strides = [1, 1]} : vector<2x128xf32> to vector<2x32xf32>
    %580 = arith.truncf %567 : vector<2x32xf32> to vector<2x32xbf16>
    %c0_200 = arith.constant 0 : index
    %c0_201 = arith.constant 0 : index
    %581 = vector.load %arg3[%c0_200, %c0_201] : memref<32x32xbf16, #tpu.memory_space<vmem>>, vector<32x32xbf16>
    %cst_202 = arith.constant dense<0.000000e+00> : vector<2x32xf32>
    %582 = tpu.matmul %580, %581, %cst_202 {dimension_numbers = #tpu.dot_dimension_numbers<[1], [0], [0], [1], [0, 0, 1, 1], [], []>} : vector<2x32xbf16>, vector<32x32xbf16>, vector<2x32xf32> -> vector<2x32xf32>
    %583 = arith.truncf %576 : vector<2x32xf32> to vector<2x32xbf16>
    %c0_203 = arith.constant 0 : index
    %c0_204 = arith.constant 0 : index
    %584 = vector.load %arg4[%c0_203, %c0_204] : memref<32x32xbf16, #tpu.memory_space<vmem>>, vector<32x32xbf16>
    %cst_205 = arith.constant dense<0.000000e+00> : vector<2x32xf32>
    %585 = tpu.matmul %583, %584, %cst_205 {dimension_numbers = #tpu.dot_dimension_numbers<[1], [0], [0], [1], [0, 0, 1, 1], [], []>} : vector<2x32xbf16>, vector<32x32xbf16>, vector<2x32xf32> -> vector<2x32xf32>
    %586 = arith.addf %582, %585 : vector<2x32xf32>
    %587 = arith.addf %586, %2 : vector<2x32xf32>
    %cst_206 = arith.constant dense<0.000000e+00> : vector<2xf32>
    %588 = vector.multi_reduction <add>, %587, %cst_206 [1] : vector<2x32xf32> to vector<2xf32>
    %589 = vector.shape_cast %588 : vector<2xf32> to vector<2x1xf32>
    %cst_207 = arith.constant 3.200000e+01 : f32
    %590 = vector.broadcast %cst_207 : f32 to vector<2x1xf32>
    %591 = arith.divf %589, %590 : vector<2x1xf32>
    %592 = vector.broadcast %591 : vector<2x1xf32> to vector<2x32xf32>
    %593 = arith.subf %587, %592 : vector<2x32xf32>
    %594 = arith.mulf %593, %593 : vector<2x32xf32>
    %cst_208 = arith.constant dense<0.000000e+00> : vector<2xf32>
    %595 = vector.multi_reduction <add>, %594, %cst_208 [1] : vector<2x32xf32> to vector<2xf32>
    %596 = vector.shape_cast %595 : vector<2xf32> to vector<2x1xf32>
    %cst_209 = arith.constant 3.200000e+01 : f32
    %597 = vector.broadcast %cst_209 : f32 to vector<2x1xf32>
    %598 = arith.divf %596, %597 : vector<2x1xf32>
    %599 = vector.broadcast %591 : vector<2x1xf32> to vector<2x32xf32>
    %600 = arith.subf %587, %599 : vector<2x32xf32>
    %cst_210 = arith.constant 1.000000e-03 : f32
    %601 = vector.broadcast %cst_210 : f32 to vector<2x1xf32>
    %602 = arith.addf %598, %601 : vector<2x1xf32>
    %603 = math.rsqrt %602 : vector<2x1xf32>
    %604 = vector.broadcast %603 : vector<2x1xf32> to vector<2x32xf32>
    %605 = arith.mulf %600, %604 : vector<2x32xf32>
    %606 = arith.mulf %605, %5 : vector<2x32xf32>
    %607 = arith.addf %606, %8 : vector<2x32xf32>
    %cst_211 = arith.constant 0.000000e+00 : f32
    %608 = vector.broadcast %cst_211 : f32 to vector<2x32xf32>
    %609 = arith.cmpf ogt, %607, %608 : vector<2x32xf32>
    %610 = math.exp %607 : vector<2x32xf32>
    %cst_212 = arith.constant 1.000000e+00 : f32
    %611 = vector.broadcast %cst_212 : f32 to vector<2x32xf32>
    %612 = arith.subf %610, %611 : vector<2x32xf32>
    %613 = arith.select %609, %607, %612 : vector<2x32xi1>, vector<2x32xf32>
    %614 = arith.truncf %613 : vector<2x32xf32> to vector<2x32xbf16>
    %c0_213 = arith.constant 0 : index
    %c0_214 = arith.constant 0 : index
    %615 = vector.load %arg5[%c0_213, %c0_214] : memref<32x96xbf16, #tpu.memory_space<vmem>>, vector<32x96xbf16>
    %cst_215 = arith.constant dense<0.000000e+00> : vector<2x96xf32>
    %616 = tpu.matmul %614, %615, %cst_215 {dimension_numbers = #tpu.dot_dimension_numbers<[1], [0], [0], [1], [0, 0, 1, 1], [], []>} : vector<2x32xbf16>, vector<32x96xbf16>, vector<2x96xf32> -> vector<2x96xf32>
    %617 = arith.addf %616, %11 : vector<2x96xf32>
    %618 = arith.truncf %470 : vector<2x32xf32> to vector<2x32xbf16>
    %c0_216 = arith.constant 0 : index
    %c0_217 = arith.constant 0 : index
    %619 = vector.load %arg6[%c0_216, %c0_217] : memref<32x96xbf16, #tpu.memory_space<vmem>>, vector<32x96xbf16>
    %cst_218 = arith.constant dense<0.000000e+00> : vector<2x96xf32>
    %620 = tpu.matmul %618, %619, %cst_218 {dimension_numbers = #tpu.dot_dimension_numbers<[1], [0], [0], [1], [0, 0, 1, 1], [], []>} : vector<2x32xbf16>, vector<32x96xbf16>, vector<2x96xf32> -> vector<2x96xf32>
    %621 = arith.addf %620, %14 : vector<2x96xf32>
    %622 = vector.extract_strided_slice %617 {offsets = [0, 0], sizes = [2, 32], strides = [1, 1]} : vector<2x96xf32> to vector<2x32xf32>
    %623 = vector.extract_strided_slice %621 {offsets = [0, 0], sizes = [2, 32], strides = [1, 1]} : vector<2x96xf32> to vector<2x32xf32>
    %624 = arith.addf %622, %623 : vector<2x32xf32>
    %625 = arith.negf %624 : vector<2x32xf32>
    %626 = math.exp %625 : vector<2x32xf32>
    %cst_219 = arith.constant 1.000000e+00 : f32
    %627 = vector.broadcast %cst_219 : f32 to vector<2x32xf32>
    %628 = arith.addf %627, %626 : vector<2x32xf32>
    %629 = arith.divf %627, %628 : vector<2x32xf32>
    %630 = vector.extract_strided_slice %617 {offsets = [0, 32], sizes = [2, 32], strides = [1, 1]} : vector<2x96xf32> to vector<2x32xf32>
    %631 = vector.extract_strided_slice %621 {offsets = [0, 32], sizes = [2, 32], strides = [1, 1]} : vector<2x96xf32> to vector<2x32xf32>
    %632 = arith.addf %630, %631 : vector<2x32xf32>
    %633 = arith.negf %632 : vector<2x32xf32>
    %634 = math.exp %633 : vector<2x32xf32>
    %cst_220 = arith.constant 1.000000e+00 : f32
    %635 = vector.broadcast %cst_220 : f32 to vector<2x32xf32>
    %636 = arith.addf %635, %634 : vector<2x32xf32>
    %637 = arith.divf %635, %636 : vector<2x32xf32>
    %638 = vector.extract_strided_slice %617 {offsets = [0, 64], sizes = [2, 32], strides = [1, 1]} : vector<2x96xf32> to vector<2x32xf32>
    %639 = vector.extract_strided_slice %621 {offsets = [0, 64], sizes = [2, 32], strides = [1, 1]} : vector<2x96xf32> to vector<2x32xf32>
    %640 = arith.mulf %629, %639 : vector<2x32xf32>
    %641 = arith.addf %638, %640 : vector<2x32xf32>
    %642 = math.tanh %641 : vector<2x32xf32>
    %cst_221 = arith.constant 1.000000e+00 : f32
    %643 = vector.broadcast %cst_221 : f32 to vector<2x32xf32>
    %644 = arith.subf %643, %637 : vector<2x32xf32>
    %645 = arith.mulf %644, %642 : vector<2x32xf32>
    %646 = arith.mulf %637, %470 : vector<2x32xf32>
    %647 = arith.addf %645, %646 : vector<2x32xf32>
    %648 = arith.truncf %647 : vector<2x32xf32> to vector<2x32xbf16>
    %c0_222 = arith.constant 0 : index
    %c0_223 = arith.constant 0 : index
    %649 = vector.load %arg7[%c0_222, %c0_223] : memref<32x128xbf16, #tpu.memory_space<vmem>>, vector<32x128xbf16>
    %cst_224 = arith.constant dense<0.000000e+00> : vector<2x128xf32>
    %650 = tpu.matmul %648, %649, %cst_224 {dimension_numbers = #tpu.dot_dimension_numbers<[1], [0], [0], [1], [0, 0, 1, 1], [], []>} : vector<2x32xbf16>, vector<32x128xbf16>, vector<2x128xf32> -> vector<2x128xf32>
    %651 = vector.extract_strided_slice %650 {offsets = [0, 0], sizes = [2, 64], strides = [1, 1]} : vector<2x128xf32> to vector<2x64xf32>
    %652 = arith.addf %651, %17 : vector<2x64xf32>
    %cst_225 = arith.constant dense<0.000000e+00> : vector<2xf32>
    %653 = vector.multi_reduction <add>, %652, %cst_225 [1] : vector<2x64xf32> to vector<2xf32>
    %654 = vector.shape_cast %653 : vector<2xf32> to vector<2x1xf32>
    %cst_226 = arith.constant 6.400000e+01 : f32
    %655 = vector.broadcast %cst_226 : f32 to vector<2x1xf32>
    %656 = arith.divf %654, %655 : vector<2x1xf32>
    %657 = vector.broadcast %656 : vector<2x1xf32> to vector<2x64xf32>
    %658 = arith.subf %652, %657 : vector<2x64xf32>
    %659 = arith.mulf %658, %658 : vector<2x64xf32>
    %cst_227 = arith.constant dense<0.000000e+00> : vector<2xf32>
    %660 = vector.multi_reduction <add>, %659, %cst_227 [1] : vector<2x64xf32> to vector<2xf32>
    %661 = vector.shape_cast %660 : vector<2xf32> to vector<2x1xf32>
    %cst_228 = arith.constant 6.400000e+01 : f32
    %662 = vector.broadcast %cst_228 : f32 to vector<2x1xf32>
    %663 = arith.divf %661, %662 : vector<2x1xf32>
    %664 = vector.broadcast %656 : vector<2x1xf32> to vector<2x64xf32>
    %665 = arith.subf %652, %664 : vector<2x64xf32>
    %cst_229 = arith.constant 1.000000e-03 : f32
    %666 = vector.broadcast %cst_229 : f32 to vector<2x1xf32>
    %667 = arith.addf %663, %666 : vector<2x1xf32>
    %668 = math.rsqrt %667 : vector<2x1xf32>
    %669 = vector.broadcast %668 : vector<2x1xf32> to vector<2x64xf32>
    %670 = arith.mulf %665, %669 : vector<2x64xf32>
    %671 = arith.mulf %670, %20 : vector<2x64xf32>
    %672 = arith.addf %671, %23 : vector<2x64xf32>
    %cst_230 = arith.constant 0.000000e+00 : f32
    %673 = vector.broadcast %cst_230 : f32 to vector<2x64xf32>
    %674 = arith.cmpf ogt, %672, %673 : vector<2x64xf32>
    %675 = math.exp %672 : vector<2x64xf32>
    %cst_231 = arith.constant 1.000000e+00 : f32
    %676 = vector.broadcast %cst_231 : f32 to vector<2x64xf32>
    %677 = arith.subf %675, %676 : vector<2x64xf32>
    %678 = arith.select %674, %672, %677 : vector<2x64xi1>, vector<2x64xf32>
    %679 = vector.extract_strided_slice %650 {offsets = [0, 64], sizes = [2, 64], strides = [1, 1]} : vector<2x128xf32> to vector<2x64xf32>
    %680 = arith.truncf %577 : vector<2x32xf32> to vector<2x32xbf16>
    %c0_232 = arith.constant 0 : index
    %c0_233 = arith.constant 0 : index
    %681 = vector.load %arg8[%c0_232, %c0_233] : memref<32x64xbf16, #tpu.memory_space<vmem>>, vector<32x64xbf16>
    %cst_234 = arith.constant dense<0.000000e+00> : vector<2x64xf32>
    %682 = tpu.matmul %680, %681, %cst_234 {dimension_numbers = #tpu.dot_dimension_numbers<[1], [0], [0], [1], [0, 0, 1, 1], [], []>} : vector<2x32xbf16>, vector<32x64xbf16>, vector<2x64xf32> -> vector<2x64xf32>
    %683 = arith.addf %679, %682 : vector<2x64xf32>
    %684 = arith.addf %683, %26 : vector<2x64xf32>
    %cst_235 = arith.constant dense<0.000000e+00> : vector<2xf32>
    %685 = vector.multi_reduction <add>, %684, %cst_235 [1] : vector<2x64xf32> to vector<2xf32>
    %686 = vector.shape_cast %685 : vector<2xf32> to vector<2x1xf32>
    %cst_236 = arith.constant 6.400000e+01 : f32
    %687 = vector.broadcast %cst_236 : f32 to vector<2x1xf32>
    %688 = arith.divf %686, %687 : vector<2x1xf32>
    %689 = vector.broadcast %688 : vector<2x1xf32> to vector<2x64xf32>
    %690 = arith.subf %684, %689 : vector<2x64xf32>
    %691 = arith.mulf %690, %690 : vector<2x64xf32>
    %cst_237 = arith.constant dense<0.000000e+00> : vector<2xf32>
    %692 = vector.multi_reduction <add>, %691, %cst_237 [1] : vector<2x64xf32> to vector<2xf32>
    %693 = vector.shape_cast %692 : vector<2xf32> to vector<2x1xf32>
    %cst_238 = arith.constant 6.400000e+01 : f32
    %694 = vector.broadcast %cst_238 : f32 to vector<2x1xf32>
    %695 = arith.divf %693, %694 : vector<2x1xf32>
    %696 = vector.broadcast %688 : vector<2x1xf32> to vector<2x64xf32>
    %697 = arith.subf %684, %696 : vector<2x64xf32>
    %cst_239 = arith.constant 1.000000e-03 : f32
    %698 = vector.broadcast %cst_239 : f32 to vector<2x1xf32>
    %699 = arith.addf %695, %698 : vector<2x1xf32>
    %700 = math.rsqrt %699 : vector<2x1xf32>
    %701 = vector.broadcast %700 : vector<2x1xf32> to vector<2x64xf32>
    %702 = arith.mulf %697, %701 : vector<2x64xf32>
    %703 = arith.mulf %702, %29 : vector<2x64xf32>
    %704 = arith.addf %703, %32 : vector<2x64xf32>
    %cst_240 = arith.constant 0.000000e+00 : f32
    %705 = vector.broadcast %cst_240 : f32 to vector<2x64xf32>
    %706 = arith.cmpf ogt, %704, %705 : vector<2x64xf32>
    %707 = math.exp %704 : vector<2x64xf32>
    %cst_241 = arith.constant 1.000000e+00 : f32
    %708 = vector.broadcast %cst_241 : f32 to vector<2x64xf32>
    %709 = arith.subf %707, %708 : vector<2x64xf32>
    %710 = arith.select %706, %704, %709 : vector<2x64xi1>, vector<2x64xf32>
    %711 = arith.truncf %678 : vector<2x64xf32> to vector<2x64xbf16>
    %c0_242 = arith.constant 0 : index
    %c0_243 = arith.constant 0 : index
    %712 = vector.load %arg9[%c0_242, %c0_243] : memref<64x64xbf16, #tpu.memory_space<vmem>>, vector<64x64xbf16>
    %cst_244 = arith.constant dense<0.000000e+00> : vector<2x64xf32>
    %713 = tpu.matmul %711, %712, %cst_244 {dimension_numbers = #tpu.dot_dimension_numbers<[1], [0], [0], [1], [0, 0, 1, 1], [], []>} : vector<2x64xbf16>, vector<64x64xbf16>, vector<2x64xf32> -> vector<2x64xf32>
    %714 = arith.addf %713, %35 : vector<2x64xf32>
    %715 = arith.truncf %710 : vector<2x64xf32> to vector<2x64xbf16>
    %c0_245 = arith.constant 0 : index
    %c0_246 = arith.constant 0 : index
    %716 = vector.load %arg10[%c0_245, %c0_246] : memref<64x64xbf16, #tpu.memory_space<vmem>>, vector<64x64xbf16>
    %cst_247 = arith.constant dense<0.000000e+00> : vector<2x64xf32>
    %717 = tpu.matmul %715, %716, %cst_247 {dimension_numbers = #tpu.dot_dimension_numbers<[1], [0], [0], [1], [0, 0, 1, 1], [], []>} : vector<2x64xbf16>, vector<64x64xbf16>, vector<2x64xf32> -> vector<2x64xf32>
    %718 = arith.addf %717, %38 : vector<2x64xf32>
    %719 = vector.extract_strided_slice %714 {offsets = [0, 0], sizes = [2, 32], strides = [1, 1]} : vector<2x64xf32> to vector<2x32xf32>
    %720 = vector.extract_strided_slice %714 {offsets = [0, 32], sizes = [2, 32], strides = [1, 1]} : vector<2x64xf32> to vector<2x32xf32>
    %721 = arith.negf %720 : vector<2x32xf32>
    %722 = math.exp %721 : vector<2x32xf32>
    %cst_248 = arith.constant 1.000000e+00 : f32
    %723 = vector.broadcast %cst_248 : f32 to vector<2x32xf32>
    %724 = arith.addf %723, %722 : vector<2x32xf32>
    %725 = arith.divf %723, %724 : vector<2x32xf32>
    %cst_249 = arith.constant 2.000000e+00 : f32
    %726 = vector.broadcast %cst_249 : f32 to vector<2x32xf32>
    %727 = arith.mulf %726, %725 : vector<2x32xf32>
    %cst_250 = arith.constant 1.000000e-01 : f32
    %728 = vector.broadcast %cst_250 : f32 to vector<2x32xf32>
    %729 = arith.addf %727, %728 : vector<2x32xf32>
    %730 = arith.mulf %729, %578 : vector<2x32xf32>
    %731 = arith.addf %719, %730 : vector<2x32xf32>
    %732 = vector.extract_strided_slice %718 {offsets = [0, 0], sizes = [2, 32], strides = [1, 1]} : vector<2x64xf32> to vector<2x32xf32>
    %733 = vector.extract_strided_slice %718 {offsets = [0, 32], sizes = [2, 32], strides = [1, 1]} : vector<2x64xf32> to vector<2x32xf32>
    %734 = arith.negf %733 : vector<2x32xf32>
    %735 = math.exp %734 : vector<2x32xf32>
    %cst_251 = arith.constant 1.000000e+00 : f32
    %736 = vector.broadcast %cst_251 : f32 to vector<2x32xf32>
    %737 = arith.addf %736, %735 : vector<2x32xf32>
    %738 = arith.divf %736, %737 : vector<2x32xf32>
    %cst_252 = arith.constant 2.000000e+00 : f32
    %739 = vector.broadcast %cst_252 : f32 to vector<2x32xf32>
    %740 = arith.mulf %739, %738 : vector<2x32xf32>
    %cst_253 = arith.constant 1.000000e-01 : f32
    %741 = vector.broadcast %cst_253 : f32 to vector<2x32xf32>
    %742 = arith.addf %740, %741 : vector<2x32xf32>
    %743 = arith.mulf %742, %579 : vector<2x32xf32>
    %744 = arith.addf %732, %743 : vector<2x32xf32>
    %745 = tpu.concatenate %714, %731, %39, %718, %744, %647 in 1 : vector<2x64xf32>, vector<2x32xf32>, vector<2x32xf32>, vector<2x64xf32>, vector<2x32xf32>, vector<2x32xf32> -> vector<2x256xf32>
    %746 = arith.index_cast %c3_i32 : i32 to index
    %c0_254 = arith.constant 0 : index
    %c0_255 = arith.constant 0 : index
    %747 = vector.load %arg15[%746, %c0_254, %c0_255] : memref<8x2x256xf32, #tpu.memory_space<vmem>>, vector<1x2x256xf32>
    %748 = vector.shape_cast %747 : vector<1x2x256xf32> to vector<2x256xf32>
    %749 = vector.shape_cast %745 : vector<2x256xf32> to vector<1x2x256xf32>
    tpu.vector_store %arg15[%746, %c0_254, %c0_255], %749 {strides = array<i32>} : memref<8x2x256xf32, #tpu.memory_space<vmem>>, vector<1x2x256xf32>,
    %c4_i32 = arith.constant 4 : i32
    %750 = arith.index_cast %c4_i32 : i32 to index
    %c0_256 = arith.constant 0 : index
    %c0_257 = arith.constant 0 : index
    %751 = vector.load %arg0[%750, %c0_256, %c0_257] : memref<8x2x128xf32, #tpu.memory_space<vmem>>, vector<1x2x128xf32>
    %752 = vector.shape_cast %751 : vector<1x2x128xf32> to vector<2x128xf32>
    %753 = vector.extract_strided_slice %752 {offsets = [0, 0], sizes = [2, 32], strides = [1, 1]} : vector<2x128xf32> to vector<2x32xf32>
    %754 = vector.extract_strided_slice %752 {offsets = [0, 32], sizes = [2, 32], strides = [1, 1]} : vector<2x128xf32> to vector<2x32xf32>
    %755 = vector.extract_strided_slice %752 {offsets = [0, 64], sizes = [2, 32], strides = [1, 1]} : vector<2x128xf32> to vector<2x32xf32>
    %756 = vector.extract_strided_slice %752 {offsets = [0, 96], sizes = [2, 32], strides = [1, 1]} : vector<2x128xf32> to vector<2x32xf32>
    %757 = arith.truncf %744 : vector<2x32xf32> to vector<2x32xbf16>
    %c0_258 = arith.constant 0 : index
    %c0_259 = arith.constant 0 : index
    %758 = vector.load %arg3[%c0_258, %c0_259] : memref<32x32xbf16, #tpu.memory_space<vmem>>, vector<32x32xbf16>
    %cst_260 = arith.constant dense<0.000000e+00> : vector<2x32xf32>
    %759 = tpu.matmul %757, %758, %cst_260 {dimension_numbers = #tpu.dot_dimension_numbers<[1], [0], [0], [1], [0, 0, 1, 1], [], []>} : vector<2x32xbf16>, vector<32x32xbf16>, vector<2x32xf32> -> vector<2x32xf32>
    %760 = arith.truncf %753 : vector<2x32xf32> to vector<2x32xbf16>
    %c0_261 = arith.constant 0 : index
    %c0_262 = arith.constant 0 : index
    %761 = vector.load %arg4[%c0_261, %c0_262] : memref<32x32xbf16, #tpu.memory_space<vmem>>, vector<32x32xbf16>
    %cst_263 = arith.constant dense<0.000000e+00> : vector<2x32xf32>
    %762 = tpu.matmul %760, %761, %cst_263 {dimension_numbers = #tpu.dot_dimension_numbers<[1], [0], [0], [1], [0, 0, 1, 1], [], []>} : vector<2x32xbf16>, vector<32x32xbf16>, vector<2x32xf32> -> vector<2x32xf32>
    %763 = arith.addf %759, %762 : vector<2x32xf32>
    %764 = arith.addf %763, %2 : vector<2x32xf32>
    %cst_264 = arith.constant dense<0.000000e+00> : vector<2xf32>
    %765 = vector.multi_reduction <add>, %764, %cst_264 [1] : vector<2x32xf32> to vector<2xf32>
    %766 = vector.shape_cast %765 : vector<2xf32> to vector<2x1xf32>
    %cst_265 = arith.constant 3.200000e+01 : f32
    %767 = vector.broadcast %cst_265 : f32 to vector<2x1xf32>
    %768 = arith.divf %766, %767 : vector<2x1xf32>
    %769 = vector.broadcast %768 : vector<2x1xf32> to vector<2x32xf32>
    %770 = arith.subf %764, %769 : vector<2x32xf32>
    %771 = arith.mulf %770, %770 : vector<2x32xf32>
    %cst_266 = arith.constant dense<0.000000e+00> : vector<2xf32>
    %772 = vector.multi_reduction <add>, %771, %cst_266 [1] : vector<2x32xf32> to vector<2xf32>
    %773 = vector.shape_cast %772 : vector<2xf32> to vector<2x1xf32>
    %cst_267 = arith.constant 3.200000e+01 : f32
    %774 = vector.broadcast %cst_267 : f32 to vector<2x1xf32>
    %775 = arith.divf %773, %774 : vector<2x1xf32>
    %776 = vector.broadcast %768 : vector<2x1xf32> to vector<2x32xf32>
    %777 = arith.subf %764, %776 : vector<2x32xf32>
    %cst_268 = arith.constant 1.000000e-03 : f32
    %778 = vector.broadcast %cst_268 : f32 to vector<2x1xf32>
    %779 = arith.addf %775, %778 : vector<2x1xf32>
    %780 = math.rsqrt %779 : vector<2x1xf32>
    %781 = vector.broadcast %780 : vector<2x1xf32> to vector<2x32xf32>
    %782 = arith.mulf %777, %781 : vector<2x32xf32>
    %783 = arith.mulf %782, %5 : vector<2x32xf32>
    %784 = arith.addf %783, %8 : vector<2x32xf32>
    %cst_269 = arith.constant 0.000000e+00 : f32
    %785 = vector.broadcast %cst_269 : f32 to vector<2x32xf32>
    %786 = arith.cmpf ogt, %784, %785 : vector<2x32xf32>
    %787 = math.exp %784 : vector<2x32xf32>
    %cst_270 = arith.constant 1.000000e+00 : f32
    %788 = vector.broadcast %cst_270 : f32 to vector<2x32xf32>
    %789 = arith.subf %787, %788 : vector<2x32xf32>
    %790 = arith.select %786, %784, %789 : vector<2x32xi1>, vector<2x32xf32>
    %791 = arith.truncf %790 : vector<2x32xf32> to vector<2x32xbf16>
    %c0_271 = arith.constant 0 : index
    %c0_272 = arith.constant 0 : index
    %792 = vector.load %arg5[%c0_271, %c0_272] : memref<32x96xbf16, #tpu.memory_space<vmem>>, vector<32x96xbf16>
    %cst_273 = arith.constant dense<0.000000e+00> : vector<2x96xf32>
    %793 = tpu.matmul %791, %792, %cst_273 {dimension_numbers = #tpu.dot_dimension_numbers<[1], [0], [0], [1], [0, 0, 1, 1], [], []>} : vector<2x32xbf16>, vector<32x96xbf16>, vector<2x96xf32> -> vector<2x96xf32>
    %794 = arith.addf %793, %11 : vector<2x96xf32>
    %795 = arith.truncf %647 : vector<2x32xf32> to vector<2x32xbf16>
    %c0_274 = arith.constant 0 : index
    %c0_275 = arith.constant 0 : index
    %796 = vector.load %arg6[%c0_274, %c0_275] : memref<32x96xbf16, #tpu.memory_space<vmem>>, vector<32x96xbf16>
    %cst_276 = arith.constant dense<0.000000e+00> : vector<2x96xf32>
    %797 = tpu.matmul %795, %796, %cst_276 {dimension_numbers = #tpu.dot_dimension_numbers<[1], [0], [0], [1], [0, 0, 1, 1], [], []>} : vector<2x32xbf16>, vector<32x96xbf16>, vector<2x96xf32> -> vector<2x96xf32>
    %798 = arith.addf %797, %14 : vector<2x96xf32>
    %799 = vector.extract_strided_slice %794 {offsets = [0, 0], sizes = [2, 32], strides = [1, 1]} : vector<2x96xf32> to vector<2x32xf32>
    %800 = vector.extract_strided_slice %798 {offsets = [0, 0], sizes = [2, 32], strides = [1, 1]} : vector<2x96xf32> to vector<2x32xf32>
    %801 = arith.addf %799, %800 : vector<2x32xf32>
    %802 = arith.negf %801 : vector<2x32xf32>
    %803 = math.exp %802 : vector<2x32xf32>
    %cst_277 = arith.constant 1.000000e+00 : f32
    %804 = vector.broadcast %cst_277 : f32 to vector<2x32xf32>
    %805 = arith.addf %804, %803 : vector<2x32xf32>
    %806 = arith.divf %804, %805 : vector<2x32xf32>
    %807 = vector.extract_strided_slice %794 {offsets = [0, 32], sizes = [2, 32], strides = [1, 1]} : vector<2x96xf32> to vector<2x32xf32>
    %808 = vector.extract_strided_slice %798 {offsets = [0, 32], sizes = [2, 32], strides = [1, 1]} : vector<2x96xf32> to vector<2x32xf32>
    %809 = arith.addf %807, %808 : vector<2x32xf32>
    %810 = arith.negf %809 : vector<2x32xf32>
    %811 = math.exp %810 : vector<2x32xf32>
    %cst_278 = arith.constant 1.000000e+00 : f32
    %812 = vector.broadcast %cst_278 : f32 to vector<2x32xf32>
    %813 = arith.addf %812, %811 : vector<2x32xf32>
    %814 = arith.divf %812, %813 : vector<2x32xf32>
    %815 = vector.extract_strided_slice %794 {offsets = [0, 64], sizes = [2, 32], strides = [1, 1]} : vector<2x96xf32> to vector<2x32xf32>
    %816 = vector.extract_strided_slice %798 {offsets = [0, 64], sizes = [2, 32], strides = [1, 1]} : vector<2x96xf32> to vector<2x32xf32>
    %817 = arith.mulf %806, %816 : vector<2x32xf32>
    %818 = arith.addf %815, %817 : vector<2x32xf32>
    %819 = math.tanh %818 : vector<2x32xf32>
    %cst_279 = arith.constant 1.000000e+00 : f32
    %820 = vector.broadcast %cst_279 : f32 to vector<2x32xf32>
    %821 = arith.subf %820, %814 : vector<2x32xf32>
    %822 = arith.mulf %821, %819 : vector<2x32xf32>
    %823 = arith.mulf %814, %647 : vector<2x32xf32>
    %824 = arith.addf %822, %823 : vector<2x32xf32>
    %825 = arith.truncf %824 : vector<2x32xf32> to vector<2x32xbf16>
    %c0_280 = arith.constant 0 : index
    %c0_281 = arith.constant 0 : index
    %826 = vector.load %arg7[%c0_280, %c0_281] : memref<32x128xbf16, #tpu.memory_space<vmem>>, vector<32x128xbf16>
    %cst_282 = arith.constant dense<0.000000e+00> : vector<2x128xf32>
    %827 = tpu.matmul %825, %826, %cst_282 {dimension_numbers = #tpu.dot_dimension_numbers<[1], [0], [0], [1], [0, 0, 1, 1], [], []>} : vector<2x32xbf16>, vector<32x128xbf16>, vector<2x128xf32> -> vector<2x128xf32>
    %828 = vector.extract_strided_slice %827 {offsets = [0, 0], sizes = [2, 64], strides = [1, 1]} : vector<2x128xf32> to vector<2x64xf32>
    %829 = arith.addf %828, %17 : vector<2x64xf32>
    %cst_283 = arith.constant dense<0.000000e+00> : vector<2xf32>
    %830 = vector.multi_reduction <add>, %829, %cst_283 [1] : vector<2x64xf32> to vector<2xf32>
    %831 = vector.shape_cast %830 : vector<2xf32> to vector<2x1xf32>
    %cst_284 = arith.constant 6.400000e+01 : f32
    %832 = vector.broadcast %cst_284 : f32 to vector<2x1xf32>
    %833 = arith.divf %831, %832 : vector<2x1xf32>
    %834 = vector.broadcast %833 : vector<2x1xf32> to vector<2x64xf32>
    %835 = arith.subf %829, %834 : vector<2x64xf32>
    %836 = arith.mulf %835, %835 : vector<2x64xf32>
    %cst_285 = arith.constant dense<0.000000e+00> : vector<2xf32>
    %837 = vector.multi_reduction <add>, %836, %cst_285 [1] : vector<2x64xf32> to vector<2xf32>
    %838 = vector.shape_cast %837 : vector<2xf32> to vector<2x1xf32>
    %cst_286 = arith.constant 6.400000e+01 : f32
    %839 = vector.broadcast %cst_286 : f32 to vector<2x1xf32>
    %840 = arith.divf %838, %839 : vector<2x1xf32>
    %841 = vector.broadcast %833 : vector<2x1xf32> to vector<2x64xf32>
    %842 = arith.subf %829, %841 : vector<2x64xf32>
    %cst_287 = arith.constant 1.000000e-03 : f32
    %843 = vector.broadcast %cst_287 : f32 to vector<2x1xf32>
    %844 = arith.addf %840, %843 : vector<2x1xf32>
    %845 = math.rsqrt %844 : vector<2x1xf32>
    %846 = vector.broadcast %845 : vector<2x1xf32> to vector<2x64xf32>
    %847 = arith.mulf %842, %846 : vector<2x64xf32>
    %848 = arith.mulf %847, %20 : vector<2x64xf32>
    %849 = arith.addf %848, %23 : vector<2x64xf32>
    %cst_288 = arith.constant 0.000000e+00 : f32
    %850 = vector.broadcast %cst_288 : f32 to vector<2x64xf32>
    %851 = arith.cmpf ogt, %849, %850 : vector<2x64xf32>
    %852 = math.exp %849 : vector<2x64xf32>
    %cst_289 = arith.constant 1.000000e+00 : f32
    %853 = vector.broadcast %cst_289 : f32 to vector<2x64xf32>
    %854 = arith.subf %852, %853 : vector<2x64xf32>
    %855 = arith.select %851, %849, %854 : vector<2x64xi1>, vector<2x64xf32>
    %856 = vector.extract_strided_slice %827 {offsets = [0, 64], sizes = [2, 64], strides = [1, 1]} : vector<2x128xf32> to vector<2x64xf32>
    %857 = arith.truncf %754 : vector<2x32xf32> to vector<2x32xbf16>
    %c0_290 = arith.constant 0 : index
    %c0_291 = arith.constant 0 : index
    %858 = vector.load %arg8[%c0_290, %c0_291] : memref<32x64xbf16, #tpu.memory_space<vmem>>, vector<32x64xbf16>
    %cst_292 = arith.constant dense<0.000000e+00> : vector<2x64xf32>
    %859 = tpu.matmul %857, %858, %cst_292 {dimension_numbers = #tpu.dot_dimension_numbers<[1], [0], [0], [1], [0, 0, 1, 1], [], []>} : vector<2x32xbf16>, vector<32x64xbf16>, vector<2x64xf32> -> vector<2x64xf32>
    %860 = arith.addf %856, %859 : vector<2x64xf32>
    %861 = arith.addf %860, %26 : vector<2x64xf32>
    %cst_293 = arith.constant dense<0.000000e+00> : vector<2xf32>
    %862 = vector.multi_reduction <add>, %861, %cst_293 [1] : vector<2x64xf32> to vector<2xf32>
    %863 = vector.shape_cast %862 : vector<2xf32> to vector<2x1xf32>
    %cst_294 = arith.constant 6.400000e+01 : f32
    %864 = vector.broadcast %cst_294 : f32 to vector<2x1xf32>
    %865 = arith.divf %863, %864 : vector<2x1xf32>
    %866 = vector.broadcast %865 : vector<2x1xf32> to vector<2x64xf32>
    %867 = arith.subf %861, %866 : vector<2x64xf32>
    %868 = arith.mulf %867, %867 : vector<2x64xf32>
    %cst_295 = arith.constant dense<0.000000e+00> : vector<2xf32>
    %869 = vector.multi_reduction <add>, %868, %cst_295 [1] : vector<2x64xf32> to vector<2xf32>
    %870 = vector.shape_cast %869 : vector<2xf32> to vector<2x1xf32>
    %cst_296 = arith.constant 6.400000e+01 : f32
    %871 = vector.broadcast %cst_296 : f32 to vector<2x1xf32>
    %872 = arith.divf %870, %871 : vector<2x1xf32>
    %873 = vector.broadcast %865 : vector<2x1xf32> to vector<2x64xf32>
    %874 = arith.subf %861, %873 : vector<2x64xf32>
    %cst_297 = arith.constant 1.000000e-03 : f32
    %875 = vector.broadcast %cst_297 : f32 to vector<2x1xf32>
    %876 = arith.addf %872, %875 : vector<2x1xf32>
    %877 = math.rsqrt %876 : vector<2x1xf32>
    %878 = vector.broadcast %877 : vector<2x1xf32> to vector<2x64xf32>
    %879 = arith.mulf %874, %878 : vector<2x64xf32>
    %880 = arith.mulf %879, %29 : vector<2x64xf32>
    %881 = arith.addf %880, %32 : vector<2x64xf32>
    %cst_298 = arith.constant 0.000000e+00 : f32
    %882 = vector.broadcast %cst_298 : f32 to vector<2x64xf32>
    %883 = arith.cmpf ogt, %881, %882 : vector<2x64xf32>
    %884 = math.exp %881 : vector<2x64xf32>
    %cst_299 = arith.constant 1.000000e+00 : f32
    %885 = vector.broadcast %cst_299 : f32 to vector<2x64xf32>
    %886 = arith.subf %884, %885 : vector<2x64xf32>
    %887 = arith.select %883, %881, %886 : vector<2x64xi1>, vector<2x64xf32>
    %888 = arith.truncf %855 : vector<2x64xf32> to vector<2x64xbf16>
    %c0_300 = arith.constant 0 : index
    %c0_301 = arith.constant 0 : index
    %889 = vector.load %arg9[%c0_300, %c0_301] : memref<64x64xbf16, #tpu.memory_space<vmem>>, vector<64x64xbf16>
    %cst_302 = arith.constant dense<0.000000e+00> : vector<2x64xf32>
    %890 = tpu.matmul %888, %889, %cst_302 {dimension_numbers = #tpu.dot_dimension_numbers<[1], [0], [0], [1], [0, 0, 1, 1], [], []>} : vector<2x64xbf16>, vector<64x64xbf16>, vector<2x64xf32> -> vector<2x64xf32>
    %891 = arith.addf %890, %35 : vector<2x64xf32>
    %892 = arith.truncf %887 : vector<2x64xf32> to vector<2x64xbf16>
    %c0_303 = arith.constant 0 : index
    %c0_304 = arith.constant 0 : index
    %893 = vector.load %arg10[%c0_303, %c0_304] : memref<64x64xbf16, #tpu.memory_space<vmem>>, vector<64x64xbf16>
    %cst_305 = arith.constant dense<0.000000e+00> : vector<2x64xf32>
    %894 = tpu.matmul %892, %893, %cst_305 {dimension_numbers = #tpu.dot_dimension_numbers<[1], [0], [0], [1], [0, 0, 1, 1], [], []>} : vector<2x64xbf16>, vector<64x64xbf16>, vector<2x64xf32> -> vector<2x64xf32>
    %895 = arith.addf %894, %38 : vector<2x64xf32>
    %896 = vector.extract_strided_slice %891 {offsets = [0, 0], sizes = [2, 32], strides = [1, 1]} : vector<2x64xf32> to vector<2x32xf32>
    %897 = vector.extract_strided_slice %891 {offsets = [0, 32], sizes = [2, 32], strides = [1, 1]} : vector<2x64xf32> to vector<2x32xf32>
    %898 = arith.negf %897 : vector<2x32xf32>
    %899 = math.exp %898 : vector<2x32xf32>
    %cst_306 = arith.constant 1.000000e+00 : f32
    %900 = vector.broadcast %cst_306 : f32 to vector<2x32xf32>
    %901 = arith.addf %900, %899 : vector<2x32xf32>
    %902 = arith.divf %900, %901 : vector<2x32xf32>
    %cst_307 = arith.constant 2.000000e+00 : f32
    %903 = vector.broadcast %cst_307 : f32 to vector<2x32xf32>
    %904 = arith.mulf %903, %902 : vector<2x32xf32>
    %cst_308 = arith.constant 1.000000e-01 : f32
    %905 = vector.broadcast %cst_308 : f32 to vector<2x32xf32>
    %906 = arith.addf %904, %905 : vector<2x32xf32>
    %907 = arith.mulf %906, %755 : vector<2x32xf32>
    %908 = arith.addf %896, %907 : vector<2x32xf32>
    %909 = vector.extract_strided_slice %895 {offsets = [0, 0], sizes = [2, 32], strides = [1, 1]} : vector<2x64xf32> to vector<2x32xf32>
    %910 = vector.extract_strided_slice %895 {offsets = [0, 32], sizes = [2, 32], strides = [1, 1]} : vector<2x64xf32> to vector<2x32xf32>
    %911 = arith.negf %910 : vector<2x32xf32>
    %912 = math.exp %911 : vector<2x32xf32>
    %cst_309 = arith.constant 1.000000e+00 : f32
    %913 = vector.broadcast %cst_309 : f32 to vector<2x32xf32>
    %914 = arith.addf %913, %912 : vector<2x32xf32>
    %915 = arith.divf %913, %914 : vector<2x32xf32>
    %cst_310 = arith.constant 2.000000e+00 : f32
    %916 = vector.broadcast %cst_310 : f32 to vector<2x32xf32>
    %917 = arith.mulf %916, %915 : vector<2x32xf32>
    %cst_311 = arith.constant 1.000000e-01 : f32
    %918 = vector.broadcast %cst_311 : f32 to vector<2x32xf32>
    %919 = arith.addf %917, %918 : vector<2x32xf32>
    %920 = arith.mulf %919, %756 : vector<2x32xf32>
    %921 = arith.addf %909, %920 : vector<2x32xf32>
    %922 = tpu.concatenate %891, %908, %39, %895, %921, %824 in 1 : vector<2x64xf32>, vector<2x32xf32>, vector<2x32xf32>, vector<2x64xf32>, vector<2x32xf32>, vector<2x32xf32> -> vector<2x256xf32>
    %923 = arith.index_cast %c4_i32 : i32 to index
    %c0_312 = arith.constant 0 : index
    %c0_313 = arith.constant 0 : index
    %924 = vector.load %arg15[%923, %c0_312, %c0_313] : memref<8x2x256xf32, #tpu.memory_space<vmem>>, vector<1x2x256xf32>
    %925 = vector.shape_cast %924 : vector<1x2x256xf32> to vector<2x256xf32>
    %926 = vector.shape_cast %922 : vector<2x256xf32> to vector<1x2x256xf32>
    tpu.vector_store %arg15[%923, %c0_312, %c0_313], %926 {strides = array<i32>} : memref<8x2x256xf32, #tpu.memory_space<vmem>>, vector<1x2x256xf32>,
    %c5_i32 = arith.constant 5 : i32
    %927 = arith.index_cast %c5_i32 : i32 to index
    %c0_314 = arith.constant 0 : index
    %c0_315 = arith.constant 0 : index
    %928 = vector.load %arg0[%927, %c0_314, %c0_315] : memref<8x2x128xf32, #tpu.memory_space<vmem>>, vector<1x2x128xf32>
    %929 = vector.shape_cast %928 : vector<1x2x128xf32> to vector<2x128xf32>
    %930 = vector.extract_strided_slice %929 {offsets = [0, 0], sizes = [2, 32], strides = [1, 1]} : vector<2x128xf32> to vector<2x32xf32>
    %931 = vector.extract_strided_slice %929 {offsets = [0, 32], sizes = [2, 32], strides = [1, 1]} : vector<2x128xf32> to vector<2x32xf32>
    %932 = vector.extract_strided_slice %929 {offsets = [0, 64], sizes = [2, 32], strides = [1, 1]} : vector<2x128xf32> to vector<2x32xf32>
    %933 = vector.extract_strided_slice %929 {offsets = [0, 96], sizes = [2, 32], strides = [1, 1]} : vector<2x128xf32> to vector<2x32xf32>
    %934 = arith.truncf %921 : vector<2x32xf32> to vector<2x32xbf16>
    %c0_316 = arith.constant 0 : index
    %c0_317 = arith.constant 0 : index
    %935 = vector.load %arg3[%c0_316, %c0_317] : memref<32x32xbf16, #tpu.memory_space<vmem>>, vector<32x32xbf16>
    %cst_318 = arith.constant dense<0.000000e+00> : vector<2x32xf32>
    %936 = tpu.matmul %934, %935, %cst_318 {dimension_numbers = #tpu.dot_dimension_numbers<[1], [0], [0], [1], [0, 0, 1, 1], [], []>} : vector<2x32xbf16>, vector<32x32xbf16>, vector<2x32xf32> -> vector<2x32xf32>
    %937 = arith.truncf %930 : vector<2x32xf32> to vector<2x32xbf16>
    %c0_319 = arith.constant 0 : index
    %c0_320 = arith.constant 0 : index
    %938 = vector.load %arg4[%c0_319, %c0_320] : memref<32x32xbf16, #tpu.memory_space<vmem>>, vector<32x32xbf16>
    %cst_321 = arith.constant dense<0.000000e+00> : vector<2x32xf32>
    %939 = tpu.matmul %937, %938, %cst_321 {dimension_numbers = #tpu.dot_dimension_numbers<[1], [0], [0], [1], [0, 0, 1, 1], [], []>} : vector<2x32xbf16>, vector<32x32xbf16>, vector<2x32xf32> -> vector<2x32xf32>
    %940 = arith.addf %936, %939 : vector<2x32xf32>
    %941 = arith.addf %940, %2 : vector<2x32xf32>
    %cst_322 = arith.constant dense<0.000000e+00> : vector<2xf32>
    %942 = vector.multi_reduction <add>, %941, %cst_322 [1] : vector<2x32xf32> to vector<2xf32>
    %943 = vector.shape_cast %942 : vector<2xf32> to vector<2x1xf32>
    %cst_323 = arith.constant 3.200000e+01 : f32
    %944 = vector.broadcast %cst_323 : f32 to vector<2x1xf32>
    %945 = arith.divf %943, %944 : vector<2x1xf32>
    %946 = vector.broadcast %945 : vector<2x1xf32> to vector<2x32xf32>
    %947 = arith.subf %941, %946 : vector<2x32xf32>
    %948 = arith.mulf %947, %947 : vector<2x32xf32>
    %cst_324 = arith.constant dense<0.000000e+00> : vector<2xf32>
    %949 = vector.multi_reduction <add>, %948, %cst_324 [1] : vector<2x32xf32> to vector<2xf32>
    %950 = vector.shape_cast %949 : vector<2xf32> to vector<2x1xf32>
    %cst_325 = arith.constant 3.200000e+01 : f32
    %951 = vector.broadcast %cst_325 : f32 to vector<2x1xf32>
    %952 = arith.divf %950, %951 : vector<2x1xf32>
    %953 = vector.broadcast %945 : vector<2x1xf32> to vector<2x32xf32>
    %954 = arith.subf %941, %953 : vector<2x32xf32>
    %cst_326 = arith.constant 1.000000e-03 : f32
    %955 = vector.broadcast %cst_326 : f32 to vector<2x1xf32>
    %956 = arith.addf %952, %955 : vector<2x1xf32>
    %957 = math.rsqrt %956 : vector<2x1xf32>
    %958 = vector.broadcast %957 : vector<2x1xf32> to vector<2x32xf32>
    %959 = arith.mulf %954, %958 : vector<2x32xf32>
    %960 = arith.mulf %959, %5 : vector<2x32xf32>
    %961 = arith.addf %960, %8 : vector<2x32xf32>
    %cst_327 = arith.constant 0.000000e+00 : f32
    %962 = vector.broadcast %cst_327 : f32 to vector<2x32xf32>
    %963 = arith.cmpf ogt, %961, %962 : vector<2x32xf32>
    %964 = math.exp %961 : vector<2x32xf32>
    %cst_328 = arith.constant 1.000000e+00 : f32
    %965 = vector.broadcast %cst_328 : f32 to vector<2x32xf32>
    %966 = arith.subf %964, %965 : vector<2x32xf32>
    %967 = arith.select %963, %961, %966 : vector<2x32xi1>, vector<2x32xf32>
    %968 = arith.truncf %967 : vector<2x32xf32> to vector<2x32xbf16>
    %c0_329 = arith.constant 0 : index
    %c0_330 = arith.constant 0 : index
    %969 = vector.load %arg5[%c0_329, %c0_330] : memref<32x96xbf16, #tpu.memory_space<vmem>>, vector<32x96xbf16>
    %cst_331 = arith.constant dense<0.000000e+00> : vector<2x96xf32>
    %970 = tpu.matmul %968, %969, %cst_331 {dimension_numbers = #tpu.dot_dimension_numbers<[1], [0], [0], [1], [0, 0, 1, 1], [], []>} : vector<2x32xbf16>, vector<32x96xbf16>, vector<2x96xf32> -> vector<2x96xf32>
    %971 = arith.addf %970, %11 : vector<2x96xf32>
    %972 = arith.truncf %824 : vector<2x32xf32> to vector<2x32xbf16>
    %c0_332 = arith.constant 0 : index
    %c0_333 = arith.constant 0 : index
    %973 = vector.load %arg6[%c0_332, %c0_333] : memref<32x96xbf16, #tpu.memory_space<vmem>>, vector<32x96xbf16>
    %cst_334 = arith.constant dense<0.000000e+00> : vector<2x96xf32>
    %974 = tpu.matmul %972, %973, %cst_334 {dimension_numbers = #tpu.dot_dimension_numbers<[1], [0], [0], [1], [0, 0, 1, 1], [], []>} : vector<2x32xbf16>, vector<32x96xbf16>, vector<2x96xf32> -> vector<2x96xf32>
    %975 = arith.addf %974, %14 : vector<2x96xf32>
    %976 = vector.extract_strided_slice %971 {offsets = [0, 0], sizes = [2, 32], strides = [1, 1]} : vector<2x96xf32> to vector<2x32xf32>
    %977 = vector.extract_strided_slice %975 {offsets = [0, 0], sizes = [2, 32], strides = [1, 1]} : vector<2x96xf32> to vector<2x32xf32>
    %978 = arith.addf %976, %977 : vector<2x32xf32>
    %979 = arith.negf %978 : vector<2x32xf32>
    %980 = math.exp %979 : vector<2x32xf32>
    %cst_335 = arith.constant 1.000000e+00 : f32
    %981 = vector.broadcast %cst_335 : f32 to vector<2x32xf32>
    %982 = arith.addf %981, %980 : vector<2x32xf32>
    %983 = arith.divf %981, %982 : vector<2x32xf32>
    %984 = vector.extract_strided_slice %971 {offsets = [0, 32], sizes = [2, 32], strides = [1, 1]} : vector<2x96xf32> to vector<2x32xf32>
    %985 = vector.extract_strided_slice %975 {offsets = [0, 32], sizes = [2, 32], strides = [1, 1]} : vector<2x96xf32> to vector<2x32xf32>
    %986 = arith.addf %984, %985 : vector<2x32xf32>
    %987 = arith.negf %986 : vector<2x32xf32>
    %988 = math.exp %987 : vector<2x32xf32>
    %cst_336 = arith.constant 1.000000e+00 : f32
    %989 = vector.broadcast %cst_336 : f32 to vector<2x32xf32>
    %990 = arith.addf %989, %988 : vector<2x32xf32>
    %991 = arith.divf %989, %990 : vector<2x32xf32>
    %992 = vector.extract_strided_slice %971 {offsets = [0, 64], sizes = [2, 32], strides = [1, 1]} : vector<2x96xf32> to vector<2x32xf32>
    %993 = vector.extract_strided_slice %975 {offsets = [0, 64], sizes = [2, 32], strides = [1, 1]} : vector<2x96xf32> to vector<2x32xf32>
    %994 = arith.mulf %983, %993 : vector<2x32xf32>
    %995 = arith.addf %992, %994 : vector<2x32xf32>
    %996 = math.tanh %995 : vector<2x32xf32>
    %cst_337 = arith.constant 1.000000e+00 : f32
    %997 = vector.broadcast %cst_337 : f32 to vector<2x32xf32>
    %998 = arith.subf %997, %991 : vector<2x32xf32>
    %999 = arith.mulf %998, %996 : vector<2x32xf32>
    %1000 = arith.mulf %991, %824 : vector<2x32xf32>
    %1001 = arith.addf %999, %1000 : vector<2x32xf32>
    %1002 = arith.truncf %1001 : vector<2x32xf32> to vector<2x32xbf16>
    %c0_338 = arith.constant 0 : index
    %c0_339 = arith.constant 0 : index
    %1003 = vector.load %arg7[%c0_338, %c0_339] : memref<32x128xbf16, #tpu.memory_space<vmem>>, vector<32x128xbf16>
    %cst_340 = arith.constant dense<0.000000e+00> : vector<2x128xf32>
    %1004 = tpu.matmul %1002, %1003, %cst_340 {dimension_numbers = #tpu.dot_dimension_numbers<[1], [0], [0], [1], [0, 0, 1, 1], [], []>} : vector<2x32xbf16>, vector<32x128xbf16>, vector<2x128xf32> -> vector<2x128xf32>
    %1005 = vector.extract_strided_slice %1004 {offsets = [0, 0], sizes = [2, 64], strides = [1, 1]} : vector<2x128xf32> to vector<2x64xf32>
    %1006 = arith.addf %1005, %17 : vector<2x64xf32>
    %cst_341 = arith.constant dense<0.000000e+00> : vector<2xf32>
    %1007 = vector.multi_reduction <add>, %1006, %cst_341 [1] : vector<2x64xf32> to vector<2xf32>
    %1008 = vector.shape_cast %1007 : vector<2xf32> to vector<2x1xf32>
    %cst_342 = arith.constant 6.400000e+01 : f32
    %1009 = vector.broadcast %cst_342 : f32 to vector<2x1xf32>
    %1010 = arith.divf %1008, %1009 : vector<2x1xf32>
    %1011 = vector.broadcast %1010 : vector<2x1xf32> to vector<2x64xf32>
    %1012 = arith.subf %1006, %1011 : vector<2x64xf32>
    %1013 = arith.mulf %1012, %1012 : vector<2x64xf32>
    %cst_343 = arith.constant dense<0.000000e+00> : vector<2xf32>
    %1014 = vector.multi_reduction <add>, %1013, %cst_343 [1] : vector<2x64xf32> to vector<2xf32>
    %1015 = vector.shape_cast %1014 : vector<2xf32> to vector<2x1xf32>
    %cst_344 = arith.constant 6.400000e+01 : f32
    %1016 = vector.broadcast %cst_344 : f32 to vector<2x1xf32>
    %1017 = arith.divf %1015, %1016 : vector<2x1xf32>
    %1018 = vector.broadcast %1010 : vector<2x1xf32> to vector<2x64xf32>
    %1019 = arith.subf %1006, %1018 : vector<2x64xf32>
    %cst_345 = arith.constant 1.000000e-03 : f32
    %1020 = vector.broadcast %cst_345 : f32 to vector<2x1xf32>
    %1021 = arith.addf %1017, %1020 : vector<2x1xf32>
    %1022 = math.rsqrt %1021 : vector<2x1xf32>
    %1023 = vector.broadcast %1022 : vector<2x1xf32> to vector<2x64xf32>
    %1024 = arith.mulf %1019, %1023 : vector<2x64xf32>
    %1025 = arith.mulf %1024, %20 : vector<2x64xf32>
    %1026 = arith.addf %1025, %23 : vector<2x64xf32>
    %cst_346 = arith.constant 0.000000e+00 : f32
    %1027 = vector.broadcast %cst_346 : f32 to vector<2x64xf32>
    %1028 = arith.cmpf ogt, %1026, %1027 : vector<2x64xf32>
    %1029 = math.exp %1026 : vector<2x64xf32>
    %cst_347 = arith.constant 1.000000e+00 : f32
    %1030 = vector.broadcast %cst_347 : f32 to vector<2x64xf32>
    %1031 = arith.subf %1029, %1030 : vector<2x64xf32>
    %1032 = arith.select %1028, %1026, %1031 : vector<2x64xi1>, vector<2x64xf32>
    %1033 = vector.extract_strided_slice %1004 {offsets = [0, 64], sizes = [2, 64], strides = [1, 1]} : vector<2x128xf32> to vector<2x64xf32>
    %1034 = arith.truncf %931 : vector<2x32xf32> to vector<2x32xbf16>
    %c0_348 = arith.constant 0 : index
    %c0_349 = arith.constant 0 : index
    %1035 = vector.load %arg8[%c0_348, %c0_349] : memref<32x64xbf16, #tpu.memory_space<vmem>>, vector<32x64xbf16>
    %cst_350 = arith.constant dense<0.000000e+00> : vector<2x64xf32>
    %1036 = tpu.matmul %1034, %1035, %cst_350 {dimension_numbers = #tpu.dot_dimension_numbers<[1], [0], [0], [1], [0, 0, 1, 1], [], []>} : vector<2x32xbf16>, vector<32x64xbf16>, vector<2x64xf32> -> vector<2x64xf32>
    %1037 = arith.addf %1033, %1036 : vector<2x64xf32>
    %1038 = arith.addf %1037, %26 : vector<2x64xf32>
    %cst_351 = arith.constant dense<0.000000e+00> : vector<2xf32>
    %1039 = vector.multi_reduction <add>, %1038, %cst_351 [1] : vector<2x64xf32> to vector<2xf32>
    %1040 = vector.shape_cast %1039 : vector<2xf32> to vector<2x1xf32>
    %cst_352 = arith.constant 6.400000e+01 : f32
    %1041 = vector.broadcast %cst_352 : f32 to vector<2x1xf32>
    %1042 = arith.divf %1040, %1041 : vector<2x1xf32>
    %1043 = vector.broadcast %1042 : vector<2x1xf32> to vector<2x64xf32>
    %1044 = arith.subf %1038, %1043 : vector<2x64xf32>
    %1045 = arith.mulf %1044, %1044 : vector<2x64xf32>
    %cst_353 = arith.constant dense<0.000000e+00> : vector<2xf32>
    %1046 = vector.multi_reduction <add>, %1045, %cst_353 [1] : vector<2x64xf32> to vector<2xf32>
    %1047 = vector.shape_cast %1046 : vector<2xf32> to vector<2x1xf32>
    %cst_354 = arith.constant 6.400000e+01 : f32
    %1048 = vector.broadcast %cst_354 : f32 to vector<2x1xf32>
    %1049 = arith.divf %1047, %1048 : vector<2x1xf32>
    %1050 = vector.broadcast %1042 : vector<2x1xf32> to vector<2x64xf32>
    %1051 = arith.subf %1038, %1050 : vector<2x64xf32>
    %cst_355 = arith.constant 1.000000e-03 : f32
    %1052 = vector.broadcast %cst_355 : f32 to vector<2x1xf32>
    %1053 = arith.addf %1049, %1052 : vector<2x1xf32>
    %1054 = math.rsqrt %1053 : vector<2x1xf32>
    %1055 = vector.broadcast %1054 : vector<2x1xf32> to vector<2x64xf32>
    %1056 = arith.mulf %1051, %1055 : vector<2x64xf32>
    %1057 = arith.mulf %1056, %29 : vector<2x64xf32>
    %1058 = arith.addf %1057, %32 : vector<2x64xf32>
    %cst_356 = arith.constant 0.000000e+00 : f32
    %1059 = vector.broadcast %cst_356 : f32 to vector<2x64xf32>
    %1060 = arith.cmpf ogt, %1058, %1059 : vector<2x64xf32>
    %1061 = math.exp %1058 : vector<2x64xf32>
    %cst_357 = arith.constant 1.000000e+00 : f32
    %1062 = vector.broadcast %cst_357 : f32 to vector<2x64xf32>
    %1063 = arith.subf %1061, %1062 : vector<2x64xf32>
    %1064 = arith.select %1060, %1058, %1063 : vector<2x64xi1>, vector<2x64xf32>
    %1065 = arith.truncf %1032 : vector<2x64xf32> to vector<2x64xbf16>
    %c0_358 = arith.constant 0 : index
    %c0_359 = arith.constant 0 : index
    %1066 = vector.load %arg9[%c0_358, %c0_359] : memref<64x64xbf16, #tpu.memory_space<vmem>>, vector<64x64xbf16>
    %cst_360 = arith.constant dense<0.000000e+00> : vector<2x64xf32>
    %1067 = tpu.matmul %1065, %1066, %cst_360 {dimension_numbers = #tpu.dot_dimension_numbers<[1], [0], [0], [1], [0, 0, 1, 1], [], []>} : vector<2x64xbf16>, vector<64x64xbf16>, vector<2x64xf32> -> vector<2x64xf32>
    %1068 = arith.addf %1067, %35 : vector<2x64xf32>
    %1069 = arith.truncf %1064 : vector<2x64xf32> to vector<2x64xbf16>
    %c0_361 = arith.constant 0 : index
    %c0_362 = arith.constant 0 : index
    %1070 = vector.load %arg10[%c0_361, %c0_362] : memref<64x64xbf16, #tpu.memory_space<vmem>>, vector<64x64xbf16>
    %cst_363 = arith.constant dense<0.000000e+00> : vector<2x64xf32>
    %1071 = tpu.matmul %1069, %1070, %cst_363 {dimension_numbers = #tpu.dot_dimension_numbers<[1], [0], [0], [1], [0, 0, 1, 1], [], []>} : vector<2x64xbf16>, vector<64x64xbf16>, vector<2x64xf32> -> vector<2x64xf32>
    %1072 = arith.addf %1071, %38 : vector<2x64xf32>
    %1073 = vector.extract_strided_slice %1068 {offsets = [0, 0], sizes = [2, 32], strides = [1, 1]} : vector<2x64xf32> to vector<2x32xf32>
    %1074 = vector.extract_strided_slice %1068 {offsets = [0, 32], sizes = [2, 32], strides = [1, 1]} : vector<2x64xf32> to vector<2x32xf32>
    %1075 = arith.negf %1074 : vector<2x32xf32>
    %1076 = math.exp %1075 : vector<2x32xf32>
    %cst_364 = arith.constant 1.000000e+00 : f32
    %1077 = vector.broadcast %cst_364 : f32 to vector<2x32xf32>
    %1078 = arith.addf %1077, %1076 : vector<2x32xf32>
    %1079 = arith.divf %1077, %1078 : vector<2x32xf32>
    %cst_365 = arith.constant 2.000000e+00 : f32
    %1080 = vector.broadcast %cst_365 : f32 to vector<2x32xf32>
    %1081 = arith.mulf %1080, %1079 : vector<2x32xf32>
    %cst_366 = arith.constant 1.000000e-01 : f32
    %1082 = vector.broadcast %cst_366 : f32 to vector<2x32xf32>
    %1083 = arith.addf %1081, %1082 : vector<2x32xf32>
    %1084 = arith.mulf %1083, %932 : vector<2x32xf32>
    %1085 = arith.addf %1073, %1084 : vector<2x32xf32>
    %1086 = vector.extract_strided_slice %1072 {offsets = [0, 0], sizes = [2, 32], strides = [1, 1]} : vector<2x64xf32> to vector<2x32xf32>
    %1087 = vector.extract_strided_slice %1072 {offsets = [0, 32], sizes = [2, 32], strides = [1, 1]} : vector<2x64xf32> to vector<2x32xf32>
    %1088 = arith.negf %1087 : vector<2x32xf32>
    %1089 = math.exp %1088 : vector<2x32xf32>
    %cst_367 = arith.constant 1.000000e+00 : f32
    %1090 = vector.broadcast %cst_367 : f32 to vector<2x32xf32>
    %1091 = arith.addf %1090, %1089 : vector<2x32xf32>
    %1092 = arith.divf %1090, %1091 : vector<2x32xf32>
    %cst_368 = arith.constant 2.000000e+00 : f32
    %1093 = vector.broadcast %cst_368 : f32 to vector<2x32xf32>
    %1094 = arith.mulf %1093, %1092 : vector<2x32xf32>
    %cst_369 = arith.constant 1.000000e-01 : f32
    %1095 = vector.broadcast %cst_369 : f32 to vector<2x32xf32>
    %1096 = arith.addf %1094, %1095 : vector<2x32xf32>
    %1097 = arith.mulf %1096, %933 : vector<2x32xf32>
    %1098 = arith.addf %1086, %1097 : vector<2x32xf32>
    %1099 = tpu.concatenate %1068, %1085, %39, %1072, %1098, %1001 in 1 : vector<2x64xf32>, vector<2x32xf32>, vector<2x32xf32>, vector<2x64xf32>, vector<2x32xf32>, vector<2x32xf32> -> vector<2x256xf32>
    %1100 = arith.index_cast %c5_i32 : i32 to index
    %c0_370 = arith.constant 0 : index
    %c0_371 = arith.constant 0 : index
    %1101 = vector.load %arg15[%1100, %c0_370, %c0_371] : memref<8x2x256xf32, #tpu.memory_space<vmem>>, vector<1x2x256xf32>
    %1102 = vector.shape_cast %1101 : vector<1x2x256xf32> to vector<2x256xf32>
    %1103 = vector.shape_cast %1099 : vector<2x256xf32> to vector<1x2x256xf32>
    tpu.vector_store %arg15[%1100, %c0_370, %c0_371], %1103 {strides = array<i32>} : memref<8x2x256xf32, #tpu.memory_space<vmem>>, vector<1x2x256xf32>,
    %c6_i32 = arith.constant 6 : i32
    %1104 = arith.index_cast %c6_i32 : i32 to index
    %c0_372 = arith.constant 0 : index
    %c0_373 = arith.constant 0 : index
    %1105 = vector.load %arg0[%1104, %c0_372, %c0_373] : memref<8x2x128xf32, #tpu.memory_space<vmem>>, vector<1x2x128xf32>
    %1106 = vector.shape_cast %1105 : vector<1x2x128xf32> to vector<2x128xf32>
    %1107 = vector.extract_strided_slice %1106 {offsets = [0, 0], sizes = [2, 32], strides = [1, 1]} : vector<2x128xf32> to vector<2x32xf32>
    %1108 = vector.extract_strided_slice %1106 {offsets = [0, 32], sizes = [2, 32], strides = [1, 1]} : vector<2x128xf32> to vector<2x32xf32>
    %1109 = vector.extract_strided_slice %1106 {offsets = [0, 64], sizes = [2, 32], strides = [1, 1]} : vector<2x128xf32> to vector<2x32xf32>
    %1110 = vector.extract_strided_slice %1106 {offsets = [0, 96], sizes = [2, 32], strides = [1, 1]} : vector<2x128xf32> to vector<2x32xf32>
    %1111 = arith.truncf %1098 : vector<2x32xf32> to vector<2x32xbf16>
    %c0_374 = arith.constant 0 : index
    %c0_375 = arith.constant 0 : index
    %1112 = vector.load %arg3[%c0_374, %c0_375] : memref<32x32xbf16, #tpu.memory_space<vmem>>, vector<32x32xbf16>
    %cst_376 = arith.constant dense<0.000000e+00> : vector<2x32xf32>
    %1113 = tpu.matmul %1111, %1112, %cst_376 {dimension_numbers = #tpu.dot_dimension_numbers<[1], [0], [0], [1], [0, 0, 1, 1], [], []>} : vector<2x32xbf16>, vector<32x32xbf16>, vector<2x32xf32> -> vector<2x32xf32>
    %1114 = arith.truncf %1107 : vector<2x32xf32> to vector<2x32xbf16>
    %c0_377 = arith.constant 0 : index
    %c0_378 = arith.constant 0 : index
    %1115 = vector.load %arg4[%c0_377, %c0_378] : memref<32x32xbf16, #tpu.memory_space<vmem>>, vector<32x32xbf16>
    %cst_379 = arith.constant dense<0.000000e+00> : vector<2x32xf32>
    %1116 = tpu.matmul %1114, %1115, %cst_379 {dimension_numbers = #tpu.dot_dimension_numbers<[1], [0], [0], [1], [0, 0, 1, 1], [], []>} : vector<2x32xbf16>, vector<32x32xbf16>, vector<2x32xf32> -> vector<2x32xf32>
    %1117 = arith.addf %1113, %1116 : vector<2x32xf32>
    %1118 = arith.addf %1117, %2 : vector<2x32xf32>
    %cst_380 = arith.constant dense<0.000000e+00> : vector<2xf32>
    %1119 = vector.multi_reduction <add>, %1118, %cst_380 [1] : vector<2x32xf32> to vector<2xf32>
    %1120 = vector.shape_cast %1119 : vector<2xf32> to vector<2x1xf32>
    %cst_381 = arith.constant 3.200000e+01 : f32
    %1121 = vector.broadcast %cst_381 : f32 to vector<2x1xf32>
    %1122 = arith.divf %1120, %1121 : vector<2x1xf32>
    %1123 = vector.broadcast %1122 : vector<2x1xf32> to vector<2x32xf32>
    %1124 = arith.subf %1118, %1123 : vector<2x32xf32>
    %1125 = arith.mulf %1124, %1124 : vector<2x32xf32>
    %cst_382 = arith.constant dense<0.000000e+00> : vector<2xf32>
    %1126 = vector.multi_reduction <add>, %1125, %cst_382 [1] : vector<2x32xf32> to vector<2xf32>
    %1127 = vector.shape_cast %1126 : vector<2xf32> to vector<2x1xf32>
    %cst_383 = arith.constant 3.200000e+01 : f32
    %1128 = vector.broadcast %cst_383 : f32 to vector<2x1xf32>
    %1129 = arith.divf %1127, %1128 : vector<2x1xf32>
    %1130 = vector.broadcast %1122 : vector<2x1xf32> to vector<2x32xf32>
    %1131 = arith.subf %1118, %1130 : vector<2x32xf32>
    %cst_384 = arith.constant 1.000000e-03 : f32
    %1132 = vector.broadcast %cst_384 : f32 to vector<2x1xf32>
    %1133 = arith.addf %1129, %1132 : vector<2x1xf32>
    %1134 = math.rsqrt %1133 : vector<2x1xf32>
    %1135 = vector.broadcast %1134 : vector<2x1xf32> to vector<2x32xf32>
    %1136 = arith.mulf %1131, %1135 : vector<2x32xf32>
    %1137 = arith.mulf %1136, %5 : vector<2x32xf32>
    %1138 = arith.addf %1137, %8 : vector<2x32xf32>
    %cst_385 = arith.constant 0.000000e+00 : f32
    %1139 = vector.broadcast %cst_385 : f32 to vector<2x32xf32>
    %1140 = arith.cmpf ogt, %1138, %1139 : vector<2x32xf32>
    %1141 = math.exp %1138 : vector<2x32xf32>
    %cst_386 = arith.constant 1.000000e+00 : f32
    %1142 = vector.broadcast %cst_386 : f32 to vector<2x32xf32>
    %1143 = arith.subf %1141, %1142 : vector<2x32xf32>
    %1144 = arith.select %1140, %1138, %1143 : vector<2x32xi1>, vector<2x32xf32>
    %1145 = arith.truncf %1144 : vector<2x32xf32> to vector<2x32xbf16>
    %c0_387 = arith.constant 0 : index
    %c0_388 = arith.constant 0 : index
    %1146 = vector.load %arg5[%c0_387, %c0_388] : memref<32x96xbf16, #tpu.memory_space<vmem>>, vector<32x96xbf16>
    %cst_389 = arith.constant dense<0.000000e+00> : vector<2x96xf32>
    %1147 = tpu.matmul %1145, %1146, %cst_389 {dimension_numbers = #tpu.dot_dimension_numbers<[1], [0], [0], [1], [0, 0, 1, 1], [], []>} : vector<2x32xbf16>, vector<32x96xbf16>, vector<2x96xf32> -> vector<2x96xf32>
    %1148 = arith.addf %1147, %11 : vector<2x96xf32>
    %1149 = arith.truncf %1001 : vector<2x32xf32> to vector<2x32xbf16>
    %c0_390 = arith.constant 0 : index
    %c0_391 = arith.constant 0 : index
    %1150 = vector.load %arg6[%c0_390, %c0_391] : memref<32x96xbf16, #tpu.memory_space<vmem>>, vector<32x96xbf16>
    %cst_392 = arith.constant dense<0.000000e+00> : vector<2x96xf32>
    %1151 = tpu.matmul %1149, %1150, %cst_392 {dimension_numbers = #tpu.dot_dimension_numbers<[1], [0], [0], [1], [0, 0, 1, 1], [], []>} : vector<2x32xbf16>, vector<32x96xbf16>, vector<2x96xf32> -> vector<2x96xf32>
    %1152 = arith.addf %1151, %14 : vector<2x96xf32>
    %1153 = vector.extract_strided_slice %1148 {offsets = [0, 0], sizes = [2, 32], strides = [1, 1]} : vector<2x96xf32> to vector<2x32xf32>
    %1154 = vector.extract_strided_slice %1152 {offsets = [0, 0], sizes = [2, 32], strides = [1, 1]} : vector<2x96xf32> to vector<2x32xf32>
    %1155 = arith.addf %1153, %1154 : vector<2x32xf32>
    %1156 = arith.negf %1155 : vector<2x32xf32>
    %1157 = math.exp %1156 : vector<2x32xf32>
    %cst_393 = arith.constant 1.000000e+00 : f32
    %1158 = vector.broadcast %cst_393 : f32 to vector<2x32xf32>
    %1159 = arith.addf %1158, %1157 : vector<2x32xf32>
    %1160 = arith.divf %1158, %1159 : vector<2x32xf32>
    %1161 = vector.extract_strided_slice %1148 {offsets = [0, 32], sizes = [2, 32], strides = [1, 1]} : vector<2x96xf32> to vector<2x32xf32>
    %1162 = vector.extract_strided_slice %1152 {offsets = [0, 32], sizes = [2, 32], strides = [1, 1]} : vector<2x96xf32> to vector<2x32xf32>
    %1163 = arith.addf %1161, %1162 : vector<2x32xf32>
    %1164 = arith.negf %1163 : vector<2x32xf32>
    %1165 = math.exp %1164 : vector<2x32xf32>
    %cst_394 = arith.constant 1.000000e+00 : f32
    %1166 = vector.broadcast %cst_394 : f32 to vector<2x32xf32>
    %1167 = arith.addf %1166, %1165 : vector<2x32xf32>
    %1168 = arith.divf %1166, %1167 : vector<2x32xf32>
    %1169 = vector.extract_strided_slice %1148 {offsets = [0, 64], sizes = [2, 32], strides = [1, 1]} : vector<2x96xf32> to vector<2x32xf32>
    %1170 = vector.extract_strided_slice %1152 {offsets = [0, 64], sizes = [2, 32], strides = [1, 1]} : vector<2x96xf32> to vector<2x32xf32>
    %1171 = arith.mulf %1160, %1170 : vector<2x32xf32>
    %1172 = arith.addf %1169, %1171 : vector<2x32xf32>
    %1173 = math.tanh %1172 : vector<2x32xf32>
    %cst_395 = arith.constant 1.000000e+00 : f32
    %1174 = vector.broadcast %cst_395 : f32 to vector<2x32xf32>
    %1175 = arith.subf %1174, %1168 : vector<2x32xf32>
    %1176 = arith.mulf %1175, %1173 : vector<2x32xf32>
    %1177 = arith.mulf %1168, %1001 : vector<2x32xf32>
    %1178 = arith.addf %1176, %1177 : vector<2x32xf32>
    %1179 = arith.truncf %1178 : vector<2x32xf32> to vector<2x32xbf16>
    %c0_396 = arith.constant 0 : index
    %c0_397 = arith.constant 0 : index
    %1180 = vector.load %arg7[%c0_396, %c0_397] : memref<32x128xbf16, #tpu.memory_space<vmem>>, vector<32x128xbf16>
    %cst_398 = arith.constant dense<0.000000e+00> : vector<2x128xf32>
    %1181 = tpu.matmul %1179, %1180, %cst_398 {dimension_numbers = #tpu.dot_dimension_numbers<[1], [0], [0], [1], [0, 0, 1, 1], [], []>} : vector<2x32xbf16>, vector<32x128xbf16>, vector<2x128xf32> -> vector<2x128xf32>
    %1182 = vector.extract_strided_slice %1181 {offsets = [0, 0], sizes = [2, 64], strides = [1, 1]} : vector<2x128xf32> to vector<2x64xf32>
    %1183 = arith.addf %1182, %17 : vector<2x64xf32>
    %cst_399 = arith.constant dense<0.000000e+00> : vector<2xf32>
    %1184 = vector.multi_reduction <add>, %1183, %cst_399 [1] : vector<2x64xf32> to vector<2xf32>
    %1185 = vector.shape_cast %1184 : vector<2xf32> to vector<2x1xf32>
    %cst_400 = arith.constant 6.400000e+01 : f32
    %1186 = vector.broadcast %cst_400 : f32 to vector<2x1xf32>
    %1187 = arith.divf %1185, %1186 : vector<2x1xf32>
    %1188 = vector.broadcast %1187 : vector<2x1xf32> to vector<2x64xf32>
    %1189 = arith.subf %1183, %1188 : vector<2x64xf32>
    %1190 = arith.mulf %1189, %1189 : vector<2x64xf32>
    %cst_401 = arith.constant dense<0.000000e+00> : vector<2xf32>
    %1191 = vector.multi_reduction <add>, %1190, %cst_401 [1] : vector<2x64xf32> to vector<2xf32>
    %1192 = vector.shape_cast %1191 : vector<2xf32> to vector<2x1xf32>
    %cst_402 = arith.constant 6.400000e+01 : f32
    %1193 = vector.broadcast %cst_402 : f32 to vector<2x1xf32>
    %1194 = arith.divf %1192, %1193 : vector<2x1xf32>
    %1195 = vector.broadcast %1187 : vector<2x1xf32> to vector<2x64xf32>
    %1196 = arith.subf %1183, %1195 : vector<2x64xf32>
    %cst_403 = arith.constant 1.000000e-03 : f32
    %1197 = vector.broadcast %cst_403 : f32 to vector<2x1xf32>
    %1198 = arith.addf %1194, %1197 : vector<2x1xf32>
    %1199 = math.rsqrt %1198 : vector<2x1xf32>
    %1200 = vector.broadcast %1199 : vector<2x1xf32> to vector<2x64xf32>
    %1201 = arith.mulf %1196, %1200 : vector<2x64xf32>
    %1202 = arith.mulf %1201, %20 : vector<2x64xf32>
    %1203 = arith.addf %1202, %23 : vector<2x64xf32>
    %cst_404 = arith.constant 0.000000e+00 : f32
    %1204 = vector.broadcast %cst_404 : f32 to vector<2x64xf32>
    %1205 = arith.cmpf ogt, %1203, %1204 : vector<2x64xf32>
    %1206 = math.exp %1203 : vector<2x64xf32>
    %cst_405 = arith.constant 1.000000e+00 : f32
    %1207 = vector.broadcast %cst_405 : f32 to vector<2x64xf32>
    %1208 = arith.subf %1206, %1207 : vector<2x64xf32>
    %1209 = arith.select %1205, %1203, %1208 : vector<2x64xi1>, vector<2x64xf32>
    %1210 = vector.extract_strided_slice %1181 {offsets = [0, 64], sizes = [2, 64], strides = [1, 1]} : vector<2x128xf32> to vector<2x64xf32>
    %1211 = arith.truncf %1108 : vector<2x32xf32> to vector<2x32xbf16>
    %c0_406 = arith.constant 0 : index
    %c0_407 = arith.constant 0 : index
    %1212 = vector.load %arg8[%c0_406, %c0_407] : memref<32x64xbf16, #tpu.memory_space<vmem>>, vector<32x64xbf16>
    %cst_408 = arith.constant dense<0.000000e+00> : vector<2x64xf32>
    %1213 = tpu.matmul %1211, %1212, %cst_408 {dimension_numbers = #tpu.dot_dimension_numbers<[1], [0], [0], [1], [0, 0, 1, 1], [], []>} : vector<2x32xbf16>, vector<32x64xbf16>, vector<2x64xf32> -> vector<2x64xf32>
    %1214 = arith.addf %1210, %1213 : vector<2x64xf32>
    %1215 = arith.addf %1214, %26 : vector<2x64xf32>
    %cst_409 = arith.constant dense<0.000000e+00> : vector<2xf32>
    %1216 = vector.multi_reduction <add>, %1215, %cst_409 [1] : vector<2x64xf32> to vector<2xf32>
    %1217 = vector.shape_cast %1216 : vector<2xf32> to vector<2x1xf32>
    %cst_410 = arith.constant 6.400000e+01 : f32
    %1218 = vector.broadcast %cst_410 : f32 to vector<2x1xf32>
    %1219 = arith.divf %1217, %1218 : vector<2x1xf32>
    %1220 = vector.broadcast %1219 : vector<2x1xf32> to vector<2x64xf32>
    %1221 = arith.subf %1215, %1220 : vector<2x64xf32>
    %1222 = arith.mulf %1221, %1221 : vector<2x64xf32>
    %cst_411 = arith.constant dense<0.000000e+00> : vector<2xf32>
    %1223 = vector.multi_reduction <add>, %1222, %cst_411 [1] : vector<2x64xf32> to vector<2xf32>
    %1224 = vector.shape_cast %1223 : vector<2xf32> to vector<2x1xf32>
    %cst_412 = arith.constant 6.400000e+01 : f32
    %1225 = vector.broadcast %cst_412 : f32 to vector<2x1xf32>
    %1226 = arith.divf %1224, %1225 : vector<2x1xf32>
    %1227 = vector.broadcast %1219 : vector<2x1xf32> to vector<2x64xf32>
    %1228 = arith.subf %1215, %1227 : vector<2x64xf32>
    %cst_413 = arith.constant 1.000000e-03 : f32
    %1229 = vector.broadcast %cst_413 : f32 to vector<2x1xf32>
    %1230 = arith.addf %1226, %1229 : vector<2x1xf32>
    %1231 = math.rsqrt %1230 : vector<2x1xf32>
    %1232 = vector.broadcast %1231 : vector<2x1xf32> to vector<2x64xf32>
    %1233 = arith.mulf %1228, %1232 : vector<2x64xf32>
    %1234 = arith.mulf %1233, %29 : vector<2x64xf32>
    %1235 = arith.addf %1234, %32 : vector<2x64xf32>
    %cst_414 = arith.constant 0.000000e+00 : f32
    %1236 = vector.broadcast %cst_414 : f32 to vector<2x64xf32>
    %1237 = arith.cmpf ogt, %1235, %1236 : vector<2x64xf32>
    %1238 = math.exp %1235 : vector<2x64xf32>
    %cst_415 = arith.constant 1.000000e+00 : f32
    %1239 = vector.broadcast %cst_415 : f32 to vector<2x64xf32>
    %1240 = arith.subf %1238, %1239 : vector<2x64xf32>
    %1241 = arith.select %1237, %1235, %1240 : vector<2x64xi1>, vector<2x64xf32>
    %1242 = arith.truncf %1209 : vector<2x64xf32> to vector<2x64xbf16>
    %c0_416 = arith.constant 0 : index
    %c0_417 = arith.constant 0 : index
    %1243 = vector.load %arg9[%c0_416, %c0_417] : memref<64x64xbf16, #tpu.memory_space<vmem>>, vector<64x64xbf16>
    %cst_418 = arith.constant dense<0.000000e+00> : vector<2x64xf32>
    %1244 = tpu.matmul %1242, %1243, %cst_418 {dimension_numbers = #tpu.dot_dimension_numbers<[1], [0], [0], [1], [0, 0, 1, 1], [], []>} : vector<2x64xbf16>, vector<64x64xbf16>, vector<2x64xf32> -> vector<2x64xf32>
    %1245 = arith.addf %1244, %35 : vector<2x64xf32>
    %1246 = arith.truncf %1241 : vector<2x64xf32> to vector<2x64xbf16>
    %c0_419 = arith.constant 0 : index
    %c0_420 = arith.constant 0 : index
    %1247 = vector.load %arg10[%c0_419, %c0_420] : memref<64x64xbf16, #tpu.memory_space<vmem>>, vector<64x64xbf16>
    %cst_421 = arith.constant dense<0.000000e+00> : vector<2x64xf32>
    %1248 = tpu.matmul %1246, %1247, %cst_421 {dimension_numbers = #tpu.dot_dimension_numbers<[1], [0], [0], [1], [0, 0, 1, 1], [], []>} : vector<2x64xbf16>, vector<64x64xbf16>, vector<2x64xf32> -> vector<2x64xf32>
    %1249 = arith.addf %1248, %38 : vector<2x64xf32>
    %1250 = vector.extract_strided_slice %1245 {offsets = [0, 0], sizes = [2, 32], strides = [1, 1]} : vector<2x64xf32> to vector<2x32xf32>
    %1251 = vector.extract_strided_slice %1245 {offsets = [0, 32], sizes = [2, 32], strides = [1, 1]} : vector<2x64xf32> to vector<2x32xf32>
    %1252 = arith.negf %1251 : vector<2x32xf32>
    %1253 = math.exp %1252 : vector<2x32xf32>
    %cst_422 = arith.constant 1.000000e+00 : f32
    %1254 = vector.broadcast %cst_422 : f32 to vector<2x32xf32>
    %1255 = arith.addf %1254, %1253 : vector<2x32xf32>
    %1256 = arith.divf %1254, %1255 : vector<2x32xf32>
    %cst_423 = arith.constant 2.000000e+00 : f32
    %1257 = vector.broadcast %cst_423 : f32 to vector<2x32xf32>
    %1258 = arith.mulf %1257, %1256 : vector<2x32xf32>
    %cst_424 = arith.constant 1.000000e-01 : f32
    %1259 = vector.broadcast %cst_424 : f32 to vector<2x32xf32>
    %1260 = arith.addf %1258, %1259 : vector<2x32xf32>
    %1261 = arith.mulf %1260, %1109 : vector<2x32xf32>
    %1262 = arith.addf %1250, %1261 : vector<2x32xf32>
    %1263 = vector.extract_strided_slice %1249 {offsets = [0, 0], sizes = [2, 32], strides = [1, 1]} : vector<2x64xf32> to vector<2x32xf32>
    %1264 = vector.extract_strided_slice %1249 {offsets = [0, 32], sizes = [2, 32], strides = [1, 1]} : vector<2x64xf32> to vector<2x32xf32>
    %1265 = arith.negf %1264 : vector<2x32xf32>
    %1266 = math.exp %1265 : vector<2x32xf32>
    %cst_425 = arith.constant 1.000000e+00 : f32
    %1267 = vector.broadcast %cst_425 : f32 to vector<2x32xf32>
    %1268 = arith.addf %1267, %1266 : vector<2x32xf32>
    %1269 = arith.divf %1267, %1268 : vector<2x32xf32>
    %cst_426 = arith.constant 2.000000e+00 : f32
    %1270 = vector.broadcast %cst_426 : f32 to vector<2x32xf32>
    %1271 = arith.mulf %1270, %1269 : vector<2x32xf32>
    %cst_427 = arith.constant 1.000000e-01 : f32
    %1272 = vector.broadcast %cst_427 : f32 to vector<2x32xf32>
    %1273 = arith.addf %1271, %1272 : vector<2x32xf32>
    %1274 = arith.mulf %1273, %1110 : vector<2x32xf32>
    %1275 = arith.addf %1263, %1274 : vector<2x32xf32>
    %1276 = tpu.concatenate %1245, %1262, %39, %1249, %1275, %1178 in 1 : vector<2x64xf32>, vector<2x32xf32>, vector<2x32xf32>, vector<2x64xf32>, vector<2x32xf32>, vector<2x32xf32> -> vector<2x256xf32>
    %1277 = arith.index_cast %c6_i32 : i32 to index
    %c0_428 = arith.constant 0 : index
    %c0_429 = arith.constant 0 : index
    %1278 = vector.load %arg15[%1277, %c0_428, %c0_429] : memref<8x2x256xf32, #tpu.memory_space<vmem>>, vector<1x2x256xf32>
    %1279 = vector.shape_cast %1278 : vector<1x2x256xf32> to vector<2x256xf32>
    %1280 = vector.shape_cast %1276 : vector<2x256xf32> to vector<1x2x256xf32>
    tpu.vector_store %arg15[%1277, %c0_428, %c0_429], %1280 {strides = array<i32>} : memref<8x2x256xf32, #tpu.memory_space<vmem>>, vector<1x2x256xf32>,
    %c7_i32 = arith.constant 7 : i32
    %1281 = arith.index_cast %c7_i32 : i32 to index
    %c0_430 = arith.constant 0 : index
    %c0_431 = arith.constant 0 : index
    %1282 = vector.load %arg0[%1281, %c0_430, %c0_431] : memref<8x2x128xf32, #tpu.memory_space<vmem>>, vector<1x2x128xf32>
    %1283 = vector.shape_cast %1282 : vector<1x2x128xf32> to vector<2x128xf32>
    %1284 = vector.extract_strided_slice %1283 {offsets = [0, 0], sizes = [2, 32], strides = [1, 1]} : vector<2x128xf32> to vector<2x32xf32>
    %1285 = vector.extract_strided_slice %1283 {offsets = [0, 32], sizes = [2, 32], strides = [1, 1]} : vector<2x128xf32> to vector<2x32xf32>
    %1286 = vector.extract_strided_slice %1283 {offsets = [0, 64], sizes = [2, 32], strides = [1, 1]} : vector<2x128xf32> to vector<2x32xf32>
    %1287 = vector.extract_strided_slice %1283 {offsets = [0, 96], sizes = [2, 32], strides = [1, 1]} : vector<2x128xf32> to vector<2x32xf32>
    %1288 = arith.truncf %1275 : vector<2x32xf32> to vector<2x32xbf16>
    %c0_432 = arith.constant 0 : index
    %c0_433 = arith.constant 0 : index
    %1289 = vector.load %arg3[%c0_432, %c0_433] : memref<32x32xbf16, #tpu.memory_space<vmem>>, vector<32x32xbf16>
    %cst_434 = arith.constant dense<0.000000e+00> : vector<2x32xf32>
    %1290 = tpu.matmul %1288, %1289, %cst_434 {dimension_numbers = #tpu.dot_dimension_numbers<[1], [0], [0], [1], [0, 0, 1, 1], [], []>} : vector<2x32xbf16>, vector<32x32xbf16>, vector<2x32xf32> -> vector<2x32xf32>
    %1291 = arith.truncf %1284 : vector<2x32xf32> to vector<2x32xbf16>
    %c0_435 = arith.constant 0 : index
    %c0_436 = arith.constant 0 : index
    %1292 = vector.load %arg4[%c0_435, %c0_436] : memref<32x32xbf16, #tpu.memory_space<vmem>>, vector<32x32xbf16>
    %cst_437 = arith.constant dense<0.000000e+00> : vector<2x32xf32>
    %1293 = tpu.matmul %1291, %1292, %cst_437 {dimension_numbers = #tpu.dot_dimension_numbers<[1], [0], [0], [1], [0, 0, 1, 1], [], []>} : vector<2x32xbf16>, vector<32x32xbf16>, vector<2x32xf32> -> vector<2x32xf32>
    %1294 = arith.addf %1290, %1293 : vector<2x32xf32>
    %1295 = arith.addf %1294, %2 : vector<2x32xf32>
    %cst_438 = arith.constant dense<0.000000e+00> : vector<2xf32>
    %1296 = vector.multi_reduction <add>, %1295, %cst_438 [1] : vector<2x32xf32> to vector<2xf32>
    %1297 = vector.shape_cast %1296 : vector<2xf32> to vector<2x1xf32>
    %cst_439 = arith.constant 3.200000e+01 : f32
    %1298 = vector.broadcast %cst_439 : f32 to vector<2x1xf32>
    %1299 = arith.divf %1297, %1298 : vector<2x1xf32>
    %1300 = vector.broadcast %1299 : vector<2x1xf32> to vector<2x32xf32>
    %1301 = arith.subf %1295, %1300 : vector<2x32xf32>
    %1302 = arith.mulf %1301, %1301 : vector<2x32xf32>
    %cst_440 = arith.constant dense<0.000000e+00> : vector<2xf32>
    %1303 = vector.multi_reduction <add>, %1302, %cst_440 [1] : vector<2x32xf32> to vector<2xf32>
    %1304 = vector.shape_cast %1303 : vector<2xf32> to vector<2x1xf32>
    %cst_441 = arith.constant 3.200000e+01 : f32
    %1305 = vector.broadcast %cst_441 : f32 to vector<2x1xf32>
    %1306 = arith.divf %1304, %1305 : vector<2x1xf32>
    %1307 = vector.broadcast %1299 : vector<2x1xf32> to vector<2x32xf32>
    %1308 = arith.subf %1295, %1307 : vector<2x32xf32>
    %cst_442 = arith.constant 1.000000e-03 : f32
    %1309 = vector.broadcast %cst_442 : f32 to vector<2x1xf32>
    %1310 = arith.addf %1306, %1309 : vector<2x1xf32>
    %1311 = math.rsqrt %1310 : vector<2x1xf32>
    %1312 = vector.broadcast %1311 : vector<2x1xf32> to vector<2x32xf32>
    %1313 = arith.mulf %1308, %1312 : vector<2x32xf32>
    %1314 = arith.mulf %1313, %5 : vector<2x32xf32>
    %1315 = arith.addf %1314, %8 : vector<2x32xf32>
    %cst_443 = arith.constant 0.000000e+00 : f32
    %1316 = vector.broadcast %cst_443 : f32 to vector<2x32xf32>
    %1317 = arith.cmpf ogt, %1315, %1316 : vector<2x32xf32>
    %1318 = math.exp %1315 : vector<2x32xf32>
    %cst_444 = arith.constant 1.000000e+00 : f32
    %1319 = vector.broadcast %cst_444 : f32 to vector<2x32xf32>
    %1320 = arith.subf %1318, %1319 : vector<2x32xf32>
    %1321 = arith.select %1317, %1315, %1320 : vector<2x32xi1>, vector<2x32xf32>
    %1322 = arith.truncf %1321 : vector<2x32xf32> to vector<2x32xbf16>
    %c0_445 = arith.constant 0 : index
    %c0_446 = arith.constant 0 : index
    %1323 = vector.load %arg5[%c0_445, %c0_446] : memref<32x96xbf16, #tpu.memory_space<vmem>>, vector<32x96xbf16>
    %cst_447 = arith.constant dense<0.000000e+00> : vector<2x96xf32>
    %1324 = tpu.matmul %1322, %1323, %cst_447 {dimension_numbers = #tpu.dot_dimension_numbers<[1], [0], [0], [1], [0, 0, 1, 1], [], []>} : vector<2x32xbf16>, vector<32x96xbf16>, vector<2x96xf32> -> vector<2x96xf32>
    %1325 = arith.addf %1324, %11 : vector<2x96xf32>
    %1326 = arith.truncf %1178 : vector<2x32xf32> to vector<2x32xbf16>
    %c0_448 = arith.constant 0 : index
    %c0_449 = arith.constant 0 : index
    %1327 = vector.load %arg6[%c0_448, %c0_449] : memref<32x96xbf16, #tpu.memory_space<vmem>>, vector<32x96xbf16>
    %cst_450 = arith.constant dense<0.000000e+00> : vector<2x96xf32>
    %1328 = tpu.matmul %1326, %1327, %cst_450 {dimension_numbers = #tpu.dot_dimension_numbers<[1], [0], [0], [1], [0, 0, 1, 1], [], []>} : vector<2x32xbf16>, vector<32x96xbf16>, vector<2x96xf32> -> vector<2x96xf32>
    %1329 = arith.addf %1328, %14 : vector<2x96xf32>
    %1330 = vector.extract_strided_slice %1325 {offsets = [0, 0], sizes = [2, 32], strides = [1, 1]} : vector<2x96xf32> to vector<2x32xf32>
    %1331 = vector.extract_strided_slice %1329 {offsets = [0, 0], sizes = [2, 32], strides = [1, 1]} : vector<2x96xf32> to vector<2x32xf32>
    %1332 = arith.addf %1330, %1331 : vector<2x32xf32>
    %1333 = arith.negf %1332 : vector<2x32xf32>
    %1334 = math.exp %1333 : vector<2x32xf32>
    %cst_451 = arith.constant 1.000000e+00 : f32
    %1335 = vector.broadcast %cst_451 : f32 to vector<2x32xf32>
    %1336 = arith.addf %1335, %1334 : vector<2x32xf32>
    %1337 = arith.divf %1335, %1336 : vector<2x32xf32>
    %1338 = vector.extract_strided_slice %1325 {offsets = [0, 32], sizes = [2, 32], strides = [1, 1]} : vector<2x96xf32> to vector<2x32xf32>
    %1339 = vector.extract_strided_slice %1329 {offsets = [0, 32], sizes = [2, 32], strides = [1, 1]} : vector<2x96xf32> to vector<2x32xf32>
    %1340 = arith.addf %1338, %1339 : vector<2x32xf32>
    %1341 = arith.negf %1340 : vector<2x32xf32>
    %1342 = math.exp %1341 : vector<2x32xf32>
    %cst_452 = arith.constant 1.000000e+00 : f32
    %1343 = vector.broadcast %cst_452 : f32 to vector<2x32xf32>
    %1344 = arith.addf %1343, %1342 : vector<2x32xf32>
    %1345 = arith.divf %1343, %1344 : vector<2x32xf32>
    %1346 = vector.extract_strided_slice %1325 {offsets = [0, 64], sizes = [2, 32], strides = [1, 1]} : vector<2x96xf32> to vector<2x32xf32>
    %1347 = vector.extract_strided_slice %1329 {offsets = [0, 64], sizes = [2, 32], strides = [1, 1]} : vector<2x96xf32> to vector<2x32xf32>
    %1348 = arith.mulf %1337, %1347 : vector<2x32xf32>
    %1349 = arith.addf %1346, %1348 : vector<2x32xf32>
    %1350 = math.tanh %1349 : vector<2x32xf32>
    %cst_453 = arith.constant 1.000000e+00 : f32
    %1351 = vector.broadcast %cst_453 : f32 to vector<2x32xf32>
    %1352 = arith.subf %1351, %1345 : vector<2x32xf32>
    %1353 = arith.mulf %1352, %1350 : vector<2x32xf32>
    %1354 = arith.mulf %1345, %1178 : vector<2x32xf32>
    %1355 = arith.addf %1353, %1354 : vector<2x32xf32>
    %1356 = arith.truncf %1355 : vector<2x32xf32> to vector<2x32xbf16>
    %c0_454 = arith.constant 0 : index
    %c0_455 = arith.constant 0 : index
    %1357 = vector.load %arg7[%c0_454, %c0_455] : memref<32x128xbf16, #tpu.memory_space<vmem>>, vector<32x128xbf16>
    %cst_456 = arith.constant dense<0.000000e+00> : vector<2x128xf32>
    %1358 = tpu.matmul %1356, %1357, %cst_456 {dimension_numbers = #tpu.dot_dimension_numbers<[1], [0], [0], [1], [0, 0, 1, 1], [], []>} : vector<2x32xbf16>, vector<32x128xbf16>, vector<2x128xf32> -> vector<2x128xf32>
    %1359 = vector.extract_strided_slice %1358 {offsets = [0, 0], sizes = [2, 64], strides = [1, 1]} : vector<2x128xf32> to vector<2x64xf32>
    %1360 = arith.addf %1359, %17 : vector<2x64xf32>
    %cst_457 = arith.constant dense<0.000000e+00> : vector<2xf32>
    %1361 = vector.multi_reduction <add>, %1360, %cst_457 [1] : vector<2x64xf32> to vector<2xf32>
    %1362 = vector.shape_cast %1361 : vector<2xf32> to vector<2x1xf32>
    %cst_458 = arith.constant 6.400000e+01 : f32
    %1363 = vector.broadcast %cst_458 : f32 to vector<2x1xf32>
    %1364 = arith.divf %1362, %1363 : vector<2x1xf32>
    %1365 = vector.broadcast %1364 : vector<2x1xf32> to vector<2x64xf32>
    %1366 = arith.subf %1360, %1365 : vector<2x64xf32>
    %1367 = arith.mulf %1366, %1366 : vector<2x64xf32>
    %cst_459 = arith.constant dense<0.000000e+00> : vector<2xf32>
    %1368 = vector.multi_reduction <add>, %1367, %cst_459 [1] : vector<2x64xf32> to vector<2xf32>
    %1369 = vector.shape_cast %1368 : vector<2xf32> to vector<2x1xf32>
    %cst_460 = arith.constant 6.400000e+01 : f32
    %1370 = vector.broadcast %cst_460 : f32 to vector<2x1xf32>
    %1371 = arith.divf %1369, %1370 : vector<2x1xf32>
    %1372 = vector.broadcast %1364 : vector<2x1xf32> to vector<2x64xf32>
    %1373 = arith.subf %1360, %1372 : vector<2x64xf32>
    %cst_461 = arith.constant 1.000000e-03 : f32
    %1374 = vector.broadcast %cst_461 : f32 to vector<2x1xf32>
    %1375 = arith.addf %1371, %1374 : vector<2x1xf32>
    %1376 = math.rsqrt %1375 : vector<2x1xf32>
    %1377 = vector.broadcast %1376 : vector<2x1xf32> to vector<2x64xf32>
    %1378 = arith.mulf %1373, %1377 : vector<2x64xf32>
    %1379 = arith.mulf %1378, %20 : vector<2x64xf32>
    %1380 = arith.addf %1379, %23 : vector<2x64xf32>
    %cst_462 = arith.constant 0.000000e+00 : f32
    %1381 = vector.broadcast %cst_462 : f32 to vector<2x64xf32>
    %1382 = arith.cmpf ogt, %1380, %1381 : vector<2x64xf32>
    %1383 = math.exp %1380 : vector<2x64xf32>
    %cst_463 = arith.constant 1.000000e+00 : f32
    %1384 = vector.broadcast %cst_463 : f32 to vector<2x64xf32>
    %1385 = arith.subf %1383, %1384 : vector<2x64xf32>
    %1386 = arith.select %1382, %1380, %1385 : vector<2x64xi1>, vector<2x64xf32>
    %1387 = vector.extract_strided_slice %1358 {offsets = [0, 64], sizes = [2, 64], strides = [1, 1]} : vector<2x128xf32> to vector<2x64xf32>
    %1388 = arith.truncf %1285 : vector<2x32xf32> to vector<2x32xbf16>
    %c0_464 = arith.constant 0 : index
    %c0_465 = arith.constant 0 : index
    %1389 = vector.load %arg8[%c0_464, %c0_465] : memref<32x64xbf16, #tpu.memory_space<vmem>>, vector<32x64xbf16>
    %cst_466 = arith.constant dense<0.000000e+00> : vector<2x64xf32>
    %1390 = tpu.matmul %1388, %1389, %cst_466 {dimension_numbers = #tpu.dot_dimension_numbers<[1], [0], [0], [1], [0, 0, 1, 1], [], []>} : vector<2x32xbf16>, vector<32x64xbf16>, vector<2x64xf32> -> vector<2x64xf32>
    %1391 = arith.addf %1387, %1390 : vector<2x64xf32>
    %1392 = arith.addf %1391, %26 : vector<2x64xf32>
    %cst_467 = arith.constant dense<0.000000e+00> : vector<2xf32>
    %1393 = vector.multi_reduction <add>, %1392, %cst_467 [1] : vector<2x64xf32> to vector<2xf32>
    %1394 = vector.shape_cast %1393 : vector<2xf32> to vector<2x1xf32>
    %cst_468 = arith.constant 6.400000e+01 : f32
    %1395 = vector.broadcast %cst_468 : f32 to vector<2x1xf32>
    %1396 = arith.divf %1394, %1395 : vector<2x1xf32>
    %1397 = vector.broadcast %1396 : vector<2x1xf32> to vector<2x64xf32>
    %1398 = arith.subf %1392, %1397 : vector<2x64xf32>
    %1399 = arith.mulf %1398, %1398 : vector<2x64xf32>
    %cst_469 = arith.constant dense<0.000000e+00> : vector<2xf32>
    %1400 = vector.multi_reduction <add>, %1399, %cst_469 [1] : vector<2x64xf32> to vector<2xf32>
    %1401 = vector.shape_cast %1400 : vector<2xf32> to vector<2x1xf32>
    %cst_470 = arith.constant 6.400000e+01 : f32
    %1402 = vector.broadcast %cst_470 : f32 to vector<2x1xf32>
    %1403 = arith.divf %1401, %1402 : vector<2x1xf32>
    %1404 = vector.broadcast %1396 : vector<2x1xf32> to vector<2x64xf32>
    %1405 = arith.subf %1392, %1404 : vector<2x64xf32>
    %cst_471 = arith.constant 1.000000e-03 : f32
    %1406 = vector.broadcast %cst_471 : f32 to vector<2x1xf32>
    %1407 = arith.addf %1403, %1406 : vector<2x1xf32>
    %1408 = math.rsqrt %1407 : vector<2x1xf32>
    %1409 = vector.broadcast %1408 : vector<2x1xf32> to vector<2x64xf32>
    %1410 = arith.mulf %1405, %1409 : vector<2x64xf32>
    %1411 = arith.mulf %1410, %29 : vector<2x64xf32>
    %1412 = arith.addf %1411, %32 : vector<2x64xf32>
    %cst_472 = arith.constant 0.000000e+00 : f32
    %1413 = vector.broadcast %cst_472 : f32 to vector<2x64xf32>
    %1414 = arith.cmpf ogt, %1412, %1413 : vector<2x64xf32>
    %1415 = math.exp %1412 : vector<2x64xf32>
    %cst_473 = arith.constant 1.000000e+00 : f32
    %1416 = vector.broadcast %cst_473 : f32 to vector<2x64xf32>
    %1417 = arith.subf %1415, %1416 : vector<2x64xf32>
    %1418 = arith.select %1414, %1412, %1417 : vector<2x64xi1>, vector<2x64xf32>
    %1419 = arith.truncf %1386 : vector<2x64xf32> to vector<2x64xbf16>
    %c0_474 = arith.constant 0 : index
    %c0_475 = arith.constant 0 : index
    %1420 = vector.load %arg9[%c0_474, %c0_475] : memref<64x64xbf16, #tpu.memory_space<vmem>>, vector<64x64xbf16>
    %cst_476 = arith.constant dense<0.000000e+00> : vector<2x64xf32>
    %1421 = tpu.matmul %1419, %1420, %cst_476 {dimension_numbers = #tpu.dot_dimension_numbers<[1], [0], [0], [1], [0, 0, 1, 1], [], []>} : vector<2x64xbf16>, vector<64x64xbf16>, vector<2x64xf32> -> vector<2x64xf32>
    %1422 = arith.addf %1421, %35 : vector<2x64xf32>
    %1423 = arith.truncf %1418 : vector<2x64xf32> to vector<2x64xbf16>
    %c0_477 = arith.constant 0 : index
    %c0_478 = arith.constant 0 : index
    %1424 = vector.load %arg10[%c0_477, %c0_478] : memref<64x64xbf16, #tpu.memory_space<vmem>>, vector<64x64xbf16>
    %cst_479 = arith.constant dense<0.000000e+00> : vector<2x64xf32>
    %1425 = tpu.matmul %1423, %1424, %cst_479 {dimension_numbers = #tpu.dot_dimension_numbers<[1], [0], [0], [1], [0, 0, 1, 1], [], []>} : vector<2x64xbf16>, vector<64x64xbf16>, vector<2x64xf32> -> vector<2x64xf32>
    %1426 = arith.addf %1425, %38 : vector<2x64xf32>
    %1427 = vector.extract_strided_slice %1422 {offsets = [0, 0], sizes = [2, 32], strides = [1, 1]} : vector<2x64xf32> to vector<2x32xf32>
    %1428 = vector.extract_strided_slice %1422 {offsets = [0, 32], sizes = [2, 32], strides = [1, 1]} : vector<2x64xf32> to vector<2x32xf32>
    %1429 = arith.negf %1428 : vector<2x32xf32>
    %1430 = math.exp %1429 : vector<2x32xf32>
    %cst_480 = arith.constant 1.000000e+00 : f32
    %1431 = vector.broadcast %cst_480 : f32 to vector<2x32xf32>
    %1432 = arith.addf %1431, %1430 : vector<2x32xf32>
    %1433 = arith.divf %1431, %1432 : vector<2x32xf32>
    %cst_481 = arith.constant 2.000000e+00 : f32
    %1434 = vector.broadcast %cst_481 : f32 to vector<2x32xf32>
    %1435 = arith.mulf %1434, %1433 : vector<2x32xf32>
    %cst_482 = arith.constant 1.000000e-01 : f32
    %1436 = vector.broadcast %cst_482 : f32 to vector<2x32xf32>
    %1437 = arith.addf %1435, %1436 : vector<2x32xf32>
    %1438 = arith.mulf %1437, %1286 : vector<2x32xf32>
    %1439 = arith.addf %1427, %1438 : vector<2x32xf32>
    %1440 = vector.extract_strided_slice %1426 {offsets = [0, 0], sizes = [2, 32], strides = [1, 1]} : vector<2x64xf32> to vector<2x32xf32>
    %1441 = vector.extract_strided_slice %1426 {offsets = [0, 32], sizes = [2, 32], strides = [1, 1]} : vector<2x64xf32> to vector<2x32xf32>
    %1442 = arith.negf %1441 : vector<2x32xf32>
    %1443 = math.exp %1442 : vector<2x32xf32>
    %cst_483 = arith.constant 1.000000e+00 : f32
    %1444 = vector.broadcast %cst_483 : f32 to vector<2x32xf32>
    %1445 = arith.addf %1444, %1443 : vector<2x32xf32>
    %1446 = arith.divf %1444, %1445 : vector<2x32xf32>
    %cst_484 = arith.constant 2.000000e+00 : f32
    %1447 = vector.broadcast %cst_484 : f32 to vector<2x32xf32>
    %1448 = arith.mulf %1447, %1446 : vector<2x32xf32>
    %cst_485 = arith.constant 1.000000e-01 : f32
    %1449 = vector.broadcast %cst_485 : f32 to vector<2x32xf32>
    %1450 = arith.addf %1448, %1449 : vector<2x32xf32>
    %1451 = arith.mulf %1450, %1287 : vector<2x32xf32>
    %1452 = arith.addf %1440, %1451 : vector<2x32xf32>
    %1453 = tpu.concatenate %1422, %1439, %39, %1426, %1452, %1355 in 1 : vector<2x64xf32>, vector<2x32xf32>, vector<2x32xf32>, vector<2x64xf32>, vector<2x32xf32>, vector<2x32xf32> -> vector<2x256xf32>
    %1454 = arith.index_cast %c7_i32 : i32 to index
    %c0_486 = arith.constant 0 : index
    %c0_487 = arith.constant 0 : index
    %1455 = vector.load %arg15[%1454, %c0_486, %c0_487] : memref<8x2x256xf32, #tpu.memory_space<vmem>>, vector<1x2x256xf32>
    %1456 = vector.shape_cast %1455 : vector<1x2x256xf32> to vector<2x256xf32>
    %1457 = vector.shape_cast %1453 : vector<2x256xf32> to vector<1x2x256xf32>
    tpu.vector_store %arg15[%1454, %c0_486, %c0_487], %1457 {strides = array<i32>} : memref<8x2x256xf32, #tpu.memory_space<vmem>>, vector<1x2x256xf32>,
    %c8_i32 = arith.constant 8 : i32
    return
  }
}

</mosaic_0001>

<bundles_post_ra>
// kernel: tpu_custom_call.1
= control target key start
LH: loop header
LB: loop body
LE: loop exit
PB: predicated region body
PF: predicated region fallthrough
CT: control target
= control target key end

     0   :  { %20 = vsyncpa [#allocation3], 0  ;;  %s8785_s0 = inlined_call_operand.hbm [shape: f32[8,2,128], index: 0, kind: input, shape index: {}]   ;;  %s8786_s1 = inlined_call_operand.hbm [shape: f32[2,32], index: 1, kind: input, shape index: {}]   ;;  %s8787_s2 = inlined_call_operand.vmem [shape: f32[2,32], index: 2, kind: input, shape index: {}]   ;;  %s8788_s3 = inlined_call_operand.hbm [shape: bf16[32,32], index: 3, kind: input, shape index: {}]   ;;  %s8789_s4 = inlined_call_operand.hbm [shape: bf16[32,32], index: 4, kind: input, shape index: {}]   ;;  %s8790_s5 = inlined_call_operand.hbm [shape: bf16[32,96], index: 5, kind: input, shape index: {}]   ;;  %s8791_s6 = inlined_call_operand.hbm [shape: bf16[32,96], index: 6, kind: input, shape index: {}]   ;;  %s8792_s7 = inlined_call_operand.hbm [shape: bf16[32,128], index: 7, kind: input, shape index: {}]   ;;  %s8793_s8 = inlined_call_operand.hbm [shape: bf16[32,64], index: 8, kind: input, shape index: {}]   ;;  %s8794_s9 = inlined_call_operand.hbm [shape: bf16[64,64], index: 9, kind: input, shape index: {}]   ;;  %s8795_s10 = inlined_call_operand.hbm [shape: bf16[64,64], index: 10, kind: input, shape index: {}]   ;;  %s8796_s11 = inlined_call_operand.vmem [shape: f32[3,32], index: 11, kind: input, shape index: {}]   ;;  %s8797_s12 = inlined_call_operand.vmem [shape: f32[2,96], index: 12, kind: input, shape index: {}]   ;;  %s8798_s13 = inlined_call_operand.vmem [shape: f32[6,64], index: 13, kind: input, shape index: {}]   ;;  %s8799_s14 = inlined_call_operand.vmem [shape: f32[2,64], index: 14, kind: input, shape index: {}]   ;;  %s8800_s15 = inlined_call_operand.hbm [shape: f32[8,2,256], index: 15, kind: output, shape index: {}]  }
   0x1   :  { %21 = vsyncpa [#allocation6], 0 }
   0x2   :  { %22 = vsyncpa [#allocation9], 0 }
   0x3   :  { %23 = vsyncpa [#allocation12], 0 }
   0x4   :  { %24 = vsyncpa [#allocation15], 0 }
   0x5   :  { %25 = vsyncpa [#allocation18], 0 }
   0x6   :  { %26 = vsyncpa [#allocation4], 0  ;;  %s7509_s18 = smov [#allocation5]  }
   0x7   :  { %s45_s19 = sshll.u32 %s7509_s18, 4  ;;  %s46_s19 = int_to_ptr.vmem [resolvable:$true] %s45_s19 }
   0x8   :  { %s7283_s20 = scalar_lea.vmem %s46_s19, 32  ;;  %p7288_p1 = scmp.lt.s32.totalorder %s46_s19, %s46_s19 }
   0x9   :  { %p7284_p0 = scmp.ne.s32.totalorder %s46_s19, %s7283_s20  ;;  %p7289_p2 = scmp.lt.s32.totalorder %s7283_s20, %s7283_s20 }
   0xb   :  { %p7290_p3 = por %p7289_p2, %p7288_p1 }
   0xd   :  { %p7291_p4 = pnand %p7290_p3, %p7284_p0 }
   0xf   :  { %7294 = shalt.err (!%p7291_p4)
}
  0x10   :  { %48 = dma.hbm_to_vmem [thread:$0]  %s8786_s1, 32, %s46_s19, [#allocation6]  }
  0x11   :  { %s7510_s23 = smov [#allocation8]   ;;  %s7511_s25 = smov [#allocation11]  }
  0x12   :  { %s68_s24 = sshll.u32 %s7510_s23, 4  ;;  %s92_s26 = sshll.u32 %s7511_s25, 4  ;;  %s69_s24 = int_to_ptr.vmem [resolvable:$true] %s68_s24  ;;  %s93_s26 = int_to_ptr.vmem [resolvable:$true] %s92_s26 }
  0x13   :  { %s7303_s27 = scalar_lea.vmem %s69_s24, 256  ;;  %p7308_p6 = scmp.lt.s32.totalorder %s69_s24, %s69_s24 }
  0x14   :  { %p7304_p5 = scmp.ne.s32.totalorder %s69_s24, %s7303_s27  ;;  %p7309_p7 = scmp.lt.s32.totalorder %s7303_s27, %s7303_s27 }
  0x16   :  { %p7310_p8 = por %p7309_p7, %p7308_p6 }
  0x18   :  { %p7311_p9 = pnand %p7310_p8, %p7304_p5 }
  0x1a   :  { %7314 = shalt.err (!%p7311_p9)
}
  0x1b   :  { %s7512_s28 = smov 64   ;;  %s7513_s29 = smov 4  }
  0x1c   :  { %74 = dma.hbm_to_vmem [thread:$0]  %s8789_s4, 256, %s69_s24, [#allocation9], %s7512_s28, %s7512_s28, %s7513_s29  }
  0x1d   :  { %s7323_s1 = scalar_lea.vmem %s93_s26, 256  ;;  %p7328_p11 = scmp.lt.s32.totalorder %s93_s26, %s93_s26 }
  0x1e   :  { %p7324_p10 = scmp.ne.s32.totalorder %s93_s26, %s7323_s1  ;;  %p7329_p12 = scmp.lt.s32.totalorder %s7323_s1, %s7323_s1 }
  0x20   :  { %p7330_p13 = por %p7329_p12, %p7328_p11 }
  0x22   :  { %p7331_p0 = pnand %p7330_p13, %p7324_p10 }
  0x24   :  { %7334 = shalt.err (!%p7331_p0)
}
  0x25   :  { %98 = dma.hbm_to_vmem [thread:$0]  %s8791_s6, 256, %s93_s26, [#allocation12], %s7512_s28, %s7512_s28, %s7513_s29  }
  0x26   :  { %s7514_s19 = smov [#allocation14]   ;;  %s7515_s21 = smov [#allocation2]  }
  0x27   :  { %s116_s20 = sshll.u32 %s7514_s19, 4  ;;  %s32_s4 = sshll.u32 %s7515_s21, 4  ;;  %s117_s20 = int_to_ptr.vmem [resolvable:$true] %s116_s20  ;;  %s33_s4 = int_to_ptr.vmem [resolvable:$true] %s32_s4 }
  0x28   :  { %s7343_s22 = scalar_lea.vmem %s117_s20, 256  ;;  %p7348_p2 = scmp.lt.s32.totalorder %s117_s20, %s117_s20 }
  0x29   :  { %p7344_p1 = scmp.ne.s32.totalorder %s117_s20, %s7343_s22  ;;  %p7349_p3 = scmp.lt.s32.totalorder %s7343_s22, %s7343_s22 }
  0x2b   :  { %p7350_p4 = por %p7349_p3, %p7348_p2 }
  0x2d   :  { %p7351_p5 = pnand %p7350_p4, %p7344_p1 }
  0x2f   :  { %7354 = shalt.err (!%p7351_p5)
}
  0x30   :  { %122 = dma.hbm_to_vmem [thread:$0]  %s8793_s8, 256, %s117_s20, [#allocation15], %s7512_s28, %s7512_s28, %s7513_s29  }
  0x31   :  { %s7363_s6 = scalar_lea.vmem %s33_s4, 256  ;;  %p7368_p7 = scmp.lt.s32.totalorder %s33_s4, %s33_s4 }
  0x32   :  { %p7364_p6 = scmp.ne.s32.totalorder %s33_s4, %s7363_s6  ;;  %p7369_p8 = scmp.lt.s32.totalorder %s7363_s6, %s7363_s6 }
  0x34   :  { %p7370_p9 = por %p7369_p8, %p7368_p7 }
  0x36   :  { %p7371_p10 = pnand %p7370_p9, %p7364_p6 }
  0x38   :  { %7374 = shalt.err (!%p7371_p10)
}
  0x39   :  { %s7516_s25 = smov 32   ;;  %s7517_s26 = smov 2  }
  0x3a   :  { %38 = dma.hbm_to_vmem [thread:$0]  %s8785_s0, 256, %s33_s4, [#allocation3], %s7516_s25, %s7516_s25, %s7517_s26  }
  0x3b   :  { %s7518_s16 = smov [#allocation7]   ;;  %s7519_s8 = smov [#allocation10]  }
  0x3c   :  { %s56_s1 = sshll.u32 %s7518_s16, 4  ;;  %s80_s17 = sshll.u32 %s7519_s8, 4  ;;  %s57_s1 = int_to_ptr.vmem [resolvable:$true] %s56_s1  ;;  %s81_s17 = int_to_ptr.vmem [resolvable:$true] %s80_s17 }
  0x3d   :  { %s7383_s18 = scalar_lea.vmem %s57_s1, 256  ;;  %p7388_p12 = scmp.lt.s32.totalorder %s57_s1, %s57_s1 }
  0x3e   :  { %p7384_p11 = scmp.ne.s32.totalorder %s57_s1, %s7383_s18  ;;  %p7389_p13 = scmp.lt.s32.totalorder %s7383_s18, %s7383_s18 }
  0x40   :  { %p7390_p0 = por %p7389_p13, %p7388_p12 }
  0x42   :  { %p7391_p1 = pnand %p7390_p0, %p7384_p11 }
  0x44   :  { %7394 = shalt.err (!%p7391_p1)
}
  0x45   :  { %62 = dma.hbm_to_vmem [thread:$0]  %s8788_s3, 256, %s57_s1, [#allocation6], %s7512_s28, %s7512_s28, %s7513_s29  }
  0x46   :  { %s7403_s0 = scalar_lea.vmem %s81_s17, 256  ;;  %p7408_p3 = scmp.lt.s32.totalorder %s81_s17, %s81_s17 }
  0x47   :  { %p7404_p2 = scmp.ne.s32.totalorder %s81_s17, %s7403_s0  ;;  %p7409_p4 = scmp.lt.s32.totalorder %s7403_s0, %s7403_s0 }
  0x49   :  { %p7410_p5 = por %p7409_p4, %p7408_p3 }
  0x4b   :  { %p7411_p6 = pnand %p7410_p5, %p7404_p2 }
  0x4d   :  { %7414 = shalt.err (!%p7411_p6)
}
  0x4e   :  { %86 = dma.hbm_to_vmem [thread:$0]  %s8790_s5, 256, %s81_s17, [#allocation9], %s7512_s28, %s7512_s28, %s7513_s29  }
  0x4f   :  { %s7520_s22 = smov [#allocation13]   ;;  %s7521_s24 = smov [#allocation16]  }
  0x50   :  { %s104_s23 = sshll.u32 %s7520_s22, 4  ;;  %s128_s3 = sshll.u32 %s7521_s24, 4  ;;  %s105_s23 = int_to_ptr.vmem [resolvable:$true] %s104_s23  ;;  %s129_s3 = int_to_ptr.vmem [resolvable:$true] %s128_s3 }
  0x51   :  { %s7423_s6 = scalar_lea.vmem %s105_s23, 256  ;;  %p7428_p8 = scmp.lt.s32.totalorder %s105_s23, %s105_s23 }
  0x52   :  { %p7424_p7 = scmp.ne.s32.totalorder %s105_s23, %s7423_s6  ;;  %p7429_p9 = scmp.lt.s32.totalorder %s7423_s6, %s7423_s6 }
  0x54   :  { %p7430_p10 = por %p7429_p9, %p7428_p8 }
  0x56   :  { %p7431_p11 = pnand %p7430_p10, %p7424_p7 }
  0x58   :  { %7434 = shalt.err (!%p7431_p11)
}
  0x59   :  { %110 = dma.hbm_to_vmem [thread:$0]  %s8792_s7, 256, %s105_s23, [#allocation12], %s7512_s28, %s7512_s28, %s7513_s29  }
  0x5a   :  { %s7443_s5 = scalar_lea.vmem %s129_s3, 512  ;;  %p7448_p13 = scmp.lt.s32.totalorder %s129_s3, %s129_s3 }
  0x5b   :  { %p7444_p12 = scmp.ne.s32.totalorder %s129_s3, %s7443_s5  ;;  %p7449_p0 = scmp.lt.s32.totalorder %s7443_s5, %s7443_s5 }
  0x5d   :  { %p7450_p1 = por %p7449_p0, %p7448_p13 }
  0x5f   :  { %p7451_p2 = pnand %p7450_p1, %p7444_p12 }
  0x61   :  { %7454 = shalt.err (!%p7451_p2)
}
  0x62   :  { %134 = dma.hbm_to_vmem [thread:$0]  %s8794_s9, 512, %s129_s3, [#allocation15], %s7512_s28, %s7512_s28, %s7513_s29  }
  0x63   :  { %s7522_s1 = smov [#allocation17]  }
  0x64   :  { %s140_s8 = sshll.u32 %s7522_s1, 4  ;;  %s141_s8 = int_to_ptr.vmem [resolvable:$true] %s140_s8 }
  0x65   :  { %s7463_s17 = scalar_lea.vmem %s141_s8, 512  ;;  %p7468_p4 = scmp.lt.s32.totalorder %s141_s8, %s141_s8 }
  0x66   :  { %p7464_p3 = scmp.ne.s32.totalorder %s141_s8, %s7463_s17  ;;  %p7469_p5 = scmp.lt.s32.totalorder %s7463_s17, %s7463_s17 }
  0x68   :  { %p7470_p6 = por %p7469_p5, %p7468_p4 }
  0x6a   :  { %p7471_p7 = pnand %p7470_p6, %p7464_p3 }
  0x6c   :  { %7474 = shalt.err (!%p7471_p7)
}
  0x6d   :  { %146 = dma.hbm_to_vmem [thread:$0]  %s8795_s10, 512, %s141_s8, [#allocation18], %s7512_s28, %s7512_s28, %s7513_s29  }
  0x6e   :  { %7495 = dma.done.wait [#allocation3], 256  }
  0x6f   :  { %7496 = vsyncadd [#allocation3], 4294967040 }
  0x70   :  { %7497 = dma.done.wait [#allocation6], 288  }
  0x71   :  { %7498 = vsyncadd [#allocation6], 4294967008 }
  0x72   :  { %7499 = dma.done.wait [#allocation9], 512  }
  0x73   :  { %7500 = vsyncadd [#allocation9], 4294966784 }
  0x74   :  { %7501 = dma.done.wait [#allocation12], 512  }
  0x75   :  { %7502 = vsyncadd [#allocation12], 4294966784 }
  0x76   :  { %7503 = dma.done.wait [#allocation15], 768  }
  0x77   :  { %7504 = vsyncadd [#allocation15], 4294966528 }
  0x78   :  { %7505 = dma.done.wait [#allocation18], 512  }
  0x79   :  { %7506 = vsyncadd [#allocation18], 4294966784  ;;  %v7523_v0 = vmov 0.0   ;;  %vm7524_vm0 = vmmov 0   ;;  %v6883_v1 = vld [vmem:[#allocation8 + $0x8] sm:$0xff]   ;;  %v6884_v2 = vld [vmem:[#allocation7 + $0x8] sm:$0xff]  }
  0x7a   :  { %6289 = vmatprep.subr.bf16.mxu0 %v7523_v0  ;;  %6297 = vmatprep.subr.bf16.mxu1 %v7523_v0  ;;  %v6885_v3 = vld [vmem:[#allocation8] sm:$0xff]   ;;  %v6886_v4 = vld [vmem:[#allocation7] sm:$0xff]   ;;  %vm276_vm1 = vcmask 261120   ;;  %v7671_v5 = vld [vmem:[#allocation2] sm:$0x3]  ;;  %vm376_vm2 = vcmask 254976  }
  0x7b   :  { %6293 = vmatprep.mubr.msk.bf16.mxu0 %vm7524_vm0, %v7523_v0  ;;  %6301 = vmatprep.mubr.msk.bf16.mxu1 %vm7524_vm0, %v7523_v0  ;;  %v252_v6 = vld [vmem:[%s8787_s2] sm:$0x3]  ;;  %v7678_v7 = vpack.c.bf16 %v7671_v5, %v7671_v5  ;;  %v6887_v21 = vld [vmem:[#allocation11 + $0x8] sm:$0xff]   ;;  %v6888_v22 = vld [vmem:[#allocation11] sm:$0xff]   ;;  %s7525_s6 = smov 96   ;;  %vm612_vm4 = vcmask 517120  }
  0x7c   :  { %6290 = vmatpush3.bf16.msra.mxu0 %v6883_v1  ;;  %6298 = vmatpush3.bf16.msra.mxu1 %v6884_v2  ;;  %v254_v8 = vpack.c.bf16 %v252_v6, %v252_v6  ;;  %v7692_v11 = vld [vmem:[%s8796_s11] ss:$0 sm:$0xff]  ;;  %v251_v23 = vld [vmem:[#allocation5] sm:$0x3]  ;;  %v6890_v31 = vld [vmem:[#allocation10] sm:$0xff]   ;;  %vm775_vm6 = vcmask 523264  }
  0x7d   :  { %6291 = vmatprep.subr.bf16.mxu0 %v7523_v0  ;;  %6299 = vmatprep.subr.bf16.mxu1 %v7523_v0  ;;  %v458_v24 = vpack.c.bf16 %v251_v23, %v251_v23  ;;  %v6889_v30 = vld [vmem:[#allocation10 + $0x8] sm:$0xff]   ;;  %v7719_v44 = vld [vmem:[%s8796_s11 + $0x2] ss:$0 sm:$0xff]  ;;  %v6891_v2 = vld [vmem:[#allocation14 + $0x8] sm:$0xff]  }
  0x7e   :  { %v7707_v32 = vld [vmem:[%s8797_s12 + $0x1] ss:$0 sm:$0xff]  ;;  %v7729_v52 = vld [vmem:[%s8797_s12] ss:$0 sm:$0xff] }
  0x7f   :  { %v7714_v42 = vld [vmem:[%s8796_s11 + $0x1] ss:$0 sm:$0xff] }
  0x80   :  { %6292 = vmatpush3.bf16.msra.mxu0 %v6885_v3  ;;  %6300 = vmatpush3.bf16.msra.mxu1 %v6886_v4  ;;  %v6892_v3 = vld [vmem:[#allocation14] sm:$0xff]  }
  0x81   :  { %6305 = vmatprep.subr.bf16.mxu0 %v7523_v0  ;;  %6313 = vmatprep.subr.bf16.mxu1 %v7523_v0 }
  0x83   :  { %6294 = vmatmul.mubr.msk.bf16.vlgmr.msra.gmra.mxu0 %vm276_vm1, %v7678_v7  ;;  %6302 = vmatmul.mubr.msk.bf16.vlgmr.msra.gmra.mxu1 %vm276_vm1, %v254_v8 }
  0x84   :  { %6309 = vmatprep.mubr.msk.bf16.mxu0 %vm7524_vm0, %v7523_v0  ;;  %6317 = vmatprep.mubr.msk.bf16.mxu1 %vm7524_vm0, %v7523_v0 }
  0x85   :  { %6314 = vmatpush3.bf16.msra.mxu1 %v6887_v21  ;;  %6306 = vmatpush3.bf16.msra.mxu0 %v6889_v30  ;;  %v5780_v21 = vld [vmem:[%s8798_s13 + $0x3] ss:$0 sm:$0xff] }
  0x86   :  { %6315 = vmatprep.subr.bf16.mxu1 %v7523_v0  ;;  %6307 = vmatprep.subr.bf16.mxu0 %v7523_v0 }
  0x89   :  { %6316 = vmatpush3.bf16.msra.mxu1 %v6888_v22  ;;  %6308 = vmatpush3.bf16.msra.mxu0 %v6890_v31 }
  0x8a   :  { %6329 = vmatprep.subr.bf16.mxu1 %v7523_v0  ;;  %6321 = vmatprep.subr.bf16.mxu0 %v7523_v0 }
  0x8c   :  { %6318 = vmatmul.mubr.msk.bf16.vlgmr.msra.gmra.mxu1 %vm276_vm1, %v458_v24 }
  0x8d   :  { %6333 = vmatprep.mubr.msk.bf16.mxu1 %vm7524_vm0, %v7523_v0  ;;  %6330 = vmatpush3.bf16.msra.mxu1 %v6891_v2  ;;  %v7789_v2 = vld [vmem:[%s8798_s13] ss:$0 sm:$0xff] }
  0x8e   :  { %6331 = vmatprep.subr.bf16.mxu1 %v7523_v0 }
  0x91   :  { %6332 = vmatpush3.bf16.msra.mxu1 %v6892_v3 }
  0x92   :  { %6349 = vmatprep.subr.bf16.mxu1 %v7523_v0 }
 0x143   :  { %v314_v9 = vpop.f32.mrf.mxu0  ;;  %v369_v10 = vpop.f32.mrf.mxu1 }
 0x144   :  { %v370_v12 = vadd.f32 %v369_v10, %v314_v9  ;;  %v6893_v10 = vld [vmem:[#allocation13 + $0x8] sm:$0xff]  }
 0x145   :  { %v6295_v13 = vpop.f32.mrf.mxu0  ;;  %v6303_v14 = vpop.f32.mrf.mxu1 }
 0x146   :  { %v375_v16 = vadd.f32 %v7692_v11, %v370_v12  ;;  %v6894_v12 = vld [vmem:[#allocation13] sm:$0xff]  }
 0x147   :  { %v317_v15 = vpop.f32.mrf.mxu0  ;;  %v372_v17 = vpop.f32.mrf.mxu1 }
 0x148   :  { %v377_v19 = vsel %vm376_vm2, %v375_v16, 0.0 }
 0x149   :  { %v6296_v18 = vpop.f32.mrf.mxu0  ;;  %v6304_v20 = vpop.f32.mrf.mxu1  ;;  %378 = vadd.xlane.f32.xlu0 %v377_v19 }
 0x14c   :  { %v512_v33 = vpop.f32.mrf.mxu1 }
 0x14d   :  { %v513_v34 = vadd.f32 %v7707_v32, %v512_v33 }
 0x14e   :  { %v6319_v35 = vpop.f32.mrf.mxu1 }
 0x14f   :  { %526 = vrot.lane.b32.xlu1 %v513_v34, %s7512_s28 }
 0x150   :  { %v515_v36 = vpop.f32.mrf.mxu1 }
 0x151   :  { %v5781_v36 = vld [vmem:[%s8798_s13 + $0x4] ss:$0 sm:$0xff] }
 0x152   :  { %v6320_v37 = vpop.f32.mrf.mxu1 }
 0x1c1   :  { %v527_v62 = vpop.permute.xlu1 %526 }
 0x1d2   :  { %v379_v25 = vpop.xlane.xlu0 %378 }
 0x1d3   :  { %v381_v26 = vmul.f32 0.03125, %v379_v25 }
 0x1d5   :  { %v382_v27 = vsub.f32 %v375_v16, %v381_v26 }
 0x1d7   :  { %v383_v28 = vmul.f32 %v382_v27, %v382_v27 }
 0x1d9   :  { %v384_v29 = vsel %vm376_vm2, %v383_v28, 0.0 }
 0x1da   :  { %385 = vadd.xlane.f32.xlu0 %v384_v29 }
 0x263   :  { %v386_v38 = vpop.xlane.xlu0 %385 }
 0x264   :  { %v387_v39 = vmul.f32 0.03125, %v386_v38 }
 0x266   :  { %v388_v40 = vadd.f32 0.001, %v387_v39 }
 0x268   :  { %7043 = vrsqrt.f32 %v388_v40 }
 0x275   :  { %v7044_v41 = vpop.eup %7043 }
 0x276   :  { %v390_v43 = vmul.f32 %v7044_v41, %v382_v27 }
 0x278   :  { %v391_v45 = vmul.f32 %v7714_v42, %v390_v43 }
 0x27a   :  { %v392_v46 = vadd.f32 %v7719_v44, %v391_v45  ;;  %v5782_v45 = vld [vmem:[%s8798_s13 + $0x5] ss:$0 sm:$0xff] }
 0x27c   :  { %v394_v47 = vmul.f32 1.442695, %v392_v46  ;;  %vm393_vm3 = vcmp.gt.f32.partialorder %v392_v46, 0.0 }
 0x27e   :  { %7045 = vpow2.f32 %v394_v47  ;;  %v6896_v47 = vld [vmem:[#allocation17 + $0x10] sm:$0xff]  }
 0x28b   :  { %v7046_v48 = vpop.eup %7045 }
 0x28c   :  { %v5791_v49 = vadd.f32 -1.0, %v7046_v48  ;;  %v6897_v48 = vld [vmem:[#allocation17 + $0x8] sm:$0xff]  }
 0x28e   :  { %v397_v50 = vsel %vm393_vm3, %v392_v46, %v5791_v49  ;;  %v6895_v46 = vld [vmem:[#allocation17 + $0x18] sm:$0xff]   ;;  %v6898_v49 = vld [vmem:[#allocation17] sm:$0xff]  }
 0x28f   :  { %v398_v51 = vpack.c.bf16 %v397_v50, %v397_v50 }
 0x291   :  { %6310 = vmatmul.mubr.msk.bf16.vlgmr.msra.gmra.mxu0 %vm276_vm1, %v398_v51 }
 0x292   :  { %6325 = vmatprep.mubr.msk.bf16.mxu0 %vm7524_vm0, %v7523_v0  ;;  %6322 = vmatpush3.bf16.msra.mxu0 %v6893_v10 }
 0x293   :  { %6323 = vmatprep.subr.bf16.mxu0 %v7523_v0 }
 0x296   :  { %6324 = vmatpush3.bf16.msra.mxu0 %v6894_v12 }
 0x297   :  { %6337 = vmatprep.subr.bf16.mxu0 %v7523_v0 }
 0x351   :  { %v452_v53 = vpop.f32.mrf.mxu0 }
 0x352   :  { %v453_v54 = vadd.f32 %v7729_v52, %v452_v53 }
 0x353   :  { %v6311_v55 = vpop.f32.mrf.mxu0 }
 0x354   :  { %v518_v56 = vadd.f32 %v513_v34, %v453_v54 }
 0x355   :  { %v455_v57 = vpop.f32.mrf.mxu0 }
 0x356   :  { %v5798_v58 = vmul.f32 -1.442695, %v518_v56 }
 0x357   :  { %v6312_v59 = vpop.f32.mrf.mxu0 }
 0x358   :  { %7047 = vpow2.f32 %v5798_v58 }
 0x365   :  { %v7048_v60 = vpop.eup %7047 }
 0x366   :  { %v522_v61 = vadd.f32 1.0, %v7048_v60 }
 0x368   :  { %7049 = vrcp.f32 %v522_v61 }
 0x375   :  { %v7050_v63 = vpop.eup %7049 }
 0x376   :  { %v529_v1 = vmul.f32 %v7050_v63, %v527_v62 }
 0x378   :  { %531 = vrot.lane.b32.xlu1 %v529_v1, %s7512_s28 }
 0x37c   :  { %543 = vrot.lane.b32.xlu1 %v251_v23, %s7516_s25 }
 0x380   :  { %639 = vrot.lane.b32.xlu1 %v7678_v7, %s7525_s6  ;;  %v536_v7 = vsub.f32 1.0, %v7050_v63 }
 0x3ea   :  { %v532_v4 = vpop.permute.xlu1 %531 }
 0x3eb   :  { %v534_v6 = vadd.f32 %v532_v4, %v453_v54 }
 0x3ed   :  { %7051 = vtanh.f32 %v534_v6 }
 0x3ee   :  { %v544_v8 = vpop.permute.xlu1 %543 }
 0x3ef   :  { %v546_v15 = vmul.f32 %v7050_v63, %v544_v8 }
 0x3f2   :  { %v640_v9 = vpop.permute.xlu1 %639 }
 0x3f3   :  { %6334 = vmatmul.mubr.msk.bf16.vlgmr.msra.gmra.mxu1 %vm276_vm1, %v640_v9 }
 0x3f4   :  { %6357 = vmatprep.mubr.msk.bf16.mxu1 %vm7524_vm0, %v7523_v0  ;;  %6350 = vmatpush3.bf16.msra.mxu1 %v6895_v46 }
 0x3f5   :  { %6351 = vmatprep.subr.bf16.mxu1 %v7523_v0 }
 0x3f8   :  { %6352 = vmatpush3.bf16.msra.mxu1 %v6896_v47 }
 0x3f9   :  { %6353 = vmatprep.subr.bf16.mxu1 %v7523_v0 }
 0x3fa   :  { %v7052_v13 = vpop.eup %7051 }
 0x3fb   :  { %538 = vrot.lane.b32.xlu0 %v7052_v13, %s7525_s6 }
 0x3fc   :  { %6354 = vmatpush3.bf16.msra.mxu1 %v6897_v48 }
 0x3fd   :  { %6355 = vmatprep.subr.bf16.mxu1 %v7523_v0 }
 0x400   :  { %6356 = vmatpush3.bf16.msra.mxu1 %v6898_v49 }
 0x401   :  { %6369 = vmatprep.subr.bf16.mxu1 %v7523_v0 }
 0x46d   :  { %v539_v14 = vpop.permute.xlu0 %538 }
 0x46e   :  { %v541_v16 = vmul.f32 %v539_v14, %v536_v7  ;;  %v6899_v7 = vld [vmem:[#allocation16 + $0x18] sm:$0xff]   ;;  %v6900_v14 = vld [vmem:[#allocation16 + $0x10] sm:$0xff]  }
 0x470   :  { %v7744_v17 = vadd.f32 %v546_v15, %v541_v16  ;;  %v6902_v15 = vld [vmem:[#allocation16] sm:$0xff]   ;;  %v6905_v16 = vld [vmem:[#allocation7 + $0x8] sm:$0xff]  }
 0x472   :  { %v548_v18 = vpack.c.bf16 %v7744_v17, %v7744_v17 }
 0x474   :  { %554 = vrot.lane.b32.xlu1 %v548_v18, %s7525_s6  ;;  %v7807_v18 = vld [vmem:[%s8799_s14 + $0x1] ss:$0 sm:$0xff] }
 0x4b3   :  { %v690_v19 = vpop.f32.mrf.mxu1 }
 0x4b4   :  { %697 = vrot.lane.b32.xlu1 %v690_v19, %s7512_s28 }
 0x4b5   :  { %v6335_v20 = vpop.f32.mrf.mxu1 }
 0x4b7   :  { %v693_v22 = vpop.f32.mrf.mxu1 }
 0x4b8   :  { %702 = vrot.lane.b32.xlu1 %v5780_v21, %s7512_s28 }
 0x4b9   :  { %v6336_v23 = vpop.f32.mrf.mxu1 }
 0x4e6   :  { %v7754_v24 = vpop.permute.xlu1 %554 }
 0x4e7   :  { %6326 = vmatmul.mubr.msk.bf16.vlgmr.msra.gmra.mxu0 %vm276_vm1, %v7754_v24 }
 0x4e8   :  { %6345 = vmatprep.mubr.msk.bf16.mxu0 %vm7524_vm0, %v7523_v0  ;;  %6338 = vmatpush3.bf16.msra.mxu0 %v6899_v7 }
 0x4e9   :  { %6339 = vmatprep.subr.bf16.mxu0 %v7523_v0 }
 0x4ec   :  { %6340 = vmatpush3.bf16.msra.mxu0 %v6900_v14 }
 0x4ed   :  { %6341 = vmatprep.subr.bf16.mxu0 %v7523_v0 }
 0x526   :  { %v698_v25 = vpop.permute.xlu1 %697 }
 0x52a   :  { %v7760_v27 = vpop.permute.xlu1 %702 }
 0x5a7   :  { %v605_v26 = vpop.f32.mrf.mxu0 }
 0x5a8   :  { %v700_v28 = vadd.f32 %v698_v25, %v605_v26  ;;  %v611_v3 = vadd.f32 %v7789_v2, %v605_v26 }
 0x5a9   :  { %v6327_v29 = vpop.f32.mrf.mxu0 }
 0x5aa   :  { %v705_v30 = vadd.f32 %v7760_v27, %v700_v28  ;;  %v613_v4 = vsel %vm612_vm4, %v611_v3, 0.0 }
 0x5ab   :  { %v608_v31 = vpop.f32.mrf.mxu0 }
 0x5ac   :  { %707 = vrot.lane.b32.xlu1 %v705_v30, %s7512_s28 }
 0x5ad   :  { %v6328_v33 = vpop.f32.mrf.mxu0 }
 0x61e   :  { %v708_v34 = vpop.permute.xlu1 %707 }
 0x61f   :  { %v710_v35 = vsel %vm612_vm4, %v708_v34, 0.0  ;;  %v7816_v34 = vld [vmem:[%s8798_s13 + $0x1] ss:$0 sm:$0xff] }
 0x620   :  { %711 = vadd.xlane.f32.xlu0 %v710_v35 }
 0x636   :  { %728 = vrot.lane.b32.xlu0 %v5781_v36, %s7512_s28  ;;  %v7821_v36 = vld [vmem:[%s8798_s13 + $0x2] ss:$0 sm:$0xff] }
 0x6a9   :  { %v712_v37 = vpop.xlane.xlu0 %711 }
 0x6aa   :  { %v713_v38 = vmul.f32 0.015625, %v712_v37 }
 0x6ac   :  { %v714_v39 = vsub.f32 %v705_v30, %v713_v38  ;;  %v6906_v38 = vld [vmem:[#allocation7] sm:$0xff]  }
 0x6ad   :  { %v7779_v55 = vpop.permute.xlu0 %728 }
 0x6ae   :  { %v715_v40 = vmul.f32 %v714_v39, %v714_v39 }
 0x6b0   :  { %717 = vrot.lane.b32.xlu1 %v715_v40, %s7512_s28 }
 0x722   :  { %v718_v41 = vpop.permute.xlu1 %717 }
 0x723   :  { %v720_v43 = vsel %vm612_vm4, %v718_v41, 0.0 }
 0x724   :  { %721 = vadd.xlane.f32.xlu1 %v720_v43 }
 0x735   :  { %733 = vrot.lane.b32.xlu1 %v5782_v45, %s7512_s28 }
 0x7ad   :  { %v722_v50 = vpop.xlane.xlu1 %721 }
 0x7ae   :  { %v723_v51 = vmul.f32 0.015625, %v722_v50 }
 0x7b0   :  { %v724_v53 = vadd.f32 0.001, %v723_v51  ;;  %v6903_v51 = vld [vmem:[#allocation8 + $0x8] sm:$0xff]  }
 0x7b1   :  { %v7781_v57 = vpop.permute.xlu1 %733 }
 0x7b2   :  { %7053 = vrsqrt.f32 %v724_v53 }
 0x7bf   :  { %v7054_v54 = vpop.eup %7053 }
 0x7c0   :  { %v726_v56 = vmul.f32 %v7054_v54, %v714_v39  ;;  %v6904_v54 = vld [vmem:[#allocation8] sm:$0xff]  }
 0x7c2   :  { %v731_v58 = vmul.f32 %v7779_v55, %v726_v56  ;;  %v7830_v56 = vld [vmem:[#allocation2 + $0x2] sm:$0x3] }
 0x7c4   :  { %v736_v59 = vadd.f32 %v7781_v57, %v731_v58  ;;  %v7835_v58 = vpack.c.bf16 %v7830_v56, %v7830_v56 }
 0x7c6   :  { %v738_v60 = vmul.f32 1.442695, %v736_v59  ;;  %vm737_vm5 = vcmp.gt.f32.partialorder %v736_v59, 0.0 }
 0x7c8   :  { %7055 = vpow2.f32 %v738_v60 }
 0x7d5   :  { %v7056_v61 = vpop.eup %7055 }
 0x7d6   :  { %v5806_v62 = vadd.f32 -1.0, %v7056_v61  ;;  %v6907_v61 = vld [vmem:[#allocation11 + $0x8] sm:$0xff]  }
 0x7d8   :  { %v741_v63 = vsel %vm737_vm5, %v736_v59, %v5806_v62 }
 0x7d9   :  { %v819_v1 = vpack.c.bf16 %v741_v63, %v741_v63  ;;  %v6908_v63 = vld [vmem:[#allocation11] sm:$0xff]  }
 0x7db   :  { %829 = vrot.lane.b32.xlu0 %v819_v1, %s7512_s28 }
 0x7fa   :  { %614 = vadd.xlane.f32.xlu0 %v613_v4 }
 0x810   :  { %924 = vrot.lane.b32.xlu0 %v7671_v5, %s7512_s28  ;;  %v6901_v5 = vld [vmem:[#allocation16 + $0x8] sm:$0xff]  }
 0x811   :  { %6342 = vmatpush3.bf16.msra.mxu0 %v6901_v5 }
 0x812   :  { %6343 = vmatprep.subr.bf16.mxu0 %v7523_v0 }
 0x815   :  { %6344 = vmatpush3.bf16.msra.mxu0 %v6902_v15 }
 0x816   :  { %6361 = vmatprep.subr.bf16.mxu0 %v7523_v0 }
 0x84d   :  { %v830_v6 = vpop.permute.xlu0 %829 }
 0x84e   :  { %6358 = vmatmul.mubr.msk.bf16.vlgmr.msra.gmra.mxu1 %vm775_vm6, %v830_v6 }
 0x84f   :  { %6373 = vmatprep.mubr.msk.bf16.mxu1 %vm7524_vm0, %v7523_v0  ;;  %6370 = vmatpush3.bf16.msra.mxu1 %v6905_v16 }
 0x850   :  { %6371 = vmatprep.subr.bf16.mxu1 %v7523_v0 }
 0x853   :  { %6372 = vmatpush3.bf16.msra.mxu1 %v6906_v38 }
 0x854   :  { %6385 = vmatprep.subr.bf16.mxu1 %v7523_v0 }
 0x883   :  { %v615_v8 = vpop.xlane.xlu0 %614 }
 0x884   :  { %v617_v9 = vmul.f32 0.015625, %v615_v8 }
 0x886   :  { %v618_v10 = vsub.f32 %v611_v3, %v617_v9 }
 0x887   :  { %v925_v45 = vpop.permute.xlu0 %924 }
 0x888   :  { %v619_v12 = vmul.f32 %v618_v10, %v618_v10 }
 0x88a   :  { %v620_v13 = vsel %vm612_vm4, %v619_v12, 0.0 }
 0x88b   :  { %621 = vadd.xlane.f32.xlu1 %v620_v13 }
 0x90e   :  { %v892_v19 = vpop.f32.mrf.mxu1 }
 0x90f   :  { %v7810_v20 = vadd.f32 %v7807_v18, %v892_v19 }
 0x910   :  { %v6359_v21 = vpop.f32.mrf.mxu1 }
 0x911   :  { %v5818_v22 = vmul.f32 -1.442695, %v7810_v20 }
 0x912   :  { %v895_v23 = vpop.f32.mrf.mxu1 }
 0x913   :  { %7057 = vpow2.f32 %v5818_v22 }
 0x914   :  { %v6360_v25 = vpop.f32.mrf.mxu1  ;;  %v622_v26 = vpop.xlane.xlu1 %621 }
 0x915   :  { %v623_v28 = vmul.f32 0.015625, %v622_v26 }
 0x917   :  { %v624_v29 = vadd.f32 0.001, %v623_v28 }
 0x919   :  { %7059 = vrsqrt.f32 %v624_v29 }
 0x920   :  { %v7058_v30 = vpop.eup %7057 }
 0x921   :  { %v919_v31 = vadd.f32 1.0, %v7058_v30 }
 0x923   :  { %7061 = vrcp.f32 %v919_v31 }
 0x926   :  { %v7060_v33 = vpop.eup %7059 }
 0x927   :  { %v626_v35 = vmul.f32 %v7060_v33, %v618_v10  ;;  %v6909_v33 = vld [vmem:[#allocation10 + $0x8] sm:$0xff]  }
 0x929   :  { %v627_v37 = vmul.f32 %v7816_v34, %v626_v35  ;;  %v6910_v35 = vld [vmem:[#allocation10] sm:$0xff]  }
 0x92b   :  { %v628_v39 = vadd.f32 %v7821_v36, %v627_v37 }
 0x92d   :  { %v630_v40 = vmul.f32 1.442695, %v628_v39  ;;  %vm629_vm7 = vcmp.gt.f32.partialorder %v628_v39, 0.0 }
 0x92f   :  { %7063 = vpow2.f32 %v630_v40 }
 0x930   :  { %v7062_v41 = vpop.eup %7061 }
 0x931   :  { %v922_v43 = vmul.f32 2.0, %v7062_v41 }
 0x933   :  { %v923_v46 = vadd.f32 0.1, %v922_v43 }
 0x935   :  { %v927_v47 = vmul.f32 %v925_v45, %v923_v46 }
 0x937   :  { %929 = vrot.lane.b32.xlu1 %v927_v47, %s7525_s6 }
 0x93c   :  { %v7064_v48 = vpop.eup %7063 }
 0x93d   :  { %v5802_v49 = vadd.f32 -1.0, %v7064_v48 }
 0x93f   :  { %v633_v50 = vsel %vm629_vm7, %v628_v39, %v5802_v49 }
 0x940   :  { %v742_v53 = vpack.c.bf16 %v633_v50, %v633_v50 }
 0x942   :  { %6346 = vmatmul.mubr.msk.bf16.vlgmr.msra.gmra.mxu0 %vm775_vm6, %v742_v53 }
 0x943   :  { %6362 = vmatpush3.bf16.msra.mxu0 %v6903_v51  ;;  %6365 = vmatprep.mubr.msk.bf16.mxu0 %vm7524_vm0, %v7523_v0 }
 0x944   :  { %6363 = vmatprep.subr.bf16.mxu0 %v7523_v0 }
 0x947   :  { %6364 = vmatpush3.bf16.msra.mxu0 %v6904_v54 }
 0x948   :  { %6377 = vmatprep.subr.bf16.mxu0 %v7523_v0 }
 0x94a   :  { %6366 = vmatmul.mubr.msk.bf16.vlgmr.msra.gmra.mxu0 %vm276_vm1, %v7835_v58 }
 0x94b   :  { %6381 = vmatprep.mubr.msk.bf16.mxu0 %vm7524_vm0, %v7523_v0  ;;  %6378 = vmatpush3.bf16.msra.mxu0 %v6909_v33 }
 0x94c   :  { %6379 = vmatprep.subr.bf16.mxu0 %v7523_v0 }
 0x94f   :  { %6380 = vmatpush3.bf16.msra.mxu0 %v6910_v35 }
 0x950   :  { %6393 = vmatprep.subr.bf16.mxu0 %v7523_v0 }
 0x9a9   :  { %v930_v59 = vpop.permute.xlu1 %929 }
 0x9aa   :  { %v7843_v60 = vadd.f32 %v930_v59, %v7810_v20 }
 0x9ac   :  { %v964_v62 = vpack.c.bf16 %v7843_v60, %v7843_v60 }
 0x9ae   :  { %6374 = vmatmul.mubr.msk.bf16.vlgmr.msra.gmra.mxu1 %vm276_vm1, %v964_v62 }
 0x9af   :  { %6386 = vmatpush3.bf16.msra.mxu1 %v6907_v61  ;;  %6389 = vmatprep.mubr.msk.bf16.mxu1 %vm7524_vm0, %v7523_v0 }
 0x9b0   :  { %6387 = vmatprep.subr.bf16.mxu1 %v7523_v0 }
 0x9b3   :  { %6388 = vmatpush3.bf16.msra.mxu1 %v6908_v63 }
 0x9b4   :  { %6401 = vmatprep.subr.bf16.mxu1 %v7523_v0 }
 0x9b6   :  { %6390 = vmatmul.mubr.msk.bf16.vlgmr.msra.gmra.mxu1 %vm276_vm1, %v7754_v24 }
 0x9b7   :  { %6405 = vmatprep.mubr.msk.bf16.mxu1 %vm7524_vm0, %v7523_v0 }
 0xa02   :  { %v7856_v1 = vpop.f32.mrf.mxu0 }
 0xa04   :  { %v6347_v3 = vpop.f32.mrf.mxu0 }
 0xa06   :  { %v816_v4 = vpop.f32.mrf.mxu0 }
 0xa08   :  { %v6348_v6 = vpop.f32.mrf.mxu0 }
 0xa0a   :  { %v1023_v8 = vpop.f32.mrf.mxu0 }
 0xa0c   :  { %v6367_v9 = vpop.f32.mrf.mxu0 }
 0xa0e   :  { %v1026_v10 = vpop.f32.mrf.mxu0 }
 0xa0f   :  { %v6911_v10 = vld [vmem:[#allocation14 + $0x8] sm:$0xff]  }
 0xa10   :  { %v6368_v12 = vpop.f32.mrf.mxu0  ;;  %6402 = vmatpush3.bf16.msra.mxu1 %v6911_v10 }
 0xa11   :  { %v6912_v12 = vld [vmem:[#allocation14] sm:$0xff]   ;;  %6403 = vmatprep.subr.bf16.mxu1 %v7523_v0 }
 0xa14   :  { %6404 = vmatpush3.bf16.msra.mxu1 %v6912_v12  ;;  %v6916_v12 = vld [vmem:[#allocation17 + $0x10] sm:$0xff]  }
 0xa15   :  { %6421 = vmatprep.subr.bf16.mxu1 %v7523_v0 }
 0xa6e   :  { %v1078_v13 = vpop.f32.mrf.mxu1 }
 0xa6f   :  { %v1079_v7 = vadd.f32 %v1078_v13, %v1023_v8 }
 0xa70   :  { %v6375_v14 = vpop.f32.mrf.mxu1 }
 0xa71   :  { %v1084_v5 = vadd.f32 %v7692_v11, %v1079_v7 }
 0xa72   :  { %v1081_v15 = vpop.f32.mrf.mxu1 }
 0xa73   :  { %v1085_v24 = vsel %vm376_vm2, %v1084_v5, 0.0  ;;  %v6914_v15 = vld [vmem:[#allocation13] sm:$0xff]  }
 0xa74   :  { %v6376_v16 = vpop.f32.mrf.mxu1  ;;  %1086 = vadd.xlane.f32.xlu0 %v1085_v24 }
 0xa76   :  { %v1215_v19 = vpop.f32.mrf.mxu1 }
 0xa77   :  { %v1216_v25 = vadd.f32 %v7707_v32, %v1215_v19 }
 0xa78   :  { %v6391_v21 = vpop.f32.mrf.mxu1 }
 0xa7a   :  { %v1218_v22 = vpop.f32.mrf.mxu1 }
 0xa7c   :  { %v6392_v23 = vpop.f32.mrf.mxu1 }
 0xa8a   :  { %1229 = vrot.lane.b32.xlu0 %v1216_v25, %s7512_s28 }
 0xafd   :  { %v1087_v26 = vpop.xlane.xlu0 %1086 }
 0xafe   :  { %v1088_v28 = vmul.f32 0.03125, %v1087_v26 }
 0xb00   :  { %v1089_v29 = vsub.f32 %v1084_v5, %v1088_v28  ;;  %v6913_v5 = vld [vmem:[#allocation13 + $0x8] sm:$0xff]  }
 0xb01   :  { %v1230_v8 = vpop.permute.xlu0 %1229 }
 0xb02   :  { %v1090_v30 = vmul.f32 %v1089_v29, %v1089_v29 }
 0xb04   :  { %v1091_v31 = vsel %vm376_vm2, %v1090_v30, 0.0 }
 0xb05   :  { %1092 = vadd.xlane.f32.xlu1 %v1091_v31 }
 0xb8e   :  { %v1093_v37 = vpop.xlane.xlu1 %1092 }
 0xb8f   :  { %v1094_v38 = vmul.f32 0.03125, %v1093_v37 }
 0xb91   :  { %v1095_v39 = vadd.f32 0.001, %v1094_v38 }
 0xb93   :  { %7065 = vrsqrt.f32 %v1095_v39 }
 0xba0   :  { %v7066_v40 = vpop.eup %7065 }
 0xba1   :  { %v1097_v41 = vmul.f32 %v7066_v40, %v1089_v29 }
 0xba3   :  { %v1098_v43 = vmul.f32 %v7714_v42, %v1097_v41 }
 0xba5   :  { %v1099_v45 = vadd.f32 %v7719_v44, %v1098_v43 }
 0xba7   :  { %v1101_v46 = vmul.f32 1.442695, %v1099_v45  ;;  %vm1100_vm8 = vcmp.gt.f32.partialorder %v1099_v45, 0.0 }
 0xba9   :  { %7067 = vpow2.f32 %v1101_v46 }
 0xbb6   :  { %v7068_v47 = vpop.eup %7067 }
 0xbb7   :  { %v5826_v48 = vadd.f32 -1.0, %v7068_v47 }
 0xbb9   :  { %v1104_v49 = vsel %vm1100_vm8, %v1099_v45, %v5826_v48 }
 0xbba   :  { %v1105_v50 = vpack.c.bf16 %v1104_v49, %v1104_v49 }
 0xbbc   :  { %6382 = vmatmul.mubr.msk.bf16.vlgmr.msra.gmra.mxu0 %vm276_vm1, %v1105_v50 }
 0xbbd   :  { %6397 = vmatprep.mubr.msk.bf16.mxu0 %vm7524_vm0, %v7523_v0  ;;  %6394 = vmatpush3.bf16.msra.mxu0 %v6913_v5 }
 0xbbe   :  { %6395 = vmatprep.subr.bf16.mxu0 %v7523_v0 }
 0xbc1   :  { %6396 = vmatpush3.bf16.msra.mxu0 %v6914_v15  ;;  %v6918_v15 = vld [vmem:[#allocation17] sm:$0xff]  }
 0xbc2   :  { %6409 = vmatprep.subr.bf16.mxu0 %v7523_v0 }
 0xc7c   :  { %v1159_v51 = vpop.f32.mrf.mxu0 }
 0xc7d   :  { %v1160_v53 = vadd.f32 %v7729_v52, %v1159_v51 }
 0xc7e   :  { %v6383_v54 = vpop.f32.mrf.mxu0 }
 0xc7f   :  { %v1221_v59 = vadd.f32 %v1216_v25, %v1160_v53  ;;  %v6915_v54 = vld [vmem:[#allocation17 + $0x18] sm:$0xff]  }
 0xc80   :  { %v1162_v61 = vpop.f32.mrf.mxu0 }
 0xc81   :  { %v5833_v62 = vmul.f32 -1.442695, %v1221_v59 }
 0xc82   :  { %v6384_v63 = vpop.f32.mrf.mxu0 }
 0xc83   :  { %7069 = vpow2.f32 %v5833_v62 }
 0xc90   :  { %v7070_v3 = vpop.eup %7069 }
 0xc91   :  { %v1225_v4 = vadd.f32 1.0, %v7070_v3 }
 0xc93   :  { %7071 = vrcp.f32 %v1225_v4 }
 0xca0   :  { %v7072_v6 = vpop.eup %7071 }
 0xca1   :  { %v1232_v9 = vmul.f32 %v7072_v6, %v1230_v8  ;;  %v1239_v24 = vsub.f32 1.0, %v7072_v6  ;;  %v1245_v19 = vmul.f32 %v7072_v6, %v7744_v17 }
 0xca3   :  { %1234 = vrot.lane.b32.xlu1 %v1232_v9, %s7512_s28 }
 0xca7   :  { %1336 = vrot.lane.b32.xlu1 %v7835_v58, %s7525_s6 }
 0xd15   :  { %v1235_v13 = vpop.permute.xlu1 %1234 }
 0xd16   :  { %v1237_v7 = vadd.f32 %v1235_v13, %v1160_v53 }
 0xd18   :  { %7073 = vtanh.f32 %v1237_v7 }
 0xd19   :  { %v1337_v14 = vpop.permute.xlu1 %1336 }
 0xd1a   :  { %6406 = vmatmul.mubr.msk.bf16.vlgmr.msra.gmra.mxu1 %vm276_vm1, %v1337_v14  ;;  %v6917_v14 = vld [vmem:[#allocation17 + $0x8] sm:$0xff]  }
 0xd1b   :  { %6429 = vmatprep.mubr.msk.bf16.mxu1 %vm7524_vm0, %v7523_v0  ;;  %6422 = vmatpush3.bf16.msra.mxu1 %v6915_v54 }
 0xd1c   :  { %6423 = vmatprep.subr.bf16.mxu1 %v7523_v0 }
 0xd1f   :  { %6424 = vmatpush3.bf16.msra.mxu1 %v6916_v12 }
 0xd20   :  { %6425 = vmatprep.subr.bf16.mxu1 %v7523_v0 }
 0xd23   :  { %6426 = vmatpush3.bf16.msra.mxu1 %v6917_v14 }
 0xd24   :  { %6427 = vmatprep.subr.bf16.mxu1 %v7523_v0 }
 0xd25   :  { %v7074_v58 = vpop.eup %7073 }
 0xd26   :  { %1241 = vrot.lane.b32.xlu0 %v7074_v58, %s7525_s6 }
 0xd27   :  { %6428 = vmatpush3.bf16.msra.mxu1 %v6918_v15 }
 0xd28   :  { %6441 = vmatprep.subr.bf16.mxu1 %v7523_v0 }
 0xd98   :  { %v1242_v16 = vpop.permute.xlu0 %1241 }
 0xd99   :  { %v1244_v21 = vmul.f32 %v1242_v16, %v1239_v24  ;;  %v6919_v24 = vld [vmem:[#allocation16 + $0x18] sm:$0xff]  }
 0xd9b   :  { %v7883_v22 = vadd.f32 %v1245_v19, %v1244_v21  ;;  %v6920_v19 = vld [vmem:[#allocation16 + $0x10] sm:$0xff]  }
 0xd9d   :  { %v1247_v23 = vpack.c.bf16 %v7883_v22, %v7883_v22 }
 0xd9f   :  { %1253 = vrot.lane.b32.xlu0 %v1247_v23, %s7525_s6 }
 0xdda   :  { %v1387_v25 = vpop.f32.mrf.mxu1 }
 0xddb   :  { %1394 = vrot.lane.b32.xlu1 %v1387_v25, %s7512_s28  ;;  %v6921_v25 = vld [vmem:[#allocation16 + $0x8] sm:$0xff]  }
 0xddc   :  { %v6407_v26 = vpop.f32.mrf.mxu1 }
 0xddd   :  { %v6922_v26 = vld [vmem:[#allocation16] sm:$0xff]  }
 0xdde   :  { %v1390_v28 = vpop.f32.mrf.mxu1 }
 0xde0   :  { %v6408_v29 = vpop.f32.mrf.mxu1 }
 0xe11   :  { %v7889_v30 = vpop.permute.xlu0 %1253 }
 0xe12   :  { %6398 = vmatmul.mubr.msk.bf16.vlgmr.msra.gmra.mxu0 %vm276_vm1, %v7889_v30 }
 0xe13   :  { %6417 = vmatprep.mubr.msk.bf16.mxu0 %vm7524_vm0, %v7523_v0  ;;  %6410 = vmatpush3.bf16.msra.mxu0 %v6919_v24 }
 0xe14   :  { %6411 = vmatprep.subr.bf16.mxu0 %v7523_v0 }
 0xe17   :  { %6412 = vmatpush3.bf16.msra.mxu0 %v6920_v19 }
 0xe18   :  { %6413 = vmatprep.subr.bf16.mxu0 %v7523_v0 }
 0xe1b   :  { %6414 = vmatpush3.bf16.msra.mxu0 %v6921_v25 }
 0xe1c   :  { %6415 = vmatprep.subr.bf16.mxu0 %v7523_v0 }
 0xe1f   :  { %6416 = vmatpush3.bf16.msra.mxu0 %v6922_v26  ;;  %v6928_v26 = vld [vmem:[#allocation11] sm:$0xff]  }
 0xe20   :  { %6433 = vmatprep.subr.bf16.mxu0 %v7523_v0 }
 0xe4d   :  { %v1395_v31 = vpop.permute.xlu1 %1394 }
 0xed2   :  { %v1304_v33 = vpop.f32.mrf.mxu0 }
 0xed3   :  { %v1397_v35 = vadd.f32 %v1395_v31, %v1304_v33  ;;  %v1310_v50 = vadd.f32 %v7789_v2, %v1304_v33 }
 0xed4   :  { %v6399_v37 = vpop.f32.mrf.mxu0 }
 0xed5   :  { %v1398_v38 = vadd.f32 %v1397_v35, %v7760_v27  ;;  %v1311_v53 = vsel %vm612_vm4, %v1310_v50, 0.0 }
 0xed6   :  { %v1307_v39 = vpop.f32.mrf.mxu0 }
 0xed7   :  { %1400 = vrot.lane.b32.xlu0 %v1398_v38, %s7512_s28 }
 0xed8   :  { %v6400_v40 = vpop.f32.mrf.mxu0 }
 0xf49   :  { %v1401_v41 = vpop.permute.xlu0 %1400 }
 0xf4a   :  { %v1403_v43 = vsel %vm612_vm4, %v1401_v41, 0.0 }
 0xf4b   :  { %1404 = vadd.xlane.f32.xlu1 %v1403_v43 }
 0xfd4   :  { %v1405_v45 = vpop.xlane.xlu1 %1404 }
 0xfd5   :  { %v1406_v46 = vmul.f32 0.015625, %v1405_v45 }
 0xfd7   :  { %v1407_v47 = vsub.f32 %v1398_v38, %v1406_v46  ;;  %v6923_v46 = vld [vmem:[#allocation8 + $0x8] sm:$0xff]  }
 0xfd9   :  { %v1408_v48 = vmul.f32 %v1407_v47, %v1407_v47 }
 0xfdb   :  { %1410 = vrot.lane.b32.xlu0 %v1408_v48, %s7512_s28  ;;  %v6924_v48 = vld [vmem:[#allocation8] sm:$0xff]  }
0x104d   :  { %v1411_v49 = vpop.permute.xlu0 %1410 }
0x104e   :  { %v1413_v51 = vsel %vm612_vm4, %v1411_v49, 0.0  ;;  %v7924_v49 = vld [vmem:[#allocation2 + $0x4] sm:$0x3] }
0x104f   :  { %1414 = vadd.xlane.f32.xlu0 %v1413_v51 }
0x1053   :  { %1312 = vadd.xlane.f32.xlu0 %v1311_v53 }
0x10d8   :  { %v1415_v59 = vpop.xlane.xlu0 %1414 }
0x10d9   :  { %v1416_v61 = vmul.f32 0.015625, %v1415_v59 }
0x10db   :  { %v1417_v62 = vadd.f32 0.001, %v1416_v61 }
0x10dc   :  { %v1313_v63 = vpop.xlane.xlu0 %1312 }
0x10dd   :  { %7075 = vrsqrt.f32 %v1417_v62  ;;  %v1314_v3 = vmul.f32 0.015625, %v1313_v63 }
0x10df   :  { %v1315_v4 = vsub.f32 %v1310_v50, %v1314_v3  ;;  %v7930_v50 = vpack.c.bf16 %v7924_v49, %v7924_v49 }
0x10e1   :  { %v1316_v6 = vmul.f32 %v1315_v4, %v1315_v4 }
0x10e3   :  { %v1317_v8 = vsel %vm612_vm4, %v1316_v6, 0.0 }
0x10e4   :  { %1318 = vadd.xlane.f32.xlu0 %v1317_v8 }
0x10ea   :  { %v7076_v9 = vpop.eup %7075 }
0x10eb   :  { %v1419_v10 = vmul.f32 %v7076_v9, %v1407_v47  ;;  %v6925_v47 = vld [vmem:[#allocation7 + $0x8] sm:$0xff]  }
0x10ed   :  { %v1420_v13 = vmul.f32 %v1419_v10, %v7779_v55 }
0x10ef   :  { %v1421_v7 = vadd.f32 %v1420_v13, %v7781_v57 }
0x10f1   :  { %v1423_v5 = vmul.f32 1.442695, %v1421_v7  ;;  %vm1422_vm9 = vcmp.gt.f32.partialorder %v1421_v7, 0.0 }
0x10f3   :  { %7077 = vpow2.f32 %v1423_v5 }
0x10fa   :  { %1608 = vrot.lane.b32.xlu0 %v7830_v56, %s7512_s28 }
0x1100   :  { %v7078_v58 = vpop.eup %7077 }
0x1101   :  { %v5841_v16 = vadd.f32 -1.0, %v7078_v58 }
0x1103   :  { %v1426_v21 = vsel %vm1422_vm9, %v1421_v7, %v5841_v16 }
0x1104   :  { %v1503_v23 = vpack.c.bf16 %v1426_v21, %v1426_v21 }
0x1106   :  { %1513 = vrot.lane.b32.xlu1 %v1503_v23, %s7512_s28  ;;  %v6927_v23 = vld [vmem:[#allocation11 + $0x8] sm:$0xff]  }
0x116d   :  { %v1319_v56 = vpop.xlane.xlu0 %1318 }
0x116e   :  { %v1320_v28 = vmul.f32 0.015625, %v1319_v56 }
0x1170   :  { %v1321_v29 = vadd.f32 0.001, %v1320_v28 }
0x1171   :  { %v1609_v12 = vpop.permute.xlu0 %1608 }
0x1172   :  { %7079 = vrsqrt.f32 %v1321_v29 }
0x1178   :  { %v1514_v31 = vpop.permute.xlu1 %1513 }
0x1179   :  { %6430 = vmatmul.mubr.msk.bf16.vlgmr.msra.gmra.mxu1 %vm775_vm6, %v1514_v31 }
0x117a   :  { %6445 = vmatprep.mubr.msk.bf16.mxu1 %vm7524_vm0, %v7523_v0  ;;  %6442 = vmatpush3.bf16.msra.mxu1 %v6925_v47 }
0x117b   :  { %6443 = vmatprep.subr.bf16.mxu1 %v7523_v0 }
0x117f   :  { %v7080_v33 = vpop.eup %7079 }
0x1180   :  { %v1323_v35 = vmul.f32 %v7080_v33, %v1315_v4  ;;  %v6926_v4 = vld [vmem:[#allocation7] sm:$0xff]  }
0x1181   :  { %6444 = vmatpush3.bf16.msra.mxu1 %v6926_v4 }
0x1182   :  { %v1324_v37 = vmul.f32 %v7816_v34, %v1323_v35  ;;  %6457 = vmatprep.subr.bf16.mxu1 %v7523_v0 }
0x1184   :  { %v1325_v38 = vadd.f32 %v7821_v36, %v1324_v37 }
0x1186   :  { %v1327_v39 = vmul.f32 1.442695, %v1325_v38  ;;  %vm1326_vm10 = vcmp.gt.f32.partialorder %v1325_v38, 0.0 }
0x1188   :  { %7081 = vpow2.f32 %v1327_v39 }
0x1195   :  { %v7082_v40 = vpop.eup %7081 }
0x1196   :  { %v5837_v41 = vadd.f32 -1.0, %v7082_v40 }
0x1198   :  { %v1330_v43 = vsel %vm1326_vm10, %v1325_v38, %v5837_v41 }
0x1199   :  { %v1427_v45 = vpack.c.bf16 %v1330_v43, %v1330_v43 }
0x119b   :  { %6418 = vmatmul.mubr.msk.bf16.vlgmr.msra.gmra.mxu0 %vm775_vm6, %v1427_v45 }
0x119c   :  { %6437 = vmatprep.mubr.msk.bf16.mxu0 %vm7524_vm0, %v7523_v0  ;;  %6434 = vmatpush3.bf16.msra.mxu0 %v6923_v46 }
0x119d   :  { %6435 = vmatprep.subr.bf16.mxu0 %v7523_v0 }
0x11a0   :  { %6436 = vmatpush3.bf16.msra.mxu0 %v6924_v48 }
0x11a1   :  { %6449 = vmatprep.subr.bf16.mxu0 %v7523_v0 }
0x11a3   :  { %6438 = vmatmul.mubr.msk.bf16.vlgmr.msra.gmra.mxu0 %vm276_vm1, %v7930_v50 }
0x11a4   :  { %6453 = vmatprep.mubr.msk.bf16.mxu0 %vm7524_vm0, %v7523_v0 }
0x1239   :  { %v1576_v51 = vpop.f32.mrf.mxu1 }
0x123a   :  { %v7938_v53 = vadd.f32 %v7807_v18, %v1576_v51  ;;  %v6930_v51 = vld [vmem:[#allocation10] sm:$0xff]  }
0x123b   :  { %v6431_v54 = vpop.f32.mrf.mxu1 }
0x123c   :  { %v5853_v59 = vmul.f32 -1.442695, %v7938_v53 }
0x123d   :  { %v1579_v61 = vpop.f32.mrf.mxu1 }
0x123e   :  { %7083 = vpow2.f32 %v5853_v59 }
0x123f   :  { %v6432_v62 = vpop.f32.mrf.mxu1 }
0x124b   :  { %v7084_v63 = vpop.eup %7083 }
0x124c   :  { %v1603_v3 = vadd.f32 1.0, %v7084_v63 }
0x124e   :  { %7085 = vrcp.f32 %v1603_v3 }
0x125b   :  { %v7086_v6 = vpop.eup %7085  ;;  %v7942_v8 = vpop.f32.mrf.mxu0 }
0x125c   :  { %v1606_v9 = vmul.f32 2.0, %v7086_v6 }
0x125d   :  { %v6419_v10 = vpop.f32.mrf.mxu0 }
0x125e   :  { %v1607_v13 = vadd.f32 0.1, %v1606_v9 }
0x125f   :  { %v1500_v7 = vpop.f32.mrf.mxu0 }
0x1260   :  { %v1611_v14 = vmul.f32 %v1609_v12, %v1607_v13 }
0x1261   :  { %v6420_v5 = vpop.f32.mrf.mxu0 }
0x1262   :  { %1613 = vrot.lane.b32.xlu1 %v1611_v14, %s7525_s6 }
0x1263   :  { %v1707_v15 = vpop.f32.mrf.mxu0 }
0x1265   :  { %v6439_v58 = vpop.f32.mrf.mxu0 }
0x1267   :  { %v1710_v24 = vpop.f32.mrf.mxu0 }
0x1269   :  { %v6440_v16 = vpop.f32.mrf.mxu0 }
0x12d4   :  { %v1614_v19 = vpop.permute.xlu1 %1613 }
0x12d5   :  { %v7946_v21 = vadd.f32 %v1614_v19, %v7938_v53 }
0x12d7   :  { %v1648_v25 = vpack.c.bf16 %v7946_v21, %v7946_v21 }
0x12d9   :  { %6446 = vmatmul.mubr.msk.bf16.vlgmr.msra.gmra.mxu1 %vm276_vm1, %v1648_v25  ;;  %v6931_v25 = vld [vmem:[#allocation14 + $0x8] sm:$0xff]  }
0x12da   :  { %6458 = vmatpush3.bf16.msra.mxu1 %v6927_v23  ;;  %6461 = vmatprep.mubr.msk.bf16.mxu1 %vm7524_vm0, %v7523_v0 }
0x12db   :  { %6459 = vmatprep.subr.bf16.mxu1 %v7523_v0 }
0x12de   :  { %6460 = vmatpush3.bf16.msra.mxu1 %v6928_v26 }
0x12df   :  { %6473 = vmatprep.subr.bf16.mxu1 %v7523_v0 }
0x12e1   :  { %6462 = vmatmul.mubr.msk.bf16.vlgmr.msra.gmra.mxu1 %vm276_vm1, %v7889_v30 }
0x12e2   :  { %6477 = vmatprep.mubr.msk.bf16.mxu1 %vm7524_vm0, %v7523_v0  ;;  %6474 = vmatpush3.bf16.msra.mxu1 %v6931_v25 }
0x12e3   :  { %6475 = vmatprep.subr.bf16.mxu1 %v7523_v0 }
0x1399   :  { %v1762_v56 = vpop.f32.mrf.mxu1 }
0x139a   :  { %v1763_v28 = vadd.f32 %v1762_v56, %v1707_v15  ;;  %v6932_v56 = vld [vmem:[#allocation14] sm:$0xff]  }
0x139b   :  { %v6447_v29 = vpop.f32.mrf.mxu1  ;;  %6476 = vmatpush3.bf16.msra.mxu1 %v6932_v56 }
0x139c   :  { %v1768_v31 = vadd.f32 %v7692_v11, %v1763_v28  ;;  %v6929_v11 = vld [vmem:[#allocation10 + $0x8] sm:$0xff]   ;;  %6493 = vmatprep.subr.bf16.mxu1 %v7523_v0  ;;  %v6934_v29 = vld [vmem:[#allocation13] sm:$0xff]  }
0x139d   :  { %v1765_v33 = vpop.f32.mrf.mxu1  ;;  %6450 = vmatpush3.bf16.msra.mxu0 %v6929_v11  ;;  %v6933_v28 = vld [vmem:[#allocation13 + $0x8] sm:$0xff]  }
0x139e   :  { %v1769_v35 = vsel %vm376_vm2, %v1768_v31, 0.0  ;;  %6451 = vmatprep.subr.bf16.mxu0 %v7523_v0 }
0x139f   :  { %v6448_v37 = vpop.f32.mrf.mxu1  ;;  %1770 = vadd.xlane.f32.xlu1 %v1769_v35 }
0x13a1   :  { %v1899_v38 = vpop.f32.mrf.mxu1  ;;  %6452 = vmatpush3.bf16.msra.mxu0 %v6930_v51 }
0x13a2   :  { %v1900_v43 = vadd.f32 %v7707_v32, %v1899_v38  ;;  %6465 = vmatprep.subr.bf16.mxu0 %v7523_v0 }
0x13a3   :  { %v6463_v39 = vpop.f32.mrf.mxu1 }
0x13a5   :  { %v1902_v40 = vpop.f32.mrf.mxu1 }
0x13a7   :  { %v6464_v41 = vpop.f32.mrf.mxu1 }
0x13b0   :  { %1913 = vrot.lane.b32.xlu1 %v1900_v43, %s7512_s28 }
0x1428   :  { %v1771_v30 = vpop.xlane.xlu1 %1770 }
0x1429   :  { %v1772_v45 = vmul.f32 0.03125, %v1771_v30 }
0x142b   :  { %v1773_v46 = vsub.f32 %v1768_v31, %v1772_v45 }
0x142c   :  { %v1914_v19 = vpop.permute.xlu1 %1913 }
0x142d   :  { %v1774_v47 = vmul.f32 %v1773_v46, %v1773_v46 }
0x142f   :  { %v1775_v48 = vsel %vm376_vm2, %v1774_v47, 0.0 }
0x1430   :  { %1776 = vadd.xlane.f32.xlu0 %v1775_v48 }
0x14b9   :  { %v1777_v54 = vpop.xlane.xlu0 %1776 }
0x14ba   :  { %v1778_v59 = vmul.f32 0.03125, %v1777_v54 }
0x14bc   :  { %v1779_v32 = vadd.f32 0.001, %v1778_v59 }
0x14be   :  { %7087 = vrsqrt.f32 %v1779_v32 }
0x14cb   :  { %v7088_v61 = vpop.eup %7087 }
0x14cc   :  { %v1781_v62 = vmul.f32 %v7088_v61, %v1773_v46 }
0x14ce   :  { %v1782_v63 = vmul.f32 %v7714_v42, %v1781_v62 }
0x14d0   :  { %v1783_v3 = vadd.f32 %v7719_v44, %v1782_v63 }
0x14d2   :  { %v1785_v4 = vmul.f32 1.442695, %v1783_v3  ;;  %vm1784_vm11 = vcmp.gt.f32.partialorder %v1783_v3, 0.0 }
0x14d4   :  { %7089 = vpow2.f32 %v1785_v4 }
0x14e1   :  { %v7090_v6 = vpop.eup %7089 }
0x14e2   :  { %v5861_v9 = vadd.f32 -1.0, %v7090_v6 }
0x14e4   :  { %v1788_v10 = vsel %vm1784_vm11, %v1783_v3, %v5861_v9 }
0x14e5   :  { %v1789_v12 = vpack.c.bf16 %v1788_v10, %v1788_v10 }
0x14e7   :  { %6454 = vmatmul.mubr.msk.bf16.vlgmr.msra.gmra.mxu0 %vm276_vm1, %v1789_v12 }
0x14e8   :  { %6469 = vmatprep.mubr.msk.bf16.mxu0 %vm7524_vm0, %v7523_v0  ;;  %6466 = vmatpush3.bf16.msra.mxu0 %v6933_v28  ;;  %v6938_v28 = vld [vmem:[#allocation17] sm:$0xff]  }
0x14e9   :  { %6467 = vmatprep.subr.bf16.mxu0 %v7523_v0 }
0x14ec   :  { %6468 = vmatpush3.bf16.msra.mxu0 %v6934_v29 }
0x14ed   :  { %6481 = vmatprep.subr.bf16.mxu0 %v7523_v0 }
0x15a7   :  { %v1843_v13 = vpop.f32.mrf.mxu0 }
0x15a8   :  { %v1844_v7 = vadd.f32 %v7729_v52, %v1843_v13 }
0x15a9   :  { %v6455_v14 = vpop.f32.mrf.mxu0 }
0x15aa   :  { %v1905_v5 = vadd.f32 %v1900_v43, %v1844_v7 }
0x15ab   :  { %v1846_v42 = vpop.f32.mrf.mxu0 }
0x15ac   :  { %v5868_v15 = vmul.f32 -1.442695, %v1905_v5 }
0x15ad   :  { %v6456_v44 = vpop.f32.mrf.mxu0 }
0x15ae   :  { %7091 = vpow2.f32 %v5868_v15 }
0x15bb   :  { %v7092_v58 = vpop.eup %7091 }
0x15bc   :  { %v1909_v24 = vadd.f32 1.0, %v7092_v58 }
0x15be   :  { %7093 = vrcp.f32 %v1909_v24 }
0x15cb   :  { %v7094_v16 = vpop.eup %7093 }
0x15cc   :  { %v1916_v23 = vmul.f32 %v7094_v16, %v1914_v19  ;;  %v1923_v33 = vsub.f32 1.0, %v7094_v16  ;;  %v1929_v37 = vmul.f32 %v7094_v16, %v7883_v22 }
0x15ce   :  { %1918 = vrot.lane.b32.xlu0 %v1916_v23, %s7512_s28  ;;  %v6936_v23 = vld [vmem:[#allocation17 + $0x10] sm:$0xff]  }
0x1640   :  { %v1919_v26 = vpop.permute.xlu0 %1918 }
0x1641   :  { %v1921_v52 = vadd.f32 %v1919_v26, %v1844_v7  ;;  %v6935_v7 = vld [vmem:[#allocation17 + $0x18] sm:$0xff]  }
0x1643   :  { %7095 = vtanh.f32 %v1921_v52  ;;  %v6937_v52 = vld [vmem:[#allocation17 + $0x8] sm:$0xff]  }
0x1650   :  { %v7096_v31 = vpop.eup %7095 }
0x1651   :  { %1925 = vrot.lane.b32.xlu1 %v7096_v31, %s7525_s6  ;;  %v6939_v31 = vld [vmem:[#allocation16 + $0x18] sm:$0xff]  }
0x1655   :  { %2020 = vrot.lane.b32.xlu1 %v7930_v50, %s7525_s6 }
0x16c3   :  { %v1926_v35 = vpop.permute.xlu1 %1925 }
0x16c4   :  { %v1928_v38 = vmul.f32 %v1926_v35, %v1923_v33  ;;  %v6940_v35 = vld [vmem:[#allocation16 + $0x10] sm:$0xff]  }
0x16c6   :  { %v7981_v39 = vadd.f32 %v1929_v37, %v1928_v38 }
0x16c7   :  { %v2021_v40 = vpop.permute.xlu1 %2020 }
0x16c8   :  { %6478 = vmatmul.mubr.msk.bf16.vlgmr.msra.gmra.mxu1 %vm276_vm1, %v2021_v40  ;;  %v1931_v41 = vpack.c.bf16 %v7981_v39, %v7981_v39  ;;  %v6941_v40 = vld [vmem:[#allocation16 + $0x8] sm:$0xff]  }
0x16c9   :  { %6501 = vmatprep.mubr.msk.bf16.mxu1 %vm7524_vm0, %v7523_v0  ;;  %6494 = vmatpush3.bf16.msra.mxu1 %v6935_v7 }
0x16ca   :  { %1937 = vrot.lane.b32.xlu1 %v1931_v41, %s7525_s6  ;;  %6495 = vmatprep.subr.bf16.mxu1 %v7523_v0 }
0x16cd   :  { %6496 = vmatpush3.bf16.msra.mxu1 %v6936_v23 }
0x16ce   :  { %6497 = vmatprep.subr.bf16.mxu1 %v7523_v0 }
0x16d1   :  { %6498 = vmatpush3.bf16.msra.mxu1 %v6937_v52 }
0x16d2   :  { %6499 = vmatprep.subr.bf16.mxu1 %v7523_v0 }
0x16d5   :  { %6500 = vmatpush3.bf16.msra.mxu1 %v6938_v28 }
0x16d6   :  { %6513 = vmatprep.subr.bf16.mxu1 %v7523_v0 }
0x173c   :  { %v7989_v43 = vpop.permute.xlu1 %1937 }
0x173d   :  { %6470 = vmatmul.mubr.msk.bf16.vlgmr.msra.gmra.mxu0 %vm276_vm1, %v7989_v43 }
0x173e   :  { %6489 = vmatprep.mubr.msk.bf16.mxu0 %vm7524_vm0, %v7523_v0  ;;  %6482 = vmatpush3.bf16.msra.mxu0 %v6939_v31 }
0x173f   :  { %6483 = vmatprep.subr.bf16.mxu0 %v7523_v0 }
0x1742   :  { %6484 = vmatpush3.bf16.msra.mxu0 %v6940_v35 }
0x1743   :  { %6485 = vmatprep.subr.bf16.mxu0 %v7523_v0 }
0x1746   :  { %6486 = vmatpush3.bf16.msra.mxu0 %v6941_v40  ;;  %v8063_v40 = vld [vmem:[%s8796_s11] ss:$0 sm:$0xff] }
0x1747   :  { %6487 = vmatprep.subr.bf16.mxu0 %v7523_v0 }
0x1788   :  { %v2071_v50 = vpop.f32.mrf.mxu1 }
0x1789   :  { %2078 = vrot.lane.b32.xlu0 %v2071_v50, %s7512_s28 }
0x178a   :  { %v6479_v30 = vpop.f32.mrf.mxu1 }
0x178c   :  { %v2074_v45 = vpop.f32.mrf.mxu1 }
0x178e   :  { %v6480_v46 = vpop.f32.mrf.mxu1 }
0x17fb   :  { %v2079_v47 = vpop.permute.xlu0 %2078 }
0x17fd   :  { %v1988_v48 = vpop.f32.mrf.mxu0 }
0x17fe   :  { %v2081_v11 = vadd.f32 %v2079_v47, %v1988_v48  ;;  %v1994_v10 = vadd.f32 %v7789_v2, %v1988_v48 }
0x17ff   :  { %v6471_v51 = vpop.f32.mrf.mxu0 }
0x1800   :  { %v2082_v54 = vadd.f32 %v2081_v11, %v7760_v27  ;;  %v1995_v13 = vsel %vm612_vm4, %v1994_v10, 0.0 }
0x1801   :  { %v1991_v59 = vpop.f32.mrf.mxu0 }
0x1802   :  { %2084 = vrot.lane.b32.xlu1 %v2082_v54, %s7512_s28 }
0x1803   :  { %v6472_v32 = vpop.f32.mrf.mxu0 }
0x1874   :  { %v2085_v61 = vpop.permute.xlu1 %2084 }
0x1875   :  { %v2087_v62 = vsel %vm612_vm4, %v2085_v61, 0.0 }
0x1876   :  { %2088 = vadd.xlane.f32.xlu0 %v2087_v62  ;;  %v6943_v62 = vld [vmem:[#allocation8 + $0x8] sm:$0xff]  }
0x18ff   :  { %v2089_v63 = vpop.xlane.xlu0 %2088 }
0x1900   :  { %v2090_v3 = vmul.f32 0.015625, %v2089_v63  ;;  %v6945_v63 = vld [vmem:[#allocation7 + $0x8] sm:$0xff]  }
0x1902   :  { %v2091_v4 = vsub.f32 %v2082_v54, %v2090_v3  ;;  %v6944_v3 = vld [vmem:[#allocation8] sm:$0xff]  }
0x1904   :  { %v2092_v6 = vmul.f32 %v2091_v4, %v2091_v4 }
0x1906   :  { %2094 = vrot.lane.b32.xlu1 %v2092_v6, %s7512_s28 }
0x1978   :  { %v2095_v9 = vpop.permute.xlu1 %2094 }
0x1979   :  { %v2097_v12 = vsel %vm612_vm4, %v2095_v9, 0.0 }
0x197a   :  { %2098 = vadd.xlane.f32.xlu1 %v2097_v12 }
0x197e   :  { %1996 = vadd.xlane.f32.xlu1 %v1995_v13 }
0x1a03   :  { %v2099_v14 = vpop.xlane.xlu1 %2098 }
0x1a04   :  { %v2100_v5 = vmul.f32 0.015625, %v2099_v14 }
0x1a06   :  { %v2101_v42 = vadd.f32 0.001, %v2100_v5  ;;  %v6946_v5 = vld [vmem:[#allocation7] sm:$0xff]  }
0x1a07   :  { %v1997_v15 = vpop.xlane.xlu1 %1996 }
0x1a08   :  { %7097 = vrsqrt.f32 %v2101_v42  ;;  %v1998_v44 = vmul.f32 0.015625, %v1997_v15 }
0x1a0a   :  { %v1999_v58 = vsub.f32 %v1994_v10, %v1998_v44 }
0x1a0c   :  { %v2000_v24 = vmul.f32 %v1999_v58, %v1999_v58 }
0x1a0e   :  { %v2001_v2 = vsel %vm612_vm4, %v2000_v24, 0.0 }
0x1a0f   :  { %2002 = vadd.xlane.f32.xlu1 %v2001_v2 }
0x1a15   :  { %v7098_v16 = vpop.eup %7097 }
0x1a16   :  { %v2103_v19 = vmul.f32 %v7098_v16, %v2091_v4 }
0x1a18   :  { %v2104_v25 = vmul.f32 %v2103_v19, %v7779_v55 }
0x1a1a   :  { %v2105_v26 = vadd.f32 %v2104_v25, %v7781_v57 }
0x1a1c   :  { %v2107_v56 = vmul.f32 1.442695, %v2105_v26  ;;  %vm2106_vm12 = vcmp.gt.f32.partialorder %v2105_v26, 0.0 }
0x1a1e   :  { %7099 = vpow2.f32 %v2107_v56 }
0x1a20   :  { %2292 = vrot.lane.b32.xlu1 %v7924_v49, %s7512_s28  ;;  %v6942_v49 = vld [vmem:[#allocation16] sm:$0xff]  }
0x1a21   :  { %6488 = vmatpush3.bf16.msra.mxu0 %v6942_v49 }
0x1a22   :  { %6505 = vmatprep.subr.bf16.mxu0 %v7523_v0 }
0x1a2b   :  { %v7100_v29 = vpop.eup %7099 }
0x1a2c   :  { %v5876_v33 = vadd.f32 -1.0, %v7100_v29  ;;  %v6947_v29 = vld [vmem:[#allocation11 + $0x8] sm:$0xff]  }
0x1a2e   :  { %v2110_v37 = vsel %vm2106_vm12, %v2105_v26, %v5876_v33  ;;  %v6948_v33 = vld [vmem:[#allocation11] sm:$0xff]  }
0x1a2f   :  { %v2187_v38 = vpack.c.bf16 %v2110_v37, %v2110_v37 }
0x1a31   :  { %2197 = vrot.lane.b32.xlu0 %v2187_v38, %s7512_s28 }
0x1a98   :  { %v2003_v41 = vpop.xlane.xlu1 %2002 }
0x1a99   :  { %v2004_v50 = vmul.f32 0.015625, %v2003_v41 }
0x1a9b   :  { %v2005_v30 = vadd.f32 0.001, %v2004_v50 }
0x1a9d   :  { %7101 = vrsqrt.f32 %v2005_v30 }
0x1aa3   :  { %v2198_v45 = vpop.permute.xlu0 %2197 }
0x1aa4   :  { %6502 = vmatmul.mubr.msk.bf16.vlgmr.msra.gmra.mxu1 %vm775_vm6, %v2198_v45 }
0x1aa5   :  { %6517 = vmatprep.mubr.msk.bf16.mxu1 %vm7524_vm0, %v7523_v0  ;;  %6514 = vmatpush3.bf16.msra.mxu1 %v6945_v63  ;;  %v6950_v63 = vld [vmem:[#allocation10] sm:$0xff]  }
0x1aa6   :  { %6515 = vmatprep.subr.bf16.mxu1 %v7523_v0 }
0x1aa9   :  { %6516 = vmatpush3.bf16.msra.mxu1 %v6946_v5 }
0x1aaa   :  { %v7102_v46 = vpop.eup %7101  ;;  %6529 = vmatprep.subr.bf16.mxu1 %v7523_v0 }
0x1aab   :  { %v2007_v47 = vmul.f32 %v7102_v46, %v1999_v58 }
0x1aad   :  { %v2008_v48 = vmul.f32 %v7816_v34, %v2007_v47  ;;  %v8025_v34 = vld [vmem:[#allocation2 + $0x6] sm:$0x3] }
0x1aaf   :  { %v2009_v11 = vadd.f32 %v7821_v36, %v2008_v48  ;;  %v8031_v36 = vpack.c.bf16 %v8025_v34, %v8025_v34  ;;  %v8070_v48 = vld [vmem:[%s8797_s12 + $0x1] ss:$0 sm:$0xff] }
0x1ab1   :  { %v2011_v51 = vmul.f32 1.442695, %v2009_v11  ;;  %vm2010_vm13 = vcmp.gt.f32.partialorder %v2009_v11, 0.0 }
0x1ab3   :  { %7103 = vpow2.f32 %v2011_v51 }
0x1ac0   :  { %v7104_v54 = vpop.eup %7103 }
0x1ac1   :  { %v5872_v59 = vadd.f32 -1.0, %v7104_v54 }
0x1ac3   :  { %v2014_v32 = vsel %vm2010_vm13, %v2009_v11, %v5872_v59 }
0x1ac4   :  { %v2111_v61 = vpack.c.bf16 %v2014_v32, %v2014_v32 }
0x1ac6   :  { %6490 = vmatmul.mubr.msk.bf16.vlgmr.msra.gmra.mxu0 %vm775_vm6, %v2111_v61 }
0x1ac7   :  { %6509 = vmatprep.mubr.msk.bf16.mxu0 %vm7524_vm0, %v7523_v0  ;;  %6506 = vmatpush3.bf16.msra.mxu0 %v6943_v62  ;;  %v6949_v62 = vld [vmem:[#allocation10 + $0x8] sm:$0xff]  }
0x1ac8   :  { %6507 = vmatprep.subr.bf16.mxu0 %v7523_v0 }
0x1acb   :  { %6508 = vmatpush3.bf16.msra.mxu0 %v6944_v3 }
0x1acc   :  { %6521 = vmatprep.subr.bf16.mxu0 %v7523_v0 }
0x1ace   :  { %6510 = vmatmul.mubr.msk.bf16.vlgmr.msra.gmra.mxu0 %vm276_vm1, %v8031_v36 }
0x1acf   :  { %6525 = vmatprep.mubr.msk.bf16.mxu0 %vm7524_vm0, %v7523_v0  ;;  %6522 = vmatpush3.bf16.msra.mxu0 %v6949_v62 }
0x1ad0   :  { %6523 = vmatprep.subr.bf16.mxu0 %v7523_v0 }
0x1ad3   :  { %6524 = vmatpush3.bf16.msra.mxu0 %v6950_v63 }
0x1ad4   :  { %6537 = vmatprep.subr.bf16.mxu0 %v7523_v0 }
0x1b64   :  { %v2260_v4 = vpop.f32.mrf.mxu1 }
0x1b65   :  { %v8039_v6 = vadd.f32 %v7807_v18, %v2260_v4  ;;  %v2293_v18 = vpop.permute.xlu1 %2292 }
0x1b66   :  { %v6503_v9 = vpop.f32.mrf.mxu1 }
0x1b67   :  { %v5888_v10 = vmul.f32 -1.442695, %v8039_v6 }
0x1b68   :  { %v2263_v12 = vpop.f32.mrf.mxu1 }
0x1b69   :  { %7105 = vpow2.f32 %v5888_v10 }
0x1b6a   :  { %v6504_v13 = vpop.f32.mrf.mxu1 }
0x1b6b   :  { %v8080_v13 = vld [vmem:[%s8796_s11 + $0x1] ss:$0 sm:$0xff] }
0x1b76   :  { %v7106_v7 = vpop.eup %7105 }
0x1b77   :  { %v2287_v14 = vadd.f32 1.0, %v7106_v7 }
0x1b79   :  { %7107 = vrcp.f32 %v2287_v14  ;;  %v8086_v14 = vld [vmem:[%s8796_s11 + $0x2] ss:$0 sm:$0xff] }
0x1b86   :  { %v7108_v42 = vpop.eup %7107  ;;  %v8043_v15 = vpop.f32.mrf.mxu0 }
0x1b87   :  { %v2290_v44 = vmul.f32 2.0, %v7108_v42 }
0x1b88   :  { %v6491_v58 = vpop.f32.mrf.mxu0 }
0x1b89   :  { %v2291_v24 = vadd.f32 0.1, %v2290_v44 }
0x1b8a   :  { %v2184_v2 = vpop.f32.mrf.mxu0 }
0x1b8b   :  { %v2295_v16 = vmul.f32 %v2293_v18, %v2291_v24 }
0x1b8c   :  { %v6492_v19 = vpop.f32.mrf.mxu0 }
0x1b8d   :  { %2297 = vrot.lane.b32.xlu0 %v2295_v16, %s7525_s6  ;;  %v8095_v16 = vld [vmem:[%s8797_s12] ss:$0 sm:$0xff] }
0x1b8e   :  { %v2391_v23 = vpop.f32.mrf.mxu0 }
0x1b90   :  { %v6511_v25 = vpop.f32.mrf.mxu0 }
0x1b92   :  { %v2394_v26 = vpop.f32.mrf.mxu0 }
0x1b94   :  { %v6512_v52 = vpop.f32.mrf.mxu0 }
0x1bff   :  { %v2298_v56 = vpop.permute.xlu0 %2297 }
0x1c00   :  { %v8047_v28 = vadd.f32 %v2298_v56, %v8039_v6 }
0x1c02   :  { %v2332_v31 = vpack.c.bf16 %v8047_v28, %v8047_v28 }
0x1c04   :  { %6518 = vmatmul.mubr.msk.bf16.vlgmr.msra.gmra.mxu1 %vm276_vm1, %v2332_v31 }
0x1c05   :  { %6530 = vmatpush3.bf16.msra.mxu1 %v6947_v29  ;;  %6533 = vmatprep.mubr.msk.bf16.mxu1 %vm7524_vm0, %v7523_v0 }
0x1c06   :  { %6531 = vmatprep.subr.bf16.mxu1 %v7523_v0 }
0x1c09   :  { %6532 = vmatpush3.bf16.msra.mxu1 %v6948_v33 }
0x1c0a   :  { %6545 = vmatprep.subr.bf16.mxu1 %v7523_v0 }
0x1c0c   :  { %6534 = vmatmul.mubr.msk.bf16.vlgmr.msra.gmra.mxu1 %vm276_vm1, %v7989_v43 }
0x1c0d   :  { %6549 = vmatprep.mubr.msk.bf16.mxu1 %vm7524_vm0, %v7523_v0 }
0x1cc4   :  { %v2446_v35 = vpop.f32.mrf.mxu1 }
0x1cc5   :  { %v2447_v37 = vadd.f32 %v2446_v35, %v2391_v23 }
0x1cc6   :  { %v6519_v38 = vpop.f32.mrf.mxu1 }
0x1cc7   :  { %v2452_v49 = vadd.f32 %v8063_v40, %v2447_v37  ;;  %v6951_v38 = vld [vmem:[#allocation14 + $0x8] sm:$0xff]  }
0x1cc8   :  { %v2449_v41 = vpop.f32.mrf.mxu1  ;;  %6546 = vmatpush3.bf16.msra.mxu1 %v6951_v38 }
0x1cc9   :  { %v2453_v50 = vsel %vm376_vm2, %v2452_v49, 0.0  ;;  %6547 = vmatprep.subr.bf16.mxu1 %v7523_v0 }
0x1cca   :  { %v6520_v30 = vpop.f32.mrf.mxu1  ;;  %2454 = vadd.xlane.f32.xlu0 %v2453_v50  ;;  %v6952_v50 = vld [vmem:[#allocation14] sm:$0xff]  }
0x1ccb   :  { %v6953_v30 = vld [vmem:[#allocation13 + $0x8] sm:$0xff]  }
0x1ccc   :  { %v2583_v45 = vpop.f32.mrf.mxu1  ;;  %6548 = vmatpush3.bf16.msra.mxu1 %v6952_v50 }
0x1ccd   :  { %v2584_v11 = vadd.f32 %v8070_v48, %v2583_v45  ;;  %6565 = vmatprep.subr.bf16.mxu1 %v7523_v0  ;;  %v6954_v45 = vld [vmem:[#allocation13] sm:$0xff]  }
0x1cce   :  { %v6535_v43 = vpop.f32.mrf.mxu1 }
0x1cd0   :  { %v2586_v46 = vpop.f32.mrf.mxu1 }
0x1cd2   :  { %v6536_v47 = vpop.f32.mrf.mxu1 }
0x1ce0   :  { %2597 = vrot.lane.b32.xlu0 %v2584_v11, %s7512_s28 }
0x1d53   :  { %v2455_v51 = vpop.xlane.xlu0 %2454 }
0x1d54   :  { %v2456_v54 = vmul.f32 0.03125, %v2455_v51 }
0x1d56   :  { %v2457_v59 = vsub.f32 %v2452_v49, %v2456_v54 }
0x1d57   :  { %v2598_v35 = vpop.permute.xlu0 %2597 }
0x1d58   :  { %v2458_v32 = vmul.f32 %v2457_v59, %v2457_v59 }
0x1d5a   :  { %v2459_v61 = vsel %vm376_vm2, %v2458_v32, 0.0 }
0x1d5b   :  { %2460 = vadd.xlane.f32.xlu1 %v2459_v61 }
0x1de4   :  { %v2461_v3 = vpop.xlane.xlu1 %2460 }
0x1de5   :  { %v2462_v4 = vmul.f32 0.03125, %v2461_v3 }
0x1de7   :  { %v2463_v9 = vadd.f32 0.001, %v2462_v4 }
0x1de9   :  { %7109 = vrsqrt.f32 %v2463_v9 }
0x1df6   :  { %v7110_v10 = vpop.eup %7109 }
0x1df7   :  { %v2465_v12 = vmul.f32 %v7110_v10, %v2457_v59 }
0x1df9   :  { %v2466_v7 = vmul.f32 %v8080_v13, %v2465_v12 }
0x1dfb   :  { %v2467_v5 = vadd.f32 %v8086_v14, %v2466_v7 }
0x1dfd   :  { %v2469_v42 = vmul.f32 1.442695, %v2467_v5  ;;  %vm2468_vm14 = vcmp.gt.f32.partialorder %v2467_v5, 0.0 }
0x1dff   :  { %7111 = vpow2.f32 %v2469_v42 }
0x1e0c   :  { %v7112_v44 = vpop.eup %7111 }
0x1e0d   :  { %v5896_v58 = vadd.f32 -1.0, %v7112_v44 }
0x1e0f   :  { %v2472_v18 = vsel %vm2468_vm14, %v2467_v5, %v5896_v58 }
0x1e10   :  { %v2473_v24 = vpack.c.bf16 %v2472_v18, %v2472_v18 }
0x1e12   :  { %6526 = vmatmul.mubr.msk.bf16.vlgmr.msra.gmra.mxu0 %vm276_vm1, %v2473_v24 }
0x1e13   :  { %6541 = vmatprep.mubr.msk.bf16.mxu0 %vm7524_vm0, %v7523_v0  ;;  %6538 = vmatpush3.bf16.msra.mxu0 %v6953_v30 }
0x1e14   :  { %6539 = vmatprep.subr.bf16.mxu0 %v7523_v0 }
0x1e17   :  { %6540 = vmatpush3.bf16.msra.mxu0 %v6954_v45 }
0x1e18   :  { %6553 = vmatprep.subr.bf16.mxu0 %v7523_v0 }
0x1ed2   :  { %v2527_v2 = vpop.f32.mrf.mxu0 }
0x1ed3   :  { %v2528_v19 = vadd.f32 %v8095_v16, %v2527_v2 }
0x1ed4   :  { %v6527_v23 = vpop.f32.mrf.mxu0 }
0x1ed5   :  { %v2589_v25 = vadd.f32 %v2584_v11, %v2528_v19 }
0x1ed6   :  { %v2530_v26 = vpop.f32.mrf.mxu0 }
0x1ed7   :  { %v5903_v52 = vmul.f32 -1.442695, %v2589_v25  ;;  %v8129_v25 = vld [vmem:[%s8798_s13] ss:$0 sm:$0xff] }
0x1ed8   :  { %v6528_v56 = vpop.f32.mrf.mxu0 }
0x1ed9   :  { %7113 = vpow2.f32 %v5903_v52 }
0x1ee6   :  { %v7114_v29 = vpop.eup %7113 }
0x1ee7   :  { %v2593_v31 = vadd.f32 1.0, %v7114_v29  ;;  %v6955_v29 = vld [vmem:[#allocation17 + $0x18] sm:$0xff]  }
0x1ee9   :  { %7115 = vrcp.f32 %v2593_v31 }
0x1ef6   :  { %v7116_v33 = vpop.eup %7115 }
0x1ef7   :  { %v2600_v37 = vmul.f32 %v7116_v33, %v2598_v35  ;;  %v2607_v46 = vsub.f32 1.0, %v7116_v33  ;;  %v2613_v11 = vmul.f32 %v7116_v33, %v7981_v39 }
0x1ef9   :  { %2602 = vrot.lane.b32.xlu1 %v2600_v37, %s7512_s28 }
0x1f6b   :  { %v2603_v49 = vpop.permute.xlu1 %2602 }
0x1f6c   :  { %v2605_v41 = vadd.f32 %v2603_v49, %v2528_v19 }
0x1f6e   :  { %7117 = vtanh.f32 %v2605_v41 }
0x1f7b   :  { %v7118_v43 = vpop.eup %7117 }
0x1f7c   :  { %2609 = vrot.lane.b32.xlu0 %v7118_v43, %s7525_s6  ;;  %v6956_v43 = vld [vmem:[#allocation17 + $0x10] sm:$0xff]  }
0x1f80   :  { %2704 = vrot.lane.b32.xlu0 %v8031_v36, %s7525_s6 }
0x1fee   :  { %v2610_v47 = vpop.permute.xlu0 %2609 }
0x1fef   :  { %v2612_v51 = vmul.f32 %v2610_v47, %v2607_v46 }
0x1ff1   :  { %v8107_v54 = vadd.f32 %v2613_v11, %v2612_v51  ;;  %v6957_v11 = vld [vmem:[#allocation17 + $0x8] sm:$0xff]  }
0x1ff2   :  { %v2705_v59 = vpop.permute.xlu0 %2704 }
0x1ff3   :  { %6550 = vmatmul.mubr.msk.bf16.vlgmr.msra.gmra.mxu1 %vm276_vm1, %v2705_v59  ;;  %v2615_v32 = vpack.c.bf16 %v8107_v54, %v8107_v54  ;;  %v6958_v59 = vld [vmem:[#allocation17] sm:$0xff]  }
0x1ff4   :  { %6573 = vmatprep.mubr.msk.bf16.mxu1 %vm7524_vm0, %v7523_v0  ;;  %6566 = vmatpush3.bf16.msra.mxu1 %v6955_v29  ;;  %v6963_v29 = vld [vmem:[#allocation8 + $0x8] sm:$0xff]  }
0x1ff5   :  { %2621 = vrot.lane.b32.xlu0 %v2615_v32, %s7525_s6  ;;  %6567 = vmatprep.subr.bf16.mxu1 %v7523_v0 }
0x1ff8   :  { %6568 = vmatpush3.bf16.msra.mxu1 %v6956_v43 }
0x1ff9   :  { %6569 = vmatprep.subr.bf16.mxu1 %v7523_v0 }
0x1ffc   :  { %6570 = vmatpush3.bf16.msra.mxu1 %v6957_v11  ;;  %v6966_v11 = vld [vmem:[#allocation7] sm:$0xff]  }
0x1ffd   :  { %6571 = vmatprep.subr.bf16.mxu1 %v7523_v0 }
0x2000   :  { %6572 = vmatpush3.bf16.msra.mxu1 %v6958_v59 }
0x2001   :  { %6585 = vmatprep.subr.bf16.mxu1 %v7523_v0 }
0x2067   :  { %v8115_v61 = vpop.permute.xlu0 %2621 }
0x2068   :  { %6542 = vmatmul.mubr.msk.bf16.vlgmr.msra.gmra.mxu0 %vm276_vm1, %v8115_v61 }
0x2069   :  { %6561 = vmatprep.mubr.msk.bf16.mxu0 %vm7524_vm0, %v7523_v0 }
0x20b3   :  { %v2755_v36 = vpop.f32.mrf.mxu1 }
0x20b4   :  { %2762 = vrot.lane.b32.xlu1 %v2755_v36, %s7512_s28  ;;  %v6959_v36 = vld [vmem:[#allocation16 + $0x18] sm:$0xff]  }
0x20b5   :  { %v6551_v62 = vpop.f32.mrf.mxu1  ;;  %6554 = vmatpush3.bf16.msra.mxu0 %v6959_v36 }
0x20b6   :  { %6555 = vmatprep.subr.bf16.mxu0 %v7523_v0 }
0x20b7   :  { %v2758_v63 = vpop.f32.mrf.mxu1 }
0x20b8   :  { %v6960_v63 = vld [vmem:[#allocation16 + $0x10] sm:$0xff]  }
0x20b9   :  { %v6552_v3 = vpop.f32.mrf.mxu1  ;;  %6556 = vmatpush3.bf16.msra.mxu0 %v6960_v63 }
0x20ba   :  { %6557 = vmatprep.subr.bf16.mxu0 %v7523_v0 }
0x2126   :  { %v2763_v4 = vpop.permute.xlu1 %2762 }
0x2128   :  { %v2672_v9 = vpop.f32.mrf.mxu0 }
0x2129   :  { %v2765_v10 = vadd.f32 %v2763_v4, %v2672_v9  ;;  %v2678_v26 = vadd.f32 %v8129_v25, %v2672_v9  ;;  %v6961_v9 = vld [vmem:[#allocation16 + $0x8] sm:$0xff]  }
0x212a   :  { %v6543_v12 = vpop.f32.mrf.mxu0  ;;  %6558 = vmatpush3.bf16.msra.mxu0 %v6961_v9 }
0x212b   :  { %v2766_v7 = vadd.f32 %v2765_v10, %v7760_v27  ;;  %v2679_v56 = vsel %vm612_vm4, %v2678_v26, 0.0  ;;  %v6962_v10 = vld [vmem:[#allocation16] sm:$0xff]   ;;  %6559 = vmatprep.subr.bf16.mxu0 %v7523_v0 }
0x212c   :  { %v2675_v5 = vpop.f32.mrf.mxu0 }
0x212d   :  { %2768 = vrot.lane.b32.xlu0 %v2766_v7, %s7512_s28 }
0x212e   :  { %v6544_v42 = vpop.f32.mrf.mxu0  ;;  %6560 = vmatpush3.bf16.msra.mxu0 %v6962_v10 }
0x212f   :  { %6577 = vmatprep.subr.bf16.mxu0 %v7523_v0 }
0x219f   :  { %v2769_v44 = vpop.permute.xlu0 %2768 }
0x21a0   :  { %v2771_v58 = vsel %vm612_vm4, %v2769_v44, 0.0 }
0x21a1   :  { %2772 = vadd.xlane.f32.xlu1 %v2771_v58  ;;  %v8154_v58 = vld [vmem:[%s8798_s13 + $0x1] ss:$0 sm:$0xff] }
0x222a   :  { %v2773_v18 = vpop.xlane.xlu1 %2772 }
0x222b   :  { %v2774_v24 = vmul.f32 0.015625, %v2773_v18 }
0x222d   :  { %v2775_v2 = vsub.f32 %v2766_v7, %v2774_v24  ;;  %v8160_v24 = vld [vmem:[%s8798_s13 + $0x2] ss:$0 sm:$0xff] }
0x222f   :  { %v2776_v19 = vmul.f32 %v2775_v2, %v2775_v2 }
0x2231   :  { %2778 = vrot.lane.b32.xlu0 %v2776_v19, %s7512_s28 }
0x22a3   :  { %v2779_v23 = vpop.permute.xlu0 %2778 }
0x22a4   :  { %v2781_v52 = vsel %vm612_vm4, %v2779_v23, 0.0 }
0x22a5   :  { %2782 = vadd.xlane.f32.xlu0 %v2781_v52 }
0x22a9   :  { %2680 = vadd.xlane.f32.xlu0 %v2679_v56 }
0x232e   :  { %v2783_v31 = vpop.xlane.xlu0 %2782 }
0x232f   :  { %v2784_v33 = vmul.f32 0.015625, %v2783_v31  ;;  %v6965_v31 = vld [vmem:[#allocation7 + $0x8] sm:$0xff]  }
0x2331   :  { %v2785_v35 = vadd.f32 0.001, %v2784_v33  ;;  %v6964_v33 = vld [vmem:[#allocation8] sm:$0xff]  }
0x2332   :  { %v2681_v37 = vpop.xlane.xlu0 %2680 }
0x2333   :  { %7119 = vrsqrt.f32 %v2785_v35  ;;  %v2682_v38 = vmul.f32 0.015625, %v2681_v37  ;;  %v8166_v35 = vld [vmem:[#allocation2 + $0x8] sm:$0x3] }
0x2334   :  { %v8172_v37 = vpack.c.bf16 %v8166_v35, %v8166_v35 }
0x2335   :  { %v2683_v49 = vsub.f32 %v2678_v26, %v2682_v38 }
0x2337   :  { %v2684_v41 = vmul.f32 %v2683_v49, %v2683_v49 }
0x2339   :  { %v2685_v50 = vsel %vm612_vm4, %v2684_v41, 0.0 }
0x233a   :  { %2686 = vadd.xlane.f32.xlu0 %v2685_v50 }
0x2340   :  { %v7120_v30 = vpop.eup %7119 }
0x2341   :  { %v2787_v45 = vmul.f32 %v7120_v30, %v2775_v2 }
0x2343   :  { %v2788_v46 = vmul.f32 %v2787_v45, %v7779_v55 }
0x2345   :  { %v2789_v47 = vadd.f32 %v2788_v46, %v7781_v57 }
0x2347   :  { %v2791_v51 = vmul.f32 1.442695, %v2789_v47  ;;  %vm2790_vm15 = vcmp.gt.f32.partialorder %v2789_v47, 0.0 }
0x2349   :  { %7121 = vpow2.f32 %v2791_v51 }
0x2350   :  { %2976 = vrot.lane.b32.xlu0 %v8025_v34, %s7512_s28 }
0x2356   :  { %v7122_v32 = vpop.eup %7121 }
0x2357   :  { %v5911_v62 = vadd.f32 -1.0, %v7122_v32 }
0x2359   :  { %v2794_v3 = vsel %vm2790_vm15, %v2789_v47, %v5911_v62 }
0x235a   :  { %v2871_v4 = vpack.c.bf16 %v2794_v3, %v2794_v3 }
0x235c   :  { %2881 = vrot.lane.b32.xlu1 %v2871_v4, %s7512_s28 }
0x23c3   :  { %v2687_v34 = vpop.xlane.xlu0 %2686 }
0x23c4   :  { %v2688_v12 = vmul.f32 0.015625, %v2687_v34 }
0x23c6   :  { %v2689_v7 = vadd.f32 0.001, %v2688_v12 }
0x23c7   :  { %v2977_v62 = vpop.permute.xlu0 %2976 }
0x23c8   :  { %7123 = vrsqrt.f32 %v2689_v7 }
0x23ce   :  { %v2882_v5 = vpop.permute.xlu1 %2881 }
0x23cf   :  { %6574 = vmatmul.mubr.msk.bf16.vlgmr.msra.gmra.mxu1 %vm775_vm6, %v2882_v5 }
0x23d0   :  { %6589 = vmatprep.mubr.msk.bf16.mxu1 %vm7524_vm0, %v7523_v0  ;;  %6586 = vmatpush3.bf16.msra.mxu1 %v6965_v31 }
0x23d1   :  { %6587 = vmatprep.subr.bf16.mxu1 %v7523_v0 }
0x23d4   :  { %6588 = vmatpush3.bf16.msra.mxu1 %v6966_v11 }
0x23d5   :  { %v7124_v42 = vpop.eup %7123  ;;  %6601 = vmatprep.subr.bf16.mxu1 %v7523_v0 }
0x23d6   :  { %v2691_v44 = vmul.f32 %v7124_v42, %v2683_v49  ;;  %v8182_v49 = vld [vmem:[%s8799_s14 + $0x1] ss:$0 sm:$0xff] }
0x23d8   :  { %v2692_v18 = vmul.f32 %v8154_v58, %v2691_v44  ;;  %v6967_v44 = vld [vmem:[#allocation11 + $0x8] sm:$0xff]  }
0x23da   :  { %v2693_v2 = vadd.f32 %v8160_v24, %v2692_v18 }
0x23dc   :  { %v2695_v19 = vmul.f32 1.442695, %v2693_v2  ;;  %vm2694_vm3 = vcmp.gt.f32.partialorder %v2693_v2, 0.0 }
0x23de   :  { %7125 = vpow2.f32 %v2695_v19 }
0x23eb   :  { %v7126_v23 = vpop.eup %7125 }
0x23ec   :  { %v5907_v26 = vadd.f32 -1.0, %v7126_v23 }
0x23ee   :  { %v2698_v52 = vsel %vm2694_vm3, %v2693_v2, %v5907_v26  ;;  %v6968_v2 = vld [vmem:[#allocation11] sm:$0xff]  }
0x23ef   :  { %v2795_v56 = vpack.c.bf16 %v2698_v52, %v2698_v52 }
0x23f1   :  { %6562 = vmatmul.mubr.msk.bf16.vlgmr.msra.gmra.mxu0 %vm775_vm6, %v2795_v56 }
0x23f2   :  { %6581 = vmatprep.mubr.msk.bf16.mxu0 %vm7524_vm0, %v7523_v0  ;;  %6578 = vmatpush3.bf16.msra.mxu0 %v6963_v29 }
0x23f3   :  { %6579 = vmatprep.subr.bf16.mxu0 %v7523_v0 }
0x23f6   :  { %6580 = vmatpush3.bf16.msra.mxu0 %v6964_v33 }
0x23f7   :  { %6593 = vmatprep.subr.bf16.mxu0 %v7523_v0 }
0x23f9   :  { %6582 = vmatmul.mubr.msk.bf16.vlgmr.msra.gmra.mxu0 %vm276_vm1, %v8172_v37 }
0x23fa   :  { %6597 = vmatprep.mubr.msk.bf16.mxu0 %vm7524_vm0, %v7523_v0 }
0x248f   :  { %v2944_v38 = vpop.f32.mrf.mxu1 }
0x2490   :  { %v8185_v41 = vadd.f32 %v8182_v49, %v2944_v38 }
0x2491   :  { %v6575_v50 = vpop.f32.mrf.mxu1 }
0x2492   :  { %v5923_v30 = vmul.f32 -1.442695, %v8185_v41 }
0x2493   :  { %v2947_v45 = vpop.f32.mrf.mxu1 }
0x2494   :  { %7127 = vpow2.f32 %v5923_v30 }
0x2495   :  { %v6576_v43 = vpop.f32.mrf.mxu1 }
0x24a1   :  { %v7128_v46 = vpop.eup %7127 }
0x24a2   :  { %v2971_v47 = vadd.f32 1.0, %v7128_v46 }
0x24a4   :  { %7129 = vrcp.f32 %v2971_v47 }
0x24b1   :  { %v7130_v51 = vpop.eup %7129  ;;  %v8189_v59 = vpop.f32.mrf.mxu0 }
0x24b2   :  { %v2974_v32 = vmul.f32 2.0, %v7130_v51  ;;  %v6969_v51 = vld [vmem:[#allocation10 + $0x8] sm:$0xff]  }
0x24b3   :  { %v6563_v36 = vpop.f32.mrf.mxu0  ;;  %6594 = vmatpush3.bf16.msra.mxu0 %v6969_v51 }
0x24b4   :  { %v2975_v63 = vadd.f32 0.1, %v2974_v32  ;;  %v6970_v32 = vld [vmem:[#allocation10] sm:$0xff]   ;;  %6595 = vmatprep.subr.bf16.mxu0 %v7523_v0 }
0x24b5   :  { %v2868_v3 = vpop.f32.mrf.mxu0 }
0x24b6   :  { %v2979_v4 = vmul.f32 %v2977_v62, %v2975_v63 }
0x24b7   :  { %v6564_v9 = vpop.f32.mrf.mxu0  ;;  %6596 = vmatpush3.bf16.msra.mxu0 %v6970_v32 }
0x24b8   :  { %2981 = vrot.lane.b32.xlu1 %v2979_v4, %s7525_s6  ;;  %6609 = vmatprep.subr.bf16.mxu0 %v7523_v0 }
0x24b9   :  { %v3075_v10 = vpop.f32.mrf.mxu0 }
0x24bb   :  { %v6583_v34 = vpop.f32.mrf.mxu0 }
0x24bd   :  { %v3078_v12 = vpop.f32.mrf.mxu0 }
0x24bf   :  { %v6584_v7 = vpop.f32.mrf.mxu0 }
0x252a   :  { %v2982_v5 = vpop.permute.xlu1 %2981 }
0x252b   :  { %v8193_v42 = vadd.f32 %v2982_v5, %v8185_v41 }
0x252d   :  { %v3016_v18 = vpack.c.bf16 %v8193_v42, %v8193_v42 }
0x252f   :  { %6590 = vmatmul.mubr.msk.bf16.vlgmr.msra.gmra.mxu1 %vm276_vm1, %v3016_v18 }
0x2530   :  { %6602 = vmatpush3.bf16.msra.mxu1 %v6967_v44  ;;  %6605 = vmatprep.mubr.msk.bf16.mxu1 %vm7524_vm0, %v7523_v0 }
0x2531   :  { %6603 = vmatprep.subr.bf16.mxu1 %v7523_v0 }
0x2534   :  { %6604 = vmatpush3.bf16.msra.mxu1 %v6968_v2 }
0x2535   :  { %6617 = vmatprep.subr.bf16.mxu1 %v7523_v0 }
0x2537   :  { %6606 = vmatmul.mubr.msk.bf16.vlgmr.msra.gmra.mxu1 %vm276_vm1, %v8115_v61 }
0x2538   :  { %6621 = vmatprep.mubr.msk.bf16.mxu1 %vm7524_vm0, %v7523_v0 }
0x25ef   :  { %v3130_v19 = vpop.f32.mrf.mxu1 }
0x25f0   :  { %v3131_v23 = vadd.f32 %v3130_v19, %v3075_v10 }
0x25f1   :  { %v6591_v26 = vpop.f32.mrf.mxu1 }
0x25f2   :  { %v3136_v52 = vadd.f32 %v8063_v40, %v3131_v23 }
0x25f3   :  { %v3133_v56 = vpop.f32.mrf.mxu1 }
0x25f4   :  { %v3137_v29 = vsel %vm376_vm2, %v3136_v52, 0.0 }
0x25f5   :  { %v6592_v31 = vpop.f32.mrf.mxu1  ;;  %3138 = vadd.xlane.f32.xlu1 %v3137_v29 }
0x25f7   :  { %v3267_v33 = vpop.f32.mrf.mxu1 }
0x25f8   :  { %v3268_v45 = vadd.f32 %v8070_v48, %v3267_v33 }
0x25f9   :  { %v6607_v38 = vpop.f32.mrf.mxu1 }
0x25fb   :  { %v3270_v50 = vpop.f32.mrf.mxu1 }
0x25fd   :  { %v6608_v30 = vpop.f32.mrf.mxu1 }
0x25fe   :  { %v6971_v30 = vld [vmem:[#allocation14 + $0x8] sm:$0xff]  }
0x25ff   :  { %6618 = vmatpush3.bf16.msra.mxu1 %v6971_v30 }
0x2600   :  { %6619 = vmatprep.subr.bf16.mxu1 %v7523_v0 }
0x2606   :  { %3281 = vrot.lane.b32.xlu1 %v3268_v45, %s7512_s28 }
0x267e   :  { %v3139_v61 = vpop.xlane.xlu1 %3138 }
0x267f   :  { %v3140_v43 = vmul.f32 0.03125, %v3139_v61 }
0x2681   :  { %v3141_v46 = vsub.f32 %v3136_v52, %v3140_v43 }
0x2682   :  { %v3282_v38 = vpop.permute.xlu1 %3281 }
0x2683   :  { %v3142_v47 = vmul.f32 %v3141_v46, %v3141_v46 }
0x2685   :  { %v3143_v11 = vsel %vm376_vm2, %v3142_v47, 0.0  ;;  %v6974_v47 = vld [vmem:[#allocation13] sm:$0xff]  }
0x2686   :  { %3144 = vadd.xlane.f32.xlu0 %v3143_v11 }
0x270f   :  { %v3145_v36 = vpop.xlane.xlu0 %3144 }
0x2710   :  { %v3146_v62 = vmul.f32 0.03125, %v3145_v36 }
0x2712   :  { %v3147_v63 = vadd.f32 0.001, %v3146_v62 }
0x2714   :  { %7131 = vrsqrt.f32 %v3147_v63 }
0x2721   :  { %v7132_v3 = vpop.eup %7131 }
0x2722   :  { %v3149_v4 = vmul.f32 %v7132_v3, %v3141_v46  ;;  %v6973_v46 = vld [vmem:[#allocation13 + $0x8] sm:$0xff]  }
0x2724   :  { %v3150_v9 = vmul.f32 %v8080_v13, %v3149_v4 }
0x2726   :  { %v3151_v10 = vadd.f32 %v8086_v14, %v3150_v9 }
0x2728   :  { %v3153_v34 = vmul.f32 1.442695, %v3151_v10  ;;  %vm3152_vm5 = vcmp.gt.f32.partialorder %v3151_v10, 0.0 }
0x272a   :  { %7133 = vpow2.f32 %v3153_v34 }
0x2737   :  { %v7134_v12 = vpop.eup %7133 }
0x2738   :  { %v5931_v7 = vadd.f32 -1.0, %v7134_v12 }
0x273a   :  { %v3156_v5 = vsel %vm3152_vm5, %v3151_v10, %v5931_v7 }
0x273b   :  { %v3157_v44 = vpack.c.bf16 %v3156_v5, %v3156_v5 }
0x273d   :  { %6598 = vmatmul.mubr.msk.bf16.vlgmr.msra.gmra.mxu0 %vm276_vm1, %v3157_v44 }
0x273e   :  { %6613 = vmatprep.mubr.msk.bf16.mxu0 %vm7524_vm0, %v7523_v0  ;;  %6610 = vmatpush3.bf16.msra.mxu0 %v6973_v46 }
0x273f   :  { %6611 = vmatprep.subr.bf16.mxu0 %v7523_v0 }
0x2742   :  { %6612 = vmatpush3.bf16.msra.mxu0 %v6974_v47 }
0x2743   :  { %6625 = vmatprep.subr.bf16.mxu0 %v7523_v0 }
0x27fd   :  { %v3211_v18 = vpop.f32.mrf.mxu0 }
0x27fe   :  { %v3212_v2 = vadd.f32 %v8095_v16, %v3211_v18 }
0x27ff   :  { %v6599_v19 = vpop.f32.mrf.mxu0 }
0x2800   :  { %v3273_v23 = vadd.f32 %v3268_v45, %v3212_v2  ;;  %v6972_v45 = vld [vmem:[#allocation14] sm:$0xff]  }
0x2801   :  { %v3214_v26 = vpop.f32.mrf.mxu0  ;;  %6620 = vmatpush3.bf16.msra.mxu1 %v6972_v45 }
0x2802   :  { %v5938_v52 = vmul.f32 -1.442695, %v3273_v23  ;;  %6637 = vmatprep.subr.bf16.mxu1 %v7523_v0 }
0x2803   :  { %v6600_v56 = vpop.f32.mrf.mxu0 }
0x2804   :  { %7135 = vpow2.f32 %v5938_v52 }
0x2811   :  { %v7136_v29 = vpop.eup %7135 }
0x2812   :  { %v3277_v31 = vadd.f32 1.0, %v7136_v29 }
0x2814   :  { %7137 = vrcp.f32 %v3277_v31 }
0x2821   :  { %v7138_v33 = vpop.eup %7137 }
0x2822   :  { %v3284_v50 = vmul.f32 %v7138_v33, %v3282_v38  ;;  %v3291_v51 = vsub.f32 1.0, %v7138_v33  ;;  %v3297_v36 = vmul.f32 %v7138_v33, %v8107_v54 }
0x2824   :  { %3286 = vrot.lane.b32.xlu0 %v3284_v50, %s7512_s28 }
0x2896   :  { %v3287_v61 = vpop.permute.xlu0 %3286 }
0x2897   :  { %v3289_v43 = vadd.f32 %v3287_v61, %v3212_v2 }
0x2899   :  { %7139 = vtanh.f32 %v3289_v43  ;;  %v6975_v43 = vld [vmem:[#allocation17 + $0x18] sm:$0xff]  }
0x28a6   :  { %v7140_v11 = vpop.eup %7139 }
0x28a7   :  { %3293 = vrot.lane.b32.xlu1 %v7140_v11, %s7525_s6 }
0x28ab   :  { %3388 = vrot.lane.b32.xlu1 %v8172_v37, %s7525_s6 }
0x2919   :  { %v3294_v32 = vpop.permute.xlu1 %3293 }
0x291a   :  { %v3296_v62 = vmul.f32 %v3294_v32, %v3291_v51 }
0x291c   :  { %v8228_v63 = vadd.f32 %v3297_v36, %v3296_v62 }
0x291d   :  { %v3389_v3 = vpop.permute.xlu1 %3388 }
0x291e   :  { %6622 = vmatmul.mubr.msk.bf16.vlgmr.msra.gmra.mxu1 %vm276_vm1, %v3389_v3  ;;  %v3299_v4 = vpack.c.bf16 %v8228_v63, %v8228_v63 }
0x291f   :  { %6645 = vmatprep.mubr.msk.bf16.mxu1 %vm7524_vm0, %v7523_v0  ;;  %6638 = vmatpush3.bf16.msra.mxu1 %v6975_v43 }
0x2920   :  { %3305 = vrot.lane.b32.xlu1 %v3299_v4, %s7525_s6  ;;  %6639 = vmatprep.subr.bf16.mxu1 %v7523_v0 }
0x2992   :  { %v8236_v9 = vpop.permute.xlu1 %3305 }
0x2993   :  { %6614 = vmatmul.mubr.msk.bf16.vlgmr.msra.gmra.mxu0 %vm276_vm1, %v8236_v9 }
0x2994   :  { %6633 = vmatprep.mubr.msk.bf16.mxu0 %vm7524_vm0, %v7523_v0 }
0x29de   :  { %v3439_v37 = vpop.f32.mrf.mxu1 }
0x29df   :  { %3446 = vrot.lane.b32.xlu0 %v3439_v37, %s7512_s28  ;;  %v6976_v37 = vld [vmem:[#allocation17 + $0x10] sm:$0xff]  }
0x29e0   :  { %v6623_v10 = vpop.f32.mrf.mxu1  ;;  %6640 = vmatpush3.bf16.msra.mxu1 %v6976_v37 }
0x29e1   :  { %6641 = vmatprep.subr.bf16.mxu1 %v7523_v0 }
0x29e2   :  { %v3442_v34 = vpop.f32.mrf.mxu1 }
0x29e4   :  { %v6624_v12 = vpop.f32.mrf.mxu1 }
0x29e5   :  { %v6977_v12 = vld [vmem:[#allocation17 + $0x8] sm:$0xff]  }
0x29e6   :  { %6642 = vmatpush3.bf16.msra.mxu1 %v6977_v12 }
0x29e7   :  { %6643 = vmatprep.subr.bf16.mxu1 %v7523_v0 }
0x2a51   :  { %v3447_v7 = vpop.permute.xlu0 %3446 }
0x2a53   :  { %v3356_v5 = vpop.f32.mrf.mxu0 }
0x2a54   :  { %v3449_v44 = vadd.f32 %v3447_v7, %v3356_v5  ;;  %v3362_v50 = vadd.f32 %v8129_v25, %v3356_v5  ;;  %v6978_v5 = vld [vmem:[#allocation17] sm:$0xff]  }
0x2a55   :  { %v6615_v18 = vpop.f32.mrf.mxu0  ;;  %6644 = vmatpush3.bf16.msra.mxu1 %v6978_v5 }
0x2a56   :  { %v3450_v2 = vadd.f32 %v3449_v44, %v7760_v27  ;;  %v3363_v61 = vsel %vm612_vm4, %v3362_v50, 0.0  ;;  %6657 = vmatprep.subr.bf16.mxu1 %v7523_v0 }
0x2a57   :  { %v3359_v19 = vpop.f32.mrf.mxu0 }
0x2a58   :  { %3452 = vrot.lane.b32.xlu1 %v3450_v2, %s7512_s28 }
0x2a59   :  { %v6616_v23 = vpop.f32.mrf.mxu0 }
0x2aca   :  { %v3453_v26 = vpop.permute.xlu1 %3452 }
0x2acb   :  { %v3455_v52 = vsel %vm612_vm4, %v3453_v26, 0.0  ;;  %v6980_v26 = vld [vmem:[#allocation16 + $0x10] sm:$0xff]  }
0x2acc   :  { %3456 = vadd.xlane.f32.xlu0 %v3455_v52  ;;  %v6981_v52 = vld [vmem:[#allocation16 + $0x8] sm:$0xff]  }
0x2b55   :  { %v3457_v56 = vpop.xlane.xlu0 %3456 }
0x2b56   :  { %v3458_v29 = vmul.f32 0.015625, %v3457_v56 }
0x2b58   :  { %v3459_v31 = vsub.f32 %v3450_v2, %v3458_v29  ;;  %v6979_v2 = vld [vmem:[#allocation16 + $0x18] sm:$0xff]  }
0x2b59   :  { %6626 = vmatpush3.bf16.msra.mxu0 %v6979_v2 }
0x2b5a   :  { %v3460_v33 = vmul.f32 %v3459_v31, %v3459_v31  ;;  %6627 = vmatprep.subr.bf16.mxu0 %v7523_v0 }
0x2b5c   :  { %3462 = vrot.lane.b32.xlu1 %v3460_v33, %s7512_s28 }
0x2b5d   :  { %6628 = vmatpush3.bf16.msra.mxu0 %v6980_v26 }
0x2b5e   :  { %6629 = vmatprep.subr.bf16.mxu0 %v7523_v0 }
0x2b61   :  { %6630 = vmatpush3.bf16.msra.mxu0 %v6981_v52 }
0x2b62   :  { %6631 = vmatprep.subr.bf16.mxu0 %v7523_v0 }
0x2bce   :  { %v3463_v38 = vpop.permute.xlu1 %3462 }
0x2bcf   :  { %v3465_v30 = vsel %vm612_vm4, %v3463_v38, 0.0 }
0x2bd0   :  { %3466 = vadd.xlane.f32.xlu1 %v3465_v30 }
0x2bd4   :  { %3364 = vadd.xlane.f32.xlu1 %v3363_v61 }
0x2c59   :  { %v3467_v45 = vpop.xlane.xlu1 %3466 }
0x2c5a   :  { %v3468_v46 = vmul.f32 0.015625, %v3467_v45 }
0x2c5c   :  { %v3469_v47 = vadd.f32 0.001, %v3468_v46 }
0x2c5d   :  { %v3365_v11 = vpop.xlane.xlu1 %3364 }
0x2c5e   :  { %7141 = vrsqrt.f32 %v3469_v47  ;;  %v3366_v51 = vmul.f32 0.015625, %v3365_v11 }
0x2c60   :  { %v3367_v32 = vsub.f32 %v3362_v50, %v3366_v51  ;;  %v6983_v51 = vld [vmem:[#allocation8 + $0x8] sm:$0xff]  }
0x2c62   :  { %v3368_v36 = vmul.f32 %v3367_v32, %v3367_v32 }
0x2c64   :  { %v3369_v62 = vsel %vm612_vm4, %v3368_v36, 0.0  ;;  %v6985_v36 = vld [vmem:[#allocation7 + $0x8] sm:$0xff]  }
0x2c65   :  { %3370 = vadd.xlane.f32.xlu1 %v3369_v62  ;;  %v8272_v62 = vld [vmem:[#allocation2 + $0xa] sm:$0x3] }
0x2c6b   :  { %v7142_v3 = vpop.eup %7141 }
0x2c6c   :  { %v3471_v4 = vmul.f32 %v7142_v3, %v3459_v31  ;;  %v8278_v3 = vpack.c.bf16 %v8272_v62, %v8272_v62 }
0x2c6e   :  { %v3472_v10 = vmul.f32 %v3471_v4, %v7779_v55 }
0x2c70   :  { %v3473_v34 = vadd.f32 %v3472_v10, %v7781_v57 }
0x2c72   :  { %v3475_v7 = vmul.f32 1.442695, %v3473_v34  ;;  %vm3474_vm7 = vcmp.gt.f32.partialorder %v3473_v34, 0.0 }
0x2c74   :  { %7143 = vpow2.f32 %v3475_v7 }
0x2c76   :  { %3660 = vrot.lane.b32.xlu1 %v8166_v35, %s7512_s28  ;;  %v6982_v35 = vld [vmem:[#allocation16] sm:$0xff]  }
0x2c77   :  { %6632 = vmatpush3.bf16.msra.mxu0 %v6982_v35 }
0x2c78   :  { %6649 = vmatprep.subr.bf16.mxu0 %v7523_v0 }
0x2c81   :  { %v7144_v44 = vpop.eup %7143 }
0x2c82   :  { %v5946_v18 = vadd.f32 -1.0, %v7144_v44 }
0x2c84   :  { %v3478_v19 = vsel %vm3474_vm7, %v3473_v34, %v5946_v18  ;;  %v6986_v18 = vld [vmem:[#allocation7] sm:$0xff]  }
0x2c85   :  { %v3555_v23 = vpack.c.bf16 %v3478_v19, %v3478_v19 }
0x2c87   :  { %3565 = vrot.lane.b32.xlu0 %v3555_v23, %s7512_s28 }
0x2cee   :  { %v3371_v56 = vpop.xlane.xlu1 %3370 }
0x2cef   :  { %v3372_v29 = vmul.f32 0.015625, %v3371_v56 }
0x2cf1   :  { %v3373_v31 = vadd.f32 0.001, %v3372_v29 }
0x2cf2   :  { %v3661_v52 = vpop.permute.xlu1 %3660 }
0x2cf3   :  { %7145 = vrsqrt.f32 %v3373_v31 }
0x2cf9   :  { %v3566_v33 = vpop.permute.xlu0 %3565 }
0x2cfa   :  { %6646 = vmatmul.mubr.msk.bf16.vlgmr.msra.gmra.mxu1 %vm775_vm6, %v3566_v33 }
0x2cfb   :  { %6661 = vmatprep.mubr.msk.bf16.mxu1 %vm7524_vm0, %v7523_v0  ;;  %6658 = vmatpush3.bf16.msra.mxu1 %v6985_v36 }
0x2cfc   :  { %6659 = vmatprep.subr.bf16.mxu1 %v7523_v0 }
0x2cff   :  { %6660 = vmatpush3.bf16.msra.mxu1 %v6986_v18 }
0x2d00   :  { %v7146_v38 = vpop.eup %7145  ;;  %6673 = vmatprep.subr.bf16.mxu1 %v7523_v0 }
0x2d01   :  { %v3375_v50 = vmul.f32 %v7146_v38, %v3367_v32  ;;  %v6984_v32 = vld [vmem:[#allocation8] sm:$0xff]  }
0x2d03   :  { %v3376_v30 = vmul.f32 %v8154_v58, %v3375_v50 }
0x2d05   :  { %v3377_v61 = vadd.f32 %v8160_v24, %v3376_v30 }
0x2d07   :  { %v3379_v43 = vmul.f32 1.442695, %v3377_v61  ;;  %vm3378_vm8 = vcmp.gt.f32.partialorder %v3377_v61, 0.0 }
0x2d09   :  { %7147 = vpow2.f32 %v3379_v43 }
0x2d16   :  { %v7148_v45 = vpop.eup %7147 }
0x2d17   :  { %v5942_v46 = vadd.f32 -1.0, %v7148_v45  ;;  %v6987_v45 = vld [vmem:[#allocation11 + $0x8] sm:$0xff]  }
0x2d19   :  { %v3382_v47 = vsel %vm3378_vm8, %v3377_v61, %v5942_v46 }
0x2d1a   :  { %v3479_v11 = vpack.c.bf16 %v3382_v47, %v3382_v47  ;;  %v6988_v47 = vld [vmem:[#allocation11] sm:$0xff]  }
0x2d1c   :  { %6634 = vmatmul.mubr.msk.bf16.vlgmr.msra.gmra.mxu0 %vm775_vm6, %v3479_v11 }
0x2d1d   :  { %6653 = vmatprep.mubr.msk.bf16.mxu0 %vm7524_vm0, %v7523_v0  ;;  %6650 = vmatpush3.bf16.msra.mxu0 %v6983_v51 }
0x2d1e   :  { %6651 = vmatprep.subr.bf16.mxu0 %v7523_v0 }
0x2d21   :  { %6652 = vmatpush3.bf16.msra.mxu0 %v6984_v32 }
0x2d22   :  { %6665 = vmatprep.subr.bf16.mxu0 %v7523_v0 }
0x2d24   :  { %6654 = vmatmul.mubr.msk.bf16.vlgmr.msra.gmra.mxu0 %vm276_vm1, %v8278_v3 }
0x2d25   :  { %6669 = vmatprep.mubr.msk.bf16.mxu0 %vm7524_vm0, %v7523_v0 }
0x2dba   :  { %v3628_v4 = vpop.f32.mrf.mxu1 }
0x2dbb   :  { %v8286_v37 = vadd.f32 %v8182_v49, %v3628_v4 }
0x2dbc   :  { %v6647_v10 = vpop.f32.mrf.mxu1 }
0x2dbd   :  { %v5958_v34 = vmul.f32 -1.442695, %v8286_v37 }
0x2dbe   :  { %v3631_v12 = vpop.f32.mrf.mxu1 }
0x2dbf   :  { %7149 = vpow2.f32 %v5958_v34 }
0x2dc0   :  { %v6648_v7 = vpop.f32.mrf.mxu1 }
0x2dcc   :  { %v7150_v5 = vpop.eup %7149 }
0x2dcd   :  { %v3655_v44 = vadd.f32 1.0, %v7150_v5 }
0x2dcf   :  { %7151 = vrcp.f32 %v3655_v44 }
0x2ddc   :  { %v7152_v2 = vpop.eup %7151  ;;  %v8290_v19 = vpop.f32.mrf.mxu0 }
0x2ddd   :  { %v3658_v23 = vmul.f32 2.0, %v7152_v2 }
0x2dde   :  { %v6635_v26 = vpop.f32.mrf.mxu0 }
0x2ddf   :  { %v3659_v35 = vadd.f32 0.1, %v3658_v23 }
0x2de0   :  { %v3552_v56 = vpop.f32.mrf.mxu0 }
0x2de1   :  { %v3663_v29 = vmul.f32 %v3661_v52, %v3659_v35  ;;  %v6990_v35 = vld [vmem:[#allocation10] sm:$0xff]  }
0x2de2   :  { %v6636_v31 = vpop.f32.mrf.mxu0 }
0x2de3   :  { %3665 = vrot.lane.b32.xlu0 %v3663_v29, %s7525_s6 }
0x2de4   :  { %v3759_v33 = vpop.f32.mrf.mxu0 }
0x2de6   :  { %v6655_v38 = vpop.f32.mrf.mxu0 }
0x2de8   :  { %v3762_v50 = vpop.f32.mrf.mxu0 }
0x2dea   :  { %v6656_v30 = vpop.f32.mrf.mxu0 }
0x2e55   :  { %v3666_v61 = vpop.permute.xlu0 %3665 }
0x2e56   :  { %v8294_v43 = vadd.f32 %v3666_v61, %v8286_v37 }
0x2e58   :  { %v3700_v46 = vpack.c.bf16 %v8294_v43, %v8294_v43 }
0x2e5a   :  { %6662 = vmatmul.mubr.msk.bf16.vlgmr.msra.gmra.mxu1 %vm276_vm1, %v3700_v46 }
0x2e5b   :  { %6674 = vmatpush3.bf16.msra.mxu1 %v6987_v45  ;;  %6677 = vmatprep.mubr.msk.bf16.mxu1 %vm7524_vm0, %v7523_v0 }
0x2e5c   :  { %6675 = vmatprep.subr.bf16.mxu1 %v7523_v0 }
0x2e5f   :  { %6676 = vmatpush3.bf16.msra.mxu1 %v6988_v47 }
0x2e60   :  { %6689 = vmatprep.subr.bf16.mxu1 %v7523_v0 }
0x2e62   :  { %6678 = vmatmul.mubr.msk.bf16.vlgmr.msra.gmra.mxu1 %vm276_vm1, %v8236_v9 }
0x2e63   :  { %6693 = vmatprep.mubr.msk.bf16.mxu1 %vm7524_vm0, %v7523_v0 }
0x2f1a   :  { %v3814_v11 = vpop.f32.mrf.mxu1 }
0x2f1b   :  { %v3815_v51 = vadd.f32 %v3814_v11, %v3759_v33 }
0x2f1c   :  { %v6663_v36 = vpop.f32.mrf.mxu1 }
0x2f1d   :  { %v3820_v32 = vadd.f32 %v8063_v40, %v3815_v51  ;;  %v6989_v40 = vld [vmem:[#allocation10 + $0x8] sm:$0xff]  }
0x2f1e   :  { %v3817_v4 = vpop.f32.mrf.mxu1  ;;  %6666 = vmatpush3.bf16.msra.mxu0 %v6989_v40 }
0x2f1f   :  { %v3821_v10 = vsel %vm376_vm2, %v3820_v32, 0.0  ;;  %6667 = vmatprep.subr.bf16.mxu0 %v7523_v0 }
0x2f20   :  { %v6664_v34 = vpop.f32.mrf.mxu1  ;;  %3822 = vadd.xlane.f32.xlu0 %v3821_v10 }
0x2f22   :  { %v3951_v12 = vpop.f32.mrf.mxu1  ;;  %6668 = vmatpush3.bf16.msra.mxu0 %v6990_v35 }
0x2f23   :  { %v3952_v18 = vadd.f32 %v8070_v48, %v3951_v12  ;;  %6681 = vmatprep.subr.bf16.mxu0 %v7523_v0 }
0x2f24   :  { %v6679_v7 = vpop.f32.mrf.mxu1 }
0x2f26   :  { %v3954_v5 = vpop.f32.mrf.mxu1 }
0x2f28   :  { %v6680_v44 = vpop.f32.mrf.mxu1 }
0x2f29   :  { %v6991_v44 = vld [vmem:[#allocation14 + $0x8] sm:$0xff]  }
0x2f2a   :  { %6690 = vmatpush3.bf16.msra.mxu1 %v6991_v44 }
0x2f2b   :  { %6691 = vmatprep.subr.bf16.mxu1 %v7523_v0 }
0x2f36   :  { %3965 = vrot.lane.b32.xlu0 %v3952_v18, %s7512_s28 }
0x2fa9   :  { %v3823_v9 = vpop.xlane.xlu0 %3822 }
0x2faa   :  { %v3824_v2 = vmul.f32 0.03125, %v3823_v9 }
0x2fac   :  { %v3825_v23 = vsub.f32 %v3820_v32, %v3824_v2  ;;  %v6993_v2 = vld [vmem:[#allocation13 + $0x8] sm:$0xff]  }
0x2fad   :  { %v3966_v7 = vpop.permute.xlu0 %3965 }
0x2fae   :  { %v3826_v26 = vmul.f32 %v3825_v23, %v3825_v23 }
0x2fb0   :  { %v3827_v52 = vsel %vm376_vm2, %v3826_v26, 0.0 }
0x2fb1   :  { %3828 = vadd.xlane.f32.xlu1 %v3827_v52 }
0x303a   :  { %v3829_v56 = vpop.xlane.xlu1 %3828 }
0x303b   :  { %v3830_v29 = vmul.f32 0.03125, %v3829_v56 }
0x303d   :  { %v3831_v48 = vadd.f32 0.001, %v3830_v29 }
0x303f   :  { %7153 = vrsqrt.f32 %v3831_v48 }
0x304c   :  { %v7154_v31 = vpop.eup %7153 }
0x304d   :  { %v3833_v33 = vmul.f32 %v7154_v31, %v3825_v23  ;;  %v6994_v23 = vld [vmem:[#allocation13] sm:$0xff]  }
0x304f   :  { %v3834_v38 = vmul.f32 %v8080_v13, %v3833_v33 }
0x3051   :  { %v3835_v50 = vadd.f32 %v8086_v14, %v3834_v38 }
0x3053   :  { %v3837_v30 = vmul.f32 1.442695, %v3835_v50  ;;  %vm3836_vm9 = vcmp.gt.f32.partialorder %v3835_v50, 0.0 }
0x3055   :  { %7155 = vpow2.f32 %v3837_v30 }
0x3062   :  { %v7156_v61 = vpop.eup %7155 }
0x3063   :  { %v5966_v45 = vadd.f32 -1.0, %v7156_v61 }
0x3065   :  { %v3840_v46 = vsel %vm3836_vm9, %v3835_v50, %v5966_v45 }
0x3066   :  { %v3841_v47 = vpack.c.bf16 %v3840_v46, %v3840_v46 }
0x3068   :  { %6670 = vmatmul.mubr.msk.bf16.vlgmr.msra.gmra.mxu0 %vm276_vm1, %v3841_v47 }
0x3069   :  { %6685 = vmatprep.mubr.msk.bf16.mxu0 %vm7524_vm0, %v7523_v0  ;;  %6682 = vmatpush3.bf16.msra.mxu0 %v6993_v2 }
0x306a   :  { %6683 = vmatprep.subr.bf16.mxu0 %v7523_v0 }
0x306d   :  { %6684 = vmatpush3.bf16.msra.mxu0 %v6994_v23 }
0x306e   :  { %6697 = vmatprep.subr.bf16.mxu0 %v7523_v0 }
0x3128   :  { %v3895_v11 = vpop.f32.mrf.mxu0 }
0x3129   :  { %v3896_v51 = vadd.f32 %v8095_v16, %v3895_v11 }
0x312a   :  { %v6671_v36 = vpop.f32.mrf.mxu0 }
0x312b   :  { %v3957_v32 = vadd.f32 %v3952_v18, %v3896_v51  ;;  %v6992_v18 = vld [vmem:[#allocation14] sm:$0xff]  }
0x312c   :  { %v3898_v13 = vpop.f32.mrf.mxu0  ;;  %6692 = vmatpush3.bf16.msra.mxu1 %v6992_v18 }
0x312d   :  { %v5973_v4 = vmul.f32 -1.442695, %v3957_v32  ;;  %6709 = vmatprep.subr.bf16.mxu1 %v7523_v0 }
0x312e   :  { %v6672_v14 = vpop.f32.mrf.mxu0 }
0x312f   :  { %7157 = vpow2.f32 %v5973_v4 }
0x313c   :  { %v7158_v10 = vpop.eup %7157 }
0x313d   :  { %v3961_v34 = vadd.f32 1.0, %v7158_v10 }
0x313f   :  { %7159 = vrcp.f32 %v3961_v34 }
0x314c   :  { %v7160_v12 = vpop.eup %7159 }
0x314d   :  { %v3968_v5 = vmul.f32 %v7160_v12, %v3966_v7  ;;  %v3975_v52 = vsub.f32 1.0, %v7160_v12  ;;  %v3981_v35 = vmul.f32 %v7160_v12, %v8228_v63 }
0x314f   :  { %3970 = vrot.lane.b32.xlu1 %v3968_v5, %s7512_s28 }
0x31c1   :  { %v3971_v9 = vpop.permute.xlu1 %3970 }
0x31c2   :  { %v3973_v16 = vadd.f32 %v3971_v9, %v3896_v51  ;;  %v6995_v9 = vld [vmem:[#allocation17 + $0x18] sm:$0xff]  }
0x31c4   :  { %7161 = vtanh.f32 %v3973_v16 }
0x31d1   :  { %v7162_v26 = vpop.eup %7161 }
0x31d2   :  { %3977 = vrot.lane.b32.xlu0 %v7162_v26, %s7525_s6 }
0x31d6   :  { %4072 = vrot.lane.b32.xlu0 %v8278_v3, %s7525_s6 }
0x3244   :  { %v3978_v40 = vpop.permute.xlu0 %3977 }
0x3245   :  { %v3980_v56 = vmul.f32 %v3978_v40, %v3975_v52 }
0x3247   :  { %v8329_v29 = vadd.f32 %v3981_v35, %v3980_v56 }
0x3248   :  { %v4073_v48 = vpop.permute.xlu0 %4072 }
0x3249   :  { %6694 = vmatmul.mubr.msk.bf16.vlgmr.msra.gmra.mxu1 %vm276_vm1, %v4073_v48  ;;  %v3983_v31 = vpack.c.bf16 %v8329_v29, %v8329_v29  ;;  %v6996_v48 = vld [vmem:[#allocation17 + $0x10] sm:$0xff]  }
0x324a   :  { %6717 = vmatprep.mubr.msk.bf16.mxu1 %vm7524_vm0, %v7523_v0  ;;  %6710 = vmatpush3.bf16.msra.mxu1 %v6995_v9 }
0x324b   :  { %3989 = vrot.lane.b32.xlu0 %v3983_v31, %s7525_s6  ;;  %6711 = vmatprep.subr.bf16.mxu1 %v7523_v0 }
0x324e   :  { %6712 = vmatpush3.bf16.msra.mxu1 %v6996_v48 }
0x324f   :  { %6713 = vmatprep.subr.bf16.mxu1 %v7523_v0 }
0x32bd   :  { %v8337_v33 = vpop.permute.xlu0 %3989 }
0x32be   :  { %6686 = vmatmul.mubr.msk.bf16.vlgmr.msra.gmra.mxu0 %vm276_vm1, %v8337_v33 }
0x32bf   :  { %6705 = vmatprep.mubr.msk.bf16.mxu0 %vm7524_vm0, %v7523_v0 }
0x3309   :  { %v4123_v3 = vpop.f32.mrf.mxu1 }
0x330a   :  { %4130 = vrot.lane.b32.xlu1 %v4123_v3, %s7512_s28 }
0x330b   :  { %v6695_v38 = vpop.f32.mrf.mxu1 }
0x330c   :  { %v6997_v38 = vld [vmem:[#allocation17 + $0x8] sm:$0xff]  }
0x330d   :  { %v4126_v50 = vpop.f32.mrf.mxu1  ;;  %6714 = vmatpush3.bf16.msra.mxu1 %v6997_v38  ;;  %v7006_v38 = vld [vmem:[#allocation7] sm:$0xff]  }
0x330e   :  { %6715 = vmatprep.subr.bf16.mxu1 %v7523_v0 }
0x330f   :  { %v6696_v30 = vpop.f32.mrf.mxu1 }
0x3310   :  { %v6998_v30 = vld [vmem:[#allocation17] sm:$0xff]  }
0x3311   :  { %6716 = vmatpush3.bf16.msra.mxu1 %v6998_v30 }
0x3312   :  { %6729 = vmatprep.subr.bf16.mxu1 %v7523_v0 }
0x337c   :  { %v4131_v61 = vpop.permute.xlu1 %4130 }
0x337e   :  { %v4040_v45 = vpop.f32.mrf.mxu0 }
0x337f   :  { %v4133_v46 = vadd.f32 %v4131_v61, %v4040_v45  ;;  %v4046_v7 = vadd.f32 %v8129_v25, %v4040_v45 }
0x3380   :  { %v6687_v47 = vpop.f32.mrf.mxu0 }
0x3381   :  { %v4134_v11 = vadd.f32 %v4133_v46, %v7760_v27  ;;  %v4047_v44 = vsel %vm612_vm4, %v4046_v7, 0.0  ;;  %v6999_v46 = vld [vmem:[#allocation16 + $0x18] sm:$0xff]  }
0x3382   :  { %v4043_v51 = vpop.f32.mrf.mxu0  ;;  %6698 = vmatpush3.bf16.msra.mxu0 %v6999_v46 }
0x3383   :  { %4136 = vrot.lane.b32.xlu0 %v4134_v11, %s7512_s28  ;;  %v7000_v51 = vld [vmem:[#allocation16 + $0x10] sm:$0xff]   ;;  %6699 = vmatprep.subr.bf16.mxu0 %v7523_v0 }
0x3384   :  { %v6688_v36 = vpop.f32.mrf.mxu0 }
0x3385   :  { %v7001_v36 = vld [vmem:[#allocation16 + $0x8] sm:$0xff]  }
0x3386   :  { %6700 = vmatpush3.bf16.msra.mxu0 %v7000_v51 }
0x3387   :  { %6701 = vmatprep.subr.bf16.mxu0 %v7523_v0 }
0x338a   :  { %6702 = vmatpush3.bf16.msra.mxu0 %v7001_v36 }
0x338b   :  { %6703 = vmatprep.subr.bf16.mxu0 %v7523_v0 }
0x33f5   :  { %v4137_v32 = vpop.permute.xlu0 %4136 }
0x33f6   :  { %v4139_v13 = vsel %vm612_vm4, %v4137_v32, 0.0  ;;  %v7002_v32 = vld [vmem:[#allocation16] sm:$0xff]  }
0x33f7   :  { %4140 = vadd.xlane.f32.xlu1 %v4139_v13  ;;  %6704 = vmatpush3.bf16.msra.mxu0 %v7002_v32 }
0x33f8   :  { %6721 = vmatprep.subr.bf16.mxu0 %v7523_v0 }
0x3480   :  { %v4141_v4 = vpop.xlane.xlu1 %4140 }
0x3481   :  { %v4142_v14 = vmul.f32 0.015625, %v4141_v4 }
0x3483   :  { %v4143_v10 = vsub.f32 %v4134_v11, %v4142_v14 }
0x3485   :  { %v4144_v34 = vmul.f32 %v4143_v10, %v4143_v10 }
0x3487   :  { %4146 = vrot.lane.b32.xlu0 %v4144_v34, %s7512_s28 }
0x34f9   :  { %v4147_v12 = vpop.permute.xlu0 %4146 }
0x34fa   :  { %v4149_v5 = vsel %vm612_vm4, %v4147_v12, 0.0 }
0x34fb   :  { %4150 = vadd.xlane.f32.xlu0 %v4149_v5 }
0x34ff   :  { %4048 = vadd.xlane.f32.xlu0 %v4047_v44 }
0x3584   :  { %v4151_v16 = vpop.xlane.xlu0 %4150 }
0x3585   :  { %v4152_v18 = vmul.f32 0.015625, %v4151_v16 }
0x3587   :  { %v4153_v2 = vadd.f32 0.001, %v4152_v18 }
0x3588   :  { %v4049_v23 = vpop.xlane.xlu0 %4048 }
0x3589   :  { %7163 = vrsqrt.f32 %v4153_v2  ;;  %v4050_v26 = vmul.f32 0.015625, %v4049_v23  ;;  %v7003_v2 = vld [vmem:[#allocation8 + $0x8] sm:$0xff]   ;;  %v7005_v23 = vld [vmem:[#allocation7 + $0x8] sm:$0xff]  }
0x358b   :  { %v4051_v52 = vsub.f32 %v4046_v7, %v4050_v26  ;;  %v7004_v26 = vld [vmem:[#allocation8] sm:$0xff]  }
0x358d   :  { %v4052_v40 = vmul.f32 %v4051_v52, %v4051_v52 }
0x358f   :  { %v4053_v25 = vsel %vm612_vm4, %v4052_v40, 0.0 }
0x3590   :  { %4054 = vadd.xlane.f32.xlu0 %v4053_v25 }
0x3596   :  { %v7164_v35 = vpop.eup %7163 }
0x3597   :  { %v4155_v56 = vmul.f32 %v7164_v35, %v4143_v10 }
0x3599   :  { %v4156_v31 = vmul.f32 %v4155_v56, %v7779_v55 }
0x359b   :  { %v4157_v3 = vadd.f32 %v4156_v31, %v7781_v57 }
0x359d   :  { %v4159_v50 = vmul.f32 1.442695, %v4157_v3  ;;  %vm4158_vm10 = vcmp.gt.f32.partialorder %v4157_v3, 0.0 }
0x359f   :  { %7165 = vpow2.f32 %v4159_v50 }
0x35a6   :  { %4344 = vrot.lane.b32.xlu0 %v8272_v62, %s7512_s28 }
0x35ac   :  { %v7166_v61 = vpop.eup %7165 }
0x35ad   :  { %v5981_v45 = vadd.f32 -1.0, %v7166_v61 }
0x35af   :  { %v4162_v47 = vsel %vm4158_vm10, %v4157_v3, %v5981_v45 }
0x35b0   :  { %v4239_v11 = vpack.c.bf16 %v4162_v47, %v4162_v47 }
0x35b2   :  { %4249 = vrot.lane.b32.xlu1 %v4239_v11, %s7512_s28 }
0x3619   :  { %v4055_v62 = vpop.xlane.xlu0 %4054 }
0x361a   :  { %v4056_v13 = vmul.f32 0.015625, %v4055_v62 }
0x361c   :  { %v4057_v4 = vadd.f32 0.001, %v4056_v13 }
0x361e   :  { %7167 = vrsqrt.f32 %v4057_v4 }
0x3624   :  { %v4250_v14 = vpop.permute.xlu1 %4249 }
0x3625   :  { %6718 = vmatmul.mubr.msk.bf16.vlgmr.msra.gmra.mxu1 %vm775_vm6, %v4250_v14 }
0x3626   :  { %6733 = vmatprep.mubr.msk.bf16.mxu1 %vm7524_vm0, %v7523_v0  ;;  %6730 = vmatpush3.bf16.msra.mxu1 %v7005_v23 }
0x3627   :  { %6731 = vmatprep.subr.bf16.mxu1 %v7523_v0 }
0x362a   :  { %6732 = vmatpush3.bf16.msra.mxu1 %v7006_v38 }
0x362b   :  { %v7168_v10 = vpop.eup %7167  ;;  %6745 = vmatprep.subr.bf16.mxu1 %v7523_v0 }
0x362c   :  { %v4059_v34 = vmul.f32 %v7168_v10, %v4051_v52  ;;  %v7007_v10 = vld [vmem:[#allocation11 + $0x8] sm:$0xff]  }
0x362e   :  { %v4060_v12 = vmul.f32 %v8154_v58, %v4059_v34  ;;  %v8373_v58 = vld [vmem:[#allocation2 + $0xc] sm:$0x3] }
0x3630   :  { %v4061_v7 = vadd.f32 %v8160_v24, %v4060_v12  ;;  %v8379_v24 = vpack.c.bf16 %v8373_v58, %v8373_v58  ;;  %v7008_v12 = vld [vmem:[#allocation11] sm:$0xff]  }
0x3632   :  { %v4063_v5 = vmul.f32 1.442695, %v4061_v7  ;;  %vm4062_vm11 = vcmp.gt.f32.partialorder %v4061_v7, 0.0 }
0x3634   :  { %7169 = vpow2.f32 %v4063_v5 }
0x3641   :  { %v7170_v44 = vpop.eup %7169 }
0x3642   :  { %v5977_v9 = vadd.f32 -1.0, %v7170_v44 }
0x3644   :  { %v4066_v16 = vsel %vm4062_vm11, %v4061_v7, %v5977_v9  ;;  %v8411_v9 = vld [vmem:[%s8796_s11] ss:$0 sm:$0xff] }
0x3645   :  { %v4163_v18 = vpack.c.bf16 %v4066_v16, %v4066_v16 }
0x3647   :  { %6706 = vmatmul.mubr.msk.bf16.vlgmr.msra.gmra.mxu0 %vm775_vm6, %v4163_v18 }
0x3648   :  { %6725 = vmatprep.mubr.msk.bf16.mxu0 %vm7524_vm0, %v7523_v0  ;;  %6722 = vmatpush3.bf16.msra.mxu0 %v7003_v2 }
0x3649   :  { %6723 = vmatprep.subr.bf16.mxu0 %v7523_v0 }
0x364c   :  { %6724 = vmatpush3.bf16.msra.mxu0 %v7004_v26 }
0x364d   :  { %6737 = vmatprep.subr.bf16.mxu0 %v7523_v0 }
0x364f   :  { %6726 = vmatmul.mubr.msk.bf16.vlgmr.msra.gmra.mxu0 %vm276_vm1, %v8379_v24 }
0x3650   :  { %6741 = vmatprep.mubr.msk.bf16.mxu0 %vm7524_vm0, %v7523_v0 }
0x36e5   :  { %v4312_v52 = vpop.f32.mrf.mxu1 }
0x36e6   :  { %v8387_v40 = vadd.f32 %v8182_v49, %v4312_v52  ;;  %v4345_v49 = vpop.permute.xlu0 %4344 }
0x36e7   :  { %v6719_v25 = vpop.f32.mrf.mxu1 }
0x36e8   :  { %v5993_v35 = vmul.f32 -1.442695, %v8387_v40 }
0x36e9   :  { %v4315_v56 = vpop.f32.mrf.mxu1 }
0x36ea   :  { %7171 = vpow2.f32 %v5993_v35  ;;  %v8418_v35 = vld [vmem:[%s8797_s12 + $0x1] ss:$0 sm:$0xff] }
0x36eb   :  { %v6720_v48 = vpop.f32.mrf.mxu1 }
0x36f7   :  { %v7172_v31 = vpop.eup %7171 }
0x36f8   :  { %v4339_v3 = vadd.f32 1.0, %v7172_v31 }
0x36fa   :  { %7173 = vrcp.f32 %v4339_v3 }
0x3707   :  { %v7174_v50 = vpop.eup %7173  ;;  %v8391_v30 = vpop.f32.mrf.mxu0 }
0x3708   :  { %v4342_v61 = vmul.f32 2.0, %v7174_v50 }
0x3709   :  { %v6707_v45 = vpop.f32.mrf.mxu0 }
0x370a   :  { %v4343_v46 = vadd.f32 0.1, %v4342_v61  ;;  %v7009_v61 = vld [vmem:[#allocation10 + $0x8] sm:$0xff]   ;;  %v7010_v45 = vld [vmem:[#allocation10] sm:$0xff]  }
0x370b   :  { %v4236_v47 = vpop.f32.mrf.mxu0  ;;  %6738 = vmatpush3.bf16.msra.mxu0 %v7009_v61 }
0x370c   :  { %v4347_v11 = vmul.f32 %v4345_v49, %v4343_v46  ;;  %6739 = vmatprep.subr.bf16.mxu0 %v7523_v0 }
0x370d   :  { %v6708_v51 = vpop.f32.mrf.mxu0 }
0x370e   :  { %4349 = vrot.lane.b32.xlu1 %v4347_v11, %s7525_s6 }
0x370f   :  { %v4443_v36 = vpop.f32.mrf.mxu0  ;;  %6740 = vmatpush3.bf16.msra.mxu0 %v7010_v45  ;;  %v7013_v45 = vld [vmem:[#allocation13 + $0x8] sm:$0xff]  }
0x3710   :  { %6753 = vmatprep.subr.bf16.mxu0 %v7523_v0 }
0x3711   :  { %v6727_v32 = vpop.f32.mrf.mxu0 }
0x3713   :  { %v4446_v62 = vpop.f32.mrf.mxu0 }
0x3714   :  { %v8434_v62 = vld [vmem:[%s8796_s11 + $0x2] ss:$0 sm:$0xff] }
0x3715   :  { %v6728_v13 = vpop.f32.mrf.mxu0 }
0x3780   :  { %v4350_v4 = vpop.permute.xlu1 %4349 }
0x3781   :  { %v8395_v14 = vadd.f32 %v4350_v4, %v8387_v40 }
0x3783   :  { %v4384_v34 = vpack.c.bf16 %v8395_v14, %v8395_v14 }
0x3785   :  { %6734 = vmatmul.mubr.msk.bf16.vlgmr.msra.gmra.mxu1 %vm276_vm1, %v4384_v34 }
0x3786   :  { %6746 = vmatpush3.bf16.msra.mxu1 %v7007_v10  ;;  %6749 = vmatprep.mubr.msk.bf16.mxu1 %vm7524_vm0, %v7523_v0 }
0x3787   :  { %6747 = vmatprep.subr.bf16.mxu1 %v7523_v0 }
0x378a   :  { %6748 = vmatpush3.bf16.msra.mxu1 %v7008_v12 }
0x378b   :  { %6761 = vmatprep.subr.bf16.mxu1 %v7523_v0 }
0x378d   :  { %6750 = vmatmul.mubr.msk.bf16.vlgmr.msra.gmra.mxu1 %vm276_vm1, %v8337_v33 }
0x378e   :  { %6765 = vmatprep.mubr.msk.bf16.mxu1 %vm7524_vm0, %v7523_v0 }
0x3845   :  { %v4498_v7 = vpop.f32.mrf.mxu1 }
0x3846   :  { %v4499_v5 = vadd.f32 %v4498_v7, %v4443_v36  ;;  %v8428_v36 = vld [vmem:[%s8796_s11 + $0x1] ss:$0 sm:$0xff] }
0x3847   :  { %v6735_v44 = vpop.f32.mrf.mxu1 }
0x3848   :  { %v4504_v16 = vadd.f32 %v8411_v9, %v4499_v5  ;;  %v8443_v44 = vld [vmem:[%s8797_s12] ss:$0 sm:$0xff] }
0x3849   :  { %v4501_v18 = vpop.f32.mrf.mxu1 }
0x384a   :  { %v4505_v2 = vsel %vm376_vm2, %v4504_v16, 0.0 }
0x384b   :  { %v6736_v23 = vpop.f32.mrf.mxu1  ;;  %4506 = vadd.xlane.f32.xlu1 %v4505_v2 }
0x384d   :  { %v4635_v26 = vpop.f32.mrf.mxu1 }
0x384e   :  { %v4636_v56 = vadd.f32 %v8418_v35, %v4635_v26 }
0x384f   :  { %v6751_v33 = vpop.f32.mrf.mxu1 }
0x3851   :  { %v4638_v52 = vpop.f32.mrf.mxu1 }
0x3853   :  { %v6752_v25 = vpop.f32.mrf.mxu1 }
0x385c   :  { %4649 = vrot.lane.b32.xlu1 %v4636_v56, %s7512_s28 }
0x38d4   :  { %v4507_v48 = vpop.xlane.xlu1 %4506 }
0x38d5   :  { %v4508_v31 = vmul.f32 0.03125, %v4507_v48 }
0x38d7   :  { %v4509_v3 = vsub.f32 %v4504_v16, %v4508_v31 }
0x38d8   :  { %v4650_v31 = vpop.permute.xlu1 %4649 }
0x38d9   :  { %v4510_v38 = vmul.f32 %v4509_v3, %v4509_v3 }
0x38db   :  { %v4511_v50 = vsel %vm376_vm2, %v4510_v38, 0.0  ;;  %v7011_v38 = vld [vmem:[#allocation14 + $0x8] sm:$0xff]  }
0x38dc   :  { %4512 = vadd.xlane.f32.xlu0 %v4511_v50  ;;  %6762 = vmatpush3.bf16.msra.mxu1 %v7011_v38 }
0x38dd   :  { %6763 = vmatprep.subr.bf16.mxu1 %v7523_v0 }
0x3965   :  { %v4513_v49 = vpop.xlane.xlu0 %4512 }
0x3966   :  { %v4514_v46 = vmul.f32 0.03125, %v4513_v49  ;;  %v7014_v49 = vld [vmem:[#allocation13] sm:$0xff]  }
0x3968   :  { %v4515_v47 = vadd.f32 0.001, %v4514_v46 }
0x396a   :  { %7175 = vrsqrt.f32 %v4515_v47 }
0x3977   :  { %v7176_v11 = vpop.eup %7175 }
0x3978   :  { %v4517_v51 = vmul.f32 %v7176_v11, %v4509_v3 }
0x397a   :  { %v4518_v32 = vmul.f32 %v8428_v36, %v4517_v51 }
0x397c   :  { %v4519_v13 = vadd.f32 %v8434_v62, %v4518_v32 }
0x397e   :  { %v4521_v4 = vmul.f32 1.442695, %v4519_v13  ;;  %vm4520_vm12 = vcmp.gt.f32.partialorder %v4519_v13, 0.0 }
0x3980   :  { %7177 = vpow2.f32 %v4521_v4 }
0x398d   :  { %v7178_v10 = vpop.eup %7177 }
0x398e   :  { %v6001_v34 = vadd.f32 -1.0, %v7178_v10 }
0x3990   :  { %v4524_v12 = vsel %vm4520_vm12, %v4519_v13, %v6001_v34 }
0x3991   :  { %v4525_v7 = vpack.c.bf16 %v4524_v12, %v4524_v12 }
0x3993   :  { %6742 = vmatmul.mubr.msk.bf16.vlgmr.msra.gmra.mxu0 %vm276_vm1, %v4525_v7 }
0x3994   :  { %6757 = vmatprep.mubr.msk.bf16.mxu0 %vm7524_vm0, %v7523_v0  ;;  %6754 = vmatpush3.bf16.msra.mxu0 %v7013_v45 }
0x3995   :  { %6755 = vmatprep.subr.bf16.mxu0 %v7523_v0 }
0x3998   :  { %6756 = vmatpush3.bf16.msra.mxu0 %v7014_v49 }
0x3999   :  { %6769 = vmatprep.subr.bf16.mxu0 %v7523_v0 }
0x3a53   :  { %v4579_v5 = vpop.f32.mrf.mxu0 }
0x3a54   :  { %v4580_v16 = vadd.f32 %v8443_v44, %v4579_v5 }
0x3a55   :  { %v6743_v18 = vpop.f32.mrf.mxu0 }
0x3a56   :  { %v4641_v2 = vadd.f32 %v4636_v56, %v4580_v16  ;;  %v7012_v56 = vld [vmem:[#allocation14] sm:$0xff]  }
0x3a57   :  { %v4582_v23 = vpop.f32.mrf.mxu0  ;;  %6764 = vmatpush3.bf16.msra.mxu1 %v7012_v56  ;;  %v8477_v56 = vld [vmem:[%s8798_s13] ss:$0 sm:$0xff] }
0x3a58   :  { %v6008_v26 = vmul.f32 -1.442695, %v4641_v2  ;;  %6781 = vmatprep.subr.bf16.mxu1 %v7523_v0 }
0x3a59   :  { %v6744_v33 = vpop.f32.mrf.mxu0 }
0x3a5a   :  { %7179 = vpow2.f32 %v6008_v26 }
0x3a67   :  { %v7180_v52 = vpop.eup %7179 }
0x3a68   :  { %v4645_v25 = vadd.f32 1.0, %v7180_v52 }
0x3a6a   :  { %7181 = vrcp.f32 %v4645_v25 }
0x3a77   :  { %v7182_v48 = vpop.eup %7181 }
0x3a78   :  { %v4652_v3 = vmul.f32 %v7182_v48, %v4650_v31  ;;  %v4659_v47 = vsub.f32 1.0, %v7182_v48  ;;  %v4665_v51 = vmul.f32 %v7182_v48, %v8329_v29 }
0x3a7a   :  { %4654 = vrot.lane.b32.xlu0 %v4652_v3, %s7512_s28 }
0x3aec   :  { %v4655_v50 = vpop.permute.xlu0 %4654 }
0x3aed   :  { %v4657_v61 = vadd.f32 %v4655_v50, %v4580_v16 }
0x3aef   :  { %7183 = vtanh.f32 %v4657_v61 }
0x3afc   :  { %v7184_v46 = vpop.eup %7183 }
0x3afd   :  { %4661 = vrot.lane.b32.xlu1 %v7184_v46, %s7525_s6 }
0x3b01   :  { %4756 = vrot.lane.b32.xlu1 %v8379_v24, %s7525_s6 }
0x3b6f   :  { %v4662_v11 = vpop.permute.xlu1 %4661 }
0x3b70   :  { %v4664_v32 = vmul.f32 %v4662_v11, %v4659_v47  ;;  %v7015_v47 = vld [vmem:[#allocation17 + $0x18] sm:$0xff]  }
0x3b72   :  { %v8455_v13 = vadd.f32 %v4665_v51, %v4664_v32 }
0x3b73   :  { %v4757_v4 = vpop.permute.xlu1 %4756 }
0x3b74   :  { %v4667_v10 = vpack.c.bf16 %v8455_v13, %v8455_v13  ;;  %6766 = vmatmul.mubr.msk.bf16.vlgmr.msra.gmra.mxu1 %vm276_vm1, %v4757_v4 }
0x3b75   :  { %6789 = vmatprep.mubr.msk.bf16.mxu1 %vm7524_vm0, %v7523_v0  ;;  %6782 = vmatpush3.bf16.msra.mxu1 %v7015_v47 }
0x3b76   :  { %4673 = vrot.lane.b32.xlu1 %v4667_v10, %s7525_s6  ;;  %6783 = vmatprep.subr.bf16.mxu1 %v7523_v0 }
0x3be8   :  { %v8463_v34 = vpop.permute.xlu1 %4673 }
0x3be9   :  { %6758 = vmatmul.mubr.msk.bf16.vlgmr.msra.gmra.mxu0 %vm276_vm1, %v8463_v34 }
0x3bea   :  { %6777 = vmatprep.mubr.msk.bf16.mxu0 %vm7524_vm0, %v7523_v0 }
0x3c34   :  { %v4807_v24 = vpop.f32.mrf.mxu1 }
0x3c35   :  { %4814 = vrot.lane.b32.xlu0 %v4807_v24, %s7512_s28 }
0x3c36   :  { %v6767_v12 = vpop.f32.mrf.mxu1 }
0x3c38   :  { %v4810_v7 = vpop.f32.mrf.mxu1 }
0x3c3a   :  { %v6768_v5 = vpop.f32.mrf.mxu1 }
0x3ca7   :  { %v4815_v16 = vpop.permute.xlu0 %4814 }
0x3ca9   :  { %v4724_v18 = vpop.f32.mrf.mxu0 }
0x3caa   :  { %v4817_v2 = vadd.f32 %v4815_v16, %v4724_v18  ;;  %v4730_v45 = vadd.f32 %v8477_v56, %v4724_v18  ;;  %v7016_v18 = vld [vmem:[#allocation17 + $0x10] sm:$0xff]  }
0x3cab   :  { %v6759_v23 = vpop.f32.mrf.mxu0  ;;  %6784 = vmatpush3.bf16.msra.mxu1 %v7016_v18 }
0x3cac   :  { %v4818_v26 = vadd.f32 %v4817_v2, %v7760_v27  ;;  %v4731_v46 = vsel %vm612_vm4, %v4730_v45, 0.0  ;;  %6785 = vmatprep.subr.bf16.mxu1 %v7523_v0 }
0x3cad   :  { %v4727_v33 = vpop.f32.mrf.mxu0 }
0x3cae   :  { %4820 = vrot.lane.b32.xlu1 %v4818_v26, %s7512_s28 }
0x3caf   :  { %v6760_v52 = vpop.f32.mrf.mxu0 }
0x3cb0   :  { %v7018_v52 = vld [vmem:[#allocation17] sm:$0xff]  }
0x3d20   :  { %v4821_v25 = vpop.permute.xlu1 %4820 }
0x3d21   :  { %v4823_v48 = vsel %vm612_vm4, %v4821_v25, 0.0 }
0x3d22   :  { %4824 = vadd.xlane.f32.xlu0 %v4823_v48 }
0x3dab   :  { %v4825_v31 = vpop.xlane.xlu0 %4824 }
0x3dac   :  { %v4826_v3 = vmul.f32 0.015625, %v4825_v31  ;;  %v7019_v31 = vld [vmem:[#allocation16 + $0x18] sm:$0xff]  }
0x3dad   :  { %6770 = vmatpush3.bf16.msra.mxu0 %v7019_v31  ;;  %v8530_v31 = vld [vmem:[%s8799_s14 + $0x1] ss:$0 sm:$0xff] }
0x3dae   :  { %v4827_v38 = vsub.f32 %v4818_v26, %v4826_v3  ;;  %v7017_v26 = vld [vmem:[#allocation17 + $0x8] sm:$0xff]   ;;  %6771 = vmatprep.subr.bf16.mxu0 %v7523_v0 }
0x3daf   :  { %6786 = vmatpush3.bf16.msra.mxu1 %v7017_v26  ;;  %v7025_v26 = vld [vmem:[#allocation7 + $0x8] sm:$0xff]  }
0x3db0   :  { %v4828_v50 = vmul.f32 %v4827_v38, %v4827_v38  ;;  %6787 = vmatprep.subr.bf16.mxu1 %v7523_v0 }
0x3db2   :  { %4830 = vrot.lane.b32.xlu1 %v4828_v50, %s7512_s28  ;;  %v7020_v50 = vld [vmem:[#allocation16 + $0x10] sm:$0xff]  }
0x3db3   :  { %6788 = vmatpush3.bf16.msra.mxu1 %v7018_v52  ;;  %6772 = vmatpush3.bf16.msra.mxu0 %v7020_v50  ;;  %v8514_v52 = vld [vmem:[#allocation2 + $0xe] sm:$0x3] }
0x3db4   :  { %6801 = vmatprep.subr.bf16.mxu1 %v7523_v0  ;;  %6773 = vmatprep.subr.bf16.mxu0 %v7523_v0 }
0x3e24   :  { %v4831_v61 = vpop.permute.xlu1 %4830 }
0x3e25   :  { %v4833_v49 = vsel %vm612_vm4, %v4831_v61, 0.0  ;;  %v7021_v61 = vld [vmem:[#allocation16 + $0x8] sm:$0xff]  }
0x3e26   :  { %4834 = vadd.xlane.f32.xlu1 %v4833_v49  ;;  %6774 = vmatpush3.bf16.msra.mxu0 %v7021_v61 }
0x3e27   :  { %6775 = vmatprep.subr.bf16.mxu0 %v7523_v0 }
0x3e2a   :  { %4732 = vadd.xlane.f32.xlu1 %v4731_v46 }
0x3eaf   :  { %v4835_v11 = vpop.xlane.xlu1 %4834 }
0x3eb0   :  { %v4836_v51 = vmul.f32 0.015625, %v4835_v11 }
0x3eb2   :  { %v4837_v32 = vadd.f32 0.001, %v4836_v51 }
0x3eb3   :  { %v4733_v4 = vpop.xlane.xlu1 %4732 }
0x3eb4   :  { %7185 = vrsqrt.f32 %v4837_v32  ;;  %v4734_v10 = vmul.f32 0.015625, %v4733_v4  ;;  %v8502_v4 = vld [vmem:[%s8798_s13 + $0x1] ss:$0 sm:$0xff] }
0x3eb6   :  { %v4735_v24 = vsub.f32 %v4730_v45, %v4734_v10  ;;  %v7022_v45 = vld [vmem:[#allocation16] sm:$0xff]  }
0x3eb7   :  { %6776 = vmatpush3.bf16.msra.mxu0 %v7022_v45 }
0x3eb8   :  { %v4736_v12 = vmul.f32 %v4735_v24, %v4735_v24  ;;  %6793 = vmatprep.subr.bf16.mxu0 %v7523_v0 }
0x3eba   :  { %v4737_v7 = vsel %vm612_vm4, %v4736_v12, 0.0  ;;  %v8508_v12 = vld [vmem:[%s8798_s13 + $0x2] ss:$0 sm:$0xff] }
0x3ebb   :  { %4738 = vadd.xlane.f32.xlu1 %v4737_v7 }
0x3ec1   :  { %v7186_v5 = vpop.eup %7185 }
0x3ec2   :  { %v4839_v16 = vmul.f32 %v7186_v5, %v4827_v38 }
0x3ec4   :  { %v4840_v2 = vmul.f32 %v4839_v16, %v7779_v55 }
0x3ec6   :  { %v4841_v23 = vadd.f32 %v4840_v2, %v7781_v57 }
0x3ec8   :  { %v4843_v33 = vmul.f32 1.442695, %v4841_v23  ;;  %vm4842_vm13 = vcmp.gt.f32.partialorder %v4841_v23, 0.0 }
0x3eca   :  { %7187 = vpow2.f32 %v4843_v33  ;;  %v7024_v33 = vld [vmem:[#allocation8] sm:$0xff]  }
0x3ecc   :  { %5028 = vrot.lane.b32.xlu1 %v8373_v58, %s7512_s28 }
0x3ed7   :  { %v7188_v25 = vpop.eup %7187 }
0x3ed8   :  { %v6016_v48 = vadd.f32 -1.0, %v7188_v25  ;;  %v8520_v25 = vpack.c.bf16 %v8514_v52, %v8514_v52 }
0x3eda   :  { %v4846_v3 = vsel %vm4842_vm13, %v4841_v23, %v6016_v48  ;;  %v7023_v23 = vld [vmem:[#allocation8 + $0x8] sm:$0xff]  }
0x3edb   :  { %v4923_v38 = vpack.c.bf16 %v4846_v3, %v4846_v3 }
0x3edd   :  { %4933 = vrot.lane.b32.xlu0 %v4923_v38, %s7512_s28 }
0x3f44   :  { %v4739_v49 = vpop.xlane.xlu1 %4738 }
0x3f45   :  { %v4740_v46 = vmul.f32 0.015625, %v4739_v49 }
0x3f47   :  { %v4741_v47 = vadd.f32 0.001, %v4740_v46 }
0x3f49   :  { %7189 = vrsqrt.f32 %v4741_v47  ;;  %v7026_v47 = vld [vmem:[#allocation7] sm:$0xff]  }
0x3f4f   :  { %v4934_v11 = vpop.permute.xlu0 %4933 }
0x3f50   :  { %6790 = vmatmul.mubr.msk.bf16.vlgmr.msra.gmra.mxu1 %vm775_vm6, %v4934_v11 }
0x3f51   :  { %6805 = vmatprep.mubr.msk.bf16.mxu1 %vm7524_vm0, %v7523_v0  ;;  %6802 = vmatpush3.bf16.msra.mxu1 %v7025_v26 }
0x3f52   :  { %6803 = vmatprep.subr.bf16.mxu1 %v7523_v0 }
0x3f55   :  { %6804 = vmatpush3.bf16.msra.mxu1 %v7026_v47 }
0x3f56   :  { %v7190_v51 = vpop.eup %7189  ;;  %6817 = vmatprep.subr.bf16.mxu1 %v7523_v0 }
0x3f57   :  { %v4743_v32 = vmul.f32 %v7190_v51, %v4735_v24 }
0x3f59   :  { %v4744_v10 = vmul.f32 %v8502_v4, %v4743_v32 }
0x3f5b   :  { %v4745_v7 = vadd.f32 %v8508_v12, %v4744_v10 }
0x3f5d   :  { %v4747_v5 = vmul.f32 1.442695, %v4745_v7  ;;  %vm4746_vm14 = vcmp.gt.f32.partialorder %v4745_v7, 0.0 }
0x3f5f   :  { %7191 = vpow2.f32 %v4747_v5 }
0x3f6c   :  { %v7192_v16 = vpop.eup %7191 }
0x3f6d   :  { %v6012_v18 = vadd.f32 -1.0, %v7192_v16 }
0x3f6f   :  { %v4750_v24 = vsel %vm4746_vm14, %v4745_v7, %v6012_v18  ;;  %v5029_v7 = vpop.permute.xlu1 %5028 }
0x3f70   :  { %v4847_v2 = vpack.c.bf16 %v4750_v24, %v4750_v24 }
0x3f72   :  { %6778 = vmatmul.mubr.msk.bf16.vlgmr.msra.gmra.mxu0 %vm775_vm6, %v4847_v2 }
0x3f73   :  { %6797 = vmatprep.mubr.msk.bf16.mxu0 %vm7524_vm0, %v7523_v0  ;;  %6794 = vmatpush3.bf16.msra.mxu0 %v7023_v23 }
0x3f74   :  { %6795 = vmatprep.subr.bf16.mxu0 %v7523_v0 }
0x3f77   :  { %6796 = vmatpush3.bf16.msra.mxu0 %v7024_v33 }
0x3f78   :  { %6809 = vmatprep.subr.bf16.mxu0 %v7523_v0 }
0x3f7a   :  { %6798 = vmatmul.mubr.msk.bf16.vlgmr.msra.gmra.mxu0 %vm276_vm1, %v8520_v25 }
0x3f7b   :  { %6813 = vmatprep.mubr.msk.bf16.mxu0 %vm7524_vm0, %v7523_v0 }
0x4010   :  { %v4996_v48 = vpop.f32.mrf.mxu1 }
0x4011   :  { %v8533_v3 = vadd.f32 %v8530_v31, %v4996_v48 }
0x4012   :  { %v6791_v38 = vpop.f32.mrf.mxu1 }
0x4013   :  { %v6028_v50 = vmul.f32 -1.442695, %v8533_v3 }
0x4014   :  { %v4999_v61 = vpop.f32.mrf.mxu1 }
0x4015   :  { %7193 = vpow2.f32 %v6028_v50  ;;  %v7027_v50 = vld [vmem:[#allocation11 + $0x8] sm:$0xff]  }
0x4016   :  { %v6792_v45 = vpop.f32.mrf.mxu1 }
0x4017   :  { %v7028_v45 = vld [vmem:[#allocation11] sm:$0xff]  }
0x4022   :  { %v7194_v49 = vpop.eup %7193 }
0x4023   :  { %v5023_v46 = vadd.f32 1.0, %v7194_v49 }
0x4025   :  { %7195 = vrcp.f32 %v5023_v46 }
0x4032   :  { %v7196_v11 = vpop.eup %7195  ;;  %v8537_v51 = vpop.f32.mrf.mxu0 }
0x4033   :  { %v5026_v32 = vmul.f32 2.0, %v7196_v11 }
0x4034   :  { %v6779_v10 = vpop.f32.mrf.mxu0 }
0x4035   :  { %v5027_v5 = vadd.f32 0.1, %v5026_v32 }
0x4036   :  { %v4920_v16 = vpop.f32.mrf.mxu0 }
0x4037   :  { %v5031_v18 = vmul.f32 %v5029_v7, %v5027_v5 }
0x4038   :  { %v6780_v24 = vpop.f32.mrf.mxu0 }
0x4039   :  { %5033 = vrot.lane.b32.xlu0 %v5031_v18, %s7525_s6 }
0x403a   :  { %v5127_v2 = vpop.f32.mrf.mxu0 }
0x403c   :  { %v6799_v23 = vpop.f32.mrf.mxu0 }
0x403e   :  { %v5130_v26 = vpop.f32.mrf.mxu0 }
0x4040   :  { %v6800_v33 = vpop.f32.mrf.mxu0 }
0x40ab   :  { %v5034_v48 = vpop.permute.xlu0 %5033 }
0x40ac   :  { %v8541_v38 = vadd.f32 %v5034_v48, %v8533_v3 }
0x40ae   :  { %v5068_v61 = vpack.c.bf16 %v8541_v38, %v8541_v38 }
0x40b0   :  { %6806 = vmatmul.mubr.msk.bf16.vlgmr.msra.gmra.mxu1 %vm276_vm1, %v5068_v61 }
0x40b1   :  { %6818 = vmatpush3.bf16.msra.mxu1 %v7027_v50  ;;  %6821 = vmatprep.mubr.msk.bf16.mxu1 %vm7524_vm0, %v7523_v0  ;;  %v7030_v50 = vld [vmem:[#allocation10] sm:$0xff]  }
0x40b2   :  { %6819 = vmatprep.subr.bf16.mxu1 %v7523_v0 }
0x40b5   :  { %6820 = vmatpush3.bf16.msra.mxu1 %v7028_v45 }
0x40b6   :  { %6833 = vmatprep.subr.bf16.mxu1 %v7523_v0 }
0x40b8   :  { %6822 = vmatmul.mubr.msk.bf16.vlgmr.msra.gmra.mxu1 %vm276_vm1, %v8463_v34 }
0x40b9   :  { %6837 = vmatprep.mubr.msk.bf16.mxu1 %vm7524_vm0, %v7523_v0 }
0x4170   :  { %v5182_v49 = vpop.f32.mrf.mxu1 }
0x4171   :  { %v5183_v46 = vadd.f32 %v5182_v49, %v5127_v2 }
0x4172   :  { %v6807_v47 = vpop.f32.mrf.mxu1 }
0x4173   :  { %v5188_v11 = vadd.f32 %v8411_v9, %v5183_v46  ;;  %v7029_v9 = vld [vmem:[#allocation10 + $0x8] sm:$0xff]  }
0x4174   :  { %v5185_v32 = vpop.f32.mrf.mxu1  ;;  %6810 = vmatpush3.bf16.msra.mxu0 %v7029_v9 }
0x4175   :  { %v5189_v10 = vsel %vm376_vm2, %v5188_v11, 0.0  ;;  %6811 = vmatprep.subr.bf16.mxu0 %v7523_v0 }
0x4176   :  { %v6808_v7 = vpop.f32.mrf.mxu1  ;;  %5190 = vadd.xlane.f32.xlu0 %v5189_v10 }
0x4178   :  { %v5319_v5 = vpop.f32.mrf.mxu1  ;;  %6812 = vmatpush3.bf16.msra.mxu0 %v7030_v50 }
0x4179   :  { %v5320_v23 = vadd.f32 %v8418_v35, %v5319_v5  ;;  %6825 = vmatprep.subr.bf16.mxu0 %v7523_v0 }
0x417a   :  { %v6823_v16 = vpop.f32.mrf.mxu1 }
0x417c   :  { %v5322_v18 = vpop.f32.mrf.mxu1 }
0x417e   :  { %v6824_v24 = vpop.f32.mrf.mxu1 }
0x418c   :  { %5333 = vrot.lane.b32.xlu0 %v5320_v23, %s7512_s28 }
0x41ff   :  { %v5191_v34 = vpop.xlane.xlu0 %5190 }
0x4200   :  { %v5192_v26 = vmul.f32 0.03125, %v5191_v34 }
0x4202   :  { %v5193_v33 = vsub.f32 %v5188_v11, %v5192_v26 }
0x4203   :  { %v5334_v50 = vpop.permute.xlu0 %5333 }
0x4204   :  { %v5194_v2 = vmul.f32 %v5193_v33, %v5193_v33 }
0x4206   :  { %v5195_v48 = vsel %vm376_vm2, %v5194_v2, 0.0 }
0x4207   :  { %5196 = vadd.xlane.f32.xlu1 %v5195_v48 }
0x4290   :  { %v5197_v61 = vpop.xlane.xlu1 %5196 }
0x4291   :  { %v5198_v45 = vmul.f32 0.03125, %v5197_v61 }
0x4293   :  { %v5199_v35 = vadd.f32 0.001, %v5198_v45  ;;  %v7031_v45 = vld [vmem:[#allocation14 + $0x8] sm:$0xff]  }
0x4294   :  { %6834 = vmatpush3.bf16.msra.mxu1 %v7031_v45 }
0x4295   :  { %7197 = vrsqrt.f32 %v5199_v35  ;;  %6835 = vmatprep.subr.bf16.mxu1 %v7523_v0 }
0x42a2   :  { %v7198_v49 = vpop.eup %7197 }
0x42a3   :  { %v5201_v46 = vmul.f32 %v7198_v49, %v5193_v33  ;;  %v7033_v49 = vld [vmem:[#allocation13 + $0x8] sm:$0xff]  }
0x42a5   :  { %v5202_v47 = vmul.f32 %v8428_v36, %v5201_v46  ;;  %v7034_v46 = vld [vmem:[#allocation13] sm:$0xff]  }
0x42a7   :  { %v5203_v11 = vadd.f32 %v8434_v62, %v5202_v47 }
0x42a9   :  { %v5205_v32 = vmul.f32 1.442695, %v5203_v11  ;;  %vm5204_vm2 = vcmp.gt.f32.partialorder %v5203_v11, 0.0 }
0x42ab   :  { %7199 = vpow2.f32 %v5205_v32 }
0x42b8   :  { %v7200_v10 = vpop.eup %7199 }
0x42b9   :  { %v6036_v7 = vadd.f32 -1.0, %v7200_v10 }
0x42bb   :  { %v5208_v5 = vsel %vm5204_vm2, %v5203_v11, %v6036_v7 }
0x42bc   :  { %v5209_v16 = vpack.c.bf16 %v5208_v5, %v5208_v5 }
0x42be   :  { %6814 = vmatmul.mubr.msk.bf16.vlgmr.msra.gmra.mxu0 %vm276_vm1, %v5209_v16 }
0x42bf   :  { %6829 = vmatprep.mubr.msk.bf16.mxu0 %vm7524_vm0, %v7523_v0  ;;  %6826 = vmatpush3.bf16.msra.mxu0 %v7033_v49 }
0x42c0   :  { %6827 = vmatprep.subr.bf16.mxu0 %v7523_v0 }
0x42c3   :  { %6828 = vmatpush3.bf16.msra.mxu0 %v7034_v46 }
0x42c4   :  { %6841 = vmatprep.subr.bf16.mxu0 %v7523_v0 }
0x437e   :  { %v5263_v18 = vpop.f32.mrf.mxu0 }
0x437f   :  { %v5264_v24 = vadd.f32 %v8443_v44, %v5263_v18 }
0x4380   :  { %v6815_v34 = vpop.f32.mrf.mxu0 }
0x4381   :  { %v5325_v26 = vadd.f32 %v5320_v23, %v5264_v24  ;;  %v7032_v23 = vld [vmem:[#allocation14] sm:$0xff]  }
0x4382   :  { %v5266_v36 = vpop.f32.mrf.mxu0  ;;  %6836 = vmatpush3.bf16.msra.mxu1 %v7032_v23 }
0x4383   :  { %v6043_v33 = vmul.f32 -1.442695, %v5325_v26  ;;  %6853 = vmatprep.subr.bf16.mxu1 %v7523_v0 }
0x4384   :  { %v6816_v62 = vpop.f32.mrf.mxu0 }
0x4385   :  { %7201 = vpow2.f32 %v6043_v33 }
0x4392   :  { %v7202_v2 = vpop.eup %7201 }
0x4393   :  { %v5329_v48 = vadd.f32 1.0, %v7202_v2 }
0x4395   :  { %7203 = vrcp.f32 %v5329_v48 }
0x43a2   :  { %v7204_v9 = vpop.eup %7203 }
0x43a3   :  { %v5336_v61 = vmul.f32 %v7204_v9, %v5334_v50  ;;  %v5343_v11 = vsub.f32 1.0, %v7204_v9  ;;  %v5349_v10 = vmul.f32 %v7204_v9, %v8455_v13 }
0x43a5   :  { %5338 = vrot.lane.b32.xlu1 %v5336_v61, %s7512_s28 }
0x4417   :  { %v5339_v35 = vpop.permute.xlu1 %5338 }
0x4418   :  { %v5341_v44 = vadd.f32 %v5339_v35, %v5264_v24 }
0x441a   :  { %7205 = vtanh.f32 %v5341_v44 }
0x4427   :  { %v7206_v47 = vpop.eup %7205 }
0x4428   :  { %5345 = vrot.lane.b32.xlu0 %v7206_v47, %s7525_s6 }
0x442c   :  { %5440 = vrot.lane.b32.xlu0 %v8520_v25, %s7525_s6 }
0x449a   :  { %v5346_v32 = vpop.permute.xlu0 %5345 }
0x449b   :  { %v5348_v7 = vmul.f32 %v5346_v32, %v5343_v11 }
0x449d   :  { %v8576_v5 = vadd.f32 %v5349_v10, %v5348_v7 }
0x449e   :  { %v5441_v16 = vpop.permute.xlu0 %5440 }
0x449f   :  { %v5351_v18 = vpack.c.bf16 %v8576_v5, %v8576_v5  ;;  %6838 = vmatmul.mubr.msk.bf16.vlgmr.msra.gmra.mxu1 %vm276_vm1, %v5441_v16 }
0x44a0   :  { %6861 = vmatprep.mubr.msk.bf16.mxu1 %vm7524_vm0, %v7523_v0 }
0x44a1   :  { %5357 = vrot.lane.b32.xlu0 %v5351_v18, %s7525_s6 }
0x4513   :  { %v5358_v24 = vpop.permute.xlu0 %5357 }
0x4514   :  { %6830 = vmatmul.mubr.msk.bf16.vlgmr.msra.gmra.mxu0 %vm276_vm1, %v5358_v24 }
0x4515   :  { %6849 = vmatprep.mubr.msk.bf16.mxu0 %vm7524_vm0, %v7523_v0 }
0x455f   :  { %v5491_v25 = vpop.f32.mrf.mxu1 }
0x4560   :  { %5498 = vrot.lane.b32.xlu1 %v5491_v25, %s7512_s28  ;;  %v7269_v25 = vld [vmem:[#allocation2] sm:$0x3] }
0x4561   :  { %v6839_v34 = vpop.f32.mrf.mxu1 }
0x4562   :  { %v7271_v34 = vld [vmem:[#allocation2 + $0xa] sm:$0x3] }
0x4563   :  { %v5494_v26 = vpop.f32.mrf.mxu1 }
0x4564   :  { %v7035_v26 = vld [vmem:[#allocation16 + $0x18] sm:$0xff]  }
0x4565   :  { %v6840_v36 = vpop.f32.mrf.mxu1  ;;  %6842 = vmatpush3.bf16.msra.mxu0 %v7035_v26 }
0x4566   :  { %v7036_v36 = vld [vmem:[#allocation16 + $0x10] sm:$0xff]   ;;  %6843 = vmatprep.subr.bf16.mxu0 %v7523_v0 }
0x4569   :  { %6844 = vmatpush3.bf16.msra.mxu0 %v7036_v36 }
0x456a   :  { %6845 = vmatprep.subr.bf16.mxu0 %v7523_v0 }
0x45d2   :  { %v5499_v33 = vpop.permute.xlu1 %5498 }
0x45d4   :  { %v5408_v62 = vpop.f32.mrf.mxu0 }
0x45d5   :  { %v5501_v2 = vadd.f32 %v5499_v33, %v5408_v62  ;;  %v5414_v47 = vadd.f32 %v8477_v56, %v5408_v62  ;;  %v7270_v56 = vld [vmem:[#allocation2 + $0x6] sm:$0x3]  ;;  %v7037_v33 = vld [vmem:[#allocation16 + $0x8] sm:$0xff]   ;;  %v7038_v62 = vld [vmem:[#allocation16] sm:$0xff]  }
0x45d6   :  { %v6831_v48 = vpop.f32.mrf.mxu0  ;;  %6846 = vmatpush3.bf16.msra.mxu0 %v7037_v33 }
0x45d7   :  { %v5502_v9 = vadd.f32 %v5501_v2, %v7760_v27  ;;  %v5415_v11 = vsel %vm612_vm4, %v5414_v47, 0.0  ;;  %6847 = vmatprep.subr.bf16.mxu0 %v7523_v0  ;;  %v7039_v2 = vld [vmem:[#allocation17 + $0x18] sm:$0xff]   ;;  %v7040_v48 = vld [vmem:[#allocation17 + $0x10] sm:$0xff]  }
0x45d8   :  { %v5411_v50 = vpop.f32.mrf.mxu0  ;;  %6854 = vmatpush3.bf16.msra.mxu1 %v7039_v2 }
0x45d9   :  { %5504 = vrot.lane.b32.xlu0 %v5502_v9, %s7512_s28  ;;  %6855 = vmatprep.subr.bf16.mxu1 %v7523_v0  ;;  %v7042_v50 = vld [vmem:[#allocation17] sm:$0xff]  }
0x45da   :  { %v6832_v61 = vpop.f32.mrf.mxu0  ;;  %6848 = vmatpush3.bf16.msra.mxu0 %v7038_v62 }
0x45dc   :  { %6856 = vmatpush3.bf16.msra.mxu1 %v7040_v48 }
0x45dd   :  { %6857 = vmatprep.subr.bf16.mxu1 %v7523_v0 }
0x464b   :  { %v5505_v45 = vpop.permute.xlu0 %5504 }
0x464c   :  { %v5507_v35 = vsel %vm612_vm4, %v5505_v45, 0.0 }
0x464d   :  { %5508 = vadd.xlane.f32.xlu1 %v5507_v35 }
0x46d6   :  { %v5509_v44 = vpop.xlane.xlu1 %5508 }
0x46d7   :  { %v5510_v23 = vmul.f32 0.015625, %v5509_v44  ;;  %v8614_v44 = vld [vmem:[%s8799_s14] ss:$0 sm:$0xff]  ;;  %s7526_s14 = smov [#allocation19]  }
0x46d9   :  { %v5511_v49 = vsub.f32 %v5502_v9, %v5510_v23  ;;  %v7041_v9 = vld [vmem:[#allocation17 + $0x8] sm:$0xff]   ;;  %v8618_v23 = vadd.f32 %v8614_v44, %v7856_v1 }
0x46da   :  { %6858 = vmatpush3.bf16.msra.mxu1 %v7041_v9 }
0x46db   :  { %v5512_v46 = vmul.f32 %v5511_v49, %v5511_v49  ;;  %6859 = vmatprep.subr.bf16.mxu1 %v7523_v0 }
0x46dd   :  { %5514 = vrot.lane.b32.xlu0 %v5512_v46, %s7512_s28 }
0x46de   :  { %6860 = vmatpush3.bf16.msra.mxu1 %v7042_v50 }
0x46fc   :  { %5416 = vadd.xlane.f32.xlu0 %v5415_v11 }
0x474f   :  { %v5515_v27 = vpop.permute.xlu0 %5514 }
0x4750   :  { %v5517_v32 = vsel %vm612_vm4, %v5515_v27, 0.0 }
0x4751   :  { %5518 = vadd.xlane.f32.xlu1 %v5517_v32 }
0x4785   :  { %v5417_v10 = vpop.xlane.xlu0 %5416 }
0x4786   :  { %v5418_v7 = vmul.f32 0.015625, %v5417_v10 }
0x4788   :  { %v8595_v16 = vsub.f32 %v5414_v47, %v5418_v7  ;;  %v5817_v47 = vmul.f32 -1.442695, %v8618_v23 }
0x478a   :  { %v5420_v18 = vmul.f32 %v8595_v16, %v8595_v16 }
0x478c   :  { %v5421_v24 = vsel %vm612_vm4, %v5420_v18, 0.0  ;;  %vm946_vm4 = vcmask 785408  }
0x478d   :  { %5422 = vadd.xlane.f32.xlu0 %v5421_v24 }
0x47a3   :  { %907 = vrot.lane.b32.xlu0 %v7269_v25, %s7525_s6 }
0x47a7   :  { %2959 = vrot.lane.b32.xlu0 %v7270_v56, %s7525_s6  ;;  %v7272_v56 = vld [vmem:[#allocation2 + $0x2] sm:$0x3] }
0x47ab   :  { %4327 = vrot.lane.b32.xlu0 %v7271_v34, %s7525_s6 }
0x47af   :  { %5695 = vrot.lane.b32.xlu0 %v8514_v52, %s7525_s6 }
0x47da   :  { %v5519_v61 = vpop.xlane.xlu1 %5518 }
0x47db   :  { %v5520_v45 = vmul.f32 0.015625, %v5519_v61 }
0x47dd   :  { %v5521_v35 = vadd.f32 0.001, %v5520_v45 }
0x47df   :  { %7207 = vrsqrt.f32 %v5521_v35 }
0x47e0   :  { %7209 = vpow2.f32 %v5817_v47 }
0x47ec   :  { %v7208_v46 = vpop.eup %7207 }
0x47ed   :  { %v5523_v11 = vmul.f32 %v7208_v46, %v5511_v49  ;;  %v7210_v10 = vpop.eup %7209  ;;  %v7273_v49 = vld [vmem:[#allocation2 + $0x4] sm:$0x3] }
0x47ee   :  { %v901_v7 = vadd.f32 1.0, %v7210_v10  ;;  %v8663_v10 = vadd.f32 %v8614_v44, %v8537_v51 }
0x47ef   :  { %v5524_v0 = vmul.f32 %v5523_v11, %v7779_v55 }
0x47f1   :  { %v5525_v27 = vadd.f32 %v5524_v0, %v7781_v57  ;;  %v7274_v57 = vld [vmem:[#allocation2 + $0x8] sm:$0x3] }
0x47f3   :  { %v5527_v32 = vmul.f32 1.442695, %v5525_v27  ;;  %vm5526_vm0 = vcmp.gt.f32.partialorder %v5525_v27, 0.0 }
0x47f5   :  { %7211 = vpow2.f32 %v5527_v32  ;;  %v8657_v32 = vadd.f32 %v8614_v44, %v8391_v30 }
0x47f6   :  { %7213 = vrcp.f32 %v901_v7 }
0x4802   :  { %v7212_v18 = vpop.eup %7211 }
0x4803   :  { %v6051_v24 = vadd.f32 -1.0, %v7212_v18  ;;  %v7214_v55 = vpop.eup %7213 }
0x4804   :  { %v904_v34 = vmul.f32 2.0, %v7214_v55 }
0x4805   :  { %v5530_v25 = vsel %vm5526_vm0, %v5525_v27, %v6051_v24  ;;  %v8652_v27 = vadd.f32 %v8614_v44, %v8290_v19  ;;  %v6027_v19 = vmul.f32 -1.442695, %v8663_v10 }
0x4806   :  { %v5607_v1 = vpack.c.bf16 %v5530_v25, %v5530_v25  ;;  %v905_v62 = vadd.f32 0.1, %v904_v34 }
0x4808   :  { %5617 = vrot.lane.b32.xlu1 %v5607_v1, %s7512_s28 }
0x480c   :  { %1591 = vrot.lane.b32.xlu1 %v7272_v56, %s7525_s6 }
0x4810   :  { %2275 = vrot.lane.b32.xlu1 %v7273_v49, %s7525_s6 }
0x4814   :  { %3643 = vrot.lane.b32.xlu1 %v7274_v57, %s7525_s6 }
0x4816   :  { %v5423_v26 = vpop.xlane.xlu0 %5422 }
0x4817   :  { %v5424_v36 = vmul.f32 0.015625, %v5423_v26 }
0x4818   :  { %5011 = vrot.lane.b32.xlu1 %v8373_v58, %s7525_s6 }
0x4819   :  { %v5425_v33 = vadd.f32 0.001, %v5424_v36 }
0x481a   :  { %v908_v2 = vpop.permute.xlu0 %907 }
0x481b   :  { %7215 = vrsqrt.f32 %v5425_v33  ;;  %v910_v48 = vmul.f32 %v908_v2, %v905_v62 }
0x481c   :  { %5712 = vrot.lane.b32.xlu1 %v8514_v52, %s7512_s28  ;;  %v8638_v52 = vadd.f32 %v8614_v44, %v7942_v8 }
0x481d   :  { %912 = vrot.lane.b32.xlu0 %v910_v48, %s7525_s6 }
0x4828   :  { %v7216_v9 = vpop.eup %7215 }
0x4829   :  { %v5427_v50 = vmul.f32 %v7216_v9, %v8595_v16  ;;  %v8642_v16 = vadd.f32 %v8614_v44, %v8043_v15  ;;  %v5957_v15 = vmul.f32 -1.442695, %v8652_v27 }
0x482b   :  { %v5428_v61 = vmul.f32 %v8502_v4, %v5427_v50  ;;  %v5852_v4 = vmul.f32 -1.442695, %v8638_v52  ;;  %v5887_v0 = vmul.f32 -1.442695, %v8642_v16 }
0x482d   :  { %v5429_v45 = vadd.f32 %v8508_v12, %v5428_v61  ;;  %v8647_v12 = vadd.f32 %v8614_v44, %v8189_v59  ;;  %v5992_v59 = vmul.f32 -1.442695, %v8657_v32 }
0x482f   :  { %v5431_v35 = vmul.f32 1.442695, %v5429_v45  ;;  %vm5430_vm1 = vcmp.gt.f32.partialorder %v5429_v45, 0.0  ;;  %v5922_v8 = vmul.f32 -1.442695, %v8647_v12 }
0x4831   :  { %7217 = vpow2.f32 %v5431_v35  ;;  %v2960_v35 = vpop.permute.xlu0 %2959 }
0x4832   :  { %7219 = vpow2.f32 %v5852_v4 }
0x4833   :  { %7221 = vpow2.f32 %v5887_v0 }
0x4834   :  { %7223 = vpow2.f32 %v5922_v8 }
0x4835   :  { %7225 = vpow2.f32 %v5957_v15 }
0x4836   :  { %7227 = vpow2.f32 %v5992_v59 }
0x4837   :  { %7229 = vpow2.f32 %v6027_v19 }
0x483e   :  { %v7218_v58 = vpop.eup %7217 }
0x483f   :  { %v6047_v46 = vadd.f32 -1.0, %v7218_v58  ;;  %v7220_v7 = vpop.eup %7219 }
0x4840   :  { %v7222_v18 = vpop.eup %7221  ;;  %v1585_v24 = vadd.f32 1.0, %v7220_v7  ;;  %v4328_v7 = vpop.permute.xlu0 %4327 }
0x4841   :  { %v5434_v47 = vsel %vm5430_vm1, %v5429_v45, %v6047_v46  ;;  %v7224_v30 = vpop.eup %7223  ;;  %v2269_v25 = vadd.f32 1.0, %v7222_v18 }
0x4842   :  { %v5531_v11 = vpack.c.bf16 %v5434_v47, %v5434_v47  ;;  %v7226_v1 = vpop.eup %7225  ;;  %v2953_v56 = vadd.f32 1.0, %v7224_v30  ;;  %7231 = vrcp.f32 %v1585_v24 }
0x4843   :  { %v7228_v49 = vpop.eup %7227  ;;  %7233 = vrcp.f32 %v2269_v25  ;;  %v3637_v55 = vadd.f32 1.0, %v7226_v1 }
0x4844   :  { %6850 = vmatmul.mubr.msk.bf16.vlgmr.msra.gmra.mxu0 %vm775_vm6, %v5531_v11  ;;  %7235 = vrcp.f32 %v2953_v56  ;;  %v4321_v57 = vadd.f32 1.0, %v7228_v49  ;;  %v7230_v51 = vpop.eup %7229 }
0x4845   :  { %7237 = vrcp.f32 %v3637_v55  ;;  %v5005_v34 = vadd.f32 1.0, %v7230_v51 }
0x4846   :  { %7239 = vrcp.f32 %v4321_v57 }
0x4847   :  { %7241 = vrcp.f32 %v5005_v34 }
0x484f   :  { %v7232_v26 = vpop.eup %7231 }
0x4850   :  { %v7234_v36 = vpop.eup %7233  ;;  %v1588_v33 = vmul.f32 2.0, %v7232_v26 }
0x4851   :  { %v7236_v62 = vpop.eup %7235  ;;  %v2272_v61 = vmul.f32 2.0, %v7234_v36 }
0x4852   :  { %v7238_v48 = vpop.eup %7237  ;;  %v2956_v9 = vmul.f32 2.0, %v7236_v62  ;;  %v1589_v50 = vadd.f32 0.1, %v1588_v33 }
0x4853   :  { %v7240_v45 = vpop.eup %7239  ;;  %v2273_v4 = vadd.f32 0.1, %v2272_v61  ;;  %v3640_v0 = vmul.f32 2.0, %v7238_v48 }
0x4854   :  { %v2957_v47 = vadd.f32 0.1, %v2956_v9  ;;  %v4324_v11 = vmul.f32 2.0, %v7240_v45  ;;  %v7242_v8 = vpop.eup %7241 }
0x4855   :  { %v3641_v24 = vadd.f32 0.1, %v3640_v0  ;;  %v5008_v30 = vmul.f32 2.0, %v7242_v8 }
0x4856   :  { %v2962_v59 = vmul.f32 %v2960_v35, %v2957_v47  ;;  %v4325_v18 = vadd.f32 0.1, %v4324_v11 }
0x4857   :  { %v5009_v49 = vadd.f32 0.1, %v5008_v30 }
0x4858   :  { %v4330_v1 = vmul.f32 %v4328_v7, %v4325_v18 }
0x487a   :  { %v5618_v2 = vpop.permute.xlu1 %5617 }
0x487b   :  { %6862 = vmatmul.mubr.msk.bf16.vlgmr.msra.gmra.mxu1 %vm775_vm6, %v5618_v2 }
0x487e   :  { %v1592_v58 = vpop.permute.xlu1 %1591 }
0x487f   :  { %v1594_v46 = vmul.f32 %v1592_v58, %v1589_v50  ;;  %v5696_v50 = vpop.permute.xlu0 %5695 }
0x4881   :  { %1596 = vrot.lane.b32.xlu1 %v1594_v46, %s7525_s6 }
0x4882   :  { %v2276_v15 = vpop.permute.xlu1 %2275 }
0x4883   :  { %v2278_v19 = vmul.f32 %v2276_v15, %v2273_v4 }
0x4885   :  { %2280 = vrot.lane.b32.xlu0 %v2278_v19, %s7525_s6  ;;  %2964 = vrot.lane.b32.xlu1 %v2962_v59, %s7525_s6 }
0x4886   :  { %v3644_v25 = vpop.permute.xlu1 %3643 }
0x4887   :  { %v3646_v56 = vmul.f32 %v3644_v25, %v3641_v24 }
0x4889   :  { %3648 = vrot.lane.b32.xlu0 %v3646_v56, %s7525_s6  ;;  %4332 = vrot.lane.b32.xlu1 %v4330_v1, %s7525_s6 }
0x488a   :  { %v5012_v55 = vpop.permute.xlu1 %5011 }
0x488b   :  { %v5014_v57 = vmul.f32 %v5012_v55, %v5009_v49 }
0x488d   :  { %5016 = vrot.lane.b32.xlu0 %v5014_v57, %s7525_s6 }
0x488e   :  { %v5713_v15 = vpop.permute.xlu1 %5712 }
0x488f   :  { %v913_v58 = vpop.permute.xlu0 %912 }
0x48f7   :  { %v2281_v59 = vpop.permute.xlu0 %2280 }
0x48fb   :  { %v3649_v7 = vpop.permute.xlu0 %3648 }
0x48fc   :  { %v3651_v18 = vadd.f32 %v3649_v7, %v8652_v27 }
0x48ff   :  { %v5017_v30 = vpop.permute.xlu0 %5016 }
0x4900   :  { %v5019_v25 = vadd.f32 %v5017_v30, %v8663_v10 }
0x4904   :  { %v5601_v51 = vpop.f32.mrf.mxu0 }
0x4905   :  { %v8674_v34 = vadd.f32 %v8614_v44, %v5601_v51  ;;  %v915_v44 = vadd.f32 %v913_v58, %v8618_v23 }
0x4906   :  { %v6851_v26 = vpop.f32.mrf.mxu0 }
0x4907   :  { %v6062_v36 = vmul.f32 -1.442695, %v8674_v34 }
0x4908   :  { %v5604_v33 = vpop.f32.mrf.mxu0 }
0x4909   :  { %7243 = vpow2.f32 %v6062_v36 }
0x490a   :  { %v6852_v62 = vpop.f32.mrf.mxu0 }
0x4916   :  { %v7244_v2 = vpop.eup %7243 }
0x4917   :  { %v5689_v48 = vadd.f32 1.0, %v7244_v2 }
0x4919   :  { %7245 = vrcp.f32 %v5689_v48 }
0x4926   :  { %v7246_v9 = vpop.eup %7245 }
0x4927   :  { %v5692_v61 = vmul.f32 2.0, %v7246_v9 }
0x4929   :  { %v5693_v45 = vadd.f32 0.1, %v5692_v61 }
0x492b   :  { %v5698_v35 = vmul.f32 %v5696_v50, %v5693_v45 }
0x492d   :  { %5700 = vrot.lane.b32.xlu1 %v5698_v35, %s7525_s6 }
0x4931   :  { %934 = vrot.lane.b32.xlu1 %v915_v44, %s7512_s28 }
0x4935   :  { %942 = vrot.lane.b32.xlu1 %v7744_v17, %s7512_s28 }
0x4939   :  { %1622 = vrot.lane.b32.xlu1 %v7946_v21, %s7512_s28 }
0x493b   :  { %v5680_v46 = vpop.f32.mrf.mxu1 }
0x493c   :  { %v8685_v47 = vadd.f32 %v8530_v31, %v5680_v46 }
0x493d   :  { %v6863_v11 = vpop.f32.mrf.mxu1  ;;  %2306 = vrot.lane.b32.xlu1 %v8047_v28, %s7512_s28 }
0x493e   :  { %v6063_v4 = vmul.f32 -1.442695, %v8685_v47 }
0x493f   :  { %v5683_v0 = vpop.f32.mrf.mxu1 }
0x4940   :  { %7247 = vpow2.f32 %v6063_v4 }
0x4941   :  { %v6864_v8 = vpop.f32.mrf.mxu1  ;;  %2990 = vrot.lane.b32.xlu1 %v8193_v42, %s7512_s28 }
0x4945   :  { %3674 = vrot.lane.b32.xlu1 %v8294_v43, %s7512_s28 }
0x4949   :  { %4358 = vrot.lane.b32.xlu1 %v8395_v14, %s7512_s28  ;;  %v1597_v14 = vpop.permute.xlu1 %1596 }
0x494d   :  { %v7248_v17 = vpop.eup %7247  ;;  %5042 = vrot.lane.b32.xlu1 %v8541_v38, %s7512_s28  ;;  %v1599_v38 = vadd.f32 %v1597_v14, %v8638_v52  ;;  %v2965_v19 = vpop.permute.xlu1 %2964 }
0x494e   :  { %v5707_v21 = vadd.f32 1.0, %v7248_v17 }
0x4950   :  { %7249 = vrcp.f32 %v5707_v21 }
0x4951   :  { %2310 = vrot.lane.b32.xlu1 %v7981_v39, %s7512_s28  ;;  %v2283_v39 = vadd.f32 %v2281_v59, %v8642_v16  ;;  %v4333_v24 = vpop.permute.xlu1 %4332 }
0x4955   :  { %3678 = vrot.lane.b32.xlu1 %v8228_v63, %s7512_s28  ;;  %v2967_v63 = vadd.f32 %v2965_v19, %v8647_v12 }
0x495d   :  { %v7250_v28 = vpop.eup %7249 }
0x495e   :  { %v5710_v42 = vmul.f32 2.0, %v7250_v28 }
0x4960   :  { %v5711_v31 = vadd.f32 0.1, %v5710_v42 }
0x4962   :  { %v5715_v43 = vmul.f32 %v5713_v15, %v5711_v31 }
0x4964   :  { %5717 = vrot.lane.b32.xlu0 %v5715_v43, %s7525_s6  ;;  %s5755_s6 = sshll.u32 %s7526_s14, 4  ;;  %s5756_s6 = int_to_ptr.vmem [resolvable:$true] %s5755_s6 }
0x4965   :  { %s7475_s5 = scalar_lea.vmem %s5756_s6, 512  ;;  %p7480_p9 = scmp.lt.s32.totalorder %s5756_s6, %s5756_s6 }
0x4966   :  { %p7476_p8 = scmp.ne.s32.totalorder %s5756_s6, %s7475_s5  ;;  %p7481_p10 = scmp.lt.s32.totalorder %s7475_s5, %s7475_s5 }
0x4968   :  { %938 = vrot.lane.b32.xlu0 %v7843_v60, %s7512_s28  ;;  %v4335_v60 = vadd.f32 %v4333_v24, %v8657_v32  ;;  %p7482_p11 = por %p7481_p10, %p7480_p9 }
0x496a   :  { %p7483_p12 = pnand %p7482_p11, %p7476_p8 }
0x496c   :  { %1618 = vrot.lane.b32.xlu0 %v1599_v38, %s7512_s28 }
0x4970   :  { %2302 = vrot.lane.b32.xlu0 %v2283_v39, %s7512_s28 }
0x4974   :  { %2986 = vrot.lane.b32.xlu0 %v2967_v63, %s7512_s28 }
0x4978   :  { %3670 = vrot.lane.b32.xlu0 %v3651_v18, %s7512_s28 }
0x497c   :  { %4354 = vrot.lane.b32.xlu0 %v4335_v60, %s7512_s28 }
0x4980   :  { %5038 = vrot.lane.b32.xlu0 %v5019_v25, %s7512_s28 }
0x499f   :  { %v5701_v1 = vpop.permute.xlu1 %5700 }
0x49a0   :  { %v5703_v56 = vadd.f32 %v5701_v1, %v8674_v34 }
0x49a2   :  { %5722 = vrot.lane.b32.xlu0 %v5703_v56, %s7512_s28 }
0x49a3   :  { %v935_v49 = vpop.permute.xlu1 %934 }
0x49a6   :  { %1626 = vrot.lane.b32.xlu0 %v7883_v22, %s7512_s28  ;;  %v945_v22 = vsel %vm775_vm6, %v8618_v23, %v935_v49 }
0x49a7   :  { %v943_v55 = vpop.permute.xlu1 %942  ;;  %v947_v48 = vsel %vm946_vm4, %v945_v22, 0.0 }
0x49aa   :  { %2994 = vrot.lane.b32.xlu0 %v8107_v54, %s7512_s28 }
0x49ab   :  { %v1623_v57 = vpop.permute.xlu1 %1622 }
0x49ac   :  { %v1631_v15 = vsel %vm775_vm6, %v7938_v53, %v1623_v57 }
0x49ae   :  { %4362 = vrot.lane.b32.xlu0 %v8329_v29, %s7512_s28 }
0x49af   :  { %v2307_v51 = vpop.permute.xlu1 %2306 }
0x49b0   :  { %v2315_v23 = vsel %vm775_vm6, %v8039_v6, %v2307_v51 }
0x49b2   :  { %5730 = vrot.lane.b32.xlu0 %v8576_v5, %s7512_s28 }
0x49b3   :  { %v2991_v26 = vpop.permute.xlu1 %2990 }
0x49b4   :  { %v2999_v59 = vsel %vm775_vm6, %v8185_v41, %v2991_v26 }
0x49b7   :  { %v3675_v36 = vpop.permute.xlu1 %3674 }
0x49bb   :  { %v4359_v33 = vpop.permute.xlu1 %4358 }
0x49bc   :  { %v4367_v7 = vsel %vm775_vm6, %v8387_v40, %v4359_v33 }
0x49bf   :  { %v5043_v29 = vpop.permute.xlu1 %5042 }
0x49c3   :  { %v2311_v45 = vpop.permute.xlu1 %2310 }
0x49c7   :  { %v3679_v4 = vpop.permute.xlu1 %3678 }
0x49d6   :  { %v5718_v62 = vpop.permute.xlu0 %5717 }
0x49d7   :  { %v5720_v2 = vadd.f32 %v5718_v62, %v8685_v47 }
0x49d9   :  { %5726 = vrot.lane.b32.xlu1 %v5720_v2, %s7512_s28 }
0x49da   :  { %v939_v54 = vpop.permute.xlu0 %938 }
0x49db   :  { %v948_v5 = vsel %vm775_vm6, %v7810_v20, %v939_v54  ;;  %v2316_v20 = vsel %vm946_vm4, %v2315_v23, %v2311_v45 }
0x49dc   :  { %v949_v9 = vsel %vm946_vm4, %v948_v5, %v943_v55  ;;  %v5051_v55 = vsel %vm775_vm6, %v8533_v3, %v5043_v29 }
0x49dd   :  { %v952_v50 = vcombine.low %v947_v48, %v949_v9  ;;  %5046 = vrot.lane.b32.xlu1 %v8455_v13, %s7512_s28  ;;  %v3683_v13 = vsel %vm775_vm6, %v8286_v37, %v3675_v36 }
0x49de   :  { %v1619_v61 = vpop.permute.xlu0 %1618  ;;  %v3684_v6 = vsel %vm946_vm4, %v3683_v13, %v3679_v4 }
0x49df   :  { %5819 = vst.sshfl [vmem:[#allocation19] sm:$0x33 pattern:$0x76325410] %v952_v50  ;;  %v1629_v31 = vsel %vm775_vm6, %v8638_v52, %v1619_v61 }
0x49e0   :  { %v1630_v37 = vsel %vm946_vm4, %v1629_v31, 0.0 }
0x49e2   :  { %v2303_v35 = vpop.permute.xlu0 %2302 }
0x49e3   :  { %v2313_v58 = vsel %vm775_vm6, %v8642_v16, %v2303_v35 }
0x49e4   :  { %v2314_v44 = vsel %vm946_vm4, %v2313_v58, 0.0 }
0x49e5   :  { %v2319_v46 = vcombine.low %v2314_v44, %v2316_v20 }
0x49e6   :  { %v2987_v11 = vpop.permute.xlu0 %2986 }
0x49e7   :  { %5889 = vst.sshfl [vmem:[#allocation19 + $0x8] sm:$0x33 pattern:$0x76325410] %v2319_v46  ;;  %v2997_v14 = vsel %vm775_vm6, %v8647_v12, %v2987_v11 }
0x49e8   :  { %v2998_v19 = vsel %vm946_vm4, %v2997_v14, 0.0 }
0x49ea   :  { %v3671_v0 = vpop.permute.xlu0 %3670 }
0x49eb   :  { %v3681_v8 = vsel %vm775_vm6, %v8652_v27, %v3671_v0 }
0x49ec   :  { %v3682_v17 = vsel %vm946_vm4, %v3681_v8, 0.0 }
0x49ed   :  { %v3687_v16 = vcombine.low %v3682_v17, %v3684_v6 }
0x49ee   :  { %v4355_v21 = vpop.permute.xlu0 %4354 }
0x49ef   :  { %5959 = vst.sshfl [vmem:[#allocation19 + $0x10] sm:$0x33 pattern:$0x76325410] %v3687_v16  ;;  %v4365_v53 = vsel %vm775_vm6, %v8657_v32, %v4355_v21 }
0x49f0   :  { %v4366_v12 = vsel %vm946_vm4, %v4365_v53, 0.0 }
0x49f2   :  { %v5039_v28 = vpop.permute.xlu0 %5038 }
0x49f3   :  { %v5049_v1 = vsel %vm775_vm6, %v8663_v10, %v5039_v28 }
0x4a14   :  { %v5723_v42 = vpop.permute.xlu0 %5722 }
0x4a15   :  { %v5733_v60 = vsel %vm775_vm6, %v8674_v34, %v5723_v42  ;;  %v5050_v34 = vsel %vm946_vm4, %v5049_v1, 0.0 }
0x4a16   :  { %v5734_v40 = vsel %vm946_vm4, %v5733_v60, 0.0 }
0x4a18   :  { %v1627_v43 = vpop.permute.xlu0 %1626 }
0x4a19   :  { %v1632_v27 = vsel %vm946_vm4, %v1631_v15, %v1627_v43 }
0x4a1a   :  { %v1635_v38 = vcombine.low %v1630_v37, %v1632_v27 }
0x4a1c   :  { %5854 = vst.sshfl [vmem:[#allocation19 + $0x4] sm:$0x33 pattern:$0x76325410] %v1635_v38  ;;  %v2995_v39 = vpop.permute.xlu0 %2994 }
0x4a1d   :  { %v3000_v52 = vsel %vm946_vm4, %v2999_v59, %v2995_v39 }
0x4a1e   :  { %v3003_v63 = vcombine.low %v2998_v19, %v3000_v52 }
0x4a20   :  { %5924 = vst.sshfl [vmem:[#allocation19 + $0xc] sm:$0x33 pattern:$0x76325410] %v3003_v63  ;;  %v4363_v18 = vpop.permute.xlu0 %4362 }
0x4a21   :  { %v4368_v24 = vsel %vm946_vm4, %v4367_v7, %v4363_v18 }
0x4a22   :  { %v4371_v41 = vcombine.low %v4366_v12, %v4368_v24 }
0x4a24   :  { %5994 = vst.sshfl [vmem:[#allocation19 + $0x14] sm:$0x33 pattern:$0x76325410] %v4371_v41  ;;  %v5731_v25 = vpop.permute.xlu0 %5730 }
0x4a4b   :  { %v5727_v30 = vpop.permute.xlu1 %5726 }
0x4a4c   :  { %v5735_v32 = vsel %vm775_vm6, %v8685_v47, %v5727_v30 }
0x4a4d   :  { %v5736_v56 = vsel %vm946_vm4, %v5735_v32, %v5731_v25 }
0x4a4e   :  { %v5739_v49 = vcombine.low %v5734_v40, %v5736_v56 }
0x4a4f   :  { %v5047_v57 = vpop.permute.xlu1 %5046 }
0x4a50   :  { %6064 = vst.sshfl [vmem:[#allocation19 + $0x1c] sm:$0x33 pattern:$0x76325410] %v5739_v49  ;;  %v5052_v51 = vsel %vm946_vm4, %v5051_v55, %v5047_v57 }
0x4a51   :  { %v5055_v47 = vcombine.low %v5050_v34, %v5052_v51 }
0x4a53   :  { %6029 = vst.sshfl [vmem:[#allocation19 + $0x18] sm:$0x33 pattern:$0x76325410] %v5055_v47 }
0x4a54   :  { %7486 = shalt.err (!%p7483_p12)
}
0x4a55   :  { %5761 = dma.vmem_to_hbm [thread:$0]  %s5756_s6, 512, %s8800_s15, [#allocation4], %s7512_s28, %s7512_s28, %s7513_s29  }
0x4a56   :  { %7507 = dma.done.wait [#allocation4], 512  }
0x4a57   :  { %7508 = vsyncadd [#allocation4], 4294966784 }
0x4a58   :  { %5765 = vsyncpa [#allocation3], 1 }
0x4a59   :  { %5766 = vsyncpa [#allocation6], 1 }
0x4a5a   :  { %5767 = vsyncpa [#allocation9], 1 }
0x4a5b   :  { %5768 = vsyncpa [#allocation12], 1 }
0x4a5c   :  { %5769 = vsyncpa [#allocation15], 1 }
0x4a5d   :  { %5770 = vsyncpa [#allocation18], 1 }
0x4a5e   :  { %5771 = vsyncpa [#allocation4], 1 }

</bundles_post_ra>
